<compile_context>
chip_gen: v6e
topology: v6e:2x2x1
jax: 0.10.0
libtpu: 0.0.40
codegen_flags: <defaults>
</compile_context>

<pallas_src>
import jax
import jax.numpy as jnp
from jax.experimental import pallas as pl
from jax.experimental.pallas import tpu as pltpu

IN_FEATURES = 200 * 200   # 40000
HIDDEN = 500
OUT_FEATURES = 3

# Static tiling config.
TK = 8192                                  # K tile of the streamed W1
H_PAD = 512                                # HIDDEN padded to a multiple of 128
OUT_PAD = 128                              # OUT padded to one full lane group
K_PAD = pl.cdiv(IN_FEATURES, TK) * TK      # 40960
NUM_K = K_PAD // TK                        # 5
MAX_TB = 256                               # batch-tile cap (VMEM safety for big B)


def _tensorcores_per_device() -> int:
    """Best-effort: 2 on chips whose JAX device spans two TensorCores."""
    try:
        kind = jax.devices()[0].device_kind.lower()
    except Exception:
        return 1
    for tag in ("v7", "7x", "v5p", "v4"):
        if tag in kind:
            return 2
    return 1


def _batch_tiling(b: int) -> tuple[int, int]:
    """Returns (B_pad, TB) with TB | B_pad, TB % 8 == 0 and TB <= MAX_TB."""
    if b <= MAX_TB:
        bp = ((b + 7) // 8) * 8
        return bp, bp
    bp = ((b + MAX_TB - 1) // MAX_TB) * MAX_TB
    return bp, MAX_TB


def _fused_kernel(x_ref, w1_ref, b1_ref, w2_ref, out_ref, acc_ref):
    """Grid (b, slab, k): partial logits for one (batch-tile, hidden-slab).

    Axis k ("arbitrary") is the 40960-wide reduction of the first matmul with
    a VMEM f32 accumulator.  On the last k step the slab's hidden activations
    are finished (bias + sigmoid) and immediately contracted with that slab's
    rows of W2, producing per-slab partial logits (OUT padded to 128 lanes).
    """
    k = pl.program_id(2)

    @pl.when(k == 0)
    def _init():
        acc_ref[...] = jnp.zeros_like(acc_ref)

    # bf16 x bf16 on the MXU, f32 accumulation.
    acc_ref[...] += jnp.dot(x_ref[...], w1_ref[0],
                            preferred_element_type=jnp.float32)

    @pl.when(k == pl.num_programs(2) - 1)
    def _finalize():
        h = jax.nn.sigmoid(acc_ref[...] + b1_ref[...])           # (TB, TH) f32
        # Second layer fused here: W2 is ~256 KB/slab, so this matmul is free.
        out_ref[0] = jnp.dot(h, w2_ref[0],
                             preferred_element_type=jnp.float32)  # (TB, OUT_PAD)


@jax.jit
def classifier_forward(x, w1_p, b1_p, w2_p, b2_p):
    """Forward pass. Parameters must already be laid out via `prepare_params`."""
    num_slabs, k_pad, th = w1_p.shape
    assert k_pad == K_PAD and th * num_slabs == H_PAD, w1_p.shape

    B, K = x.shape
    assert K == IN_FEATURES, x.shape
    B_pad, TB = _batch_tiling(B)
    num_b = B_pad // TB

    # Per-call work on x only (a few MB): cast to bf16, pad batch and K.
    x_p = jnp.pad(x.astype(jnp.bfloat16), ((0, B_pad - B), (0, K_PAD - K)))

    partial = pl.pallas_call(
        _fused_kernel,
        out_shape=jax.ShapeDtypeStruct((num_slabs, B_pad, OUT_PAD), jnp.float32),
        grid_spec=pltpu.PrefetchScalarGridSpec(
            num_scalar_prefetch=0,
            grid=(num_b, num_slabs, NUM_K),
            in_specs=[
                # x: streamed K tile (bf16), re-fetched per slab (tiny vs W1).
                pl.BlockSpec((TB, TK), lambda b, h, k: (b, k)),
                # W1: the dominant HBM stream; contiguous per-slab tiles.
                # (pipeline_mode=pl.Buffered(3) is a further small option on v7x.)
                pl.BlockSpec((1, TK, th), lambda b, h, k: (h, k, 0)),
                # b1 slab.
                pl.BlockSpec((1, th), lambda b, h, k: (0, h)),
                # W2 slab (rows matching this hidden slab), OUT padded to 128.
                pl.BlockSpec((1, th, OUT_PAD), lambda b, h, k: (h, 0, 0)),
            ],
            out_specs=pl.BlockSpec((1, TB, OUT_PAD), lambda b, h, k: (h, b, 0)),
            scratch_shapes=[pltpu.VMEM((TB, th), jnp.float32)],
        ),
        compiler_params=pltpu.CompilerParams(
            dimension_semantics=("parallel", "parallel", "arbitrary"),
            vmem_limit_bytes=48 << 20,   # fits v7x's 64 MiB/TC with headroom
        ),
    )(x_p, w1_p, b1_p, w2_p)

    # Cross-slab sum of partial logits + bias + final sigmoid (tiny epilogue).
    logits = jnp.sum(partial, axis=0)[:B, :OUT_FEATURES] + b2_p
    return jax.nn.sigmoid(logits)


def prepare_params(w1, b1, w2, b2, *, num_slabs=None, weight_dtype=jnp.bfloat16):
    """One-time (load-time) padding / layout / quantization of the parameters.

    * W1 -> weight_dtype (bf16 default): the kernel is HBM-bound on W1, so
      halving its bytes is ~2x end-to-end.  Use jnp.float32 for bit-exactness.
    * W1 reshaped to (num_slabs, K_PAD, TH) so each streamed tile is one
      contiguous HBM region (num_slabs=2 only on 2-TensorCore devices).
    * W2 padded rows / columns are zero, so the padded hidden lanes
      (sigmoid(0) = 0.5) and padded output lanes never affect the logits.
    """
    if num_slabs is None:
        num_slabs = _tensorcores_per_device()
    assert H_PAD % num_slabs == 0
    th = H_PAD // num_slabs

    assert w1.shape == (IN_FEATURES, HIDDEN), w1.shape
    assert w2.shape == (HIDDEN, OUT_FEATURES), w2.shape

    w1_p = jnp.pad(w1.astype(weight_dtype),
                   ((0, K_PAD - IN_FEATURES), (0, H_PAD - HIDDEN)))
    w1_p = w1_p.reshape(K_PAD, num_slabs, th).transpose(1, 0, 2)  # contiguous slabs

    b1_p = jnp.pad(jnp.reshape(b1, (1, HIDDEN)).astype(jnp.float32),
                   ((0, 0), (0, H_PAD - HIDDEN)))

    w2_p = jnp.pad(w2.astype(jnp.float32),
                   ((0, H_PAD - HIDDEN), (0, OUT_PAD - OUT_FEATURES)))
    w2_p = w2_p.reshape(num_slabs, th, OUT_PAD)

    b2_p = jnp.reshape(b2, (1, OUT_FEATURES)).astype(jnp.float32)
    return w1_p, b1_p, w2_p, b2_p


def init_params(key):
    """Deterministic init mimicking PyTorch nn.Linear default U[-1/sqrt(fan_in), +]."""
    k1, k2, k3, k4 = jax.random.split(key, 4)
    bound1 = 1.0 / jnp.sqrt(jnp.float32(IN_FEATURES))
    bound2 = 1.0 / jnp.sqrt(jnp.float32(HIDDEN))
    w1 = jax.random.uniform(k1, (IN_FEATURES, HIDDEN), jnp.float32, -bound1, bound1)
    b1 = jax.random.uniform(k2, (1, HIDDEN), jnp.float32, -bound1, bound1)
    w2 = jax.random.uniform(k3, (HIDDEN, OUT_FEATURES), jnp.float32, -bound2, bound2)
    b2 = jax.random.uniform(k4, (1, OUT_FEATURES), jnp.float32, -bound2, bound2)
    return w1, b1, w2, b2


def reference_forward(x, w1, b1, w2, b2):
    h = jax.nn.sigmoid(
        jnp.dot(x, w1, precision=jax.lax.Precision.HIGHEST) + b1)
    return jax.nn.sigmoid(
        jnp.dot(h, w2, precision=jax.lax.Precision.HIGHEST) + b2)


if __name__ == "__main__":
    key = jax.random.PRNGKey(0)
    kx, kp = jax.random.split(key)

    B = 8  # small batch; feature dim is fixed at 200*200 by the module
    x = jax.random.uniform(kx, (B, IN_FEATURES), jnp.float32)
    w1, b1, w2, b2 = init_params(kp)
    w1_p, b1_p, w2_p, b2_p = prepare_params(w1, b1, w2, b2)

    out = classifier_forward(x, w1_p, b1_p, w2_p, b2_p)
    out = jax.block_until_ready(out)
    assert out.shape == (B, OUT_FEATURES), out.shape

    # Reference A: same quantization as the kernel (bf16 x / W1, f32 math).
    xq = x.astype(jnp.bfloat16).astype(jnp.float32)
    w1q = w1.astype(jnp.bfloat16).astype(jnp.float32)
    ref_q = reference_forward(xq, w1q, b1, w2, b2)
    # Reference B: pure f32 PyTorch-equivalent (bf16 W1 costs ~1e-4..1e-3 abs).
    ref_f32 = reference_forward(x, w1, b1, w2, b2)

    err_q = float(jnp.max(jnp.abs(out - ref_q)))
    err_f = float(jnp.max(jnp.abs(out - ref_f32)))
    assert err_q < 2e-3, f"quantization-matched error too large: {err_q}"
    assert err_f < 5e-3, f"f32-reference error too large: {err_f}"
    print("KERNEL_OK")
</pallas_src>

<mosaic_0001>
module attributes {stable_mosaic.version = 11 : i64} {
  func.func @_fused_kernel(%arg0: i32, %arg1: i32, %arg2: i32, %arg3: memref<8x8192xbf16, #tpu.memory_space<vmem>>, %arg4: memref<1x8192x512xbf16, #tpu.memory_space<vmem>>, %arg5: memref<1x512xf32, #tpu.memory_space<vmem>>, %arg6: memref<1x512x128xf32, #tpu.memory_space<vmem>>, %arg7: memref<1x8x128xf32, #tpu.memory_space<vmem>>, %arg8: memref<8x512xf32, #tpu.memory_space<vmem>>) attributes {dimension_semantics = [#tpu.dimension_semantics<parallel>, #tpu.dimension_semantics<parallel>, #tpu.dimension_semantics<arbitrary>], iteration_bounds = array<i64: 1, 1, 5>, scalar_prefetch = 0 : i64, scratch_operands = 1 : i64, tpu.core_type = #tpu.core_type<tc>, window_params = [{transform_indices = @transform_0, window_bounds = array<i64: 8, 8192>}, {transform_indices = @transform_1, window_bounds = array<i64: 1, 8192, 512>}, {transform_indices = @transform_2, window_bounds = array<i64: 1, 512>}, {transform_indices = @transform_3, window_bounds = array<i64: 1, 512, 128>}, {transform_indices = @transform_4, window_bounds = array<i64: 1, 8, 128>}]} {
    %c0_i32 = arith.constant 0 : i32
    %0 = arith.cmpi eq, %arg2, %c0_i32 : i32
    %1 = arith.extui %0 : i1 to i32
    %c0_i32_0 = arith.constant 0 : i32
    %2 = arith.cmpi ne, %1, %c0_i32_0 : i32
    scf.if %2 {
      %cst_10 = arith.constant 0.000000e+00 : f32
      %13 = vector.broadcast %cst_10 : f32 to vector<8x512xf32>
      %c0_11 = arith.constant 0 : index
      %c0_12 = arith.constant 0 : index
      %14 = vector.load %arg8[%c0_11, %c0_12] : memref<8x512xf32, #tpu.memory_space<vmem>>, vector<8x512xf32>
      tpu.vector_store %arg8[%c0_11, %c0_12], %13 {strides = array<i32>} : memref<8x512xf32, #tpu.memory_space<vmem>>, vector<8x512xf32>,
    } else {
    }
    %c0 = arith.constant 0 : index
    %c0_1 = arith.constant 0 : index
    %3 = vector.load %arg8[%c0, %c0_1] : memref<8x512xf32, #tpu.memory_space<vmem>>, vector<8x512xf32>
    %c0_2 = arith.constant 0 : index
    %c0_3 = arith.constant 0 : index
    %4 = vector.load %arg3[%c0_2, %c0_3] : memref<8x8192xbf16, #tpu.memory_space<vmem>>, vector<8x8192xbf16>
    %c0_4 = arith.constant 0 : index
    %c0_5 = arith.constant 0 : index
    %c0_6 = arith.constant 0 : index
    %5 = vector.load %arg4[%c0_4, %c0_5, %c0_6] : memref<1x8192x512xbf16, #tpu.memory_space<vmem>>, vector<1x8192x512xbf16>
    %6 = vector.shape_cast %5 : vector<1x8192x512xbf16> to vector<8192x512xbf16>
    %cst = arith.constant dense<0.000000e+00> : vector<8x512xf32>
    %7 = tpu.matmul %4, %6, %cst {dimension_numbers = #tpu.dot_dimension_numbers<[1], [0], [0], [1], [0, 0, 1, 1], [], []>} : vector<8x8192xbf16>, vector<8192x512xbf16>, vector<8x512xf32> -> vector<8x512xf32>
    %8 = arith.addf %3, %7 : vector<8x512xf32>
    %c0_7 = arith.constant 0 : index
    %c0_8 = arith.constant 0 : index
    %9 = vector.load %arg8[%c0_7, %c0_8] : memref<8x512xf32, #tpu.memory_space<vmem>>, vector<8x512xf32>
    tpu.vector_store %arg8[%c0_7, %c0_8], %8 {strides = array<i32>} : memref<8x512xf32, #tpu.memory_space<vmem>>, vector<8x512xf32>,
    %c4_i32 = arith.constant 4 : i32
    %10 = arith.cmpi eq, %arg2, %c4_i32 : i32
    %11 = arith.extui %10 : i1 to i32
    %c0_i32_9 = arith.constant 0 : i32
    %12 = arith.cmpi ne, %11, %c0_i32_9 : i32
    scf.if %12 {
      %c0_10 = arith.constant 0 : index
      %c0_11 = arith.constant 0 : index
      %13 = vector.load %arg8[%c0_10, %c0_11] : memref<8x512xf32, #tpu.memory_space<vmem>>, vector<8x512xf32>
      %c0_12 = arith.constant 0 : index
      %c0_13 = arith.constant 0 : index
      %14 = vector.load %arg5[%c0_12, %c0_13] : memref<1x512xf32, #tpu.memory_space<vmem>>, vector<1x512xf32>
      %15 = vector.broadcast %14 : vector<1x512xf32> to vector<8x512xf32>
      %16 = arith.addf %13, %15 : vector<8x512xf32>
      %17 = arith.negf %16 : vector<8x512xf32>
      %18 = math.exp %17 : vector<8x512xf32>
      %cst_14 = arith.constant 1.000000e+00 : f32
      %19 = vector.broadcast %cst_14 : f32 to vector<8x512xf32>
      %20 = arith.addf %19, %18 : vector<8x512xf32>
      %21 = arith.divf %19, %20 : vector<8x512xf32>
      %c0_15 = arith.constant 0 : index
      %c0_16 = arith.constant 0 : index
      %c0_17 = arith.constant 0 : index
      %22 = vector.load %arg6[%c0_15, %c0_16, %c0_17] : memref<1x512x128xf32, #tpu.memory_space<vmem>>, vector<1x512x128xf32>
      %23 = vector.shape_cast %22 : vector<1x512x128xf32> to vector<512x128xf32>
      %cst_18 = arith.constant dense<0.000000e+00> : vector<8x128xf32>
      %24 = tpu.matmul %21, %23, %cst_18 {dimension_numbers = #tpu.dot_dimension_numbers<[1], [0], [0], [1], [0, 0, 1, 1], [], []>} : vector<8x512xf32>, vector<512x128xf32>, vector<8x128xf32> -> vector<8x128xf32>
      %c0_19 = arith.constant 0 : index
      %c0_20 = arith.constant 0 : index
      %c0_21 = arith.constant 0 : index
      %25 = vector.load %arg7[%c0_19, %c0_20, %c0_21] : memref<1x8x128xf32, #tpu.memory_space<vmem>>, vector<1x8x128xf32>
      %26 = vector.shape_cast %25 : vector<1x8x128xf32> to vector<8x128xf32>
      %27 = vector.shape_cast %24 : vector<8x128xf32> to vector<1x8x128xf32>
      tpu.vector_store %arg7[%c0_19, %c0_20, %c0_21], %27 {strides = array<i32>} : memref<1x8x128xf32, #tpu.memory_space<vmem>>, vector<1x8x128xf32>,
    } else {
    }
    return
  }
  func.func @transform_0(%arg0: i32, %arg1: i32, %arg2: i32) -> (i32, i32) {
    %c0_i32 = arith.constant 0 : i32
    return %arg0, %arg2 : i32, i32
  }
  func.func @transform_1(%arg0: i32, %arg1: i32, %arg2: i32) -> (i32, i32, i32) {
    %c0_i32 = arith.constant 0 : i32
    %c0_i32_0 = arith.constant 0 : i32
    return %arg1, %arg2, %c0_i32 : i32, i32, i32
  }
  func.func @transform_2(%arg0: i32, %arg1: i32, %arg2: i32) -> (i32, i32) {
    %c0_i32 = arith.constant 0 : i32
    %c0_i32_0 = arith.constant 0 : i32
    return %c0_i32, %arg1 : i32, i32
  }
  func.func @transform_3(%arg0: i32, %arg1: i32, %arg2: i32) -> (i32, i32, i32) {
    %c0_i32 = arith.constant 0 : i32
    %c0_i32_0 = arith.constant 0 : i32
    %c0_i32_1 = arith.constant 0 : i32
    return %arg1, %c0_i32, %c0_i32_0 : i32, i32, i32
  }
  func.func @transform_4(%arg0: i32, %arg1: i32, %arg2: i32) -> (i32, i32, i32) {
    %c0_i32 = arith.constant 0 : i32
    %c0_i32_0 = arith.constant 0 : i32
    return %arg1, %arg0, %c0_i32 : i32, i32, i32
  }
}

</mosaic_0001>

<bundles_post_ra>
// kernel: classifier_forward.1
= control target key start
LH: loop header
LB: loop body
LE: loop exit
PB: predicated region body
PF: predicated region fallthrough
CT: control target
= control target key end

     0   :  { %9 = vsyncpa [#allocation4], 0  ;;  %s24343_s0 = inlined_call_operand.vmem [shape: bf16[8,40960], index: 0, kind: input, shape index: {}]   ;;  %s24344_s1 = inlined_call_operand.hbm [shape: bf16[1,40960,512], index: 1, kind: input, shape index: {}]   ;;  %s24345_s2 = inlined_call_operand.hbm [shape: f32[1,512], index: 2, kind: input, shape index: {}]   ;;  %s24346_s3 = inlined_call_operand.hbm [shape: f32[1,512,128], index: 3, kind: input, shape index: {}]   ;;  %s24347_s4 = inlined_call_operand.vmem [shape: f32[1,8,128], index: 4, kind: output, shape index: {}]  }
   0x1   :  { %11 = vsyncpa [#allocation4 + $0x1], 0 }
   0x2   :  { %12 = vsyncpa [#allocation6], 0  ;;  %s21517_s15 = smov 0   ;;  %s21519_s16 = smov 0  }
   0x3   :  { %s21521_s17 = smov 0   ;;  %s21523_s18 = smov 0  }
   0x4   :  { %s21525_s19 = smov 0   ;;  %s21527_s20 = smov 0  }
   0x5 LB: > { %s15907_s21 = sadd.s32 4294967295, %s21482_s20   ;;  %s74_s22 = sadd.s32 1, %s21470_s17  ;;  %s21482_s20 = sphi %s21527_s20, %s18_s20   ;;  %s21478_s19 = sphi %s21525_s19, %s24422_s19   ;;  %s21474_s18 = sphi %s21523_s18, %s24421_s18   ;;  %s21470_s17 = sphi %s21521_s17, %s24420_s17   ;;  %s21466_s16 = sphi %s21519_s16, %s24419_s16   ;;  %s21462_s15 = sphi %s21517_s15, %s24418_s15  }
   0x6   : > { %p81_p0 = scmp.ne.s32.totalorder %s21470_s17, %s21466_s16  ;;  %p82_p1 = scmp.eq.s32.totalorder %s21482_s20, 0 }
   0x7   : > { %p87_p2 = scmp.ne.s32.totalorder %s21466_s16, %s21462_s15  ;;  %p21551_p3 = scmp.eq.s32.totalorder %s15907_s21, 0 }
   0x8   : > { %p83_p4 = por %p82_p1, %p81_p0  ;;  %p15908_p5 = scmp.ge.s32.totalorder %s21482_s20, 1 }
   0x9   : > { %s24371_s23 = scalar_select %p21551_p3, 1, 0 }
   0xa   : > { %p21558_p6 = por %p21551_p3, %p87_p2  ;;  %p178_p7 = scmp.lt.s32.totalorder %s21482_s20, 6 }
   0xb   : > { %s21484_s26 = smov [#allocation5]   ;;  %p18138_p10 = scmp.lt.s32.totalorder %s21482_s20, 5 }
   0xc   : > { %s24372_s24 = scalar_select %p21558_p6, 1, 0 }
   0xd   : > { %p21563_p8 = pnand %p15908_p5, %p178_p7  ;;  %s194_s27 = sshll.u32 %s21484_s26, 4  ;;  %s195_s27 = int_to_ptr.vmem [resolvable:$true] %s194_s27 }
   0xe   : > { %p21576_p12 = pnand %p18138_p10, %p83_p4  ;;  %s21485_s30 = smov [#allocation7]  }
   0xf   : > { %s24373_s25 = scalar_select %p21563_p8, 1, 0 }
  0x10   : > { %p18125_p9 = pneg %p21563_p8  ;;  %s207_s5 = sshll.u32 %s21485_s30, 4  ;;  %s208_s5 = int_to_ptr.vmem [resolvable:$true] %s207_s5 }
  0x11   : > { %s21359_s6 = scalar_lea.vmem %s195_s27, 64  ;;  %p21367_p5 = scmp.lt.s32.totalorder %s195_s27, %s195_s27 }
  0x12   : > { %p21572_p11 = pnand %p18125_p9, %p21551_p3  ;;  %p21360_p0 = scmp.ne.s32.totalorder %s195_s27, %s21359_s6 }
  0x13   : > { %p21368_p7 = scmp.lt.s32.totalorder %s21359_s6, %s21359_s6 }
  0x14   : > { %p21350_p13 = pneg %p21572_p11 }
  0x15   : > { %p21369_p9 = por %p21368_p7, %p21367_p5 }
  0x16   : > { %p21362_p1 = pnand %p21360_p0, %p21350_p13 }
  0x18   : > { %p21363_p2 = pneg %p21362_p1 }
  0x1a   : > { %p21370_p3 = pnand %p21369_p9, %p21363_p2 }
  0x1c   : > { %21373 = shalt.err (!%p21370_p3)
}
  0x1d   : > { %18128 = dma.hbm_to_vmem [thread:$0]  (!%p21572_p11), %s24345_s2, 64, %s195_s27, [#allocation6]  }
  0x1e   : > { %s21385_s9 = scalar_lea.vmem %s208_s5, 8192  ;;  %p21393_p1 = scmp.lt.s32.totalorder %s208_s5, %s208_s5 }
  0x1f   : > { %p21386_p4 = scmp.ne.s32.totalorder %s208_s5, %s21385_s9  ;;  %p21394_p6 = scmp.lt.s32.totalorder %s21385_s9, %s21385_s9 }
  0x21   : > { %p21388_p10 = pnand %p21386_p4, %p21350_p13  ;;  %p21395_p8 = por %p21394_p6, %p21393_p1 }
  0x23   : > { %p21389_p0 = pneg %p21388_p10 }
  0x25   : > { %p21396_p5 = pnand %p21395_p8, %p21389_p0 }
  0x27   : > { %21399 = shalt.err (!%p21396_p5)
}
  0x28   : > { %s21486_s10 = smov 128   ;;  %s21487_s11 = smov 8  }
  0x29   : > { %18131 = dma.hbm_to_vmem [thread:$0]  (!%p21572_p11), %s24346_s3, 8192, %s208_s5, [#allocation6], %s21486_s10, %s21486_s10, %s21487_s11  }
  0x2a   : > { %s234_s14 = sand.u32 1, %s21470_s17   ;;  %s30_s15 = sadd.s32 1, %s21478_s19 }
  0x2b   : > { %p31_p3 = scmp.ge.s32.totalorder %s30_s15, 5  ;;  %s15912_s21 = sshll.u32 %s234_s14, 14 }
  0x2c   : > { %s18044_s26 = sshll.u32 %s21478_s19, 18  ;;  %s238_s7 = scalar_lea.vmem [#allocation3], %s15912_s21 }
  0x2d   : > { %s24424_s15 = smov (%p31_p3, %s30_s15), 0  ;;  %s247_s6 = scalar_lea.hbm %s24344_s1, %s18044_s26 }
  0x2e   : > { %s248_s8 = sshll.u32 %s238_s7, 4  ;;  %s70_s28 = ssub.s32 %s21478_s19, %s24424_s15  ;;  %s249_s8 = int_to_ptr.vmem [resolvable:$true] %s248_s8 }
  0x2f   : > { %p72_p6 = scmp.eq.s32.totalorder %s70_s28, 0  ;;  %s235_s5 = scalar_lea.sflag [#allocation4], %s234_s14 }
  0x30   : > { %p21402_p8 = pneg %p21576_p12  ;;  %s21413_s10 = scalar_lea.vmem %s249_s8, 262144 }
  0x31   : > { %s21611_s9 = scalar_select %p72_p6, %s21470_s17, %s74_s22  }
  0x32   : > { %p21414_p11 = scmp.ne.s32.totalorder %s249_s8, %s21413_s10  ;;  %s21488_s11 = smov [#allocation3]  }
  0x33   : > { %s21418_s12 = sshll.u32 %s21488_s11, 4  ;;  %s21419_s12 = int_to_ptr.vmem [resolvable:$false] %s21418_s12 }
  0x34   : > { %p21416_p13 = pnand %p21414_p11, %p21402_p8  ;;  %s21420_s13 = scalar_lea.vmem %s21419_s12, 524288 }
  0x35   : > { %p21421_p7 = scmp.lt.s32.totalorder %s249_s8, %s21419_s12  ;;  %p21422_p9 = scmp.lt.s32.totalorder %s21420_s13, %s21413_s10 }
  0x36   : > { %p21417_p2 = pneg %p21416_p13 }
  0x37   : > { %p21423_p4 = por %p21422_p9, %p21421_p7 }
  0x39   : > { %p21424_p10 = pnand %p21423_p4, %p21417_p2 }
  0x3b   : > { %21427 = shalt.err (!%p21424_p10)
}
  0x3c   : > { %s21489_s21 = smov 256   ;;  %s21490_s22 = smov 16  }
  0x3d   : > { %18135 = dma.hbm_to_vmem [thread:$0]  (!%p21576_p12), %s247_s6, 262144, %s249_s8, %s235_s5, %s21489_s21, %s21489_s21, %s21490_s22  }
  0x3e   : > { %p24376_p0 = scmp.ne.s32.totalorder %s24373_s25, 0 }
  0x40   : > { %260 = sbr.rel (%p24376_p0) target bundleno = 2597 (0xa25), region = 36 }
  0x45   : > { %s262_s14 = sand.u32 1, %s21466_s16   ;;  %p24377_p1 = scmp.ne.s32.totalorder %s24372_s24, 0 }
  0x46   : > { %s15917_s26 = sshll.u32 %s262_s14, 14  ;;  %s263_s27 = scalar_lea.sflag [#allocation4], %s262_s14 }
  0x47   : > { %s21620_s30 = scalar_lea.vmem [#allocation3], %s15917_s26 }
  0x48   : > { %21453 = dma.done.wait (%p24377_p1), %s263_s27, 262144  }
  0x49   : > { %21455 = vsyncadd (%p24377_p1), %s263_s27, 4294705152  ;;  %p24378_p5 = scmp.ne.s32.totalorder %s24371_s23, 0 }
  0x4b   : > { %21457 = dma.done.wait (%p24378_p5), [#allocation6], 8256  }
  0x4c   : > { %21459 = vsyncadd (%p24378_p5), [#allocation6], 4294959040  ;;  %s15920_s25 = sshll.u32 %s21474_s18, 6  ;;  %p15922_p3 = scmp.ne.s32.totalorder %s21474_s18, 0 }
  0x4d   : > { %p313_p12 = scmp.lt.s32.totalorder %s15920_s25, 319 }
  0x4e   : > { %332 = sbr.rel (%p15922_p3) target bundleno = 86 (0x56), region = 52 }
  0x4f   : > { %s24426_s25 = smov (!%p313_p12, %s15920_s25), 319 }
  0x50   : > { %s15921_s29 = sshll.u32 %s24426_s25, 2 }
  0x51   : > { %s21634_s8 = scalar_lea.vmem %s24343_s0, %s15921_s29 }
  0x53   : > { %v21491_v0 = vmov 0.0  }
  0x54   : > { %333 = vst [vmem:[#allocation2 + $0x10] sm:$0xff] %v21491_v0  ;;  %334 = vst [vmem:[#allocation2] sm:$0xff] %v21491_v0 }
  0x55   : > { %335 = vst [vmem:[#allocation2 + $0x18] sm:$0xff] %v21491_v0  ;;  %336 = vst [vmem:[#allocation2 + $0x8] sm:$0xff] %v21491_v0 }
  0x56 PF: > { %v18196_v1 = vld [vmem:[%s21620_s30 + $0xe4] ss:$16 sps:$4 sm:$0xff]   ;;  %v18200_v3 = vld [vmem:[%s21620_s30 + $0xe0] ss:$16 sps:$4 sm:$0xff]   ;;  %v342_v49 = vld [vmem:[%s21634_s8 + $0x8] sm:$0xff]  ;;  %p18035_p6 = scmp.ne.s32.totalorder %s21474_s18, 4 }
  0x57   : > { %v18198_v2 = vld [vmem:[%s21620_s30 + $0x2e4] ss:$16 sps:$4 sm:$0xff]   ;;  %12885 = vmatprep.subr.bf16.mxu0 %v18196_v1  ;;  %v18201_v4 = vld [vmem:[%s21620_s30 + $0x2e0] ss:$16 sps:$4 sm:$0xff]   ;;  %v21689_v52 = vcombine.high %v342_v49, %v342_v49 }
  0x58   : > { %12926 = vmatprep.subr.bf16.mxu1 %v18198_v2  ;;  %v18202_v5 = vld [vmem:[%s21620_s30 + $0xc4] ss:$16 sps:$4 sm:$0xff]   ;;  %12886 = vmatpush1.bf16.msra.mxu0 %v18200_v3  ;;  %v18206_v7 = vld [vmem:[%s21620_s30 + $0xc0] ss:$16 sps:$4 sm:$0xff]  }
  0x59   : > { %12927 = vmatpush1.bf16.msra.mxu1 %v18201_v4  ;;  %v18204_v6 = vld [vmem:[%s21620_s30 + $0x2c4] ss:$16 sps:$4 sm:$0xff]   ;;  %12887 = vmatprep.subr.bf16.mxu0 %v18202_v5  ;;  %v18207_v8 = vld [vmem:[%s21620_s30 + $0x2c0] ss:$16 sps:$4 sm:$0xff]  }
  0x5a   : > { %12928 = vmatprep.subr.bf16.mxu1 %v18204_v6  ;;  %v18208_v9 = vld [vmem:[%s21620_s30 + $0xa4] ss:$16 sps:$4 sm:$0xff]   ;;  %v18212_v11 = vld [vmem:[%s21620_s30 + $0xa0] ss:$16 sps:$4 sm:$0xff]   ;;  %12958 = vmatprep.mubr.bf16.mxu1 %v21689_v52 }
  0x5b   : > { %v18210_v10 = vld [vmem:[%s21620_s30 + $0x2a4] ss:$16 sps:$4 sm:$0xff]   ;;  %v18213_v12 = vld [vmem:[%s21620_s30 + $0x2a0] ss:$16 sps:$4 sm:$0xff]  }
  0x5c   : > { %12888 = vmatpush1.bf16.msra.mxu0 %v18206_v7  ;;  %v18214_v13 = vld [vmem:[%s21620_s30 + $0x84] ss:$16 sps:$4 sm:$0xff]   ;;  %v18218_v15 = vld [vmem:[%s21620_s30 + $0x80] ss:$16 sps:$4 sm:$0xff]  }
  0x5d   : > { %12929 = vmatpush1.bf16.msra.mxu1 %v18207_v8  ;;  %12889 = vmatprep.subr.bf16.mxu0 %v18208_v9  ;;  %v18216_v14 = vld [vmem:[%s21620_s30 + $0x284] ss:$16 sps:$4 sm:$0xff]   ;;  %v18219_v16 = vld [vmem:[%s21620_s30 + $0x280] ss:$16 sps:$4 sm:$0xff]   ;;  %v21713_v8 = vcombine.low %v342_v49, %v342_v49 }
  0x5e   : > { %12930 = vmatprep.subr.bf16.mxu1 %v18210_v10  ;;  %v18220_v17 = vld [vmem:[%s21620_s30 + $0x64] ss:$16 sps:$4 sm:$0xff]   ;;  %v18224_v19 = vld [vmem:[%s21620_s30 + $0x60] ss:$16 sps:$4 sm:$0xff]  }
  0x5f   : > { %v18222_v18 = vld [vmem:[%s21620_s30 + $0x264] ss:$16 sps:$4 sm:$0xff]   ;;  %v18225_v20 = vld [vmem:[%s21620_s30 + $0x260] ss:$16 sps:$4 sm:$0xff]  }
  0x60   : > { %12890 = vmatpush1.bf16.msra.mxu0 %v18212_v11  ;;  %v18226_v21 = vld [vmem:[%s21620_s30 + $0x44] ss:$16 sps:$4 sm:$0xff]   ;;  %v18230_v23 = vld [vmem:[%s21620_s30 + $0x40] ss:$16 sps:$4 sm:$0xff]  }
  0x61   : > { %12931 = vmatpush1.bf16.msra.mxu1 %v18213_v12  ;;  %12891 = vmatprep.subr.bf16.mxu0 %v18214_v13  ;;  %v18228_v22 = vld [vmem:[%s21620_s30 + $0x244] ss:$16 sps:$4 sm:$0xff]   ;;  %v18231_v24 = vld [vmem:[%s21620_s30 + $0x240] ss:$16 sps:$4 sm:$0xff]  }
  0x62   : > { %12932 = vmatprep.subr.bf16.mxu1 %v18216_v14  ;;  %v18232_v25 = vld [vmem:[%s21620_s30 + $0x24] ss:$16 sps:$4 sm:$0xff]   ;;  %v18236_v27 = vld [vmem:[%s21620_s30 + $0x20] ss:$16 sps:$4 sm:$0xff]  }
  0x63   : > { %v18234_v26 = vld [vmem:[%s21620_s30 + $0x224] ss:$16 sps:$4 sm:$0xff]   ;;  %v18237_v28 = vld [vmem:[%s21620_s30 + $0x220] ss:$16 sps:$4 sm:$0xff]  }
  0x64   : > { %12892 = vmatpush1.bf16.msra.mxu0 %v18218_v15  ;;  %v18238_v29 = vld [vmem:[%s21620_s30 + $0x4] ss:$16 sps:$4 sm:$0xff]   ;;  %v18242_v31 = vld [vmem:[%s21620_s30] ss:$16 sps:$4 sm:$0xff]  }
  0x65   : > { %12933 = vmatpush1.bf16.msra.mxu1 %v18219_v16  ;;  %12893 = vmatprep.subr.bf16.mxu0 %v18220_v17  ;;  %v18240_v30 = vld [vmem:[%s21620_s30 + $0x204] ss:$16 sps:$4 sm:$0xff]   ;;  %v18243_v32 = vld [vmem:[%s21620_s30 + $0x200] ss:$16 sps:$4 sm:$0xff]  }
  0x66   : > { %12934 = vmatprep.subr.bf16.mxu1 %v18222_v18  ;;  %v18244_v33 = vld [vmem:[%s21620_s30 + $0x1e4] ss:$16 sps:$4 sm:$0xff]   ;;  %v18248_v35 = vld [vmem:[%s21620_s30 + $0x1e0] ss:$16 sps:$4 sm:$0xff]  }
  0x67   : > { %v18246_v34 = vld [vmem:[%s21620_s30 + $0x3e4] ss:$16 sps:$4 sm:$0xff]   ;;  %v18249_v36 = vld [vmem:[%s21620_s30 + $0x3e0] ss:$16 sps:$4 sm:$0xff]  }
  0x68   : > { %12894 = vmatpush1.bf16.msra.mxu0 %v18224_v19  ;;  %v18250_v37 = vld [vmem:[%s21620_s30 + $0x1c4] ss:$16 sps:$4 sm:$0xff]   ;;  %v18254_v39 = vld [vmem:[%s21620_s30 + $0x1c0] ss:$16 sps:$4 sm:$0xff]  }
  0x69   : > { %12935 = vmatpush1.bf16.msra.mxu1 %v18225_v20  ;;  %12895 = vmatprep.subr.bf16.mxu0 %v18226_v21  ;;  %v18252_v38 = vld [vmem:[%s21620_s30 + $0x3c4] ss:$16 sps:$4 sm:$0xff]   ;;  %v18255_v40 = vld [vmem:[%s21620_s30 + $0x3c0] ss:$16 sps:$4 sm:$0xff]  }
  0x6a   : > { %12936 = vmatprep.subr.bf16.mxu1 %v18228_v22  ;;  %v18256_v41 = vld [vmem:[%s21620_s30 + $0x1a4] ss:$16 sps:$4 sm:$0xff]   ;;  %v18260_v43 = vld [vmem:[%s21620_s30 + $0x1a0] ss:$16 sps:$4 sm:$0xff]  }
  0x6b   : > { %v18258_v42 = vld [vmem:[%s21620_s30 + $0x3a4] ss:$16 sps:$4 sm:$0xff]   ;;  %v18261_v44 = vld [vmem:[%s21620_s30 + $0x3a0] ss:$16 sps:$4 sm:$0xff]  }
  0x6c   : > { %12896 = vmatpush1.bf16.msra.mxu0 %v18230_v23  ;;  %v18262_v45 = vld [vmem:[%s21620_s30 + $0x184] ss:$16 sps:$4 sm:$0xff]   ;;  %v18266_v50 = vld [vmem:[%s21620_s30 + $0x180] ss:$16 sps:$4 sm:$0xff]  }
  0x6d   : > { %12937 = vmatpush1.bf16.msra.mxu1 %v18231_v24  ;;  %12897 = vmatprep.subr.bf16.mxu0 %v18232_v25  ;;  %v18264_v46 = vld [vmem:[%s21620_s30 + $0x384] ss:$16 sps:$4 sm:$0xff]   ;;  %v18267_v51 = vld [vmem:[%s21620_s30 + $0x380] ss:$16 sps:$4 sm:$0xff]  }
  0x6e   : > { %12938 = vmatprep.subr.bf16.mxu1 %v18234_v26  ;;  %v341_v47 = vld [vmem:[%s21634_s8] sm:$0xff] }
  0x6f   : > { %v21684_v48 = vcombine.high %v341_v47, %v341_v47  ;;  %v18268_v53 = vld [vmem:[%s21620_s30 + $0x164] ss:$16 sps:$4 sm:$0xff]   ;;  %v18272_v55 = vld [vmem:[%s21620_s30 + $0x160] ss:$16 sps:$4 sm:$0xff]   ;;  %v21711_v7 = vcombine.low %v341_v47, %v341_v47 }
  0x70   : > { %12898 = vmatpush1.bf16.msra.mxu0 %v18236_v27  ;;  %v18270_v54 = vld [vmem:[%s21620_s30 + $0x364] ss:$16 sps:$4 sm:$0xff]   ;;  %v18273_v56 = vld [vmem:[%s21620_s30 + $0x360] ss:$16 sps:$4 sm:$0xff]  }
  0x71   : > { %12939 = vmatpush1.bf16.msra.mxu1 %v18237_v28  ;;  %12899 = vmatprep.subr.bf16.mxu0 %v18238_v29  ;;  %v18274_v57 = vld [vmem:[%s21620_s30 + $0x144] ss:$16 sps:$4 sm:$0xff]   ;;  %v18278_v59 = vld [vmem:[%s21620_s30 + $0x140] ss:$16 sps:$4 sm:$0xff]  }
  0x72   : > { %12940 = vmatprep.subr.bf16.mxu1 %v18240_v30  ;;  %12917 = vmatprep.mubr.bf16.mxu0 %v21684_v48  ;;  %v18276_v58 = vld [vmem:[%s21620_s30 + $0x344] ss:$16 sps:$4 sm:$0xff]   ;;  %v18279_v60 = vld [vmem:[%s21620_s30 + $0x340] ss:$16 sps:$4 sm:$0xff]  }
  0x73   : > { %v18280_v61 = vld [vmem:[%s21620_s30 + $0x124] ss:$16 sps:$4 sm:$0xff]   ;;  %v18284_v63 = vld [vmem:[%s21620_s30 + $0x120] ss:$16 sps:$4 sm:$0xff]  }
  0x74   : > { %12900 = vmatpush1.bf16.msra.mxu0 %v18242_v31  ;;  %v18282_v62 = vld [vmem:[%s21620_s30 + $0x324] ss:$16 sps:$4 sm:$0xff]   ;;  %v18285_v0 = vld [vmem:[%s21620_s30 + $0x320] ss:$16 sps:$4 sm:$0xff]  }
  0x75   : > { %12941 = vmatpush1.bf16.msra.mxu1 %v18243_v32  ;;  %12901 = vmatprep.subr.bf16.mxu0 %v18244_v33  ;;  %v18286_v1 = vld [vmem:[%s21620_s30 + $0x104] ss:$16 sps:$4 sm:$0xff]   ;;  %v18290_v3 = vld [vmem:[%s21620_s30 + $0x100] ss:$16 sps:$4 sm:$0xff]  }
  0x76   : > { %12942 = vmatprep.subr.bf16.mxu1 %v18246_v34  ;;  %v18288_v2 = vld [vmem:[%s21620_s30 + $0x304] ss:$16 sps:$4 sm:$0xff]   ;;  %v18291_v4 = vld [vmem:[%s21620_s30 + $0x300] ss:$16 sps:$4 sm:$0xff]   ;;  %v21745_v34 = vld [vmem:[%s21634_s8 + $0x18] sm:$0xff] }
  0x77   : > { %v18298_v5 = vld [vmem:[%s21620_s30 + $0x4e4] ss:$16 sps:$4 sm:$0xff]   ;;  %v18296_v9 = vld [vmem:[%s21620_s30 + $0x4e0] ss:$16 sps:$4 sm:$0xff]  }
  0x78   : > { %12902 = vmatpush2.bf16.msra.mxu0 %v18248_v35  ;;  %v18301_v6 = vld [vmem:[%s21620_s30 + $0x6e4] ss:$16 sps:$4 sm:$0xff]   ;;  %v18299_v10 = vld [vmem:[%s21620_s30 + $0x6e0] ss:$16 sps:$4 sm:$0xff]  }
  0x79   : > { %12943 = vmatpush2.bf16.msra.mxu1 %v18249_v36  ;;  %12903 = vmatprep.subr.bf16.mxu0 %v18250_v37  ;;  %v18304_v11 = vld [vmem:[%s21620_s30 + $0x4c4] ss:$16 sps:$4 sm:$0xff]   ;;  %v18302_v13 = vld [vmem:[%s21620_s30 + $0x4c0] ss:$16 sps:$4 sm:$0xff]  }
  0x7a   : > { %12944 = vmatprep.subr.bf16.mxu1 %v18252_v38  ;;  %v18307_v12 = vld [vmem:[%s21620_s30 + $0x6c4] ss:$16 sps:$4 sm:$0xff]   ;;  %v18305_v14 = vld [vmem:[%s21620_s30 + $0x6c0] ss:$16 sps:$4 sm:$0xff]   ;;  %v21755_v38 = vcombine.high %v21745_v34, %v21745_v34 }
  0x7b   : > { %v18310_v15 = vld [vmem:[%s21620_s30 + $0x4a4] ss:$16 sps:$4 sm:$0xff]   ;;  %v18308_v17 = vld [vmem:[%s21620_s30 + $0x4a0] ss:$16 sps:$4 sm:$0xff]  }
  0x7c   : > { %12904 = vmatpush2.bf16.msra.mxu0 %v18254_v39  ;;  %v18313_v16 = vld [vmem:[%s21620_s30 + $0x6a4] ss:$16 sps:$4 sm:$0xff]   ;;  %v18311_v18 = vld [vmem:[%s21620_s30 + $0x6a0] ss:$16 sps:$4 sm:$0xff]  }
  0x7d   : > { %12945 = vmatpush2.bf16.msra.mxu1 %v18255_v40  ;;  %12905 = vmatprep.subr.bf16.mxu0 %v18256_v41  ;;  %v18316_v19 = vld [vmem:[%s21620_s30 + $0x484] ss:$16 sps:$4 sm:$0xff]   ;;  %v18314_v21 = vld [vmem:[%s21620_s30 + $0x480] ss:$16 sps:$4 sm:$0xff]  }
  0x7e   : > { %12946 = vmatprep.subr.bf16.mxu1 %v18258_v42  ;;  %v18319_v20 = vld [vmem:[%s21620_s30 + $0x684] ss:$16 sps:$4 sm:$0xff]   ;;  %v18317_v22 = vld [vmem:[%s21620_s30 + $0x680] ss:$16 sps:$4 sm:$0xff]  }
  0x7f   : > { %v18322_v23 = vld [vmem:[%s21620_s30 + $0x464] ss:$16 sps:$4 sm:$0xff]   ;;  %v18320_v25 = vld [vmem:[%s21620_s30 + $0x460] ss:$16 sps:$4 sm:$0xff]  }
  0x80   : > { %12906 = vmatpush2.bf16.msra.mxu0 %v18260_v43  ;;  %v18325_v24 = vld [vmem:[%s21620_s30 + $0x664] ss:$16 sps:$4 sm:$0xff]   ;;  %v18323_v26 = vld [vmem:[%s21620_s30 + $0x660] ss:$16 sps:$4 sm:$0xff]  }
  0x81   : > { %12947 = vmatpush2.bf16.msra.mxu1 %v18261_v44  ;;  %12907 = vmatprep.subr.bf16.mxu0 %v18262_v45  ;;  %v18328_v27 = vld [vmem:[%s21620_s30 + $0x444] ss:$16 sps:$4 sm:$0xff]   ;;  %v18326_v29 = vld [vmem:[%s21620_s30 + $0x440] ss:$16 sps:$4 sm:$0xff]  }
  0x82   : > { %12948 = vmatprep.subr.bf16.mxu1 %v18264_v46  ;;  %v18331_v28 = vld [vmem:[%s21620_s30 + $0x644] ss:$16 sps:$4 sm:$0xff]   ;;  %v18329_v30 = vld [vmem:[%s21620_s30 + $0x640] ss:$16 sps:$4 sm:$0xff]  }
  0x83   : > { %v18334_v31 = vld [vmem:[%s21620_s30 + $0x424] ss:$16 sps:$4 sm:$0xff]   ;;  %v18332_v35 = vld [vmem:[%s21620_s30 + $0x420] ss:$16 sps:$4 sm:$0xff]  }
  0x84   : > { %12908 = vmatpush2.bf16.msra.mxu0 %v18266_v50  ;;  %v18337_v32 = vld [vmem:[%s21620_s30 + $0x624] ss:$16 sps:$4 sm:$0xff]   ;;  %v18335_v36 = vld [vmem:[%s21620_s30 + $0x620] ss:$16 sps:$4 sm:$0xff]  }
  0x85   : > { %12949 = vmatpush2.bf16.msra.mxu1 %v18267_v51  ;;  %12909 = vmatprep.subr.bf16.mxu0 %v18268_v53  ;;  %v21742_v33 = vld [vmem:[%s21634_s8 + $0x10] sm:$0xff] }
  0x86   : > { %12950 = vmatprep.subr.bf16.mxu1 %v18270_v54  ;;  %v21751_v37 = vcombine.high %v21742_v33, %v21742_v33  ;;  %v18340_v39 = vld [vmem:[%s21620_s30 + $0x404] ss:$16 sps:$4 sm:$0xff]   ;;  %v18338_v41 = vld [vmem:[%s21620_s30 + $0x400] ss:$16 sps:$4 sm:$0xff]  }
  0x87   : > { %v18343_v40 = vld [vmem:[%s21620_s30 + $0x604] ss:$16 sps:$4 sm:$0xff]   ;;  %v18341_v42 = vld [vmem:[%s21620_s30 + $0x600] ss:$16 sps:$4 sm:$0xff]  }
  0x88   : > { %12910 = vmatpush2.bf16.msra.mxu0 %v18272_v55  ;;  %v18346_v43 = vld [vmem:[%s21620_s30 + $0x5e4] ss:$16 sps:$4 sm:$0xff]   ;;  %v18344_v45 = vld [vmem:[%s21620_s30 + $0x5e0] ss:$16 sps:$4 sm:$0xff]  }
  0x89   : > { %12951 = vmatpush2.bf16.msra.mxu1 %v18273_v56  ;;  %12911 = vmatprep.subr.bf16.mxu0 %v18274_v57  ;;  %v18349_v44 = vld [vmem:[%s21620_s30 + $0x7e4] ss:$16 sps:$4 sm:$0xff]   ;;  %v18347_v46 = vld [vmem:[%s21620_s30 + $0x7e0] ss:$16 sps:$4 sm:$0xff]  }
  0x8a   : > { %12952 = vmatprep.subr.bf16.mxu1 %v18276_v58  ;;  %v18352_v47 = vld [vmem:[%s21620_s30 + $0x5c4] ss:$16 sps:$4 sm:$0xff]   ;;  %v18350_v50 = vld [vmem:[%s21620_s30 + $0x5c0] ss:$16 sps:$4 sm:$0xff]  }
  0x8b   : > { %v18355_v49 = vld [vmem:[%s21620_s30 + $0x7c4] ss:$16 sps:$4 sm:$0xff]   ;;  %v18353_v51 = vld [vmem:[%s21620_s30 + $0x7c0] ss:$16 sps:$4 sm:$0xff]  }
  0x8c   : > { %12912 = vmatpush2.bf16.msra.mxu0 %v18278_v59  ;;  %v18358_v53 = vld [vmem:[%s21620_s30 + $0x5a4] ss:$16 sps:$4 sm:$0xff]   ;;  %v18356_v55 = vld [vmem:[%s21620_s30 + $0x5a0] ss:$16 sps:$4 sm:$0xff]  }
  0x8d   : > { %12953 = vmatpush2.bf16.msra.mxu1 %v18279_v60  ;;  %12913 = vmatprep.subr.bf16.mxu0 %v18280_v61  ;;  %v18361_v54 = vld [vmem:[%s21620_s30 + $0x7a4] ss:$16 sps:$4 sm:$0xff]   ;;  %v18359_v56 = vld [vmem:[%s21620_s30 + $0x7a0] ss:$16 sps:$4 sm:$0xff]  }
  0x8e   : > { %12954 = vmatprep.subr.bf16.mxu1 %v18282_v62  ;;  %v18364_v57 = vld [vmem:[%s21620_s30 + $0x584] ss:$16 sps:$4 sm:$0xff]   ;;  %v18362_v59 = vld [vmem:[%s21620_s30 + $0x580] ss:$16 sps:$4 sm:$0xff]  }
  0x8f   : > { %v18367_v58 = vld [vmem:[%s21620_s30 + $0x784] ss:$16 sps:$4 sm:$0xff]   ;;  %v18365_v60 = vld [vmem:[%s21620_s30 + $0x780] ss:$16 sps:$4 sm:$0xff]  }
  0x90   : > { %12914 = vmatpush2.bf16.msra.mxu0 %v18284_v63  ;;  %v18370_v61 = vld [vmem:[%s21620_s30 + $0x564] ss:$16 sps:$4 sm:$0xff]   ;;  %v18368_v63 = vld [vmem:[%s21620_s30 + $0x560] ss:$16 sps:$4 sm:$0xff]  }
  0x91   : > { %12955 = vmatpush2.bf16.msra.mxu1 %v18285_v0  ;;  %12915 = vmatprep.subr.bf16.mxu0 %v18286_v1  ;;  %v18373_v62 = vld [vmem:[%s21620_s30 + $0x764] ss:$16 sps:$4 sm:$0xff]   ;;  %v18371_v0 = vld [vmem:[%s21620_s30 + $0x760] ss:$16 sps:$4 sm:$0xff]  }
  0x92   : > { %12956 = vmatprep.subr.bf16.mxu1 %v18288_v2  ;;  %v18376_v1 = vld [vmem:[%s21620_s30 + $0x544] ss:$16 sps:$4 sm:$0xff]  }
  0x93   : > { %v18379_v2 = vld [vmem:[%s21620_s30 + $0x744] ss:$16 sps:$4 sm:$0xff]  }
  0x94   : > { %12916 = vmatpush2.bf16.msra.mxu0 %v18290_v3  ;;  %v18374_v3 = vld [vmem:[%s21620_s30 + $0x540] ss:$16 sps:$4 sm:$0xff]  }
  0x95   : > { %12957 = vmatpush2.bf16.msra.mxu1 %v18291_v4  ;;  %12967 = vmatprep.subr.bf16.mxu0 %v18298_v5  ;;  %v18377_v4 = vld [vmem:[%s21620_s30 + $0x740] ss:$16 sps:$4 sm:$0xff]   ;;  %v18382_v5 = vld [vmem:[%s21620_s30 + $0x524] ss:$16 sps:$4 sm:$0xff]  }
  0x96   : > { %13008 = vmatprep.subr.bf16.mxu1 %v18301_v6  ;;  %v18385_v6 = vld [vmem:[%s21620_s30 + $0x724] ss:$16 sps:$4 sm:$0xff]  }
  0x97   : > { %12918 = vmatmul.mubr.bf16.vlgmr.msra.gmra.mxu0 %v21711_v7 }
  0x98   : > { %12959 = vmatmul.mubr.bf16.vlgmr.msra.gmra.mxu1 %v21713_v8  ;;  %12968 = vmatpush1.bf16.msra.mxu0 %v18296_v9  ;;  %v18380_v9 = vld [vmem:[%s21620_s30 + $0x520] ss:$16 sps:$4 sm:$0xff]  }
  0x99   : > { %13009 = vmatpush1.bf16.msra.mxu1 %v18299_v10  ;;  %12969 = vmatprep.subr.bf16.mxu0 %v18304_v11  ;;  %v18383_v10 = vld [vmem:[%s21620_s30 + $0x720] ss:$16 sps:$4 sm:$0xff]   ;;  %v18388_v11 = vld [vmem:[%s21620_s30 + $0x504] ss:$16 sps:$4 sm:$0xff]  }
  0x9a   : > { %13010 = vmatprep.subr.bf16.mxu1 %v18307_v12  ;;  %12999 = vmatprep.mubr.bf16.mxu0 %v21751_v37  ;;  %v18391_v12 = vld [vmem:[%s21620_s30 + $0x704] ss:$16 sps:$4 sm:$0xff]  }
  0x9b   : > { %13040 = vmatprep.mubr.bf16.mxu1 %v21755_v38 }
  0x9c   : > { %12970 = vmatpush1.bf16.msra.mxu0 %v18302_v13  ;;  %v18386_v13 = vld [vmem:[%s21620_s30 + $0x500] ss:$16 sps:$4 sm:$0xff]  }
  0x9d   : > { %13011 = vmatpush1.bf16.msra.mxu1 %v18305_v14  ;;  %12971 = vmatprep.subr.bf16.mxu0 %v18310_v15  ;;  %v18389_v14 = vld [vmem:[%s21620_s30 + $0x700] ss:$16 sps:$4 sm:$0xff]   ;;  %v18398_v15 = vld [vmem:[%s21620_s30 + $0x8e4] ss:$16 sps:$4 sm:$0xff]  }
  0x9e   : > { %13012 = vmatprep.subr.bf16.mxu1 %v18313_v16  ;;  %v18401_v16 = vld [vmem:[%s21620_s30 + $0xae4] ss:$16 sps:$4 sm:$0xff]  }
  0xa0   : > { %12972 = vmatpush1.bf16.msra.mxu0 %v18308_v17  ;;  %v21799_v17 = vcombine.low %v21742_v33, %v21742_v33  ;;  %v18416_v33 = vld [vmem:[%s21620_s30 + $0x884] ss:$16 sps:$4 sm:$0xff]  }
  0xa1   : > { %13013 = vmatpush1.bf16.msra.mxu1 %v18311_v18  ;;  %12973 = vmatprep.subr.bf16.mxu0 %v18316_v19  ;;  %v21803_v18 = vcombine.low %v21745_v34, %v21745_v34  ;;  %v18396_v19 = vld [vmem:[%s21620_s30 + $0x8e0] ss:$16 sps:$4 sm:$0xff]   ;;  %v18419_v34 = vld [vmem:[%s21620_s30 + $0xa84] ss:$16 sps:$4 sm:$0xff]  }
  0xa2   : > { %13014 = vmatprep.subr.bf16.mxu1 %v18319_v20  ;;  %v18399_v20 = vld [vmem:[%s21620_s30 + $0xae0] ss:$16 sps:$4 sm:$0xff]  }
  0xa4   : > { %12974 = vmatpush1.bf16.msra.mxu0 %v18314_v21  ;;  %v18404_v21 = vld [vmem:[%s21620_s30 + $0x8c4] ss:$16 sps:$4 sm:$0xff]  }
  0xa5   : > { %13015 = vmatpush1.bf16.msra.mxu1 %v18317_v22  ;;  %12975 = vmatprep.subr.bf16.mxu0 %v18322_v23  ;;  %v18407_v22 = vld [vmem:[%s21620_s30 + $0xac4] ss:$16 sps:$4 sm:$0xff]  }
  0xa6   : > { %13016 = vmatprep.subr.bf16.mxu1 %v18325_v24  ;;  %v21810_v23 = vld [vmem:[%s21634_s8 + $0x20] sm:$0xff]  ;;  %v21813_v24 = vld [vmem:[%s21634_s8 + $0x28] sm:$0xff] }
  0xa8   : > { %12976 = vmatpush1.bf16.msra.mxu0 %v18320_v25  ;;  %v21817_v25 = vcombine.high %v21810_v23, %v21810_v23 }
  0xa9   : > { %13017 = vmatpush1.bf16.msra.mxu1 %v18323_v26  ;;  %12977 = vmatprep.subr.bf16.mxu0 %v18328_v27  ;;  %v21821_v26 = vcombine.high %v21813_v24, %v21813_v24  ;;  %v18402_v27 = vld [vmem:[%s21620_s30 + $0x8c0] ss:$16 sps:$4 sm:$0xff]  }
  0xaa   : > { %13018 = vmatprep.subr.bf16.mxu1 %v18331_v28  ;;  %v18405_v28 = vld [vmem:[%s21620_s30 + $0xac0] ss:$16 sps:$4 sm:$0xff]  }
  0xac   : > { %12978 = vmatpush1.bf16.msra.mxu0 %v18326_v29  ;;  %v18410_v29 = vld [vmem:[%s21620_s30 + $0x8a4] ss:$16 sps:$4 sm:$0xff]  }
  0xad   : > { %13019 = vmatpush1.bf16.msra.mxu1 %v18329_v30  ;;  %12979 = vmatprep.subr.bf16.mxu0 %v18334_v31  ;;  %v18413_v30 = vld [vmem:[%s21620_s30 + $0xaa4] ss:$16 sps:$4 sm:$0xff]   ;;  %v18408_v31 = vld [vmem:[%s21620_s30 + $0x8a0] ss:$16 sps:$4 sm:$0xff]  }
  0xae   : > { %13020 = vmatprep.subr.bf16.mxu1 %v18337_v32  ;;  %v18411_v32 = vld [vmem:[%s21620_s30 + $0xaa0] ss:$16 sps:$4 sm:$0xff]  }
  0xb0   : > { %12980 = vmatpush1.bf16.msra.mxu0 %v18332_v35  ;;  %v18414_v35 = vld [vmem:[%s21620_s30 + $0x880] ss:$16 sps:$4 sm:$0xff]  }
  0xb1   : > { %13021 = vmatpush1.bf16.msra.mxu1 %v18335_v36  ;;  %12981 = vmatprep.subr.bf16.mxu0 %v18340_v39  ;;  %v18417_v36 = vld [vmem:[%s21620_s30 + $0xa80] ss:$16 sps:$4 sm:$0xff]   ;;  %v18422_v39 = vld [vmem:[%s21620_s30 + $0x864] ss:$16 sps:$4 sm:$0xff]  }
  0xb2   : > { %13022 = vmatprep.subr.bf16.mxu1 %v18343_v40  ;;  %v18425_v40 = vld [vmem:[%s21620_s30 + $0xa64] ss:$16 sps:$4 sm:$0xff]  }
  0xb4   : > { %12982 = vmatpush1.bf16.msra.mxu0 %v18338_v41  ;;  %v18420_v41 = vld [vmem:[%s21620_s30 + $0x860] ss:$16 sps:$4 sm:$0xff]  }
  0xb5   : > { %13023 = vmatpush1.bf16.msra.mxu1 %v18341_v42  ;;  %12983 = vmatprep.subr.bf16.mxu0 %v18346_v43  ;;  %v18423_v42 = vld [vmem:[%s21620_s30 + $0xa60] ss:$16 sps:$4 sm:$0xff]   ;;  %v18428_v43 = vld [vmem:[%s21620_s30 + $0x844] ss:$16 sps:$4 sm:$0xff]  }
  0xb6   : > { %13024 = vmatprep.subr.bf16.mxu1 %v18349_v44  ;;  %v18431_v44 = vld [vmem:[%s21620_s30 + $0xa44] ss:$16 sps:$4 sm:$0xff]  }
  0xb8   : > { %12984 = vmatpush2.bf16.msra.mxu0 %v18344_v45  ;;  %v18426_v45 = vld [vmem:[%s21620_s30 + $0x840] ss:$16 sps:$4 sm:$0xff]  }
  0xb9   : > { %13025 = vmatpush2.bf16.msra.mxu1 %v18347_v46  ;;  %12985 = vmatprep.subr.bf16.mxu0 %v18352_v47  ;;  %v18429_v46 = vld [vmem:[%s21620_s30 + $0xa40] ss:$16 sps:$4 sm:$0xff]   ;;  %v18434_v47 = vld [vmem:[%s21620_s30 + $0x824] ss:$16 sps:$4 sm:$0xff]  }
  0xba   : > { %13026 = vmatprep.subr.bf16.mxu1 %v18355_v49  ;;  %v18437_v49 = vld [vmem:[%s21620_s30 + $0xa24] ss:$16 sps:$4 sm:$0xff]  }
  0xbc   : > { %12986 = vmatpush2.bf16.msra.mxu0 %v18350_v50  ;;  %v18432_v50 = vld [vmem:[%s21620_s30 + $0x820] ss:$16 sps:$4 sm:$0xff]  }
  0xbd   : > { %13027 = vmatpush2.bf16.msra.mxu1 %v18353_v51  ;;  %12987 = vmatprep.subr.bf16.mxu0 %v18358_v53  ;;  %v18435_v51 = vld [vmem:[%s21620_s30 + $0xa20] ss:$16 sps:$4 sm:$0xff]   ;;  %v18440_v53 = vld [vmem:[%s21620_s30 + $0x804] ss:$16 sps:$4 sm:$0xff]  }
  0xbe   : > { %13028 = vmatprep.subr.bf16.mxu1 %v18361_v54  ;;  %v18443_v54 = vld [vmem:[%s21620_s30 + $0xa04] ss:$16 sps:$4 sm:$0xff]  }
  0xc0   : > { %12988 = vmatpush2.bf16.msra.mxu0 %v18356_v55  ;;  %v18438_v55 = vld [vmem:[%s21620_s30 + $0x800] ss:$16 sps:$4 sm:$0xff]  }
  0xc1   : > { %13029 = vmatpush2.bf16.msra.mxu1 %v18359_v56  ;;  %12989 = vmatprep.subr.bf16.mxu0 %v18364_v57  ;;  %v18441_v56 = vld [vmem:[%s21620_s30 + $0xa00] ss:$16 sps:$4 sm:$0xff]   ;;  %v18446_v57 = vld [vmem:[%s21620_s30 + $0x9e4] ss:$16 sps:$4 sm:$0xff]  }
  0xc2   : > { %13030 = vmatprep.subr.bf16.mxu1 %v18367_v58  ;;  %v18449_v58 = vld [vmem:[%s21620_s30 + $0xbe4] ss:$16 sps:$4 sm:$0xff]  }
  0xc4   : > { %12990 = vmatpush2.bf16.msra.mxu0 %v18362_v59  ;;  %v18444_v59 = vld [vmem:[%s21620_s30 + $0x9e0] ss:$16 sps:$4 sm:$0xff]  }
  0xc5   : > { %13031 = vmatpush2.bf16.msra.mxu1 %v18365_v60  ;;  %12991 = vmatprep.subr.bf16.mxu0 %v18370_v61  ;;  %v18447_v60 = vld [vmem:[%s21620_s30 + $0xbe0] ss:$16 sps:$4 sm:$0xff]   ;;  %v18452_v61 = vld [vmem:[%s21620_s30 + $0x9c4] ss:$16 sps:$4 sm:$0xff]  }
  0xc6   : > { %13032 = vmatprep.subr.bf16.mxu1 %v18373_v62  ;;  %v18455_v62 = vld [vmem:[%s21620_s30 + $0xbc4] ss:$16 sps:$4 sm:$0xff]  }
  0xc8   : > { %12992 = vmatpush2.bf16.msra.mxu0 %v18368_v63  ;;  %v18450_v63 = vld [vmem:[%s21620_s30 + $0x9c0] ss:$16 sps:$4 sm:$0xff]  }
  0xc9   : > { %13033 = vmatpush2.bf16.msra.mxu1 %v18371_v0  ;;  %12993 = vmatprep.subr.bf16.mxu0 %v18376_v1  ;;  %v18453_v0 = vld [vmem:[%s21620_s30 + $0xbc0] ss:$16 sps:$4 sm:$0xff]   ;;  %v18458_v1 = vld [vmem:[%s21620_s30 + $0x9a4] ss:$16 sps:$4 sm:$0xff]  }
  0xca   : > { %13034 = vmatprep.subr.bf16.mxu1 %v18379_v2  ;;  %v18461_v2 = vld [vmem:[%s21620_s30 + $0xba4] ss:$16 sps:$4 sm:$0xff]  }
  0xcc   : > { %12994 = vmatpush2.bf16.msra.mxu0 %v18374_v3  ;;  %v18456_v3 = vld [vmem:[%s21620_s30 + $0x9a0] ss:$16 sps:$4 sm:$0xff]  }
  0xcd   : > { %13035 = vmatpush2.bf16.msra.mxu1 %v18377_v4  ;;  %12995 = vmatprep.subr.bf16.mxu0 %v18382_v5  ;;  %v18459_v4 = vld [vmem:[%s21620_s30 + $0xba0] ss:$16 sps:$4 sm:$0xff]   ;;  %v18464_v5 = vld [vmem:[%s21620_s30 + $0x984] ss:$16 sps:$4 sm:$0xff]  }
  0xce   : > { %13036 = vmatprep.subr.bf16.mxu1 %v18385_v6  ;;  %v18467_v6 = vld [vmem:[%s21620_s30 + $0xb84] ss:$16 sps:$4 sm:$0xff]  }
  0xd0   : > { %12996 = vmatpush2.bf16.msra.mxu0 %v18380_v9  ;;  %v18462_v9 = vld [vmem:[%s21620_s30 + $0x980] ss:$16 sps:$4 sm:$0xff]  }
  0xd1   : > { %13037 = vmatpush2.bf16.msra.mxu1 %v18383_v10  ;;  %12997 = vmatprep.subr.bf16.mxu0 %v18388_v11  ;;  %v18465_v10 = vld [vmem:[%s21620_s30 + $0xb80] ss:$16 sps:$4 sm:$0xff]   ;;  %v18470_v11 = vld [vmem:[%s21620_s30 + $0x964] ss:$16 sps:$4 sm:$0xff]  }
  0xd2   : > { %13038 = vmatprep.subr.bf16.mxu1 %v18391_v12  ;;  %v18473_v12 = vld [vmem:[%s21620_s30 + $0xb64] ss:$16 sps:$4 sm:$0xff]  }
  0xd4   : > { %12998 = vmatpush2.bf16.msra.mxu0 %v18386_v13  ;;  %v18468_v13 = vld [vmem:[%s21620_s30 + $0x960] ss:$16 sps:$4 sm:$0xff]  }
  0xd5   : > { %13039 = vmatpush2.bf16.msra.mxu1 %v18389_v14  ;;  %13049 = vmatprep.subr.bf16.mxu0 %v18398_v15  ;;  %v18471_v14 = vld [vmem:[%s21620_s30 + $0xb60] ss:$16 sps:$4 sm:$0xff]   ;;  %v18476_v15 = vld [vmem:[%s21620_s30 + $0x944] ss:$16 sps:$4 sm:$0xff]  }
  0xd6   : > { %13090 = vmatprep.subr.bf16.mxu1 %v18401_v16  ;;  %v18479_v16 = vld [vmem:[%s21620_s30 + $0xb44] ss:$16 sps:$4 sm:$0xff]  }
  0xd7   : > { %13000 = vmatmul.mubr.bf16.vlgmr.msra.gmra.mxu0 %v21799_v17 }
  0xd8   : > { %13041 = vmatmul.mubr.bf16.vlgmr.msra.gmra.mxu1 %v21803_v18  ;;  %13050 = vmatpush1.bf16.msra.mxu0 %v18396_v19  ;;  %v18474_v19 = vld [vmem:[%s21620_s30 + $0x940] ss:$16 sps:$4 sm:$0xff]  }
  0xd9   : > { %13091 = vmatpush1.bf16.msra.mxu1 %v18399_v20  ;;  %13051 = vmatprep.subr.bf16.mxu0 %v18404_v21  ;;  %v18477_v20 = vld [vmem:[%s21620_s30 + $0xb40] ss:$16 sps:$4 sm:$0xff]   ;;  %v18482_v21 = vld [vmem:[%s21620_s30 + $0x924] ss:$16 sps:$4 sm:$0xff]  }
  0xda   : > { %13092 = vmatprep.subr.bf16.mxu1 %v18407_v22  ;;  %13081 = vmatprep.mubr.bf16.mxu0 %v21817_v25  ;;  %v18485_v22 = vld [vmem:[%s21620_s30 + $0xb24] ss:$16 sps:$4 sm:$0xff]  }
  0xdb   : > { %13122 = vmatprep.mubr.bf16.mxu1 %v21821_v26 }
  0xdc   : > { %13052 = vmatpush1.bf16.msra.mxu0 %v18402_v27  ;;  %v18480_v27 = vld [vmem:[%s21620_s30 + $0x920] ss:$16 sps:$4 sm:$0xff]  }
  0xdd   : > { %13093 = vmatpush1.bf16.msra.mxu1 %v18405_v28  ;;  %13053 = vmatprep.subr.bf16.mxu0 %v18410_v29  ;;  %v18483_v28 = vld [vmem:[%s21620_s30 + $0xb20] ss:$16 sps:$4 sm:$0xff]   ;;  %v18488_v29 = vld [vmem:[%s21620_s30 + $0x904] ss:$16 sps:$4 sm:$0xff]  }
  0xde   : > { %13094 = vmatprep.subr.bf16.mxu1 %v18413_v30  ;;  %v18491_v30 = vld [vmem:[%s21620_s30 + $0xb04] ss:$16 sps:$4 sm:$0xff]  }
  0xe0   : > { %13054 = vmatpush1.bf16.msra.mxu0 %v18408_v31  ;;  %v18486_v31 = vld [vmem:[%s21620_s30 + $0x900] ss:$16 sps:$4 sm:$0xff]  }
  0xe1   : > { %13095 = vmatpush1.bf16.msra.mxu1 %v18411_v32  ;;  %13055 = vmatprep.subr.bf16.mxu0 %v18416_v33  ;;  %v18489_v32 = vld [vmem:[%s21620_s30 + $0xb00] ss:$16 sps:$4 sm:$0xff]   ;;  %v18498_v33 = vld [vmem:[%s21620_s30 + $0xce4] ss:$16 sps:$4 sm:$0xff]  }
  0xe2   : > { %13096 = vmatprep.subr.bf16.mxu1 %v18419_v34  ;;  %v18501_v34 = vld [vmem:[%s21620_s30 + $0xee4] ss:$16 sps:$4 sm:$0xff]  }
  0xe4   : > { %13056 = vmatpush1.bf16.msra.mxu0 %v18414_v35  ;;  %v18496_v35 = vld [vmem:[%s21620_s30 + $0xce0] ss:$16 sps:$4 sm:$0xff]  }
  0xe5   : > { %13097 = vmatpush1.bf16.msra.mxu1 %v18417_v36  ;;  %13057 = vmatprep.subr.bf16.mxu0 %v18422_v39  ;;  %v18499_v36 = vld [vmem:[%s21620_s30 + $0xee0] ss:$16 sps:$4 sm:$0xff]   ;;  %v21891_v39 = vcombine.low %v21810_v23, %v21810_v23 }
  0xe6   : > { %13098 = vmatprep.subr.bf16.mxu1 %v18425_v40  ;;  %v21895_v40 = vcombine.low %v21813_v24, %v21813_v24 }
  0xe8   : > { %13058 = vmatpush1.bf16.msra.mxu0 %v18420_v41  ;;  %v21898_v41 = vld [vmem:[%s21634_s8 + $0x30] sm:$0xff] }
  0xe9   : > { %13099 = vmatpush1.bf16.msra.mxu1 %v18423_v42  ;;  %13059 = vmatprep.subr.bf16.mxu0 %v18428_v43  ;;  %v21901_v42 = vld [vmem:[%s21634_s8 + $0x38] sm:$0xff]  ;;  %v18504_v43 = vld [vmem:[%s21620_s30 + $0xcc4] ss:$16 sps:$4 sm:$0xff]   ;;  %v21907_v23 = vcombine.high %v21898_v41, %v21898_v41 }
  0xea   : > { %13100 = vmatprep.subr.bf16.mxu1 %v18431_v44  ;;  %v18507_v44 = vld [vmem:[%s21620_s30 + $0xec4] ss:$16 sps:$4 sm:$0xff]   ;;  %v21911_v24 = vcombine.high %v21901_v42, %v21901_v42 }
  0xec   : > { %13060 = vmatpush1.bf16.msra.mxu0 %v18426_v45  ;;  %v18502_v45 = vld [vmem:[%s21620_s30 + $0xcc0] ss:$16 sps:$4 sm:$0xff]  }
  0xed   : > { %13101 = vmatpush1.bf16.msra.mxu1 %v18429_v46  ;;  %13061 = vmatprep.subr.bf16.mxu0 %v18434_v47  ;;  %v18505_v46 = vld [vmem:[%s21620_s30 + $0xec0] ss:$16 sps:$4 sm:$0xff]   ;;  %v18510_v47 = vld [vmem:[%s21620_s30 + $0xca4] ss:$16 sps:$4 sm:$0xff]  }
  0xee   : > { %13102 = vmatprep.subr.bf16.mxu1 %v18437_v49  ;;  %v18513_v49 = vld [vmem:[%s21620_s30 + $0xea4] ss:$16 sps:$4 sm:$0xff]  }
  0xf0   : > { %13062 = vmatpush1.bf16.msra.mxu0 %v18432_v50  ;;  %v18508_v50 = vld [vmem:[%s21620_s30 + $0xca0] ss:$16 sps:$4 sm:$0xff]  }
  0xf1   : > { %13103 = vmatpush1.bf16.msra.mxu1 %v18435_v51  ;;  %13063 = vmatprep.subr.bf16.mxu0 %v18440_v53  ;;  %v18511_v51 = vld [vmem:[%s21620_s30 + $0xea0] ss:$16 sps:$4 sm:$0xff]   ;;  %v18516_v53 = vld [vmem:[%s21620_s30 + $0xc84] ss:$16 sps:$4 sm:$0xff]  }
  0xf2   : > { %13104 = vmatprep.subr.bf16.mxu1 %v18443_v54  ;;  %v18519_v54 = vld [vmem:[%s21620_s30 + $0xe84] ss:$16 sps:$4 sm:$0xff]  }
  0xf4   : > { %13064 = vmatpush1.bf16.msra.mxu0 %v18438_v55  ;;  %v18514_v55 = vld [vmem:[%s21620_s30 + $0xc80] ss:$16 sps:$4 sm:$0xff]  }
  0xf5   : > { %13105 = vmatpush1.bf16.msra.mxu1 %v18441_v56  ;;  %13065 = vmatprep.subr.bf16.mxu0 %v18446_v57  ;;  %v18517_v56 = vld [vmem:[%s21620_s30 + $0xe80] ss:$16 sps:$4 sm:$0xff]   ;;  %v18522_v57 = vld [vmem:[%s21620_s30 + $0xc64] ss:$16 sps:$4 sm:$0xff]  }
  0xf6   : > { %13106 = vmatprep.subr.bf16.mxu1 %v18449_v58  ;;  %v18525_v58 = vld [vmem:[%s21620_s30 + $0xe64] ss:$16 sps:$4 sm:$0xff]  }
  0xf8   : > { %13066 = vmatpush2.bf16.msra.mxu0 %v18444_v59  ;;  %v18520_v59 = vld [vmem:[%s21620_s30 + $0xc60] ss:$16 sps:$4 sm:$0xff]  }
  0xf9   : > { %13107 = vmatpush2.bf16.msra.mxu1 %v18447_v60  ;;  %13067 = vmatprep.subr.bf16.mxu0 %v18452_v61  ;;  %v18523_v60 = vld [vmem:[%s21620_s30 + $0xe60] ss:$16 sps:$4 sm:$0xff]   ;;  %v18528_v61 = vld [vmem:[%s21620_s30 + $0xc44] ss:$16 sps:$4 sm:$0xff]  }
  0xfa   : > { %13108 = vmatprep.subr.bf16.mxu1 %v18455_v62  ;;  %v18531_v62 = vld [vmem:[%s21620_s30 + $0xe44] ss:$16 sps:$4 sm:$0xff]  }
  0xfc   : > { %13068 = vmatpush2.bf16.msra.mxu0 %v18450_v63  ;;  %v18526_v63 = vld [vmem:[%s21620_s30 + $0xc40] ss:$16 sps:$4 sm:$0xff]  }
  0xfd   : > { %13109 = vmatpush2.bf16.msra.mxu1 %v18453_v0  ;;  %13069 = vmatprep.subr.bf16.mxu0 %v18458_v1  ;;  %v18529_v0 = vld [vmem:[%s21620_s30 + $0xe40] ss:$16 sps:$4 sm:$0xff]   ;;  %v18534_v1 = vld [vmem:[%s21620_s30 + $0xc24] ss:$16 sps:$4 sm:$0xff]  }
  0xfe   : > { %13110 = vmatprep.subr.bf16.mxu1 %v18461_v2  ;;  %v18537_v2 = vld [vmem:[%s21620_s30 + $0xe24] ss:$16 sps:$4 sm:$0xff]  }
 0x100   : > { %13070 = vmatpush2.bf16.msra.mxu0 %v18456_v3  ;;  %v18532_v3 = vld [vmem:[%s21620_s30 + $0xc20] ss:$16 sps:$4 sm:$0xff]  }
 0x101   : > { %13111 = vmatpush2.bf16.msra.mxu1 %v18459_v4  ;;  %13071 = vmatprep.subr.bf16.mxu0 %v18464_v5  ;;  %v18535_v4 = vld [vmem:[%s21620_s30 + $0xe20] ss:$16 sps:$4 sm:$0xff]   ;;  %v18540_v5 = vld [vmem:[%s21620_s30 + $0xc04] ss:$16 sps:$4 sm:$0xff]  }
 0x102   : > { %13112 = vmatprep.subr.bf16.mxu1 %v18467_v6  ;;  %v18543_v6 = vld [vmem:[%s21620_s30 + $0xe04] ss:$16 sps:$4 sm:$0xff]  }
 0x104   : > { %13072 = vmatpush2.bf16.msra.mxu0 %v18462_v9  ;;  %v18538_v9 = vld [vmem:[%s21620_s30 + $0xc00] ss:$16 sps:$4 sm:$0xff]  }
 0x105   : > { %13113 = vmatpush2.bf16.msra.mxu1 %v18465_v10  ;;  %13073 = vmatprep.subr.bf16.mxu0 %v18470_v11  ;;  %v18541_v10 = vld [vmem:[%s21620_s30 + $0xe00] ss:$16 sps:$4 sm:$0xff]   ;;  %v18546_v11 = vld [vmem:[%s21620_s30 + $0xde4] ss:$16 sps:$4 sm:$0xff]  }
 0x106   : > { %13114 = vmatprep.subr.bf16.mxu1 %v18473_v12  ;;  %v18549_v12 = vld [vmem:[%s21620_s30 + $0xfe4] ss:$16 sps:$4 sm:$0xff]  }
 0x108   : > { %13074 = vmatpush2.bf16.msra.mxu0 %v18468_v13  ;;  %v18544_v13 = vld [vmem:[%s21620_s30 + $0xde0] ss:$16 sps:$4 sm:$0xff]  }
 0x109   : > { %13115 = vmatpush2.bf16.msra.mxu1 %v18471_v14  ;;  %13075 = vmatprep.subr.bf16.mxu0 %v18476_v15  ;;  %v18547_v14 = vld [vmem:[%s21620_s30 + $0xfe0] ss:$16 sps:$4 sm:$0xff]   ;;  %v18552_v15 = vld [vmem:[%s21620_s30 + $0xdc4] ss:$16 sps:$4 sm:$0xff]  }
 0x10a   : > { %13116 = vmatprep.subr.bf16.mxu1 %v18479_v16  ;;  %v18555_v16 = vld [vmem:[%s21620_s30 + $0xfc4] ss:$16 sps:$4 sm:$0xff]  }
 0x10c   : > { %13076 = vmatpush2.bf16.msra.mxu0 %v18474_v19  ;;  %v18550_v19 = vld [vmem:[%s21620_s30 + $0xdc0] ss:$16 sps:$4 sm:$0xff]  }
 0x10d   : > { %13117 = vmatpush2.bf16.msra.mxu1 %v18477_v20  ;;  %13077 = vmatprep.subr.bf16.mxu0 %v18482_v21  ;;  %v18553_v20 = vld [vmem:[%s21620_s30 + $0xfc0] ss:$16 sps:$4 sm:$0xff]   ;;  %v18558_v21 = vld [vmem:[%s21620_s30 + $0xda4] ss:$16 sps:$4 sm:$0xff]  }
 0x10e   : > { %13118 = vmatprep.subr.bf16.mxu1 %v18485_v22  ;;  %v18561_v22 = vld [vmem:[%s21620_s30 + $0xfa4] ss:$16 sps:$4 sm:$0xff]  }
 0x110   : > { %13078 = vmatpush2.bf16.msra.mxu0 %v18480_v27  ;;  %v18556_v27 = vld [vmem:[%s21620_s30 + $0xda0] ss:$16 sps:$4 sm:$0xff]  }
 0x111   : > { %13119 = vmatpush2.bf16.msra.mxu1 %v18483_v28  ;;  %13079 = vmatprep.subr.bf16.mxu0 %v18488_v29  ;;  %v18559_v28 = vld [vmem:[%s21620_s30 + $0xfa0] ss:$16 sps:$4 sm:$0xff]   ;;  %v18564_v29 = vld [vmem:[%s21620_s30 + $0xd84] ss:$16 sps:$4 sm:$0xff]  }
 0x112   : > { %13120 = vmatprep.subr.bf16.mxu1 %v18491_v30  ;;  %v18567_v30 = vld [vmem:[%s21620_s30 + $0xf84] ss:$16 sps:$4 sm:$0xff]  }
 0x114   : > { %13080 = vmatpush2.bf16.msra.mxu0 %v18486_v31  ;;  %v18562_v31 = vld [vmem:[%s21620_s30 + $0xd80] ss:$16 sps:$4 sm:$0xff]  }
 0x115   : > { %13121 = vmatpush2.bf16.msra.mxu1 %v18489_v32  ;;  %13131 = vmatprep.subr.bf16.mxu0 %v18498_v33  ;;  %v18565_v32 = vld [vmem:[%s21620_s30 + $0xf80] ss:$16 sps:$4 sm:$0xff]   ;;  %v18570_v33 = vld [vmem:[%s21620_s30 + $0xd64] ss:$16 sps:$4 sm:$0xff]  }
 0x116   : > { %13172 = vmatprep.subr.bf16.mxu1 %v18501_v34  ;;  %v18573_v34 = vld [vmem:[%s21620_s30 + $0xf64] ss:$16 sps:$4 sm:$0xff]  }
 0x117   : > { %13082 = vmatmul.mubr.bf16.vlgmr.msra.gmra.mxu0 %v21891_v39 }
 0x118   : > { %13123 = vmatmul.mubr.bf16.vlgmr.msra.gmra.mxu1 %v21895_v40  ;;  %13132 = vmatpush1.bf16.msra.mxu0 %v18496_v35  ;;  %v18568_v35 = vld [vmem:[%s21620_s30 + $0xd60] ss:$16 sps:$4 sm:$0xff]  }
 0x119   : > { %13173 = vmatpush1.bf16.msra.mxu1 %v18499_v36  ;;  %13133 = vmatprep.subr.bf16.mxu0 %v18504_v43  ;;  %v18571_v36 = vld [vmem:[%s21620_s30 + $0xf60] ss:$16 sps:$4 sm:$0xff]   ;;  %v18576_v43 = vld [vmem:[%s21620_s30 + $0xd44] ss:$16 sps:$4 sm:$0xff]  }
 0x11a   : > { %13174 = vmatprep.subr.bf16.mxu1 %v18507_v44  ;;  %13163 = vmatprep.mubr.bf16.mxu0 %v21907_v23  ;;  %v18579_v44 = vld [vmem:[%s21620_s30 + $0xf44] ss:$16 sps:$4 sm:$0xff]  }
 0x11b   : > { %13204 = vmatprep.mubr.bf16.mxu1 %v21911_v24 }
 0x11c   : > { %13134 = vmatpush1.bf16.msra.mxu0 %v18502_v45  ;;  %v18574_v45 = vld [vmem:[%s21620_s30 + $0xd40] ss:$16 sps:$4 sm:$0xff]  }
 0x11d   : > { %13175 = vmatpush1.bf16.msra.mxu1 %v18505_v46  ;;  %13135 = vmatprep.subr.bf16.mxu0 %v18510_v47  ;;  %v18577_v46 = vld [vmem:[%s21620_s30 + $0xf40] ss:$16 sps:$4 sm:$0xff]   ;;  %v18582_v47 = vld [vmem:[%s21620_s30 + $0xd24] ss:$16 sps:$4 sm:$0xff]  }
 0x11e   : > { %13176 = vmatprep.subr.bf16.mxu1 %v18513_v49  ;;  %v18585_v49 = vld [vmem:[%s21620_s30 + $0xf24] ss:$16 sps:$4 sm:$0xff]  }
 0x120   : > { %13136 = vmatpush1.bf16.msra.mxu0 %v18508_v50  ;;  %v18580_v50 = vld [vmem:[%s21620_s30 + $0xd20] ss:$16 sps:$4 sm:$0xff]  }
 0x121   : > { %13177 = vmatpush1.bf16.msra.mxu1 %v18511_v51  ;;  %13137 = vmatprep.subr.bf16.mxu0 %v18516_v53  ;;  %v18583_v51 = vld [vmem:[%s21620_s30 + $0xf20] ss:$16 sps:$4 sm:$0xff]   ;;  %v18588_v53 = vld [vmem:[%s21620_s30 + $0xd04] ss:$16 sps:$4 sm:$0xff]  }
 0x122   : > { %13178 = vmatprep.subr.bf16.mxu1 %v18519_v54  ;;  %v18591_v54 = vld [vmem:[%s21620_s30 + $0xf04] ss:$16 sps:$4 sm:$0xff]  }
 0x124   : > { %13138 = vmatpush1.bf16.msra.mxu0 %v18514_v55  ;;  %v18586_v55 = vld [vmem:[%s21620_s30 + $0xd00] ss:$16 sps:$4 sm:$0xff]  }
 0x125   : > { %13179 = vmatpush1.bf16.msra.mxu1 %v18517_v56  ;;  %13139 = vmatprep.subr.bf16.mxu0 %v18522_v57  ;;  %v18589_v56 = vld [vmem:[%s21620_s30 + $0xf00] ss:$16 sps:$4 sm:$0xff]   ;;  %v18598_v57 = vld [vmem:[%s21620_s30 + $0x10e4] ss:$16 sps:$4 sm:$0xff]  }
 0x126   : > { %13180 = vmatprep.subr.bf16.mxu1 %v18525_v58  ;;  %v18601_v58 = vld [vmem:[%s21620_s30 + $0x12e4] ss:$16 sps:$4 sm:$0xff]  }
 0x128   : > { %13140 = vmatpush1.bf16.msra.mxu0 %v18520_v59  ;;  %v21978_v59 = vld [vmem:[%s21634_s8 + $0x40] sm:$0xff] }
 0x129   : > { %13181 = vmatpush1.bf16.msra.mxu1 %v18523_v60  ;;  %13141 = vmatprep.subr.bf16.mxu0 %v18528_v61  ;;  %v21982_v60 = vcombine.low %v21898_v41, %v21898_v41  ;;  %v21986_v61 = vcombine.low %v21901_v42, %v21901_v42  ;;  %v21997_v41 = vcombine.high %v21978_v59, %v21978_v59 }
 0x12a   : > { %13182 = vmatprep.subr.bf16.mxu1 %v18531_v62  ;;  %v21989_v62 = vld [vmem:[%s21634_s8 + $0x48] sm:$0xff] }
 0x12b   : > { %v22001_v42 = vcombine.high %v21989_v62, %v21989_v62 }
 0x12c   : > { %13142 = vmatpush1.bf16.msra.mxu0 %v18526_v63  ;;  %v18596_v63 = vld [vmem:[%s21620_s30 + $0x10e0] ss:$16 sps:$4 sm:$0xff]  }
 0x12d   : > { %13183 = vmatpush1.bf16.msra.mxu1 %v18529_v0  ;;  %13143 = vmatprep.subr.bf16.mxu0 %v18534_v1  ;;  %v18599_v0 = vld [vmem:[%s21620_s30 + $0x12e0] ss:$16 sps:$4 sm:$0xff]   ;;  %v18604_v1 = vld [vmem:[%s21620_s30 + $0x10c4] ss:$16 sps:$4 sm:$0xff]  }
 0x12e   : > { %13184 = vmatprep.subr.bf16.mxu1 %v18537_v2  ;;  %v18607_v2 = vld [vmem:[%s21620_s30 + $0x12c4] ss:$16 sps:$4 sm:$0xff]  }
 0x130   : > { %13144 = vmatpush1.bf16.msra.mxu0 %v18532_v3 }
 0x131   : > { %13185 = vmatpush1.bf16.msra.mxu1 %v18535_v4  ;;  %13145 = vmatprep.subr.bf16.mxu0 %v18540_v5  ;;  %v18602_v5 = vld [vmem:[%s21620_s30 + $0x10c0] ss:$16 sps:$4 sm:$0xff]  }
 0x132   : > { %13186 = vmatprep.subr.bf16.mxu1 %v18543_v6  ;;  %v18605_v6 = vld [vmem:[%s21620_s30 + $0x12c0] ss:$16 sps:$4 sm:$0xff]  }
 0x134   : > { %13146 = vmatpush1.bf16.msra.mxu0 %v18538_v9 }
 0x135   : > { %13187 = vmatpush1.bf16.msra.mxu1 %v18541_v10  ;;  %13147 = vmatprep.subr.bf16.mxu0 %v18546_v11  ;;  %v18610_v10 = vld [vmem:[%s21620_s30 + $0x10a4] ss:$16 sps:$4 sm:$0xff]  }
 0x136   : > { %13188 = vmatprep.subr.bf16.mxu1 %v18549_v12 }
 0x138   : > { %13148 = vmatpush2.bf16.msra.mxu0 %v18544_v13  ;;  %v18613_v13 = vld [vmem:[%s21620_s30 + $0x12a4] ss:$16 sps:$4 sm:$0xff]  }
 0x139   : > { %13189 = vmatpush2.bf16.msra.mxu1 %v18547_v14  ;;  %13149 = vmatprep.subr.bf16.mxu0 %v18552_v15 }
 0x13a   : > { %13190 = vmatprep.subr.bf16.mxu1 %v18555_v16 }
 0x13c   : > { %13150 = vmatpush2.bf16.msra.mxu0 %v18550_v19  ;;  %v18608_v19 = vld [vmem:[%s21620_s30 + $0x10a0] ss:$16 sps:$4 sm:$0xff]  }
 0x13d   : > { %13191 = vmatpush2.bf16.msra.mxu1 %v18553_v20  ;;  %13151 = vmatprep.subr.bf16.mxu0 %v18558_v21  ;;  %v18611_v20 = vld [vmem:[%s21620_s30 + $0x12a0] ss:$16 sps:$4 sm:$0xff]   ;;  %v18616_v21 = vld [vmem:[%s21620_s30 + $0x1084] ss:$16 sps:$4 sm:$0xff]  }
 0x13e   : > { %13192 = vmatprep.subr.bf16.mxu1 %v18561_v22 }
 0x140   : > { %13152 = vmatpush2.bf16.msra.mxu0 %v18556_v27 }
 0x141   : > { %13193 = vmatpush2.bf16.msra.mxu1 %v18559_v28  ;;  %13153 = vmatprep.subr.bf16.mxu0 %v18564_v29  ;;  %v18619_v28 = vld [vmem:[%s21620_s30 + $0x1284] ss:$16 sps:$4 sm:$0xff]   ;;  %v18614_v29 = vld [vmem:[%s21620_s30 + $0x1080] ss:$16 sps:$4 sm:$0xff]  }
 0x142   : > { %13194 = vmatprep.subr.bf16.mxu1 %v18567_v30  ;;  %v18617_v30 = vld [vmem:[%s21620_s30 + $0x1280] ss:$16 sps:$4 sm:$0xff]  }
 0x144   : > { %13154 = vmatpush2.bf16.msra.mxu0 %v18562_v31  ;;  %v18622_v31 = vld [vmem:[%s21620_s30 + $0x1064] ss:$16 sps:$4 sm:$0xff]  }
 0x145   : > { %13195 = vmatpush2.bf16.msra.mxu1 %v18565_v32  ;;  %13155 = vmatprep.subr.bf16.mxu0 %v18570_v33  ;;  %v18625_v32 = vld [vmem:[%s21620_s30 + $0x1264] ss:$16 sps:$4 sm:$0xff]   ;;  %v18620_v33 = vld [vmem:[%s21620_s30 + $0x1060] ss:$16 sps:$4 sm:$0xff]  }
 0x146   : > { %13196 = vmatprep.subr.bf16.mxu1 %v18573_v34  ;;  %v18623_v34 = vld [vmem:[%s21620_s30 + $0x1260] ss:$16 sps:$4 sm:$0xff]  }
 0x148   : > { %13156 = vmatpush2.bf16.msra.mxu0 %v18568_v35  ;;  %v18628_v35 = vld [vmem:[%s21620_s30 + $0x1044] ss:$16 sps:$4 sm:$0xff]  }
 0x149   : > { %13197 = vmatpush2.bf16.msra.mxu1 %v18571_v36  ;;  %13157 = vmatprep.subr.bf16.mxu0 %v18576_v43  ;;  %v18631_v36 = vld [vmem:[%s21620_s30 + $0x1244] ss:$16 sps:$4 sm:$0xff]   ;;  %v18626_v43 = vld [vmem:[%s21620_s30 + $0x1040] ss:$16 sps:$4 sm:$0xff]  }
 0x14a   : > { %13198 = vmatprep.subr.bf16.mxu1 %v18579_v44  ;;  %v18629_v44 = vld [vmem:[%s21620_s30 + $0x1240] ss:$16 sps:$4 sm:$0xff]  }
 0x14c   : > { %13158 = vmatpush2.bf16.msra.mxu0 %v18574_v45  ;;  %v18634_v45 = vld [vmem:[%s21620_s30 + $0x1024] ss:$16 sps:$4 sm:$0xff]  }
 0x14d   : > { %13199 = vmatpush2.bf16.msra.mxu1 %v18577_v46  ;;  %13159 = vmatprep.subr.bf16.mxu0 %v18582_v47  ;;  %v18637_v46 = vld [vmem:[%s21620_s30 + $0x1224] ss:$16 sps:$4 sm:$0xff]   ;;  %v18632_v47 = vld [vmem:[%s21620_s30 + $0x1020] ss:$16 sps:$4 sm:$0xff]  }
 0x14e   : > { %13200 = vmatprep.subr.bf16.mxu1 %v18585_v49  ;;  %v18635_v49 = vld [vmem:[%s21620_s30 + $0x1220] ss:$16 sps:$4 sm:$0xff]  }
 0x150   : > { %13160 = vmatpush2.bf16.msra.mxu0 %v18580_v50  ;;  %v18640_v50 = vld [vmem:[%s21620_s30 + $0x1004] ss:$16 sps:$4 sm:$0xff]  }
 0x151   : > { %13201 = vmatpush2.bf16.msra.mxu1 %v18583_v51  ;;  %13161 = vmatprep.subr.bf16.mxu0 %v18588_v53  ;;  %v18643_v51 = vld [vmem:[%s21620_s30 + $0x1204] ss:$16 sps:$4 sm:$0xff]   ;;  %v18638_v53 = vld [vmem:[%s21620_s30 + $0x1000] ss:$16 sps:$4 sm:$0xff]  }
 0x152   : > { %13202 = vmatprep.subr.bf16.mxu1 %v18591_v54  ;;  %v18641_v54 = vld [vmem:[%s21620_s30 + $0x1200] ss:$16 sps:$4 sm:$0xff]  }
 0x154   : > { %13162 = vmatpush2.bf16.msra.mxu0 %v18586_v55  ;;  %v18646_v55 = vld [vmem:[%s21620_s30 + $0x11e4] ss:$16 sps:$4 sm:$0xff]  }
 0x155   : > { %13203 = vmatpush2.bf16.msra.mxu1 %v18589_v56  ;;  %13213 = vmatprep.subr.bf16.mxu0 %v18598_v57  ;;  %v18649_v56 = vld [vmem:[%s21620_s30 + $0x13e4] ss:$16 sps:$4 sm:$0xff]   ;;  %v18644_v57 = vld [vmem:[%s21620_s30 + $0x11e0] ss:$16 sps:$4 sm:$0xff]  }
 0x156   : > { %13254 = vmatprep.subr.bf16.mxu1 %v18601_v58  ;;  %v18647_v58 = vld [vmem:[%s21620_s30 + $0x13e0] ss:$16 sps:$4 sm:$0xff]  }
 0x157   : > { %v12919_v3 = vpop.f32.mrf.mxu0  ;;  %13164 = vmatmul.mubr.bf16.vlgmr.msra.gmra.mxu0 %v21982_v60 }
 0x158   : > { %v12960_v4 = vpop.f32.mrf.mxu1  ;;  %13205 = vmatmul.mubr.bf16.vlgmr.msra.gmra.mxu1 %v21986_v61  ;;  %13214 = vmatpush1.bf16.msra.mxu0 %v18596_v63  ;;  %v18652_v63 = vld [vmem:[%s21620_s30 + $0x11c4] ss:$16 sps:$4 sm:$0xff]  }
 0x159   : > { %v22007_v9 = vadd.f32 %v12960_v4, %v12919_v3  ;;  %13255 = vmatpush1.bf16.msra.mxu1 %v18599_v0  ;;  %v12921_v11 = vpop.f32.mrf.mxu0  ;;  %13215 = vmatprep.subr.bf16.mxu0 %v18604_v1  ;;  %v18655_v0 = vld [vmem:[%s21620_s30 + $0x13c4] ss:$16 sps:$4 sm:$0xff]   ;;  %v18650_v1 = vld [vmem:[%s21620_s30 + $0x11c0] ss:$16 sps:$4 sm:$0xff]  }
 0x15a   : > { %v12962_v12 = vpop.f32.mrf.mxu1  ;;  %13256 = vmatprep.subr.bf16.mxu1 %v18607_v2  ;;  %13245 = vmatprep.mubr.bf16.mxu0 %v21997_v41  ;;  %v18653_v2 = vld [vmem:[%s21620_s30 + $0x13c0] ss:$16 sps:$4 sm:$0xff]   ;;  %v18658_v3 = vld [vmem:[%s21620_s30 + $0x11a4] ss:$16 sps:$4 sm:$0xff]  }
 0x15b   : > { %v22011_v14 = vadd.f32 %v12962_v12, %v12921_v11  ;;  %13286 = vmatprep.mubr.bf16.mxu1 %v22001_v42  ;;  %v12923_v15 = vpop.f32.mrf.mxu0  ;;  %v18661_v4 = vld [vmem:[%s21620_s30 + $0x13a4] ss:$16 sps:$4 sm:$0xff]   ;;  %v18662_v12 = vld [vmem:[%s21620_s30 + $0x1180] ss:$16 sps:$4 sm:$0xff]  }
 0x15c   : > { %v12964_v16 = vpop.f32.mrf.mxu1  ;;  %13216 = vmatpush1.bf16.msra.mxu0 %v18602_v5  ;;  %v18656_v5 = vld [vmem:[%s21620_s30 + $0x11a0] ss:$16 sps:$4 sm:$0xff]   ;;  %v18667_v11 = vld [vmem:[%s21620_s30 + $0x1384] ss:$16 sps:$4 sm:$0xff]  }
 0x15d   : > { %13257 = vmatpush1.bf16.msra.mxu1 %v18605_v6  ;;  %v12924_v22 = vpop.f32.mrf.mxu0  ;;  %13217 = vmatprep.subr.bf16.mxu0 %v18610_v10  ;;  %v18659_v6 = vld [vmem:[%s21620_s30 + $0x13a0] ss:$16 sps:$4 sm:$0xff]   ;;  %v18664_v10 = vld [vmem:[%s21620_s30 + $0x1184] ss:$16 sps:$4 sm:$0xff]  }
 0x15e   : > { %v12965_v27 = vpop.f32.mrf.mxu1  ;;  %13258 = vmatprep.subr.bf16.mxu1 %v18613_v13  ;;  %v18665_v13 = vld [vmem:[%s21620_s30 + $0x1380] ss:$16 sps:$4 sm:$0xff]   ;;  %v18670_v15 = vld [vmem:[%s21620_s30 + $0x1164] ss:$16 sps:$4 sm:$0xff]  }
 0x15f   : > { %v18673_v16 = vld [vmem:[%s21620_s30 + $0x1364] ss:$16 sps:$4 sm:$0xff]   ;;  %v18674_v27 = vld [vmem:[%s21620_s30 + $0x1140] ss:$16 sps:$4 sm:$0xff]  }
 0x160   : > { %13218 = vmatpush1.bf16.msra.mxu0 %v18608_v19  ;;  %v18668_v19 = vld [vmem:[%s21620_s30 + $0x1160] ss:$16 sps:$4 sm:$0xff]   ;;  %v18679_v22 = vld [vmem:[%s21620_s30 + $0x1344] ss:$16 sps:$4 sm:$0xff]  }
 0x161   : > { %13259 = vmatpush1.bf16.msra.mxu1 %v18611_v20  ;;  %13219 = vmatprep.subr.bf16.mxu0 %v18616_v21  ;;  %v18671_v20 = vld [vmem:[%s21620_s30 + $0x1360] ss:$16 sps:$4 sm:$0xff]   ;;  %v18676_v21 = vld [vmem:[%s21620_s30 + $0x1144] ss:$16 sps:$4 sm:$0xff]  }
 0x162   : > { %13260 = vmatprep.subr.bf16.mxu1 %v18619_v28  ;;  %v18677_v28 = vld [vmem:[%s21620_s30 + $0x1340] ss:$16 sps:$4 sm:$0xff]  }
 0x164   : > { %13220 = vmatpush1.bf16.msra.mxu0 %v18614_v29  ;;  %v18682_v29 = vld [vmem:[%s21620_s30 + $0x1124] ss:$16 sps:$4 sm:$0xff]  }
 0x165   : > { %13261 = vmatpush1.bf16.msra.mxu1 %v18617_v30  ;;  %13221 = vmatprep.subr.bf16.mxu0 %v18622_v31  ;;  %v18685_v30 = vld [vmem:[%s21620_s30 + $0x1324] ss:$16 sps:$4 sm:$0xff]   ;;  %v18680_v31 = vld [vmem:[%s21620_s30 + $0x1120] ss:$16 sps:$4 sm:$0xff]  }
 0x166   : > { %13262 = vmatprep.subr.bf16.mxu1 %v18625_v32  ;;  %v18683_v32 = vld [vmem:[%s21620_s30 + $0x1320] ss:$16 sps:$4 sm:$0xff]  }
 0x168   : > { %13222 = vmatpush1.bf16.msra.mxu0 %v18620_v33  ;;  %v18688_v33 = vld [vmem:[%s21620_s30 + $0x1104] ss:$16 sps:$4 sm:$0xff]  }
 0x169   : > { %13263 = vmatpush1.bf16.msra.mxu1 %v18623_v34  ;;  %13223 = vmatprep.subr.bf16.mxu0 %v18628_v35  ;;  %v18691_v34 = vld [vmem:[%s21620_s30 + $0x1304] ss:$16 sps:$4 sm:$0xff]   ;;  %v18686_v35 = vld [vmem:[%s21620_s30 + $0x1100] ss:$16 sps:$4 sm:$0xff]  }
 0x16a   : > { %13264 = vmatprep.subr.bf16.mxu1 %v18631_v36  ;;  %v18689_v36 = vld [vmem:[%s21620_s30 + $0x1300] ss:$16 sps:$4 sm:$0xff]  }
 0x16c   : > { %13224 = vmatpush1.bf16.msra.mxu0 %v18626_v43  ;;  %v18698_v43 = vld [vmem:[%s21620_s30 + $0x14e4] ss:$16 sps:$4 sm:$0xff]  }
 0x16d   : > { %13265 = vmatpush1.bf16.msra.mxu1 %v18629_v44  ;;  %13225 = vmatprep.subr.bf16.mxu0 %v18634_v45  ;;  %v18701_v44 = vld [vmem:[%s21620_s30 + $0x16e4] ss:$16 sps:$4 sm:$0xff]   ;;  %v18696_v45 = vld [vmem:[%s21620_s30 + $0x14e0] ss:$16 sps:$4 sm:$0xff]  }
 0x16e   : > { %13266 = vmatprep.subr.bf16.mxu1 %v18637_v46  ;;  %v18699_v46 = vld [vmem:[%s21620_s30 + $0x16e0] ss:$16 sps:$4 sm:$0xff]  }
 0x170   : > { %13226 = vmatpush1.bf16.msra.mxu0 %v18632_v47  ;;  %v22075_v47 = vcombine.low %v21978_v59, %v21978_v59 }
 0x171   : > { %13267 = vmatpush1.bf16.msra.mxu1 %v18635_v49  ;;  %13227 = vmatprep.subr.bf16.mxu0 %v18640_v50  ;;  %v22079_v49 = vcombine.low %v21989_v62, %v21989_v62  ;;  %v22082_v50 = vld [vmem:[%s21634_s8 + $0x50] sm:$0xff] }
 0x172   : > { %13268 = vmatprep.subr.bf16.mxu1 %v18643_v51  ;;  %v22085_v51 = vld [vmem:[%s21634_s8 + $0x58] sm:$0xff]  ;;  %v22093_v59 = vcombine.high %v22082_v50, %v22082_v50 }
 0x173   : > { %v22097_v62 = vcombine.high %v22085_v51, %v22085_v51 }
 0x174   : > { %13228 = vmatpush1.bf16.msra.mxu0 %v18638_v53  ;;  %v18704_v53 = vld [vmem:[%s21620_s30 + $0x14c4] ss:$16 sps:$4 sm:$0xff]  }
 0x175   : > { %13269 = vmatpush1.bf16.msra.mxu1 %v18641_v54  ;;  %13229 = vmatprep.subr.bf16.mxu0 %v18646_v55  ;;  %v18707_v54 = vld [vmem:[%s21620_s30 + $0x16c4] ss:$16 sps:$4 sm:$0xff]   ;;  %v18702_v55 = vld [vmem:[%s21620_s30 + $0x14c0] ss:$16 sps:$4 sm:$0xff]  }
 0x176   : > { %13270 = vmatprep.subr.bf16.mxu1 %v18649_v56  ;;  %v18705_v56 = vld [vmem:[%s21620_s30 + $0x16c0] ss:$16 sps:$4 sm:$0xff]  }
 0x178   : > { %13230 = vmatpush2.bf16.msra.mxu0 %v18644_v57 }
 0x179   : > { %13271 = vmatpush2.bf16.msra.mxu1 %v18647_v58  ;;  %13231 = vmatprep.subr.bf16.mxu0 %v18652_v63 }
 0x17a   : > { %13272 = vmatprep.subr.bf16.mxu1 %v18655_v0 }
 0x17c   : > { %13232 = vmatpush2.bf16.msra.mxu0 %v18650_v1 }
 0x17d   : > { %13273 = vmatpush2.bf16.msra.mxu1 %v18653_v2  ;;  %13233 = vmatprep.subr.bf16.mxu0 %v18658_v3  ;;  %v18710_v2 = vld [vmem:[%s21620_s30 + $0x14a4] ss:$16 sps:$4 sm:$0xff]  }
 0x17e   : > { %13274 = vmatprep.subr.bf16.mxu1 %v18661_v4  ;;  %v18713_v3 = vld [vmem:[%s21620_s30 + $0x16a4] ss:$16 sps:$4 sm:$0xff]  }
 0x180   : > { %13234 = vmatpush2.bf16.msra.mxu0 %v18656_v5 }
 0x181   : > { %13275 = vmatpush2.bf16.msra.mxu1 %v18659_v6  ;;  %13235 = vmatprep.subr.bf16.mxu0 %v18664_v10  ;;  %v18708_v6 = vld [vmem:[%s21620_s30 + $0x14a0] ss:$16 sps:$4 sm:$0xff]  }
 0x182   : > { %13276 = vmatprep.subr.bf16.mxu1 %v18667_v11  ;;  %v18711_v10 = vld [vmem:[%s21620_s30 + $0x16a0] ss:$16 sps:$4 sm:$0xff]  }
 0x184   : > { %13236 = vmatpush2.bf16.msra.mxu0 %v18662_v12 }
 0x185   : > { %13277 = vmatpush2.bf16.msra.mxu1 %v18665_v13  ;;  %13237 = vmatprep.subr.bf16.mxu0 %v18670_v15 }
 0x186   : > { %13278 = vmatprep.subr.bf16.mxu1 %v18673_v16  ;;  %v18719_v16 = vld [vmem:[%s21620_s30 + $0x1684] ss:$16 sps:$4 sm:$0xff]  }
 0x188   : > { %13238 = vmatpush2.bf16.msra.mxu0 %v18668_v19  ;;  %v18714_v19 = vld [vmem:[%s21620_s30 + $0x1480] ss:$16 sps:$4 sm:$0xff]  }
 0x189   : > { %13279 = vmatpush2.bf16.msra.mxu1 %v18671_v20  ;;  %13239 = vmatprep.subr.bf16.mxu0 %v18676_v21  ;;  %v18717_v20 = vld [vmem:[%s21620_s30 + $0x1680] ss:$16 sps:$4 sm:$0xff]   ;;  %v18722_v21 = vld [vmem:[%s21620_s30 + $0x1464] ss:$16 sps:$4 sm:$0xff]  }
 0x18a   : > { %13280 = vmatprep.subr.bf16.mxu1 %v18679_v22  ;;  %v18725_v22 = vld [vmem:[%s21620_s30 + $0x1664] ss:$16 sps:$4 sm:$0xff]  }
 0x18c   : > { %13240 = vmatpush2.bf16.msra.mxu0 %v18674_v27  ;;  %v18720_v27 = vld [vmem:[%s21620_s30 + $0x1460] ss:$16 sps:$4 sm:$0xff]  }
 0x18d   : > { %13281 = vmatpush2.bf16.msra.mxu1 %v18677_v28  ;;  %13241 = vmatprep.subr.bf16.mxu0 %v18682_v29  ;;  %v18723_v28 = vld [vmem:[%s21620_s30 + $0x1660] ss:$16 sps:$4 sm:$0xff]   ;;  %v18728_v29 = vld [vmem:[%s21620_s30 + $0x1444] ss:$16 sps:$4 sm:$0xff]  }
 0x18e   : > { %13282 = vmatprep.subr.bf16.mxu1 %v18685_v30  ;;  %v18731_v30 = vld [vmem:[%s21620_s30 + $0x1644] ss:$16 sps:$4 sm:$0xff]  }
 0x190   : > { %13242 = vmatpush2.bf16.msra.mxu0 %v18680_v31  ;;  %v18726_v31 = vld [vmem:[%s21620_s30 + $0x1440] ss:$16 sps:$4 sm:$0xff]  }
 0x191   : > { %13283 = vmatpush2.bf16.msra.mxu1 %v18683_v32  ;;  %13243 = vmatprep.subr.bf16.mxu0 %v18688_v33  ;;  %v18729_v32 = vld [vmem:[%s21620_s30 + $0x1640] ss:$16 sps:$4 sm:$0xff]   ;;  %v18734_v33 = vld [vmem:[%s21620_s30 + $0x1424] ss:$16 sps:$4 sm:$0xff]  }
 0x192   : > { %13284 = vmatprep.subr.bf16.mxu1 %v18691_v34  ;;  %v18737_v34 = vld [vmem:[%s21620_s30 + $0x1624] ss:$16 sps:$4 sm:$0xff]  }
 0x194   : > { %13244 = vmatpush2.bf16.msra.mxu0 %v18686_v35  ;;  %v18732_v35 = vld [vmem:[%s21620_s30 + $0x1420] ss:$16 sps:$4 sm:$0xff]  }
 0x195   : > { %13285 = vmatpush2.bf16.msra.mxu1 %v18689_v36  ;;  %13295 = vmatprep.subr.bf16.mxu0 %v18698_v43  ;;  %v18735_v36 = vld [vmem:[%s21620_s30 + $0x1620] ss:$16 sps:$4 sm:$0xff]   ;;  %v18740_v43 = vld [vmem:[%s21620_s30 + $0x1404] ss:$16 sps:$4 sm:$0xff]  }
 0x196   : > { %13336 = vmatprep.subr.bf16.mxu1 %v18701_v44  ;;  %v18743_v44 = vld [vmem:[%s21620_s30 + $0x1604] ss:$16 sps:$4 sm:$0xff]  }
 0x197   : > { %v13001_v57 = vpop.f32.mrf.mxu0  ;;  %13246 = vmatmul.mubr.bf16.vlgmr.msra.gmra.mxu0 %v22075_v47 }
 0x198   : > { %v13042_v58 = vpop.f32.mrf.mxu1  ;;  %13287 = vmatmul.mubr.bf16.vlgmr.msra.gmra.mxu1 %v22079_v49  ;;  %v13002_v63 = vadd.f32 %v13001_v57, %v22007_v9  ;;  %13296 = vmatpush1.bf16.msra.mxu0 %v18696_v45  ;;  %v18738_v45 = vld [vmem:[%s21620_s30 + $0x1400] ss:$16 sps:$4 sm:$0xff]   ;;  %v18752_v57 = vld [vmem:[%s21620_s30 + $0x15c4] ss:$16 sps:$4 sm:$0xff]  }
 0x199   : > { %13337 = vmatpush1.bf16.msra.mxu1 %v18699_v46  ;;  %v13003_v0 = vpop.f32.mrf.mxu0  ;;  %13297 = vmatprep.subr.bf16.mxu0 %v18704_v53  ;;  %v18741_v46 = vld [vmem:[%s21620_s30 + $0x1600] ss:$16 sps:$4 sm:$0xff]   ;;  %v18746_v53 = vld [vmem:[%s21620_s30 + $0x15e4] ss:$16 sps:$4 sm:$0xff]  }
 0x19a   : > { %v13044_v1 = vpop.f32.mrf.mxu1  ;;  %13338 = vmatprep.subr.bf16.mxu1 %v18707_v54  ;;  %v22104_v4 = vadd.f32 %v13042_v58, %v13002_v63  ;;  %v13004_v5 = vadd.f32 %v13003_v0, %v22011_v14  ;;  %13327 = vmatprep.mubr.bf16.mxu0 %v22093_v59  ;;  %v18716_v14 = vld [vmem:[%s21620_s30 + $0x1484] ss:$16 sps:$4 sm:$0xff]   ;;  %v18750_v63 = vld [vmem:[%s21620_s30 + $0x15c0] ss:$16 sps:$4 sm:$0xff]  }
 0x19b   : > { %13368 = vmatprep.mubr.bf16.mxu1 %v22097_v62  ;;  %v13005_v9 = vpop.f32.mrf.mxu0  ;;  %v18749_v54 = vld [vmem:[%s21620_s30 + $0x17e4] ss:$16 sps:$4 sm:$0xff]   ;;  %v18753_v0 = vld [vmem:[%s21620_s30 + $0x17c0] ss:$16 sps:$4 sm:$0xff]  }
 0x19c   : > { %v13046_v11 = vpop.f32.mrf.mxu1  ;;  %v22111_v12 = vadd.f32 %v13044_v1, %v13004_v5  ;;  %13298 = vmatpush1.bf16.msra.mxu0 %v18702_v55  ;;  %v18744_v55 = vld [vmem:[%s21620_s30 + $0x15e0] ss:$16 sps:$4 sm:$0xff]   ;;  %v18755_v58 = vld [vmem:[%s21620_s30 + $0x17c4] ss:$16 sps:$4 sm:$0xff]  }
 0x19d   : > { %13339 = vmatpush1.bf16.msra.mxu1 %v18705_v56  ;;  %v13006_v13 = vpop.f32.mrf.mxu0  ;;  %13299 = vmatprep.subr.bf16.mxu0 %v18710_v2  ;;  %v18747_v56 = vld [vmem:[%s21620_s30 + $0x17e0] ss:$16 sps:$4 sm:$0xff]   ;;  %v18758_v1 = vld [vmem:[%s21620_s30 + $0x15a4] ss:$16 sps:$4 sm:$0xff]  }
 0x19e   : > { %v13047_v15 = vpop.f32.mrf.mxu1  ;;  %13340 = vmatprep.subr.bf16.mxu1 %v18713_v3  ;;  %v18761_v2 = vld [vmem:[%s21620_s30 + $0x17a4] ss:$16 sps:$4 sm:$0xff]   ;;  %v18756_v3 = vld [vmem:[%s21620_s30 + $0x15a0] ss:$16 sps:$4 sm:$0xff]  }
 0x19f   : > { %v18759_v5 = vld [vmem:[%s21620_s30 + $0x17a0] ss:$16 sps:$4 sm:$0xff]   ;;  %v18770_v13 = vld [vmem:[%s21620_s30 + $0x1564] ss:$16 sps:$4 sm:$0xff]  }
 0x1a0   : > { %13300 = vmatpush1.bf16.msra.mxu0 %v18708_v6  ;;  %v18764_v6 = vld [vmem:[%s21620_s30 + $0x1584] ss:$16 sps:$4 sm:$0xff]   ;;  %v18762_v9 = vld [vmem:[%s21620_s30 + $0x1580] ss:$16 sps:$4 sm:$0xff]  }
 0x1a1   : > { %13341 = vmatpush1.bf16.msra.mxu1 %v18711_v10  ;;  %13301 = vmatprep.subr.bf16.mxu0 %v18716_v14  ;;  %v18767_v10 = vld [vmem:[%s21620_s30 + $0x1784] ss:$16 sps:$4 sm:$0xff]   ;;  %v18765_v11 = vld [vmem:[%s21620_s30 + $0x1780] ss:$16 sps:$4 sm:$0xff]  }
 0x1a2   : > { %13342 = vmatprep.subr.bf16.mxu1 %v18719_v16  ;;  %v18773_v15 = vld [vmem:[%s21620_s30 + $0x1764] ss:$16 sps:$4 sm:$0xff]   ;;  %v18768_v14 = vld [vmem:[%s21620_s30 + $0x1560] ss:$16 sps:$4 sm:$0xff]  }
 0x1a3   : > { %v18771_v16 = vld [vmem:[%s21620_s30 + $0x1760] ss:$16 sps:$4 sm:$0xff]  }
 0x1a4   : > { %13302 = vmatpush1.bf16.msra.mxu0 %v18714_v19  ;;  %v18776_v19 = vld [vmem:[%s21620_s30 + $0x1544] ss:$16 sps:$4 sm:$0xff]  }
 0x1a5   : > { %13343 = vmatpush1.bf16.msra.mxu1 %v18717_v20  ;;  %13303 = vmatprep.subr.bf16.mxu0 %v18722_v21  ;;  %v18779_v20 = vld [vmem:[%s21620_s30 + $0x1744] ss:$16 sps:$4 sm:$0xff]   ;;  %v18774_v21 = vld [vmem:[%s21620_s30 + $0x1540] ss:$16 sps:$4 sm:$0xff]  }
 0x1a6   : > { %13344 = vmatprep.subr.bf16.mxu1 %v18725_v22  ;;  %v18777_v22 = vld [vmem:[%s21620_s30 + $0x1740] ss:$16 sps:$4 sm:$0xff]  }
 0x1a8   : > { %13304 = vmatpush1.bf16.msra.mxu0 %v18720_v27  ;;  %v18782_v27 = vld [vmem:[%s21620_s30 + $0x1524] ss:$16 sps:$4 sm:$0xff]  }
 0x1a9   : > { %13345 = vmatpush1.bf16.msra.mxu1 %v18723_v28  ;;  %13305 = vmatprep.subr.bf16.mxu0 %v18728_v29  ;;  %v18785_v28 = vld [vmem:[%s21620_s30 + $0x1724] ss:$16 sps:$4 sm:$0xff]   ;;  %v18780_v29 = vld [vmem:[%s21620_s30 + $0x1520] ss:$16 sps:$4 sm:$0xff]  }
 0x1aa   : > { %13346 = vmatprep.subr.bf16.mxu1 %v18731_v30  ;;  %v18783_v30 = vld [vmem:[%s21620_s30 + $0x1720] ss:$16 sps:$4 sm:$0xff]  }
 0x1ac   : > { %13306 = vmatpush1.bf16.msra.mxu0 %v18726_v31  ;;  %v18788_v31 = vld [vmem:[%s21620_s30 + $0x1504] ss:$16 sps:$4 sm:$0xff]  }
 0x1ad   : > { %13347 = vmatpush1.bf16.msra.mxu1 %v18729_v32  ;;  %13307 = vmatprep.subr.bf16.mxu0 %v18734_v33  ;;  %v18791_v32 = vld [vmem:[%s21620_s30 + $0x1704] ss:$16 sps:$4 sm:$0xff]   ;;  %v18786_v33 = vld [vmem:[%s21620_s30 + $0x1500] ss:$16 sps:$4 sm:$0xff]  }
 0x1ae   : > { %13348 = vmatprep.subr.bf16.mxu1 %v18737_v34  ;;  %v18789_v34 = vld [vmem:[%s21620_s30 + $0x1700] ss:$16 sps:$4 sm:$0xff]  }
 0x1b0   : > { %13308 = vmatpush1.bf16.msra.mxu0 %v18732_v35  ;;  %v18798_v35 = vld [vmem:[%s21620_s30 + $0x18e4] ss:$16 sps:$4 sm:$0xff]  }
 0x1b1   : > { %13349 = vmatpush1.bf16.msra.mxu1 %v18735_v36  ;;  %13309 = vmatprep.subr.bf16.mxu0 %v18740_v43  ;;  %v18801_v36 = vld [vmem:[%s21620_s30 + $0x1ae4] ss:$16 sps:$4 sm:$0xff]   ;;  %v18796_v43 = vld [vmem:[%s21620_s30 + $0x18e0] ss:$16 sps:$4 sm:$0xff]  }
 0x1b2   : > { %13350 = vmatprep.subr.bf16.mxu1 %v18743_v44  ;;  %v18799_v44 = vld [vmem:[%s21620_s30 + $0x1ae0] ss:$16 sps:$4 sm:$0xff]  }
 0x1b4   : > { %13310 = vmatpush1.bf16.msra.mxu0 %v18738_v45  ;;  %v22171_v45 = vcombine.low %v22082_v50, %v22082_v50 }
 0x1b5   : > { %13351 = vmatpush1.bf16.msra.mxu1 %v18741_v46  ;;  %13311 = vmatprep.subr.bf16.mxu0 %v18746_v53  ;;  %v22175_v46 = vcombine.low %v22085_v51, %v22085_v51  ;;  %v22178_v53 = vld [vmem:[%s21634_s8 + $0x60] sm:$0xff] }
 0x1b6   : > { %13352 = vmatprep.subr.bf16.mxu1 %v18749_v54  ;;  %v22181_v54 = vld [vmem:[%s21634_s8 + $0x68] sm:$0xff]  ;;  %v22189_v50 = vcombine.high %v22178_v53, %v22178_v53 }
 0x1b7   : > { %v22193_v51 = vcombine.high %v22181_v54, %v22181_v54 }
 0x1b8   : > { %13312 = vmatpush2.bf16.msra.mxu0 %v18744_v55  ;;  %v18804_v55 = vld [vmem:[%s21620_s30 + $0x18c4] ss:$16 sps:$4 sm:$0xff]  }
 0x1b9   : > { %13353 = vmatpush2.bf16.msra.mxu1 %v18747_v56  ;;  %13313 = vmatprep.subr.bf16.mxu0 %v18752_v57  ;;  %v18807_v56 = vld [vmem:[%s21620_s30 + $0x1ac4] ss:$16 sps:$4 sm:$0xff]   ;;  %v18802_v57 = vld [vmem:[%s21620_s30 + $0x18c0] ss:$16 sps:$4 sm:$0xff]  }
 0x1ba   : > { %13354 = vmatprep.subr.bf16.mxu1 %v18755_v58  ;;  %v18805_v58 = vld [vmem:[%s21620_s30 + $0x1ac0] ss:$16 sps:$4 sm:$0xff]  }
 0x1bc   : > { %13314 = vmatpush2.bf16.msra.mxu0 %v18750_v63 }
 0x1bd   : > { %13355 = vmatpush2.bf16.msra.mxu1 %v18753_v0  ;;  %13315 = vmatprep.subr.bf16.mxu0 %v18758_v1 }
 0x1be   : > { %13356 = vmatprep.subr.bf16.mxu1 %v18761_v2 }
 0x1c0   : > { %13316 = vmatpush2.bf16.msra.mxu0 %v18756_v3 }
 0x1c1   : > { %13357 = vmatpush2.bf16.msra.mxu1 %v18759_v5  ;;  %13317 = vmatprep.subr.bf16.mxu0 %v18764_v6  ;;  %v18810_v5 = vld [vmem:[%s21620_s30 + $0x18a4] ss:$16 sps:$4 sm:$0xff]  }
 0x1c2   : > { %13358 = vmatprep.subr.bf16.mxu1 %v18767_v10  ;;  %v18813_v6 = vld [vmem:[%s21620_s30 + $0x1aa4] ss:$16 sps:$4 sm:$0xff]  }
 0x1c4   : > { %13318 = vmatpush2.bf16.msra.mxu0 %v18762_v9 }
 0x1c5   : > { %13359 = vmatpush2.bf16.msra.mxu1 %v18765_v11  ;;  %13319 = vmatprep.subr.bf16.mxu0 %v18770_v13  ;;  %v18808_v11 = vld [vmem:[%s21620_s30 + $0x18a0] ss:$16 sps:$4 sm:$0xff]  }
 0x1c6   : > { %13360 = vmatprep.subr.bf16.mxu1 %v18773_v15  ;;  %v18811_v13 = vld [vmem:[%s21620_s30 + $0x1aa0] ss:$16 sps:$4 sm:$0xff]  }
 0x1c8   : > { %13320 = vmatpush2.bf16.msra.mxu0 %v18768_v14 }
 0x1c9   : > { %13361 = vmatpush2.bf16.msra.mxu1 %v18771_v16  ;;  %13321 = vmatprep.subr.bf16.mxu0 %v18776_v19 }
 0x1ca   : > { %13362 = vmatprep.subr.bf16.mxu1 %v18779_v20  ;;  %v18819_v20 = vld [vmem:[%s21620_s30 + $0x1a84] ss:$16 sps:$4 sm:$0xff]  }
 0x1cc   : > { %13322 = vmatpush2.bf16.msra.mxu0 %v18774_v21  ;;  %v18814_v21 = vld [vmem:[%s21620_s30 + $0x1880] ss:$16 sps:$4 sm:$0xff]  }
 0x1cd   : > { %13363 = vmatpush2.bf16.msra.mxu1 %v18777_v22  ;;  %13323 = vmatprep.subr.bf16.mxu0 %v18782_v27  ;;  %v18817_v22 = vld [vmem:[%s21620_s30 + $0x1a80] ss:$16 sps:$4 sm:$0xff]   ;;  %v18822_v27 = vld [vmem:[%s21620_s30 + $0x1864] ss:$16 sps:$4 sm:$0xff]  }
 0x1ce   : > { %13364 = vmatprep.subr.bf16.mxu1 %v18785_v28  ;;  %v18825_v28 = vld [vmem:[%s21620_s30 + $0x1a64] ss:$16 sps:$4 sm:$0xff]  }
 0x1d0   : > { %13324 = vmatpush2.bf16.msra.mxu0 %v18780_v29  ;;  %v18820_v29 = vld [vmem:[%s21620_s30 + $0x1860] ss:$16 sps:$4 sm:$0xff]  }
 0x1d1   : > { %13365 = vmatpush2.bf16.msra.mxu1 %v18783_v30  ;;  %13325 = vmatprep.subr.bf16.mxu0 %v18788_v31  ;;  %v18823_v30 = vld [vmem:[%s21620_s30 + $0x1a60] ss:$16 sps:$4 sm:$0xff]   ;;  %v18828_v31 = vld [vmem:[%s21620_s30 + $0x1844] ss:$16 sps:$4 sm:$0xff]  }
 0x1d2   : > { %13366 = vmatprep.subr.bf16.mxu1 %v18791_v32  ;;  %v18831_v32 = vld [vmem:[%s21620_s30 + $0x1a44] ss:$16 sps:$4 sm:$0xff]  }
 0x1d4   : > { %13326 = vmatpush2.bf16.msra.mxu0 %v18786_v33  ;;  %v18826_v33 = vld [vmem:[%s21620_s30 + $0x1840] ss:$16 sps:$4 sm:$0xff]  }
 0x1d5   : > { %13367 = vmatpush2.bf16.msra.mxu1 %v18789_v34  ;;  %13377 = vmatprep.subr.bf16.mxu0 %v18798_v35  ;;  %v18829_v34 = vld [vmem:[%s21620_s30 + $0x1a40] ss:$16 sps:$4 sm:$0xff]   ;;  %v18834_v35 = vld [vmem:[%s21620_s30 + $0x1824] ss:$16 sps:$4 sm:$0xff]  }
 0x1d6   : > { %13418 = vmatprep.subr.bf16.mxu1 %v18801_v36  ;;  %v18837_v36 = vld [vmem:[%s21620_s30 + $0x1a24] ss:$16 sps:$4 sm:$0xff]  }
 0x1d7   : > { %v13083_v63 = vpop.f32.mrf.mxu0  ;;  %13328 = vmatmul.mubr.bf16.vlgmr.msra.gmra.mxu0 %v22171_v45 }
 0x1d8   : > { %v13124_v0 = vpop.f32.mrf.mxu1  ;;  %13369 = vmatmul.mubr.bf16.vlgmr.msra.gmra.mxu1 %v22175_v46  ;;  %v13084_v1 = vadd.f32 %v13083_v63, %v22104_v4  ;;  %13378 = vmatpush1.bf16.msra.mxu0 %v18796_v43  ;;  %v18832_v43 = vld [vmem:[%s21620_s30 + $0x1820] ss:$16 sps:$4 sm:$0xff]   ;;  %v18846_v63 = vld [vmem:[%s21620_s30 + $0x19e4] ss:$16 sps:$4 sm:$0xff]  }
 0x1d9   : > { %13419 = vmatpush1.bf16.msra.mxu1 %v18799_v44  ;;  %v13085_v2 = vpop.f32.mrf.mxu0  ;;  %13379 = vmatprep.subr.bf16.mxu0 %v18804_v55  ;;  %v18835_v44 = vld [vmem:[%s21620_s30 + $0x1a20] ss:$16 sps:$4 sm:$0xff]   ;;  %v18840_v55 = vld [vmem:[%s21620_s30 + $0x1804] ss:$16 sps:$4 sm:$0xff]  }
 0x1da   : > { %v13126_v3 = vpop.f32.mrf.mxu1  ;;  %13420 = vmatprep.subr.bf16.mxu1 %v18807_v56  ;;  %v22200_v10 = vadd.f32 %v13124_v0, %v13084_v1  ;;  %v13086_v9 = vadd.f32 %v13085_v2, %v22111_v12  ;;  %13409 = vmatprep.mubr.bf16.mxu0 %v22189_v50  ;;  %v18816_v12 = vld [vmem:[%s21620_s30 + $0x1884] ss:$16 sps:$4 sm:$0xff]   ;;  %v18844_v1 = vld [vmem:[%s21620_s30 + $0x19e0] ss:$16 sps:$4 sm:$0xff]  }
 0x1db   : > { %13450 = vmatprep.mubr.bf16.mxu1 %v22193_v51  ;;  %v13087_v4 = vpop.f32.mrf.mxu0  ;;  %v18843_v56 = vld [vmem:[%s21620_s30 + $0x1a04] ss:$16 sps:$4 sm:$0xff]   ;;  %v18847_v2 = vld [vmem:[%s21620_s30 + $0x1be0] ss:$16 sps:$4 sm:$0xff]  }
 0x1dc   : > { %v13128_v15 = vpop.f32.mrf.mxu1  ;;  %v22207_v14 = vadd.f32 %v13126_v3, %v13086_v9  ;;  %13380 = vmatpush1.bf16.msra.mxu0 %v18802_v57  ;;  %v18838_v57 = vld [vmem:[%s21620_s30 + $0x1800] ss:$16 sps:$4 sm:$0xff]   ;;  %v18849_v0 = vld [vmem:[%s21620_s30 + $0x1be4] ss:$16 sps:$4 sm:$0xff]  }
 0x1dd   : > { %13421 = vmatpush1.bf16.msra.mxu1 %v18805_v58  ;;  %v13088_v16 = vpop.f32.mrf.mxu0  ;;  %13381 = vmatprep.subr.bf16.mxu0 %v18810_v5  ;;  %v18841_v58 = vld [vmem:[%s21620_s30 + $0x1a00] ss:$16 sps:$4 sm:$0xff]   ;;  %v18852_v3 = vld [vmem:[%s21620_s30 + $0x19c4] ss:$16 sps:$4 sm:$0xff]  }
 0x1de   : > { %v13129_v19 = vpop.f32.mrf.mxu1  ;;  %13422 = vmatprep.subr.bf16.mxu1 %v18813_v6  ;;  %v18855_v5 = vld [vmem:[%s21620_s30 + $0x1bc4] ss:$16 sps:$4 sm:$0xff]   ;;  %v18850_v6 = vld [vmem:[%s21620_s30 + $0x19c0] ss:$16 sps:$4 sm:$0xff]  }
 0x1df   : > { %v18853_v9 = vld [vmem:[%s21620_s30 + $0x1bc0] ss:$16 sps:$4 sm:$0xff]   ;;  %v18864_v16 = vld [vmem:[%s21620_s30 + $0x1984] ss:$16 sps:$4 sm:$0xff]  }
 0x1e0   : > { %13382 = vmatpush1.bf16.msra.mxu0 %v18808_v11  ;;  %v18858_v11 = vld [vmem:[%s21620_s30 + $0x19a4] ss:$16 sps:$4 sm:$0xff]   ;;  %v18856_v4 = vld [vmem:[%s21620_s30 + $0x19a0] ss:$16 sps:$4 sm:$0xff]  }
 0x1e1   : > { %13423 = vmatpush1.bf16.msra.mxu1 %v18811_v13  ;;  %13383 = vmatprep.subr.bf16.mxu0 %v18816_v12  ;;  %v18861_v13 = vld [vmem:[%s21620_s30 + $0x1ba4] ss:$16 sps:$4 sm:$0xff]   ;;  %v18859_v15 = vld [vmem:[%s21620_s30 + $0x1ba0] ss:$16 sps:$4 sm:$0xff]  }
 0x1e2   : > { %13424 = vmatprep.subr.bf16.mxu1 %v18819_v20  ;;  %v18867_v19 = vld [vmem:[%s21620_s30 + $0x1b84] ss:$16 sps:$4 sm:$0xff]   ;;  %v18862_v12 = vld [vmem:[%s21620_s30 + $0x1980] ss:$16 sps:$4 sm:$0xff]  }
 0x1e3   : > { %v18865_v20 = vld [vmem:[%s21620_s30 + $0x1b80] ss:$16 sps:$4 sm:$0xff]  }
 0x1e4   : > { %13384 = vmatpush1.bf16.msra.mxu0 %v18814_v21  ;;  %v18870_v21 = vld [vmem:[%s21620_s30 + $0x1964] ss:$16 sps:$4 sm:$0xff]  }
 0x1e5   : > { %13425 = vmatpush1.bf16.msra.mxu1 %v18817_v22  ;;  %13385 = vmatprep.subr.bf16.mxu0 %v18822_v27  ;;  %v18873_v22 = vld [vmem:[%s21620_s30 + $0x1b64] ss:$16 sps:$4 sm:$0xff]   ;;  %v18868_v27 = vld [vmem:[%s21620_s30 + $0x1960] ss:$16 sps:$4 sm:$0xff]  }
 0x1e6   : > { %13426 = vmatprep.subr.bf16.mxu1 %v18825_v28  ;;  %v18871_v28 = vld [vmem:[%s21620_s30 + $0x1b60] ss:$16 sps:$4 sm:$0xff]  }
 0x1e8   : > { %13386 = vmatpush1.bf16.msra.mxu0 %v18820_v29  ;;  %v18876_v29 = vld [vmem:[%s21620_s30 + $0x1944] ss:$16 sps:$4 sm:$0xff]  }
 0x1e9   : > { %13427 = vmatpush1.bf16.msra.mxu1 %v18823_v30  ;;  %13387 = vmatprep.subr.bf16.mxu0 %v18828_v31  ;;  %v18879_v30 = vld [vmem:[%s21620_s30 + $0x1b44] ss:$16 sps:$4 sm:$0xff]   ;;  %v18874_v31 = vld [vmem:[%s21620_s30 + $0x1940] ss:$16 sps:$4 sm:$0xff]  }
 0x1ea   : > { %13428 = vmatprep.subr.bf16.mxu1 %v18831_v32  ;;  %v18877_v32 = vld [vmem:[%s21620_s30 + $0x1b40] ss:$16 sps:$4 sm:$0xff]  }
 0x1ec   : > { %13388 = vmatpush1.bf16.msra.mxu0 %v18826_v33  ;;  %v18882_v33 = vld [vmem:[%s21620_s30 + $0x1924] ss:$16 sps:$4 sm:$0xff]  }
 0x1ed   : > { %13429 = vmatpush1.bf16.msra.mxu1 %v18829_v34  ;;  %13389 = vmatprep.subr.bf16.mxu0 %v18834_v35  ;;  %v18885_v34 = vld [vmem:[%s21620_s30 + $0x1b24] ss:$16 sps:$4 sm:$0xff]   ;;  %v18880_v35 = vld [vmem:[%s21620_s30 + $0x1920] ss:$16 sps:$4 sm:$0xff]  }
 0x1ee   : > { %13430 = vmatprep.subr.bf16.mxu1 %v18837_v36  ;;  %v18883_v36 = vld [vmem:[%s21620_s30 + $0x1b20] ss:$16 sps:$4 sm:$0xff]  }
 0x1f0   : > { %13390 = vmatpush1.bf16.msra.mxu0 %v18832_v43  ;;  %v18888_v43 = vld [vmem:[%s21620_s30 + $0x1904] ss:$16 sps:$4 sm:$0xff]  }
 0x1f1   : > { %13431 = vmatpush1.bf16.msra.mxu1 %v18835_v44  ;;  %13391 = vmatprep.subr.bf16.mxu0 %v18840_v55  ;;  %v18891_v44 = vld [vmem:[%s21620_s30 + $0x1b04] ss:$16 sps:$4 sm:$0xff]   ;;  %v18886_v55 = vld [vmem:[%s21620_s30 + $0x1900] ss:$16 sps:$4 sm:$0xff]  }
 0x1f2   : > { %13432 = vmatprep.subr.bf16.mxu1 %v18843_v56  ;;  %v18889_v56 = vld [vmem:[%s21620_s30 + $0x1b00] ss:$16 sps:$4 sm:$0xff]  }
 0x1f4   : > { %13392 = vmatpush1.bf16.msra.mxu0 %v18838_v57  ;;  %v18898_v57 = vld [vmem:[%s21620_s30 + $0x1ce4] ss:$16 sps:$4 sm:$0xff]  }
 0x1f5   : > { %13433 = vmatpush1.bf16.msra.mxu1 %v18841_v58  ;;  %13393 = vmatprep.subr.bf16.mxu0 %v18846_v63  ;;  %v18901_v58 = vld [vmem:[%s21620_s30 + $0x1ee4] ss:$16 sps:$4 sm:$0xff]   ;;  %v18896_v63 = vld [vmem:[%s21620_s30 + $0x1ce0] ss:$16 sps:$4 sm:$0xff]  }
 0x1f6   : > { %13434 = vmatprep.subr.bf16.mxu1 %v18849_v0  ;;  %v18899_v0 = vld [vmem:[%s21620_s30 + $0x1ee0] ss:$16 sps:$4 sm:$0xff]  }
 0x1f8   : > { %13394 = vmatpush2.bf16.msra.mxu0 %v18844_v1  ;;  %v22267_v1 = vcombine.low %v22178_v53, %v22178_v53 }
 0x1f9   : > { %13435 = vmatpush2.bf16.msra.mxu1 %v18847_v2  ;;  %13395 = vmatprep.subr.bf16.mxu0 %v18852_v3  ;;  %v22271_v2 = vcombine.low %v22181_v54, %v22181_v54  ;;  %v22274_v3 = vld [vmem:[%s21634_s8 + $0x70] sm:$0xff] }
 0x1fa   : > { %13436 = vmatprep.subr.bf16.mxu1 %v18855_v5  ;;  %v22277_v5 = vld [vmem:[%s21634_s8 + $0x78] sm:$0xff]  ;;  %v22285_v53 = vcombine.high %v22274_v3, %v22274_v3 }
 0x1fb   : > { %v22289_v54 = vcombine.high %v22277_v5, %v22277_v5 }
 0x1fc   : > { %13396 = vmatpush2.bf16.msra.mxu0 %v18850_v6  ;;  %v18904_v6 = vld [vmem:[%s21620_s30 + $0x1cc4] ss:$16 sps:$4 sm:$0xff]  }
 0x1fd   : > { %13437 = vmatpush2.bf16.msra.mxu1 %v18853_v9  ;;  %13397 = vmatprep.subr.bf16.mxu0 %v18858_v11  ;;  %v18907_v9 = vld [vmem:[%s21620_s30 + $0x1ec4] ss:$16 sps:$4 sm:$0xff]   ;;  %v18902_v11 = vld [vmem:[%s21620_s30 + $0x1cc0] ss:$16 sps:$4 sm:$0xff]  }
 0x1fe   : > { %13438 = vmatprep.subr.bf16.mxu1 %v18861_v13  ;;  %v18905_v13 = vld [vmem:[%s21620_s30 + $0x1ec0] ss:$16 sps:$4 sm:$0xff]  }
 0x200   : > { %13398 = vmatpush2.bf16.msra.mxu0 %v18856_v4 }
 0x201   : > { %13439 = vmatpush2.bf16.msra.mxu1 %v18859_v15  ;;  %13399 = vmatprep.subr.bf16.mxu0 %v18864_v16 }
 0x202   : > { %13440 = vmatprep.subr.bf16.mxu1 %v18867_v19 }
 0x204   : > { %13400 = vmatpush2.bf16.msra.mxu0 %v18862_v12 }
 0x205   : > { %13441 = vmatpush2.bf16.msra.mxu1 %v18865_v20  ;;  %13401 = vmatprep.subr.bf16.mxu0 %v18870_v21  ;;  %v18910_v20 = vld [vmem:[%s21620_s30 + $0x1ca4] ss:$16 sps:$4 sm:$0xff]  }
 0x206   : > { %13442 = vmatprep.subr.bf16.mxu1 %v18873_v22  ;;  %v18913_v21 = vld [vmem:[%s21620_s30 + $0x1ea4] ss:$16 sps:$4 sm:$0xff]  }
 0x208   : > { %13402 = vmatpush2.bf16.msra.mxu0 %v18868_v27 }
 0x209   : > { %13443 = vmatpush2.bf16.msra.mxu1 %v18871_v28  ;;  %13403 = vmatprep.subr.bf16.mxu0 %v18876_v29  ;;  %v18908_v28 = vld [vmem:[%s21620_s30 + $0x1ca0] ss:$16 sps:$4 sm:$0xff]  }
 0x20a   : > { %13444 = vmatprep.subr.bf16.mxu1 %v18879_v30  ;;  %v18911_v29 = vld [vmem:[%s21620_s30 + $0x1ea0] ss:$16 sps:$4 sm:$0xff]  }
 0x20c   : > { %13404 = vmatpush2.bf16.msra.mxu0 %v18874_v31 }
 0x20d   : > { %13445 = vmatpush2.bf16.msra.mxu1 %v18877_v32  ;;  %13405 = vmatprep.subr.bf16.mxu0 %v18882_v33 }
 0x20e   : > { %13446 = vmatprep.subr.bf16.mxu1 %v18885_v34  ;;  %v18919_v34 = vld [vmem:[%s21620_s30 + $0x1e84] ss:$16 sps:$4 sm:$0xff]  }
 0x210   : > { %13406 = vmatpush2.bf16.msra.mxu0 %v18880_v35  ;;  %v18914_v35 = vld [vmem:[%s21620_s30 + $0x1c80] ss:$16 sps:$4 sm:$0xff]  }
 0x211   : > { %13447 = vmatpush2.bf16.msra.mxu1 %v18883_v36  ;;  %13407 = vmatprep.subr.bf16.mxu0 %v18888_v43  ;;  %v18917_v36 = vld [vmem:[%s21620_s30 + $0x1e80] ss:$16 sps:$4 sm:$0xff]   ;;  %v18922_v43 = vld [vmem:[%s21620_s30 + $0x1c64] ss:$16 sps:$4 sm:$0xff]  }
 0x212   : > { %13448 = vmatprep.subr.bf16.mxu1 %v18891_v44  ;;  %v18925_v44 = vld [vmem:[%s21620_s30 + $0x1e64] ss:$16 sps:$4 sm:$0xff]  }
 0x214   : > { %13408 = vmatpush2.bf16.msra.mxu0 %v18886_v55  ;;  %v18920_v55 = vld [vmem:[%s21620_s30 + $0x1c60] ss:$16 sps:$4 sm:$0xff]  }
 0x215   : > { %13449 = vmatpush2.bf16.msra.mxu1 %v18889_v56  ;;  %13459 = vmatprep.subr.bf16.mxu0 %v18898_v57  ;;  %v18923_v56 = vld [vmem:[%s21620_s30 + $0x1e60] ss:$16 sps:$4 sm:$0xff]   ;;  %v18928_v57 = vld [vmem:[%s21620_s30 + $0x1c44] ss:$16 sps:$4 sm:$0xff]  }
 0x216   : > { %13500 = vmatprep.subr.bf16.mxu1 %v18901_v58  ;;  %v18931_v58 = vld [vmem:[%s21620_s30 + $0x1e44] ss:$16 sps:$4 sm:$0xff]  }
 0x217   : > { %v13165_v4 = vpop.f32.mrf.mxu0  ;;  %13410 = vmatmul.mubr.bf16.vlgmr.msra.gmra.mxu0 %v22267_v1 }
 0x218   : > { %v13206_v15 = vpop.f32.mrf.mxu1  ;;  %13451 = vmatmul.mubr.bf16.vlgmr.msra.gmra.mxu1 %v22271_v2  ;;  %v13166_v16 = vadd.f32 %v13165_v4, %v22200_v10  ;;  %13460 = vmatpush1.bf16.msra.mxu0 %v18896_v63  ;;  %v18926_v63 = vld [vmem:[%s21620_s30 + $0x1c40] ss:$16 sps:$4 sm:$0xff]   ;;  %v18940_v4 = vld [vmem:[%s21620_s30 + $0x1c04] ss:$16 sps:$4 sm:$0xff]  }
 0x219   : > { %13501 = vmatpush1.bf16.msra.mxu1 %v18899_v0  ;;  %v13167_v19 = vpop.f32.mrf.mxu0  ;;  %13461 = vmatprep.subr.bf16.mxu0 %v18904_v6  ;;  %v18929_v0 = vld [vmem:[%s21620_s30 + $0x1e40] ss:$16 sps:$4 sm:$0xff]   ;;  %v18934_v6 = vld [vmem:[%s21620_s30 + $0x1c24] ss:$16 sps:$4 sm:$0xff]  }
 0x21a   : > { %v13208_v12 = vpop.f32.mrf.mxu1  ;;  %13502 = vmatprep.subr.bf16.mxu1 %v18907_v9  ;;  %v22296_v22 = vadd.f32 %v13206_v15, %v13166_v16  ;;  %v13168_v27 = vadd.f32 %v13167_v19, %v22207_v14  ;;  %13491 = vmatprep.mubr.bf16.mxu0 %v22285_v53  ;;  %v18916_v14 = vld [vmem:[%s21620_s30 + $0x1c84] ss:$16 sps:$4 sm:$0xff]   ;;  %v18938_v16 = vld [vmem:[%s21620_s30 + $0x1c00] ss:$16 sps:$4 sm:$0xff]  }
 0x21b   : > { %13532 = vmatprep.mubr.bf16.mxu1 %v22289_v54  ;;  %v13169_v10 = vpop.f32.mrf.mxu0  ;;  %v18937_v9 = vld [vmem:[%s21620_s30 + $0x1e24] ss:$16 sps:$4 sm:$0xff]   ;;  %v18941_v19 = vld [vmem:[%s21620_s30 + $0x1e00] ss:$16 sps:$4 sm:$0xff]  }
 0x21c   : > { %v13210_v30 = vpop.f32.mrf.mxu1  ;;  %v22303_v31 = vadd.f32 %v13208_v12, %v13168_v27  ;;  %13462 = vmatpush1.bf16.msra.mxu0 %v18902_v11  ;;  %v18932_v11 = vld [vmem:[%s21620_s30 + $0x1c20] ss:$16 sps:$4 sm:$0xff]   ;;  %v18943_v15 = vld [vmem:[%s21620_s30 + $0x1e04] ss:$16 sps:$4 sm:$0xff]  }
 0x21d   : > { %13503 = vmatpush1.bf16.msra.mxu1 %v18905_v13  ;;  %v13170_v32 = vpop.f32.mrf.mxu0  ;;  %13463 = vmatprep.subr.bf16.mxu0 %v18910_v20  ;;  %v18935_v13 = vld [vmem:[%s21620_s30 + $0x1e20] ss:$16 sps:$4 sm:$0xff]   ;;  %v18946_v12 = vld [vmem:[%s21620_s30 + $0x1de4] ss:$16 sps:$4 sm:$0xff]  }
 0x21e   : > { %v13211_v33 = vpop.f32.mrf.mxu1  ;;  %13504 = vmatprep.subr.bf16.mxu1 %v18913_v21  ;;  %v18949_v20 = vld [vmem:[%s21620_s30 + $0x1fe4] ss:$16 sps:$4 sm:$0xff]   ;;  %v18944_v21 = vld [vmem:[%s21620_s30 + $0x1de0] ss:$16 sps:$4 sm:$0xff]  }
 0x21f   : > { %v18947_v27 = vld [vmem:[%s21620_s30 + $0x1fe0] ss:$16 sps:$4 sm:$0xff]   ;;  %v18958_v32 = vld [vmem:[%s21620_s30 + $0x1da4] ss:$16 sps:$4 sm:$0xff]  }
 0x220   : > { %13464 = vmatpush1.bf16.msra.mxu0 %v18908_v28  ;;  %v18952_v28 = vld [vmem:[%s21620_s30 + $0x1dc4] ss:$16 sps:$4 sm:$0xff]   ;;  %v18950_v10 = vld [vmem:[%s21620_s30 + $0x1dc0] ss:$16 sps:$4 sm:$0xff]  }
 0x221   : > { %13505 = vmatpush1.bf16.msra.mxu1 %v18911_v29  ;;  %13465 = vmatprep.subr.bf16.mxu0 %v18916_v14  ;;  %v18955_v29 = vld [vmem:[%s21620_s30 + $0x1fc4] ss:$16 sps:$4 sm:$0xff]   ;;  %v18953_v30 = vld [vmem:[%s21620_s30 + $0x1fc0] ss:$16 sps:$4 sm:$0xff]  }
 0x222   : > { %13506 = vmatprep.subr.bf16.mxu1 %v18919_v34  ;;  %v18961_v33 = vld [vmem:[%s21620_s30 + $0x1fa4] ss:$16 sps:$4 sm:$0xff]   ;;  %v18956_v14 = vld [vmem:[%s21620_s30 + $0x1da0] ss:$16 sps:$4 sm:$0xff]  }
 0x223   : > { %v18959_v34 = vld [vmem:[%s21620_s30 + $0x1fa0] ss:$16 sps:$4 sm:$0xff]  }
 0x224   : > { %13466 = vmatpush1.bf16.msra.mxu0 %v18914_v35  ;;  %v18964_v35 = vld [vmem:[%s21620_s30 + $0x1d84] ss:$16 sps:$4 sm:$0xff]  }
 0x225   : > { %13507 = vmatpush1.bf16.msra.mxu1 %v18917_v36  ;;  %13467 = vmatprep.subr.bf16.mxu0 %v18922_v43  ;;  %v18967_v36 = vld [vmem:[%s21620_s30 + $0x1f84] ss:$16 sps:$4 sm:$0xff]   ;;  %v18962_v43 = vld [vmem:[%s21620_s30 + $0x1d80] ss:$16 sps:$4 sm:$0xff]  }
 0x226   : > { %13508 = vmatprep.subr.bf16.mxu1 %v18925_v44  ;;  %v18965_v44 = vld [vmem:[%s21620_s30 + $0x1f80] ss:$16 sps:$4 sm:$0xff]  }
 0x228   : > { %13468 = vmatpush1.bf16.msra.mxu0 %v18920_v55  ;;  %v18970_v55 = vld [vmem:[%s21620_s30 + $0x1d64] ss:$16 sps:$4 sm:$0xff]  }
 0x229   : > { %13509 = vmatpush1.bf16.msra.mxu1 %v18923_v56  ;;  %13469 = vmatprep.subr.bf16.mxu0 %v18928_v57  ;;  %v18973_v56 = vld [vmem:[%s21620_s30 + $0x1f64] ss:$16 sps:$4 sm:$0xff]   ;;  %v18968_v57 = vld [vmem:[%s21620_s30 + $0x1d60] ss:$16 sps:$4 sm:$0xff]  }
 0x22a   : > { %13510 = vmatprep.subr.bf16.mxu1 %v18931_v58  ;;  %v18971_v58 = vld [vmem:[%s21620_s30 + $0x1f60] ss:$16 sps:$4 sm:$0xff]  }
 0x22c   : > { %13470 = vmatpush1.bf16.msra.mxu0 %v18926_v63  ;;  %v18976_v63 = vld [vmem:[%s21620_s30 + $0x1d44] ss:$16 sps:$4 sm:$0xff]  }
 0x22d   : > { %13511 = vmatpush1.bf16.msra.mxu1 %v18929_v0  ;;  %13471 = vmatprep.subr.bf16.mxu0 %v18934_v6  ;;  %v18979_v0 = vld [vmem:[%s21620_s30 + $0x1f44] ss:$16 sps:$4 sm:$0xff]   ;;  %v18974_v6 = vld [vmem:[%s21620_s30 + $0x1d40] ss:$16 sps:$4 sm:$0xff]  }
 0x22e   : > { %13512 = vmatprep.subr.bf16.mxu1 %v18937_v9  ;;  %v18977_v9 = vld [vmem:[%s21620_s30 + $0x1f40] ss:$16 sps:$4 sm:$0xff]  }
 0x230   : > { %13472 = vmatpush1.bf16.msra.mxu0 %v18932_v11  ;;  %v18982_v11 = vld [vmem:[%s21620_s30 + $0x1d24] ss:$16 sps:$4 sm:$0xff]  }
 0x231   : > { %13513 = vmatpush1.bf16.msra.mxu1 %v18935_v13  ;;  %13473 = vmatprep.subr.bf16.mxu0 %v18940_v4  ;;  %v18985_v13 = vld [vmem:[%s21620_s30 + $0x1f24] ss:$16 sps:$4 sm:$0xff]   ;;  %v18980_v4 = vld [vmem:[%s21620_s30 + $0x1d20] ss:$16 sps:$4 sm:$0xff]  }
 0x232   : > { %13514 = vmatprep.subr.bf16.mxu1 %v18943_v15  ;;  %v18983_v15 = vld [vmem:[%s21620_s30 + $0x1f20] ss:$16 sps:$4 sm:$0xff]  }
 0x234   : > { %13474 = vmatpush1.bf16.msra.mxu0 %v18938_v16  ;;  %v18988_v16 = vld [vmem:[%s21620_s30 + $0x1d04] ss:$16 sps:$4 sm:$0xff]  }
 0x235   : > { %13515 = vmatpush1.bf16.msra.mxu1 %v18941_v19  ;;  %13475 = vmatprep.subr.bf16.mxu0 %v18946_v12  ;;  %v18991_v19 = vld [vmem:[%s21620_s30 + $0x1f04] ss:$16 sps:$4 sm:$0xff]   ;;  %v18986_v12 = vld [vmem:[%s21620_s30 + $0x1d00] ss:$16 sps:$4 sm:$0xff]  }
 0x236   : > { %13516 = vmatprep.subr.bf16.mxu1 %v18949_v20  ;;  %v18989_v20 = vld [vmem:[%s21620_s30 + $0x1f00] ss:$16 sps:$4 sm:$0xff]  }
 0x238   : > { %13476 = vmatpush2.bf16.msra.mxu0 %v18944_v21  ;;  %v18998_v21 = vld [vmem:[%s21620_s30 + $0x20e4] ss:$16 sps:$4 sm:$0xff]  }
 0x239   : > { %13517 = vmatpush2.bf16.msra.mxu1 %v18947_v27  ;;  %13477 = vmatprep.subr.bf16.mxu0 %v18952_v28  ;;  %v19001_v27 = vld [vmem:[%s21620_s30 + $0x22e4] ss:$16 sps:$4 sm:$0xff]   ;;  %v18996_v28 = vld [vmem:[%s21620_s30 + $0x20e0] ss:$16 sps:$4 sm:$0xff]  }
 0x23a   : > { %13518 = vmatprep.subr.bf16.mxu1 %v18955_v29  ;;  %v18999_v29 = vld [vmem:[%s21620_s30 + $0x22e0] ss:$16 sps:$4 sm:$0xff]  }
 0x23c   : > { %13478 = vmatpush2.bf16.msra.mxu0 %v18950_v10  ;;  %v22363_v10 = vcombine.low %v22274_v3, %v22274_v3 }
 0x23d   : > { %13519 = vmatpush2.bf16.msra.mxu1 %v18953_v30  ;;  %13479 = vmatprep.subr.bf16.mxu0 %v18958_v32  ;;  %v22367_v30 = vcombine.low %v22277_v5, %v22277_v5  ;;  %v22370_v32 = vld [vmem:[%s21634_s8 + $0x80] sm:$0xff] }
 0x23e   : > { %13520 = vmatprep.subr.bf16.mxu1 %v18961_v33  ;;  %v22373_v33 = vld [vmem:[%s21634_s8 + $0x88] sm:$0xff]  ;;  %v22381_v3 = vcombine.high %v22370_v32, %v22370_v32 }
 0x23f   : > { %v22385_v5 = vcombine.high %v22373_v33, %v22373_v33 }
 0x240   : > { %13480 = vmatpush2.bf16.msra.mxu0 %v18956_v14  ;;  %v19004_v14 = vld [vmem:[%s21620_s30 + $0x20c4] ss:$16 sps:$4 sm:$0xff]  }
 0x241   : > { %13521 = vmatpush2.bf16.msra.mxu1 %v18959_v34  ;;  %13481 = vmatprep.subr.bf16.mxu0 %v18964_v35  ;;  %v19007_v34 = vld [vmem:[%s21620_s30 + $0x22c4] ss:$16 sps:$4 sm:$0xff]   ;;  %v19002_v35 = vld [vmem:[%s21620_s30 + $0x20c0] ss:$16 sps:$4 sm:$0xff]  }
 0x242   : > { %13522 = vmatprep.subr.bf16.mxu1 %v18967_v36  ;;  %v19005_v36 = vld [vmem:[%s21620_s30 + $0x22c0] ss:$16 sps:$4 sm:$0xff]  }
 0x244   : > { %13482 = vmatpush2.bf16.msra.mxu0 %v18962_v43 }
 0x245   : > { %13523 = vmatpush2.bf16.msra.mxu1 %v18965_v44  ;;  %13483 = vmatprep.subr.bf16.mxu0 %v18970_v55 }
 0x246   : > { %13524 = vmatprep.subr.bf16.mxu1 %v18973_v56 }
 0x248   : > { %13484 = vmatpush2.bf16.msra.mxu0 %v18968_v57 }
 0x249   : > { %13525 = vmatpush2.bf16.msra.mxu1 %v18971_v58  ;;  %13485 = vmatprep.subr.bf16.mxu0 %v18976_v63  ;;  %v19010_v58 = vld [vmem:[%s21620_s30 + $0x20a4] ss:$16 sps:$4 sm:$0xff]  }
 0x24a   : > { %13526 = vmatprep.subr.bf16.mxu1 %v18979_v0  ;;  %v19013_v63 = vld [vmem:[%s21620_s30 + $0x22a4] ss:$16 sps:$4 sm:$0xff]  }
 0x24c   : > { %13486 = vmatpush2.bf16.msra.mxu0 %v18974_v6 }
 0x24d   : > { %13527 = vmatpush2.bf16.msra.mxu1 %v18977_v9  ;;  %13487 = vmatprep.subr.bf16.mxu0 %v18982_v11  ;;  %v19008_v9 = vld [vmem:[%s21620_s30 + $0x20a0] ss:$16 sps:$4 sm:$0xff]  }
 0x24e   : > { %13528 = vmatprep.subr.bf16.mxu1 %v18985_v13  ;;  %v19011_v11 = vld [vmem:[%s21620_s30 + $0x22a0] ss:$16 sps:$4 sm:$0xff]  }
 0x250   : > { %13488 = vmatpush2.bf16.msra.mxu0 %v18980_v4 }
 0x251   : > { %13529 = vmatpush2.bf16.msra.mxu1 %v18983_v15  ;;  %13489 = vmatprep.subr.bf16.mxu0 %v18988_v16 }
 0x252   : > { %13530 = vmatprep.subr.bf16.mxu1 %v18991_v19  ;;  %v19019_v19 = vld [vmem:[%s21620_s30 + $0x2284] ss:$16 sps:$4 sm:$0xff]  }
 0x254   : > { %13490 = vmatpush2.bf16.msra.mxu0 %v18986_v12  ;;  %v19014_v12 = vld [vmem:[%s21620_s30 + $0x2080] ss:$16 sps:$4 sm:$0xff]  }
 0x255   : > { %13531 = vmatpush2.bf16.msra.mxu1 %v18989_v20  ;;  %13541 = vmatprep.subr.bf16.mxu0 %v18998_v21  ;;  %v19017_v20 = vld [vmem:[%s21620_s30 + $0x2280] ss:$16 sps:$4 sm:$0xff]   ;;  %v19022_v21 = vld [vmem:[%s21620_s30 + $0x2064] ss:$16 sps:$4 sm:$0xff]  }
 0x256   : > { %13582 = vmatprep.subr.bf16.mxu1 %v19001_v27  ;;  %v19025_v27 = vld [vmem:[%s21620_s30 + $0x2264] ss:$16 sps:$4 sm:$0xff]  }
 0x257   : > { %v13247_v43 = vpop.f32.mrf.mxu0  ;;  %13492 = vmatmul.mubr.bf16.vlgmr.msra.gmra.mxu0 %v22363_v10 }
 0x258   : > { %v13288_v44 = vpop.f32.mrf.mxu1  ;;  %13533 = vmatmul.mubr.bf16.vlgmr.msra.gmra.mxu1 %v22367_v30  ;;  %v13248_v55 = vadd.f32 %v13247_v43, %v22296_v22  ;;  %13542 = vmatpush1.bf16.msra.mxu0 %v18996_v28  ;;  %v19020_v28 = vld [vmem:[%s21620_s30 + $0x2060] ss:$16 sps:$4 sm:$0xff]   ;;  %v19034_v43 = vld [vmem:[%s21620_s30 + $0x2024] ss:$16 sps:$4 sm:$0xff]  }
 0x259   : > { %13583 = vmatpush1.bf16.msra.mxu1 %v18999_v29  ;;  %v13249_v56 = vpop.f32.mrf.mxu0  ;;  %13543 = vmatprep.subr.bf16.mxu0 %v19004_v14  ;;  %v19023_v29 = vld [vmem:[%s21620_s30 + $0x2260] ss:$16 sps:$4 sm:$0xff]   ;;  %v19028_v14 = vld [vmem:[%s21620_s30 + $0x2044] ss:$16 sps:$4 sm:$0xff]  }
 0x25a   : > { %v13290_v57 = vpop.f32.mrf.mxu1  ;;  %13584 = vmatprep.subr.bf16.mxu1 %v19007_v34  ;;  %v22392_v0 = vadd.f32 %v13288_v44, %v13248_v55  ;;  %v13250_v6 = vadd.f32 %v13249_v56, %v22303_v31  ;;  %13573 = vmatprep.mubr.bf16.mxu0 %v22381_v3  ;;  %v19016_v31 = vld [vmem:[%s21620_s30 + $0x2084] ss:$16 sps:$4 sm:$0xff]   ;;  %v19032_v55 = vld [vmem:[%s21620_s30 + $0x2020] ss:$16 sps:$4 sm:$0xff]  }
 0x25b   : > { %13614 = vmatprep.mubr.bf16.mxu1 %v22385_v5  ;;  %v13251_v22 = vpop.f32.mrf.mxu0  ;;  %v19031_v34 = vld [vmem:[%s21620_s30 + $0x2244] ss:$16 sps:$4 sm:$0xff]   ;;  %v19035_v56 = vld [vmem:[%s21620_s30 + $0x2220] ss:$16 sps:$4 sm:$0xff]  }
 0x25c   : > { %v13292_v13 = vpop.f32.mrf.mxu1  ;;  %v22399_v4 = vadd.f32 %v13290_v57, %v13250_v6  ;;  %13544 = vmatpush1.bf16.msra.mxu0 %v19002_v35  ;;  %v19026_v35 = vld [vmem:[%s21620_s30 + $0x2040] ss:$16 sps:$4 sm:$0xff]   ;;  %v19037_v44 = vld [vmem:[%s21620_s30 + $0x2224] ss:$16 sps:$4 sm:$0xff]  }
 0x25d   : > { %13585 = vmatpush1.bf16.msra.mxu1 %v19005_v36  ;;  %v13252_v15 = vpop.f32.mrf.mxu0  ;;  %13545 = vmatprep.subr.bf16.mxu0 %v19010_v58  ;;  %v19029_v36 = vld [vmem:[%s21620_s30 + $0x2240] ss:$16 sps:$4 sm:$0xff]   ;;  %v19040_v57 = vld [vmem:[%s21620_s30 + $0x2004] ss:$16 sps:$4 sm:$0xff]  }
 0x25e   : > { %v13293_v16 = vpop.f32.mrf.mxu1  ;;  %13586 = vmatprep.subr.bf16.mxu1 %v19013_v63  ;;  %v19043_v58 = vld [vmem:[%s21620_s30 + $0x2204] ss:$16 sps:$4 sm:$0xff]   ;;  %v19038_v63 = vld [vmem:[%s21620_s30 + $0x2000] ss:$16 sps:$4 sm:$0xff]  }
 0x25f   : > { %v19041_v6 = vld [vmem:[%s21620_s30 + $0x2200] ss:$16 sps:$4 sm:$0xff]   ;;  %v19052_v15 = vld [vmem:[%s21620_s30 + $0x21c4] ss:$16 sps:$4 sm:$0xff]  }
 0x260   : > { %13546 = vmatpush1.bf16.msra.mxu0 %v19008_v9  ;;  %v19046_v9 = vld [vmem:[%s21620_s30 + $0x21e4] ss:$16 sps:$4 sm:$0xff]   ;;  %v19044_v22 = vld [vmem:[%s21620_s30 + $0x21e0] ss:$16 sps:$4 sm:$0xff]  }
 0x261   : > { %13587 = vmatpush1.bf16.msra.mxu1 %v19011_v11  ;;  %13547 = vmatprep.subr.bf16.mxu0 %v19016_v31  ;;  %v19049_v11 = vld [vmem:[%s21620_s30 + $0x23e4] ss:$16 sps:$4 sm:$0xff]   ;;  %v19047_v13 = vld [vmem:[%s21620_s30 + $0x23e0] ss:$16 sps:$4 sm:$0xff]  }
 0x262   : > { %13588 = vmatprep.subr.bf16.mxu1 %v19019_v19  ;;  %v19055_v16 = vld [vmem:[%s21620_s30 + $0x23c4] ss:$16 sps:$4 sm:$0xff]   ;;  %v19050_v31 = vld [vmem:[%s21620_s30 + $0x21c0] ss:$16 sps:$4 sm:$0xff]  }
 0x263   : > { %v19053_v19 = vld [vmem:[%s21620_s30 + $0x23c0] ss:$16 sps:$4 sm:$0xff]  }
 0x264   : > { %13548 = vmatpush1.bf16.msra.mxu0 %v19014_v12  ;;  %v19058_v12 = vld [vmem:[%s21620_s30 + $0x21a4] ss:$16 sps:$4 sm:$0xff]  }
 0x265   : > { %13589 = vmatpush1.bf16.msra.mxu1 %v19017_v20  ;;  %13549 = vmatprep.subr.bf16.mxu0 %v19022_v21  ;;  %v19061_v20 = vld [vmem:[%s21620_s30 + $0x23a4] ss:$16 sps:$4 sm:$0xff]   ;;  %v19056_v21 = vld [vmem:[%s21620_s30 + $0x21a0] ss:$16 sps:$4 sm:$0xff]  }
 0x266   : > { %13590 = vmatprep.subr.bf16.mxu1 %v19025_v27  ;;  %v19059_v27 = vld [vmem:[%s21620_s30 + $0x23a0] ss:$16 sps:$4 sm:$0xff]  }
 0x268   : > { %13550 = vmatpush1.bf16.msra.mxu0 %v19020_v28  ;;  %v19064_v28 = vld [vmem:[%s21620_s30 + $0x2184] ss:$16 sps:$4 sm:$0xff]  }
 0x269   : > { %13591 = vmatpush1.bf16.msra.mxu1 %v19023_v29  ;;  %13551 = vmatprep.subr.bf16.mxu0 %v19028_v14  ;;  %v19067_v29 = vld [vmem:[%s21620_s30 + $0x2384] ss:$16 sps:$4 sm:$0xff]   ;;  %v19062_v14 = vld [vmem:[%s21620_s30 + $0x2180] ss:$16 sps:$4 sm:$0xff]  }
 0x26a   : > { %13592 = vmatprep.subr.bf16.mxu1 %v19031_v34  ;;  %v19065_v34 = vld [vmem:[%s21620_s30 + $0x2380] ss:$16 sps:$4 sm:$0xff]  }
 0x26c   : > { %13552 = vmatpush1.bf16.msra.mxu0 %v19026_v35  ;;  %v19070_v35 = vld [vmem:[%s21620_s30 + $0x2164] ss:$16 sps:$4 sm:$0xff]  }
 0x26d   : > { %13593 = vmatpush1.bf16.msra.mxu1 %v19029_v36  ;;  %13553 = vmatprep.subr.bf16.mxu0 %v19034_v43  ;;  %v19073_v36 = vld [vmem:[%s21620_s30 + $0x2364] ss:$16 sps:$4 sm:$0xff]   ;;  %v19068_v43 = vld [vmem:[%s21620_s30 + $0x2160] ss:$16 sps:$4 sm:$0xff]  }
 0x26e   : > { %13594 = vmatprep.subr.bf16.mxu1 %v19037_v44  ;;  %v19071_v44 = vld [vmem:[%s21620_s30 + $0x2360] ss:$16 sps:$4 sm:$0xff]  }
 0x270   : > { %13554 = vmatpush1.bf16.msra.mxu0 %v19032_v55  ;;  %v19076_v55 = vld [vmem:[%s21620_s30 + $0x2144] ss:$16 sps:$4 sm:$0xff]  }
 0x271   : > { %13595 = vmatpush1.bf16.msra.mxu1 %v19035_v56  ;;  %13555 = vmatprep.subr.bf16.mxu0 %v19040_v57  ;;  %v19079_v56 = vld [vmem:[%s21620_s30 + $0x2344] ss:$16 sps:$4 sm:$0xff]   ;;  %v19074_v57 = vld [vmem:[%s21620_s30 + $0x2140] ss:$16 sps:$4 sm:$0xff]  }
 0x272   : > { %13596 = vmatprep.subr.bf16.mxu1 %v19043_v58  ;;  %v19077_v58 = vld [vmem:[%s21620_s30 + $0x2340] ss:$16 sps:$4 sm:$0xff]  }
 0x274   : > { %13556 = vmatpush1.bf16.msra.mxu0 %v19038_v63  ;;  %v19082_v63 = vld [vmem:[%s21620_s30 + $0x2124] ss:$16 sps:$4 sm:$0xff]  }
 0x275   : > { %13597 = vmatpush1.bf16.msra.mxu1 %v19041_v6  ;;  %13557 = vmatprep.subr.bf16.mxu0 %v19046_v9  ;;  %v19085_v6 = vld [vmem:[%s21620_s30 + $0x2324] ss:$16 sps:$4 sm:$0xff]   ;;  %v19080_v9 = vld [vmem:[%s21620_s30 + $0x2120] ss:$16 sps:$4 sm:$0xff]  }
 0x276   : > { %13598 = vmatprep.subr.bf16.mxu1 %v19049_v11  ;;  %v19083_v11 = vld [vmem:[%s21620_s30 + $0x2320] ss:$16 sps:$4 sm:$0xff]  }
 0x278   : > { %13558 = vmatpush2.bf16.msra.mxu0 %v19044_v22  ;;  %v19088_v22 = vld [vmem:[%s21620_s30 + $0x2104] ss:$16 sps:$4 sm:$0xff]  }
 0x279   : > { %13599 = vmatpush2.bf16.msra.mxu1 %v19047_v13  ;;  %13559 = vmatprep.subr.bf16.mxu0 %v19052_v15  ;;  %v19091_v13 = vld [vmem:[%s21620_s30 + $0x2304] ss:$16 sps:$4 sm:$0xff]   ;;  %v19086_v15 = vld [vmem:[%s21620_s30 + $0x2100] ss:$16 sps:$4 sm:$0xff]  }
 0x27a   : > { %13600 = vmatprep.subr.bf16.mxu1 %v19055_v16  ;;  %v19089_v16 = vld [vmem:[%s21620_s30 + $0x2300] ss:$16 sps:$4 sm:$0xff]  }
 0x27c   : > { %13560 = vmatpush2.bf16.msra.mxu0 %v19050_v31  ;;  %v19098_v31 = vld [vmem:[%s21620_s30 + $0x24e4] ss:$16 sps:$4 sm:$0xff]  }
 0x27d   : > { %13601 = vmatpush2.bf16.msra.mxu1 %v19053_v19  ;;  %13561 = vmatprep.subr.bf16.mxu0 %v19058_v12  ;;  %v19101_v19 = vld [vmem:[%s21620_s30 + $0x26e4] ss:$16 sps:$4 sm:$0xff]   ;;  %v19096_v12 = vld [vmem:[%s21620_s30 + $0x24e0] ss:$16 sps:$4 sm:$0xff]  }
 0x27e   : > { %13602 = vmatprep.subr.bf16.mxu1 %v19061_v20  ;;  %v19099_v20 = vld [vmem:[%s21620_s30 + $0x26e0] ss:$16 sps:$4 sm:$0xff]  }
 0x280   : > { %13562 = vmatpush2.bf16.msra.mxu0 %v19056_v21  ;;  %v22459_v21 = vcombine.low %v22370_v32, %v22370_v32 }
 0x281   : > { %13603 = vmatpush2.bf16.msra.mxu1 %v19059_v27  ;;  %13563 = vmatprep.subr.bf16.mxu0 %v19064_v28  ;;  %v22463_v27 = vcombine.low %v22373_v33, %v22373_v33  ;;  %v22466_v28 = vld [vmem:[%s21634_s8 + $0x90] sm:$0xff] }
 0x282   : > { %13604 = vmatprep.subr.bf16.mxu1 %v19067_v29  ;;  %v22469_v29 = vld [vmem:[%s21634_s8 + $0x98] sm:$0xff]  ;;  %v22477_v32 = vcombine.high %v22466_v28, %v22466_v28 }
 0x283   : > { %v22481_v33 = vcombine.high %v22469_v29, %v22469_v29 }
 0x284   : > { %13564 = vmatpush2.bf16.msra.mxu0 %v19062_v14  ;;  %v19104_v14 = vld [vmem:[%s21620_s30 + $0x24c4] ss:$16 sps:$4 sm:$0xff]  }
 0x285   : > { %13605 = vmatpush2.bf16.msra.mxu1 %v19065_v34  ;;  %13565 = vmatprep.subr.bf16.mxu0 %v19070_v35  ;;  %v19107_v34 = vld [vmem:[%s21620_s30 + $0x26c4] ss:$16 sps:$4 sm:$0xff]   ;;  %v19102_v35 = vld [vmem:[%s21620_s30 + $0x24c0] ss:$16 sps:$4 sm:$0xff]  }
 0x286   : > { %13606 = vmatprep.subr.bf16.mxu1 %v19073_v36  ;;  %v19105_v36 = vld [vmem:[%s21620_s30 + $0x26c0] ss:$16 sps:$4 sm:$0xff]  }
 0x288   : > { %13566 = vmatpush2.bf16.msra.mxu0 %v19068_v43 }
 0x289   : > { %13607 = vmatpush2.bf16.msra.mxu1 %v19071_v44  ;;  %13567 = vmatprep.subr.bf16.mxu0 %v19076_v55 }
 0x28a   : > { %13608 = vmatprep.subr.bf16.mxu1 %v19079_v56 }
 0x28c   : > { %13568 = vmatpush2.bf16.msra.mxu0 %v19074_v57 }
 0x28d   : > { %13609 = vmatpush2.bf16.msra.mxu1 %v19077_v58  ;;  %13569 = vmatprep.subr.bf16.mxu0 %v19082_v63  ;;  %v19110_v58 = vld [vmem:[%s21620_s30 + $0x24a4] ss:$16 sps:$4 sm:$0xff]  }
 0x28e   : > { %13610 = vmatprep.subr.bf16.mxu1 %v19085_v6  ;;  %v19113_v63 = vld [vmem:[%s21620_s30 + $0x26a4] ss:$16 sps:$4 sm:$0xff]  }
 0x290   : > { %13570 = vmatpush2.bf16.msra.mxu0 %v19080_v9 }
 0x291   : > { %13611 = vmatpush2.bf16.msra.mxu1 %v19083_v11  ;;  %13571 = vmatprep.subr.bf16.mxu0 %v19088_v22  ;;  %v19108_v11 = vld [vmem:[%s21620_s30 + $0x24a0] ss:$16 sps:$4 sm:$0xff]  }
 0x292   : > { %13612 = vmatprep.subr.bf16.mxu1 %v19091_v13  ;;  %v19111_v22 = vld [vmem:[%s21620_s30 + $0x26a0] ss:$16 sps:$4 sm:$0xff]  }
 0x294   : > { %13572 = vmatpush2.bf16.msra.mxu0 %v19086_v15 }
 0x295   : > { %13613 = vmatpush2.bf16.msra.mxu1 %v19089_v16  ;;  %13623 = vmatprep.subr.bf16.mxu0 %v19098_v31 }
 0x296   : > { %13664 = vmatprep.subr.bf16.mxu1 %v19101_v19  ;;  %v19119_v19 = vld [vmem:[%s21620_s30 + $0x2684] ss:$16 sps:$4 sm:$0xff]  }
 0x297   : > { %v13329_v43 = vpop.f32.mrf.mxu0  ;;  %13574 = vmatmul.mubr.bf16.vlgmr.msra.gmra.mxu0 %v22459_v21 }
 0x298   : > { %v13370_v44 = vpop.f32.mrf.mxu1  ;;  %13615 = vmatmul.mubr.bf16.vlgmr.msra.gmra.mxu1 %v22463_v27  ;;  %v13330_v55 = vadd.f32 %v13329_v43, %v22392_v0  ;;  %13624 = vmatpush1.bf16.msra.mxu0 %v19096_v12  ;;  %v19114_v12 = vld [vmem:[%s21620_s30 + $0x2480] ss:$16 sps:$4 sm:$0xff]   ;;  %v19128_v43 = vld [vmem:[%s21620_s30 + $0x2444] ss:$16 sps:$4 sm:$0xff]  }
 0x299   : > { %13665 = vmatpush1.bf16.msra.mxu1 %v19099_v20  ;;  %v13331_v56 = vpop.f32.mrf.mxu0  ;;  %13625 = vmatprep.subr.bf16.mxu0 %v19104_v14  ;;  %v19117_v20 = vld [vmem:[%s21620_s30 + $0x2680] ss:$16 sps:$4 sm:$0xff]   ;;  %v19122_v14 = vld [vmem:[%s21620_s30 + $0x2464] ss:$16 sps:$4 sm:$0xff]  }
 0x29a   : > { %v13372_v57 = vpop.f32.mrf.mxu1  ;;  %13666 = vmatprep.subr.bf16.mxu1 %v19107_v34  ;;  %v22488_v6 = vadd.f32 %v13370_v44, %v13330_v55  ;;  %v13332_v9 = vadd.f32 %v13331_v56, %v22399_v4  ;;  %13655 = vmatprep.mubr.bf16.mxu0 %v22477_v32  ;;  %v19116_v4 = vld [vmem:[%s21620_s30 + $0x2484] ss:$16 sps:$4 sm:$0xff]   ;;  %v19126_v55 = vld [vmem:[%s21620_s30 + $0x2440] ss:$16 sps:$4 sm:$0xff]  }
 0x29b   : > { %13696 = vmatprep.mubr.bf16.mxu1 %v22481_v33  ;;  %v13333_v0 = vpop.f32.mrf.mxu0  ;;  %v19125_v34 = vld [vmem:[%s21620_s30 + $0x2664] ss:$16 sps:$4 sm:$0xff]   ;;  %v19129_v56 = vld [vmem:[%s21620_s30 + $0x2640] ss:$16 sps:$4 sm:$0xff]  }
 0x29c   : > { %v13374_v13 = vpop.f32.mrf.mxu1  ;;  %v22495_v15 = vadd.f32 %v13372_v57, %v13332_v9  ;;  %13626 = vmatpush1.bf16.msra.mxu0 %v19102_v35  ;;  %v19120_v35 = vld [vmem:[%s21620_s30 + $0x2460] ss:$16 sps:$4 sm:$0xff]   ;;  %v19131_v44 = vld [vmem:[%s21620_s30 + $0x2644] ss:$16 sps:$4 sm:$0xff]  }
 0x29d   : > { %13667 = vmatpush1.bf16.msra.mxu1 %v19105_v36  ;;  %v13334_v16 = vpop.f32.mrf.mxu0  ;;  %13627 = vmatprep.subr.bf16.mxu0 %v19110_v58  ;;  %v19123_v36 = vld [vmem:[%s21620_s30 + $0x2660] ss:$16 sps:$4 sm:$0xff]   ;;  %v19134_v57 = vld [vmem:[%s21620_s30 + $0x2424] ss:$16 sps:$4 sm:$0xff]  }
 0x29e   : > { %v13375_v31 = vpop.f32.mrf.mxu1  ;;  %13668 = vmatprep.subr.bf16.mxu1 %v19113_v63  ;;  %v19137_v58 = vld [vmem:[%s21620_s30 + $0x2624] ss:$16 sps:$4 sm:$0xff]   ;;  %v19132_v63 = vld [vmem:[%s21620_s30 + $0x2420] ss:$16 sps:$4 sm:$0xff]  }
 0x29f   : > { %v19135_v9 = vld [vmem:[%s21620_s30 + $0x2620] ss:$16 sps:$4 sm:$0xff]   ;;  %v19146_v16 = vld [vmem:[%s21620_s30 + $0x25e4] ss:$16 sps:$4 sm:$0xff]  }
 0x2a0   : > { %13628 = vmatpush1.bf16.msra.mxu0 %v19108_v11  ;;  %v19140_v11 = vld [vmem:[%s21620_s30 + $0x2404] ss:$16 sps:$4 sm:$0xff]   ;;  %v19138_v0 = vld [vmem:[%s21620_s30 + $0x2400] ss:$16 sps:$4 sm:$0xff]  }
 0x2a1   : > { %13669 = vmatpush1.bf16.msra.mxu1 %v19111_v22  ;;  %13629 = vmatprep.subr.bf16.mxu0 %v19116_v4  ;;  %v19143_v22 = vld [vmem:[%s21620_s30 + $0x2604] ss:$16 sps:$4 sm:$0xff]   ;;  %v19141_v13 = vld [vmem:[%s21620_s30 + $0x2600] ss:$16 sps:$4 sm:$0xff]  }
 0x2a2   : > { %13670 = vmatprep.subr.bf16.mxu1 %v19119_v19  ;;  %v19149_v31 = vld [vmem:[%s21620_s30 + $0x27e4] ss:$16 sps:$4 sm:$0xff]   ;;  %v19144_v4 = vld [vmem:[%s21620_s30 + $0x25e0] ss:$16 sps:$4 sm:$0xff]  }
 0x2a3   : > { %v19147_v19 = vld [vmem:[%s21620_s30 + $0x27e0] ss:$16 sps:$4 sm:$0xff]  }
 0x2a4   : > { %13630 = vmatpush1.bf16.msra.mxu0 %v19114_v12  ;;  %v19152_v12 = vld [vmem:[%s21620_s30 + $0x25c4] ss:$16 sps:$4 sm:$0xff]  }
 0x2a5   : > { %13671 = vmatpush1.bf16.msra.mxu1 %v19117_v20  ;;  %13631 = vmatprep.subr.bf16.mxu0 %v19122_v14  ;;  %v19155_v20 = vld [vmem:[%s21620_s30 + $0x27c4] ss:$16 sps:$4 sm:$0xff]   ;;  %v19150_v14 = vld [vmem:[%s21620_s30 + $0x25c0] ss:$16 sps:$4 sm:$0xff]  }
 0x2a6   : > { %13672 = vmatprep.subr.bf16.mxu1 %v19125_v34  ;;  %v19153_v34 = vld [vmem:[%s21620_s30 + $0x27c0] ss:$16 sps:$4 sm:$0xff]  }
 0x2a8   : > { %13632 = vmatpush1.bf16.msra.mxu0 %v19120_v35  ;;  %v19158_v35 = vld [vmem:[%s21620_s30 + $0x25a4] ss:$16 sps:$4 sm:$0xff]  }
 0x2a9   : > { %13673 = vmatpush1.bf16.msra.mxu1 %v19123_v36  ;;  %13633 = vmatprep.subr.bf16.mxu0 %v19128_v43  ;;  %v19161_v36 = vld [vmem:[%s21620_s30 + $0x27a4] ss:$16 sps:$4 sm:$0xff]   ;;  %v19156_v43 = vld [vmem:[%s21620_s30 + $0x25a0] ss:$16 sps:$4 sm:$0xff]  }
 0x2aa   : > { %13674 = vmatprep.subr.bf16.mxu1 %v19131_v44  ;;  %v19159_v44 = vld [vmem:[%s21620_s30 + $0x27a0] ss:$16 sps:$4 sm:$0xff]  }
 0x2ac   : > { %13634 = vmatpush1.bf16.msra.mxu0 %v19126_v55  ;;  %v19164_v55 = vld [vmem:[%s21620_s30 + $0x2584] ss:$16 sps:$4 sm:$0xff]  }
 0x2ad   : > { %13675 = vmatpush1.bf16.msra.mxu1 %v19129_v56  ;;  %13635 = vmatprep.subr.bf16.mxu0 %v19134_v57  ;;  %v19167_v56 = vld [vmem:[%s21620_s30 + $0x2784] ss:$16 sps:$4 sm:$0xff]   ;;  %v19162_v57 = vld [vmem:[%s21620_s30 + $0x2580] ss:$16 sps:$4 sm:$0xff]  }
 0x2ae   : > { %13676 = vmatprep.subr.bf16.mxu1 %v19137_v58  ;;  %v19165_v58 = vld [vmem:[%s21620_s30 + $0x2780] ss:$16 sps:$4 sm:$0xff]  }
 0x2b0   : > { %13636 = vmatpush1.bf16.msra.mxu0 %v19132_v63  ;;  %v19170_v63 = vld [vmem:[%s21620_s30 + $0x2564] ss:$16 sps:$4 sm:$0xff]  }
 0x2b1   : > { %13677 = vmatpush1.bf16.msra.mxu1 %v19135_v9  ;;  %13637 = vmatprep.subr.bf16.mxu0 %v19140_v11  ;;  %v19173_v9 = vld [vmem:[%s21620_s30 + $0x2764] ss:$16 sps:$4 sm:$0xff]   ;;  %v19168_v11 = vld [vmem:[%s21620_s30 + $0x2560] ss:$16 sps:$4 sm:$0xff]  }
 0x2b2   : > { %13678 = vmatprep.subr.bf16.mxu1 %v19143_v22  ;;  %v19171_v22 = vld [vmem:[%s21620_s30 + $0x2760] ss:$16 sps:$4 sm:$0xff]  }
 0x2b4   : > { %13638 = vmatpush1.bf16.msra.mxu0 %v19138_v0  ;;  %v19176_v0 = vld [vmem:[%s21620_s30 + $0x2544] ss:$16 sps:$4 sm:$0xff]  }
 0x2b5   : > { %13679 = vmatpush1.bf16.msra.mxu1 %v19141_v13  ;;  %13639 = vmatprep.subr.bf16.mxu0 %v19146_v16  ;;  %v19179_v13 = vld [vmem:[%s21620_s30 + $0x2744] ss:$16 sps:$4 sm:$0xff]   ;;  %v19174_v16 = vld [vmem:[%s21620_s30 + $0x2540] ss:$16 sps:$4 sm:$0xff]  }
 0x2b6   : > { %13680 = vmatprep.subr.bf16.mxu1 %v19149_v31  ;;  %v19177_v31 = vld [vmem:[%s21620_s30 + $0x2740] ss:$16 sps:$4 sm:$0xff]  }
 0x2b8   : > { %13640 = vmatpush2.bf16.msra.mxu0 %v19144_v4  ;;  %v19182_v4 = vld [vmem:[%s21620_s30 + $0x2524] ss:$16 sps:$4 sm:$0xff]  }
 0x2b9   : > { %13681 = vmatpush2.bf16.msra.mxu1 %v19147_v19  ;;  %13641 = vmatprep.subr.bf16.mxu0 %v19152_v12  ;;  %v19185_v19 = vld [vmem:[%s21620_s30 + $0x2724] ss:$16 sps:$4 sm:$0xff]   ;;  %v19180_v12 = vld [vmem:[%s21620_s30 + $0x2520] ss:$16 sps:$4 sm:$0xff]  }
 0x2ba   : > { %13682 = vmatprep.subr.bf16.mxu1 %v19155_v20  ;;  %v19183_v20 = vld [vmem:[%s21620_s30 + $0x2720] ss:$16 sps:$4 sm:$0xff]  }
 0x2bc   : > { %13642 = vmatpush2.bf16.msra.mxu0 %v19150_v14  ;;  %v19188_v14 = vld [vmem:[%s21620_s30 + $0x2504] ss:$16 sps:$4 sm:$0xff]  }
 0x2bd   : > { %13683 = vmatpush2.bf16.msra.mxu1 %v19153_v34  ;;  %13643 = vmatprep.subr.bf16.mxu0 %v19158_v35  ;;  %v19191_v34 = vld [vmem:[%s21620_s30 + $0x2704] ss:$16 sps:$4 sm:$0xff]   ;;  %v19186_v35 = vld [vmem:[%s21620_s30 + $0x2500] ss:$16 sps:$4 sm:$0xff]  }
 0x2be   : > { %13684 = vmatprep.subr.bf16.mxu1 %v19161_v36  ;;  %v19189_v36 = vld [vmem:[%s21620_s30 + $0x2700] ss:$16 sps:$4 sm:$0xff]  }
 0x2c0   : > { %13644 = vmatpush2.bf16.msra.mxu0 %v19156_v43  ;;  %v19198_v43 = vld [vmem:[%s21620_s30 + $0x28e4] ss:$16 sps:$4 sm:$0xff]  }
 0x2c1   : > { %13685 = vmatpush2.bf16.msra.mxu1 %v19159_v44  ;;  %13645 = vmatprep.subr.bf16.mxu0 %v19164_v55  ;;  %v19201_v44 = vld [vmem:[%s21620_s30 + $0x2ae4] ss:$16 sps:$4 sm:$0xff]   ;;  %v19196_v55 = vld [vmem:[%s21620_s30 + $0x28e0] ss:$16 sps:$4 sm:$0xff]  }
 0x2c2   : > { %13686 = vmatprep.subr.bf16.mxu1 %v19167_v56  ;;  %v19199_v56 = vld [vmem:[%s21620_s30 + $0x2ae0] ss:$16 sps:$4 sm:$0xff]  }
 0x2c4   : > { %13646 = vmatpush2.bf16.msra.mxu0 %v19162_v57  ;;  %v22555_v57 = vcombine.low %v22466_v28, %v22466_v28 }
 0x2c5   : > { %13687 = vmatpush2.bf16.msra.mxu1 %v19165_v58  ;;  %13647 = vmatprep.subr.bf16.mxu0 %v19170_v63  ;;  %v22559_v58 = vcombine.low %v22469_v29, %v22469_v29  ;;  %v22562_v63 = vld [vmem:[%s21634_s8 + $0xa0] sm:$0xff] }
 0x2c6   : > { %13688 = vmatprep.subr.bf16.mxu1 %v19173_v9  ;;  %v22565_v9 = vld [vmem:[%s21634_s8 + $0xa8] sm:$0xff]  ;;  %v22573_v28 = vcombine.high %v22562_v63, %v22562_v63 }
 0x2c7   : > { %v22577_v29 = vcombine.high %v22565_v9, %v22565_v9 }
 0x2c8   : > { %13648 = vmatpush2.bf16.msra.mxu0 %v19168_v11  ;;  %v19204_v11 = vld [vmem:[%s21620_s30 + $0x28c4] ss:$16 sps:$4 sm:$0xff]   ;;  %24379 = vst [vmem:[#allocation10_spill] sm:$0xff] %v22573_v28 }
 0x2c9   : > { %13689 = vmatpush2.bf16.msra.mxu1 %v19171_v22  ;;  %13649 = vmatprep.subr.bf16.mxu0 %v19176_v0  ;;  %v19207_v22 = vld [vmem:[%s21620_s30 + $0x2ac4] ss:$16 sps:$4 sm:$0xff]   ;;  %v19202_v0 = vld [vmem:[%s21620_s30 + $0x28c0] ss:$16 sps:$4 sm:$0xff]   ;;  %24380 = vst [vmem:[#allocation11_spill] sm:$0xff] %v22577_v29 }
 0x2ca   : > { %13690 = vmatprep.subr.bf16.mxu1 %v19179_v13  ;;  %v19205_v13 = vld [vmem:[%s21620_s30 + $0x2ac0] ss:$16 sps:$4 sm:$0xff]  }
 0x2cc   : > { %13650 = vmatpush2.bf16.msra.mxu0 %v19174_v16 }
 0x2cd   : > { %13691 = vmatpush2.bf16.msra.mxu1 %v19177_v31  ;;  %13651 = vmatprep.subr.bf16.mxu0 %v19182_v4 }
 0x2ce   : > { %13692 = vmatprep.subr.bf16.mxu1 %v19185_v19 }
 0x2d0   : > { %13652 = vmatpush2.bf16.msra.mxu0 %v19180_v12 }
 0x2d1   : > { %13693 = vmatpush2.bf16.msra.mxu1 %v19183_v20  ;;  %13653 = vmatprep.subr.bf16.mxu0 %v19188_v14  ;;  %v19210_v20 = vld [vmem:[%s21620_s30 + $0x28a4] ss:$16 sps:$4 sm:$0xff]  }
 0x2d2   : > { %13694 = vmatprep.subr.bf16.mxu1 %v19191_v34  ;;  %v19213_v14 = vld [vmem:[%s21620_s30 + $0x2aa4] ss:$16 sps:$4 sm:$0xff]  }
 0x2d4   : > { %13654 = vmatpush2.bf16.msra.mxu0 %v19186_v35 }
 0x2d5   : > { %13695 = vmatpush2.bf16.msra.mxu1 %v19189_v36  ;;  %13705 = vmatprep.subr.bf16.mxu0 %v19198_v43  ;;  %v19208_v36 = vld [vmem:[%s21620_s30 + $0x28a0] ss:$16 sps:$4 sm:$0xff]  }
 0x2d6   : > { %13746 = vmatprep.subr.bf16.mxu1 %v19201_v44  ;;  %v19211_v43 = vld [vmem:[%s21620_s30 + $0x2aa0] ss:$16 sps:$4 sm:$0xff]  }
 0x2d7   : > { %v13411_v16 = vpop.f32.mrf.mxu0  ;;  %13656 = vmatmul.mubr.bf16.vlgmr.msra.gmra.mxu0 %v22555_v57 }
 0x2d8   : > { %v13452_v31 = vpop.f32.mrf.mxu1  ;;  %13697 = vmatmul.mubr.bf16.vlgmr.msra.gmra.mxu1 %v22559_v58  ;;  %v13412_v4 = vadd.f32 %v13411_v16, %v22488_v6  ;;  %13706 = vmatpush1.bf16.msra.mxu0 %v19196_v55  ;;  %v19214_v16 = vld [vmem:[%s21620_s30 + $0x2880] ss:$16 sps:$4 sm:$0xff]  }
 0x2d9   : > { %13747 = vmatpush1.bf16.msra.mxu1 %v19199_v56  ;;  %v13413_v19 = vpop.f32.mrf.mxu0  ;;  %13707 = vmatprep.subr.bf16.mxu0 %v19204_v11 }
 0x2da   : > { %v13454_v12 = vpop.f32.mrf.mxu1  ;;  %13748 = vmatprep.subr.bf16.mxu1 %v19207_v22  ;;  %v22584_v34 = vadd.f32 %v13452_v31, %v13412_v4  ;;  %v13414_v35 = vadd.f32 %v13413_v19, %v22495_v15  ;;  %13737 = vmatprep.mubr.bf16.mxu0 %v22573_v28  ;;  %v19216_v15 = vld [vmem:[%s21620_s30 + $0x2884] ss:$16 sps:$4 sm:$0xff]   ;;  %v19217_v31 = vld [vmem:[%s21620_s30 + $0x2a80] ss:$16 sps:$4 sm:$0xff]  }
 0x2db   : > { %13778 = vmatprep.mubr.bf16.mxu1 %v22577_v29  ;;  %v13415_v6 = vpop.f32.mrf.mxu0  ;;  %v19219_v22 = vld [vmem:[%s21620_s30 + $0x2a84] ss:$16 sps:$4 sm:$0xff]   ;;  %v19220_v4 = vld [vmem:[%s21620_s30 + $0x2860] ss:$16 sps:$4 sm:$0xff]  }
 0x2dc   : > { %v13456_v44 = vpop.f32.mrf.mxu1  ;;  %v22591_v55 = vadd.f32 %v13454_v12, %v13414_v35  ;;  %13708 = vmatpush1.bf16.msra.mxu0 %v19202_v0  ;;  %v19222_v0 = vld [vmem:[%s21620_s30 + $0x2864] ss:$16 sps:$4 sm:$0xff]   ;;  %v19223_v19 = vld [vmem:[%s21620_s30 + $0x2a60] ss:$16 sps:$4 sm:$0xff]  }
 0x2dd   : > { %13749 = vmatpush1.bf16.msra.mxu1 %v19205_v13  ;;  %v13416_v56 = vpop.f32.mrf.mxu0  ;;  %13709 = vmatprep.subr.bf16.mxu0 %v19210_v20  ;;  %v19225_v13 = vld [vmem:[%s21620_s30 + $0x2a64] ss:$16 sps:$4 sm:$0xff]   ;;  %v19229_v35 = vld [vmem:[%s21620_s30 + $0x2a40] ss:$16 sps:$4 sm:$0xff]  }
 0x2de   : > { %v13457_v11 = vpop.f32.mrf.mxu1  ;;  %13750 = vmatprep.subr.bf16.mxu1 %v19213_v14  ;;  %v19228_v12 = vld [vmem:[%s21620_s30 + $0x2844] ss:$16 sps:$4 sm:$0xff]   ;;  %v19226_v14 = vld [vmem:[%s21620_s30 + $0x2840] ss:$16 sps:$4 sm:$0xff]  }
 0x2df   : > { %v19231_v20 = vld [vmem:[%s21620_s30 + $0x2a44] ss:$16 sps:$4 sm:$0xff]   ;;  %v19232_v6 = vld [vmem:[%s21620_s30 + $0x2820] ss:$16 sps:$4 sm:$0xff]  }
 0x2e0   : > { %13710 = vmatpush1.bf16.msra.mxu0 %v19208_v36  ;;  %v19234_v36 = vld [vmem:[%s21620_s30 + $0x2824] ss:$16 sps:$4 sm:$0xff]   ;;  %v19235_v44 = vld [vmem:[%s21620_s30 + $0x2a20] ss:$16 sps:$4 sm:$0xff]  }
 0x2e1   : > { %13751 = vmatpush1.bf16.msra.mxu1 %v19211_v43  ;;  %13711 = vmatprep.subr.bf16.mxu0 %v19216_v15  ;;  %v19237_v43 = vld [vmem:[%s21620_s30 + $0x2a24] ss:$16 sps:$4 sm:$0xff]   ;;  %v19238_v15 = vld [vmem:[%s21620_s30 + $0x2800] ss:$16 sps:$4 sm:$0xff]  }
 0x2e2   : > { %13752 = vmatprep.subr.bf16.mxu1 %v19219_v22  ;;  %v19240_v56 = vld [vmem:[%s21620_s30 + $0x2804] ss:$16 sps:$4 sm:$0xff]   ;;  %v19241_v22 = vld [vmem:[%s21620_s30 + $0x2a00] ss:$16 sps:$4 sm:$0xff]  }
 0x2e3   : > { %v19243_v11 = vld [vmem:[%s21620_s30 + $0x2a04] ss:$16 sps:$4 sm:$0xff]   ;;  %v19308_v28 = vld [vmem:[%s21620_s30 + $0x2ca0] ss:$16 sps:$4 sm:$0xff]  }
 0x2e4   : > { %13712 = vmatpush1.bf16.msra.mxu0 %v19214_v16  ;;  %v19246_v16 = vld [vmem:[%s21620_s30 + $0x29e4] ss:$16 sps:$4 sm:$0xff]  }
 0x2e5   : > { %13753 = vmatpush1.bf16.msra.mxu1 %v19217_v31  ;;  %13713 = vmatprep.subr.bf16.mxu0 %v19222_v0  ;;  %v19249_v31 = vld [vmem:[%s21620_s30 + $0x2be4] ss:$16 sps:$4 sm:$0xff]   ;;  %v19244_v0 = vld [vmem:[%s21620_s30 + $0x29e0] ss:$16 sps:$4 sm:$0xff]  }
 0x2e6   : > { %13754 = vmatprep.subr.bf16.mxu1 %v19225_v13  ;;  %v19247_v13 = vld [vmem:[%s21620_s30 + $0x2be0] ss:$16 sps:$4 sm:$0xff]  }
 0x2e8   : > { %13714 = vmatpush1.bf16.msra.mxu0 %v19220_v4  ;;  %v19252_v4 = vld [vmem:[%s21620_s30 + $0x29c4] ss:$16 sps:$4 sm:$0xff]  }
 0x2e9   : > { %13755 = vmatpush1.bf16.msra.mxu1 %v19223_v19  ;;  %13715 = vmatprep.subr.bf16.mxu0 %v19228_v12  ;;  %v19255_v19 = vld [vmem:[%s21620_s30 + $0x2bc4] ss:$16 sps:$4 sm:$0xff]   ;;  %v19250_v12 = vld [vmem:[%s21620_s30 + $0x29c0] ss:$16 sps:$4 sm:$0xff]  }
 0x2ea   : > { %13756 = vmatprep.subr.bf16.mxu1 %v19231_v20  ;;  %v19253_v20 = vld [vmem:[%s21620_s30 + $0x2bc0] ss:$16 sps:$4 sm:$0xff]  }
 0x2ec   : > { %13716 = vmatpush1.bf16.msra.mxu0 %v19226_v14  ;;  %v19258_v14 = vld [vmem:[%s21620_s30 + $0x29a4] ss:$16 sps:$4 sm:$0xff]  }
 0x2ed   : > { %13757 = vmatpush1.bf16.msra.mxu1 %v19229_v35  ;;  %13717 = vmatprep.subr.bf16.mxu0 %v19234_v36  ;;  %v19261_v35 = vld [vmem:[%s21620_s30 + $0x2ba4] ss:$16 sps:$4 sm:$0xff]   ;;  %v19256_v36 = vld [vmem:[%s21620_s30 + $0x29a0] ss:$16 sps:$4 sm:$0xff]  }
 0x2ee   : > { %13758 = vmatprep.subr.bf16.mxu1 %v19237_v43  ;;  %v19259_v43 = vld [vmem:[%s21620_s30 + $0x2ba0] ss:$16 sps:$4 sm:$0xff]  }
 0x2f0   : > { %13718 = vmatpush1.bf16.msra.mxu0 %v19232_v6  ;;  %v19264_v6 = vld [vmem:[%s21620_s30 + $0x2984] ss:$16 sps:$4 sm:$0xff]  }
 0x2f1   : > { %13759 = vmatpush1.bf16.msra.mxu1 %v19235_v44  ;;  %13719 = vmatprep.subr.bf16.mxu0 %v19240_v56  ;;  %v19267_v44 = vld [vmem:[%s21620_s30 + $0x2b84] ss:$16 sps:$4 sm:$0xff]   ;;  %v19262_v56 = vld [vmem:[%s21620_s30 + $0x2980] ss:$16 sps:$4 sm:$0xff]  }
 0x2f2   : > { %13760 = vmatprep.subr.bf16.mxu1 %v19243_v11  ;;  %v19265_v11 = vld [vmem:[%s21620_s30 + $0x2b80] ss:$16 sps:$4 sm:$0xff]  }
 0x2f4   : > { %13720 = vmatpush1.bf16.msra.mxu0 %v19238_v15  ;;  %v19270_v15 = vld [vmem:[%s21620_s30 + $0x2964] ss:$16 sps:$4 sm:$0xff]  }
 0x2f5   : > { %13761 = vmatpush1.bf16.msra.mxu1 %v19241_v22  ;;  %13721 = vmatprep.subr.bf16.mxu0 %v19246_v16  ;;  %v19273_v22 = vld [vmem:[%s21620_s30 + $0x2b64] ss:$16 sps:$4 sm:$0xff]   ;;  %v19268_v16 = vld [vmem:[%s21620_s30 + $0x2960] ss:$16 sps:$4 sm:$0xff]  }
 0x2f6   : > { %13762 = vmatprep.subr.bf16.mxu1 %v19249_v31  ;;  %v19271_v31 = vld [vmem:[%s21620_s30 + $0x2b60] ss:$16 sps:$4 sm:$0xff]  }
 0x2f8   : > { %13722 = vmatpush2.bf16.msra.mxu0 %v19244_v0  ;;  %v19276_v0 = vld [vmem:[%s21620_s30 + $0x2944] ss:$16 sps:$4 sm:$0xff]  }
 0x2f9   : > { %13763 = vmatpush2.bf16.msra.mxu1 %v19247_v13  ;;  %13723 = vmatprep.subr.bf16.mxu0 %v19252_v4  ;;  %v19279_v13 = vld [vmem:[%s21620_s30 + $0x2b44] ss:$16 sps:$4 sm:$0xff]   ;;  %v19274_v4 = vld [vmem:[%s21620_s30 + $0x2940] ss:$16 sps:$4 sm:$0xff]  }
 0x2fa   : > { %13764 = vmatprep.subr.bf16.mxu1 %v19255_v19  ;;  %v19277_v19 = vld [vmem:[%s21620_s30 + $0x2b40] ss:$16 sps:$4 sm:$0xff]  }
 0x2fc   : > { %13724 = vmatpush2.bf16.msra.mxu0 %v19250_v12  ;;  %v19282_v12 = vld [vmem:[%s21620_s30 + $0x2924] ss:$16 sps:$4 sm:$0xff]  }
 0x2fd   : > { %13765 = vmatpush2.bf16.msra.mxu1 %v19253_v20  ;;  %13725 = vmatprep.subr.bf16.mxu0 %v19258_v14  ;;  %v19285_v20 = vld [vmem:[%s21620_s30 + $0x2b24] ss:$16 sps:$4 sm:$0xff]   ;;  %v19280_v14 = vld [vmem:[%s21620_s30 + $0x2920] ss:$16 sps:$4 sm:$0xff]  }
 0x2fe   : > { %13766 = vmatprep.subr.bf16.mxu1 %v19261_v35  ;;  %v19283_v35 = vld [vmem:[%s21620_s30 + $0x2b20] ss:$16 sps:$4 sm:$0xff]  }
 0x300   : > { %13726 = vmatpush2.bf16.msra.mxu0 %v19256_v36  ;;  %v19288_v36 = vld [vmem:[%s21620_s30 + $0x2904] ss:$16 sps:$4 sm:$0xff]  }
 0x301   : > { %13767 = vmatpush2.bf16.msra.mxu1 %v19259_v43  ;;  %13727 = vmatprep.subr.bf16.mxu0 %v19264_v6  ;;  %v19291_v43 = vld [vmem:[%s21620_s30 + $0x2b04] ss:$16 sps:$4 sm:$0xff]   ;;  %v19286_v6 = vld [vmem:[%s21620_s30 + $0x2900] ss:$16 sps:$4 sm:$0xff]  }
 0x302   : > { %13768 = vmatprep.subr.bf16.mxu1 %v19267_v44  ;;  %v19289_v44 = vld [vmem:[%s21620_s30 + $0x2b00] ss:$16 sps:$4 sm:$0xff]  }
 0x304   : > { %13728 = vmatpush2.bf16.msra.mxu0 %v19262_v56  ;;  %v19298_v56 = vld [vmem:[%s21620_s30 + $0x2ce4] ss:$16 sps:$4 sm:$0xff]  }
 0x305   : > { %13769 = vmatpush2.bf16.msra.mxu1 %v19265_v11  ;;  %13729 = vmatprep.subr.bf16.mxu0 %v19270_v15  ;;  %v19301_v11 = vld [vmem:[%s21620_s30 + $0x2ee4] ss:$16 sps:$4 sm:$0xff]   ;;  %v19296_v15 = vld [vmem:[%s21620_s30 + $0x2ce0] ss:$16 sps:$4 sm:$0xff]  }
 0x306   : > { %13770 = vmatprep.subr.bf16.mxu1 %v19273_v22  ;;  %v19299_v22 = vld [vmem:[%s21620_s30 + $0x2ee0] ss:$16 sps:$4 sm:$0xff]  }
 0x308   : > { %13730 = vmatpush2.bf16.msra.mxu0 %v19268_v16  ;;  %v22651_v16 = vcombine.low %v22562_v63, %v22562_v63 }
 0x309   : > { %13771 = vmatpush2.bf16.msra.mxu1 %v19271_v31  ;;  %13731 = vmatprep.subr.bf16.mxu0 %v19276_v0  ;;  %v22655_v31 = vcombine.low %v22565_v9, %v22565_v9  ;;  %v22658_v0 = vld [vmem:[%s21634_s8 + $0xb0] sm:$0xff] }
 0x30a   : > { %13772 = vmatprep.subr.bf16.mxu1 %v19279_v13  ;;  %24381 = vst [vmem:[#allocation12_spill] sm:$0xff] %v22651_v16  ;;  %v22661_v13 = vld [vmem:[%s21634_s8 + $0xb8] sm:$0xff]  ;;  %v22669_v63 = vcombine.high %v22658_v0, %v22658_v0 }
 0x30b   : > { %24382 = vst [vmem:[#allocation13_spill] sm:$0xff] %v22655_v31  ;;  %v22673_v9 = vcombine.high %v22661_v13, %v22661_v13 }
 0x30c   : > { %13732 = vmatpush2.bf16.msra.mxu0 %v19274_v4  ;;  %v19304_v4 = vld [vmem:[%s21620_s30 + $0x2cc4] ss:$16 sps:$4 sm:$0xff]   ;;  %24383 = vst [vmem:[#allocation14_spill] sm:$0xff] %v22669_v63 }
 0x30d   : > { %13773 = vmatpush2.bf16.msra.mxu1 %v19277_v19  ;;  %13733 = vmatprep.subr.bf16.mxu0 %v19282_v12  ;;  %v19307_v19 = vld [vmem:[%s21620_s30 + $0x2ec4] ss:$16 sps:$4 sm:$0xff]   ;;  %v19302_v12 = vld [vmem:[%s21620_s30 + $0x2cc0] ss:$16 sps:$4 sm:$0xff]   ;;  %24384 = vst [vmem:[#allocation15_spill] sm:$0xff] %v22673_v9 }
 0x30e   : > { %13774 = vmatprep.subr.bf16.mxu1 %v19285_v20  ;;  %v19305_v20 = vld [vmem:[%s21620_s30 + $0x2ec0] ss:$16 sps:$4 sm:$0xff]  }
 0x310   : > { %13734 = vmatpush2.bf16.msra.mxu0 %v19280_v14 }
 0x311   : > { %13775 = vmatpush2.bf16.msra.mxu1 %v19283_v35  ;;  %13735 = vmatprep.subr.bf16.mxu0 %v19288_v36 }
 0x312   : > { %13776 = vmatprep.subr.bf16.mxu1 %v19291_v43 }
 0x314   : > { %13736 = vmatpush2.bf16.msra.mxu0 %v19286_v6 }
 0x315   : > { %13777 = vmatpush2.bf16.msra.mxu1 %v19289_v44  ;;  %13787 = vmatprep.subr.bf16.mxu0 %v19298_v56  ;;  %v19310_v44 = vld [vmem:[%s21620_s30 + $0x2ca4] ss:$16 sps:$4 sm:$0xff]  }
 0x316   : > { %13828 = vmatprep.subr.bf16.mxu1 %v19301_v11  ;;  %v19313_v56 = vld [vmem:[%s21620_s30 + $0x2ea4] ss:$16 sps:$4 sm:$0xff]  }
 0x317   : > { %v13493_v14 = vpop.f32.mrf.mxu0  ;;  %13738 = vmatmul.mubr.bf16.vlgmr.msra.gmra.mxu0 %v22651_v16  ;;  %v19311_v16 = vld [vmem:[%s21620_s30 + $0x2ea0] ss:$16 sps:$4 sm:$0xff]  }
 0x318   : > { %v13534_v35 = vpop.f32.mrf.mxu1  ;;  %13779 = vmatmul.mubr.bf16.vlgmr.msra.gmra.mxu1 %v22655_v31  ;;  %v13494_v36 = vadd.f32 %v13493_v14, %v22584_v34  ;;  %13788 = vmatpush1.bf16.msra.mxu0 %v19296_v15  ;;  %v19319_v14 = vld [vmem:[%s21620_s30 + $0x2e84] ss:$16 sps:$4 sm:$0xff]   ;;  %v19408_v31 = vld [vmem:[%s21620_s30 + $0x30a0] ss:$16 sps:$4 sm:$0xff]  }
 0x319   : > { %13829 = vmatpush1.bf16.msra.mxu1 %v19299_v22  ;;  %v13495_v43 = vpop.f32.mrf.mxu0  ;;  %13789 = vmatprep.subr.bf16.mxu0 %v19304_v4 }
 0x31a   : > { %v13536_v6 = vpop.f32.mrf.mxu1  ;;  %13830 = vmatprep.subr.bf16.mxu1 %v19307_v19  ;;  %v22680_v11 = vadd.f32 %v13534_v35, %v13494_v36  ;;  %v13496_v29 = vadd.f32 %v13495_v43, %v22591_v55  ;;  %13819 = vmatprep.mubr.bf16.mxu0 %v22669_v63  ;;  %v19316_v55 = vld [vmem:[%s21620_s30 + $0x2c84] ss:$16 sps:$4 sm:$0xff]   ;;  %v19314_v35 = vld [vmem:[%s21620_s30 + $0x2c80] ss:$16 sps:$4 sm:$0xff]  }
 0x31b   : > { %13860 = vmatprep.mubr.bf16.mxu1 %v22673_v9  ;;  %v13497_v34 = vpop.f32.mrf.mxu0  ;;  %v19317_v36 = vld [vmem:[%s21620_s30 + $0x2e80] ss:$16 sps:$4 sm:$0xff]  }
 0x31c   : > { %v13538_v15 = vpop.f32.mrf.mxu1  ;;  %v22687_v22 = vadd.f32 %v13536_v6, %v13496_v29  ;;  %13790 = vmatpush1.bf16.msra.mxu0 %v19302_v12  ;;  %v19322_v29 = vld [vmem:[%s21620_s30 + $0x2c64] ss:$16 sps:$4 sm:$0xff]   ;;  %v19323_v43 = vld [vmem:[%s21620_s30 + $0x2e60] ss:$16 sps:$4 sm:$0xff]  }
 0x31d   : > { %13831 = vmatpush1.bf16.msra.mxu1 %v19305_v20  ;;  %v13498_v4 = vpop.f32.mrf.mxu0  ;;  %13791 = vmatprep.subr.bf16.mxu0 %v19310_v44  ;;  %v19325_v12 = vld [vmem:[%s21620_s30 + $0x2e64] ss:$16 sps:$4 sm:$0xff]   ;;  %v19320_v20 = vld [vmem:[%s21620_s30 + $0x2c60] ss:$16 sps:$4 sm:$0xff]  }
 0x31e   : > { %v13539_v19 = vpop.f32.mrf.mxu1  ;;  %13832 = vmatprep.subr.bf16.mxu1 %v19313_v56  ;;  %v19326_v6 = vld [vmem:[%s21620_s30 + $0x2c40] ss:$16 sps:$4 sm:$0xff]   ;;  %v19334_v56 = vld [vmem:[%s21620_s30 + $0x2c24] ss:$16 sps:$4 sm:$0xff]  }
 0x31f   : > { %v19329_v44 = vld [vmem:[%s21620_s30 + $0x2e40] ss:$16 sps:$4 sm:$0xff]   ;;  %v19337_v34 = vld [vmem:[%s21620_s30 + $0x2e24] ss:$16 sps:$4 sm:$0xff]  }
 0x320   : > { %13792 = vmatpush1.bf16.msra.mxu0 %v19308_v28  ;;  %v19328_v28 = vld [vmem:[%s21620_s30 + $0x2c44] ss:$16 sps:$4 sm:$0xff]   ;;  %v19332_v15 = vld [vmem:[%s21620_s30 + $0x2c20] ss:$16 sps:$4 sm:$0xff]  }
 0x321   : > { %13833 = vmatpush1.bf16.msra.mxu1 %v19311_v16  ;;  %13793 = vmatprep.subr.bf16.mxu0 %v19316_v55  ;;  %v19331_v16 = vld [vmem:[%s21620_s30 + $0x2e44] ss:$16 sps:$4 sm:$0xff]   ;;  %v19335_v4 = vld [vmem:[%s21620_s30 + $0x2e20] ss:$16 sps:$4 sm:$0xff]  }
 0x322   : > { %13834 = vmatprep.subr.bf16.mxu1 %v19319_v14  ;;  %v19340_v19 = vld [vmem:[%s21620_s30 + $0x2c04] ss:$16 sps:$4 sm:$0xff]   ;;  %v19338_v14 = vld [vmem:[%s21620_s30 + $0x2c00] ss:$16 sps:$4 sm:$0xff]  }
 0x323   : > { %v19343_v55 = vld [vmem:[%s21620_s30 + $0x2e04] ss:$16 sps:$4 sm:$0xff]  }
 0x324   : > { %13794 = vmatpush1.bf16.msra.mxu0 %v19314_v35  ;;  %v19341_v35 = vld [vmem:[%s21620_s30 + $0x2e00] ss:$16 sps:$4 sm:$0xff]  }
 0x325   : > { %13835 = vmatpush1.bf16.msra.mxu1 %v19317_v36  ;;  %13795 = vmatprep.subr.bf16.mxu0 %v19322_v29  ;;  %v19346_v36 = vld [vmem:[%s21620_s30 + $0x2de4] ss:$16 sps:$4 sm:$0xff]  }
 0x326   : > { %13836 = vmatprep.subr.bf16.mxu1 %v19325_v12  ;;  %v19349_v29 = vld [vmem:[%s21620_s30 + $0x2fe4] ss:$16 sps:$4 sm:$0xff]   ;;  %v19344_v12 = vld [vmem:[%s21620_s30 + $0x2de0] ss:$16 sps:$4 sm:$0xff]  }
 0x328   : > { %13796 = vmatpush1.bf16.msra.mxu0 %v19320_v20  ;;  %v19347_v20 = vld [vmem:[%s21620_s30 + $0x2fe0] ss:$16 sps:$4 sm:$0xff]  }
 0x329   : > { %13837 = vmatpush1.bf16.msra.mxu1 %v19323_v43  ;;  %13797 = vmatprep.subr.bf16.mxu0 %v19328_v28  ;;  %v19352_v43 = vld [vmem:[%s21620_s30 + $0x2dc4] ss:$16 sps:$4 sm:$0xff]  }
 0x32a   : > { %13838 = vmatprep.subr.bf16.mxu1 %v19331_v16  ;;  %v19355_v28 = vld [vmem:[%s21620_s30 + $0x2fc4] ss:$16 sps:$4 sm:$0xff]   ;;  %v19350_v16 = vld [vmem:[%s21620_s30 + $0x2dc0] ss:$16 sps:$4 sm:$0xff]  }
 0x32c   : > { %13798 = vmatpush1.bf16.msra.mxu0 %v19326_v6  ;;  %v19353_v6 = vld [vmem:[%s21620_s30 + $0x2fc0] ss:$16 sps:$4 sm:$0xff]  }
 0x32d   : > { %13839 = vmatpush1.bf16.msra.mxu1 %v19329_v44  ;;  %13799 = vmatprep.subr.bf16.mxu0 %v19334_v56  ;;  %v19358_v44 = vld [vmem:[%s21620_s30 + $0x2da4] ss:$16 sps:$4 sm:$0xff]  }
 0x32e   : > { %13840 = vmatprep.subr.bf16.mxu1 %v19337_v34  ;;  %v19361_v56 = vld [vmem:[%s21620_s30 + $0x2fa4] ss:$16 sps:$4 sm:$0xff]   ;;  %v19356_v34 = vld [vmem:[%s21620_s30 + $0x2da0] ss:$16 sps:$4 sm:$0xff]  }
 0x330   : > { %13800 = vmatpush1.bf16.msra.mxu0 %v19332_v15  ;;  %v19359_v15 = vld [vmem:[%s21620_s30 + $0x2fa0] ss:$16 sps:$4 sm:$0xff]  }
 0x331   : > { %13841 = vmatpush1.bf16.msra.mxu1 %v19335_v4  ;;  %13801 = vmatprep.subr.bf16.mxu0 %v19340_v19  ;;  %v19364_v4 = vld [vmem:[%s21620_s30 + $0x2d84] ss:$16 sps:$4 sm:$0xff]  }
 0x332   : > { %13842 = vmatprep.subr.bf16.mxu1 %v19343_v55  ;;  %v19367_v19 = vld [vmem:[%s21620_s30 + $0x2f84] ss:$16 sps:$4 sm:$0xff]   ;;  %v19362_v55 = vld [vmem:[%s21620_s30 + $0x2d80] ss:$16 sps:$4 sm:$0xff]  }
 0x334   : > { %13802 = vmatpush1.bf16.msra.mxu0 %v19338_v14  ;;  %v19365_v14 = vld [vmem:[%s21620_s30 + $0x2f80] ss:$16 sps:$4 sm:$0xff]  }
 0x335   : > { %13843 = vmatpush1.bf16.msra.mxu1 %v19341_v35  ;;  %13803 = vmatprep.subr.bf16.mxu0 %v19346_v36  ;;  %v19370_v35 = vld [vmem:[%s21620_s30 + $0x2d64] ss:$16 sps:$4 sm:$0xff]  }
 0x336   : > { %13844 = vmatprep.subr.bf16.mxu1 %v19349_v29  ;;  %v19373_v36 = vld [vmem:[%s21620_s30 + $0x2f64] ss:$16 sps:$4 sm:$0xff]   ;;  %v19368_v29 = vld [vmem:[%s21620_s30 + $0x2d60] ss:$16 sps:$4 sm:$0xff]  }
 0x338   : > { %13804 = vmatpush2.bf16.msra.mxu0 %v19344_v12  ;;  %v19371_v12 = vld [vmem:[%s21620_s30 + $0x2f60] ss:$16 sps:$4 sm:$0xff]  }
 0x339   : > { %13845 = vmatpush2.bf16.msra.mxu1 %v19347_v20  ;;  %13805 = vmatprep.subr.bf16.mxu0 %v19352_v43  ;;  %v19376_v20 = vld [vmem:[%s21620_s30 + $0x2d44] ss:$16 sps:$4 sm:$0xff]  }
 0x33a   : > { %13846 = vmatprep.subr.bf16.mxu1 %v19355_v28  ;;  %v19379_v43 = vld [vmem:[%s21620_s30 + $0x2f44] ss:$16 sps:$4 sm:$0xff]   ;;  %v19374_v28 = vld [vmem:[%s21620_s30 + $0x2d40] ss:$16 sps:$4 sm:$0xff]  }
 0x33c   : > { %13806 = vmatpush2.bf16.msra.mxu0 %v19350_v16  ;;  %v19377_v16 = vld [vmem:[%s21620_s30 + $0x2f40] ss:$16 sps:$4 sm:$0xff]  }
 0x33d   : > { %13847 = vmatpush2.bf16.msra.mxu1 %v19353_v6  ;;  %13807 = vmatprep.subr.bf16.mxu0 %v19358_v44  ;;  %v19382_v6 = vld [vmem:[%s21620_s30 + $0x2d24] ss:$16 sps:$4 sm:$0xff]  }
 0x33e   : > { %13848 = vmatprep.subr.bf16.mxu1 %v19361_v56  ;;  %v19385_v44 = vld [vmem:[%s21620_s30 + $0x2f24] ss:$16 sps:$4 sm:$0xff]   ;;  %v19380_v56 = vld [vmem:[%s21620_s30 + $0x2d20] ss:$16 sps:$4 sm:$0xff]  }
 0x340   : > { %13808 = vmatpush2.bf16.msra.mxu0 %v19356_v34  ;;  %v19383_v34 = vld [vmem:[%s21620_s30 + $0x2f20] ss:$16 sps:$4 sm:$0xff]  }
 0x341   : > { %13849 = vmatpush2.bf16.msra.mxu1 %v19359_v15  ;;  %13809 = vmatprep.subr.bf16.mxu0 %v19364_v4  ;;  %v19388_v15 = vld [vmem:[%s21620_s30 + $0x2d04] ss:$16 sps:$4 sm:$0xff]  }
 0x342   : > { %13850 = vmatprep.subr.bf16.mxu1 %v19367_v19  ;;  %v19391_v4 = vld [vmem:[%s21620_s30 + $0x2f04] ss:$16 sps:$4 sm:$0xff]   ;;  %v19386_v19 = vld [vmem:[%s21620_s30 + $0x2d00] ss:$16 sps:$4 sm:$0xff]  }
 0x344   : > { %13810 = vmatpush2.bf16.msra.mxu0 %v19362_v55  ;;  %v19389_v55 = vld [vmem:[%s21620_s30 + $0x2f00] ss:$16 sps:$4 sm:$0xff]  }
 0x345   : > { %13851 = vmatpush2.bf16.msra.mxu1 %v19365_v14  ;;  %13811 = vmatprep.subr.bf16.mxu0 %v19370_v35  ;;  %v19398_v14 = vld [vmem:[%s21620_s30 + $0x30e4] ss:$16 sps:$4 sm:$0xff]  }
 0x346   : > { %13852 = vmatprep.subr.bf16.mxu1 %v19373_v36  ;;  %v19401_v35 = vld [vmem:[%s21620_s30 + $0x32e4] ss:$16 sps:$4 sm:$0xff]   ;;  %v19396_v36 = vld [vmem:[%s21620_s30 + $0x30e0] ss:$16 sps:$4 sm:$0xff]  }
 0x348   : > { %13812 = vmatpush2.bf16.msra.mxu0 %v19368_v29  ;;  %v19399_v29 = vld [vmem:[%s21620_s30 + $0x32e0] ss:$16 sps:$4 sm:$0xff]  }
 0x349   : > { %13853 = vmatpush2.bf16.msra.mxu1 %v19371_v12  ;;  %13813 = vmatprep.subr.bf16.mxu0 %v19376_v20  ;;  %v22747_v12 = vcombine.low %v22658_v0, %v22658_v0  ;;  %v22751_v20 = vcombine.low %v22661_v13, %v22661_v13 }
 0x34a   : > { %13854 = vmatprep.subr.bf16.mxu1 %v19379_v43  ;;  %v22754_v43 = vld [vmem:[%s21634_s8 + $0xc0] sm:$0xff] }
 0x34b   : > { %24385 = vst [vmem:[#allocation16_spill] sm:$0xff] %v22747_v12  ;;  %24386 = vst [vmem:[#allocation17_spill] sm:$0xff] %v22751_v20  ;;  %v22765_v0 = vcombine.high %v22754_v43, %v22754_v43 }
 0x34c   : > { %13814 = vmatpush2.bf16.msra.mxu0 %v19374_v28  ;;  %v22757_v28 = vld [vmem:[%s21634_s8 + $0xc8] sm:$0xff] }
 0x34d   : > { %13855 = vmatpush2.bf16.msra.mxu1 %v19377_v16  ;;  %13815 = vmatprep.subr.bf16.mxu0 %v19382_v6  ;;  %v19404_v16 = vld [vmem:[%s21620_s30 + $0x30c4] ss:$16 sps:$4 sm:$0xff]   ;;  %24387 = vst [vmem:[#allocation18_spill] sm:$0xff] %v22765_v0  ;;  %v22769_v13 = vcombine.high %v22757_v28, %v22757_v28 }
 0x34e   : > { %13856 = vmatprep.subr.bf16.mxu1 %v19385_v44  ;;  %v19407_v6 = vld [vmem:[%s21620_s30 + $0x32c4] ss:$16 sps:$4 sm:$0xff]   ;;  %v19402_v44 = vld [vmem:[%s21620_s30 + $0x30c0] ss:$16 sps:$4 sm:$0xff]  }
 0x34f   : > { %24388 = vst [vmem:[#allocation19_spill] sm:$0xff] %v22769_v13 }
 0x350   : > { %13816 = vmatpush2.bf16.msra.mxu0 %v19380_v56  ;;  %v19405_v56 = vld [vmem:[%s21620_s30 + $0x32c0] ss:$16 sps:$4 sm:$0xff]  }
 0x351   : > { %13857 = vmatpush2.bf16.msra.mxu1 %v19383_v34  ;;  %13817 = vmatprep.subr.bf16.mxu0 %v19388_v15 }
 0x352   : > { %13858 = vmatprep.subr.bf16.mxu1 %v19391_v4 }
 0x354   : > { %13818 = vmatpush2.bf16.msra.mxu0 %v19386_v19 }
 0x355   : > { %13859 = vmatpush2.bf16.msra.mxu1 %v19389_v55  ;;  %13869 = vmatprep.subr.bf16.mxu0 %v19398_v14  ;;  %v19410_v14 = vld [vmem:[%s21620_s30 + $0x30a4] ss:$16 sps:$4 sm:$0xff]  }
 0x356   : > { %13910 = vmatprep.subr.bf16.mxu1 %v19401_v35  ;;  %v19413_v35 = vld [vmem:[%s21620_s30 + $0x32a4] ss:$16 sps:$4 sm:$0xff]  }
 0x357   : > { %v13575_v34 = vpop.f32.mrf.mxu0  ;;  %13820 = vmatmul.mubr.bf16.vlgmr.msra.gmra.mxu0 %v22747_v12  ;;  %v19411_v12 = vld [vmem:[%s21620_s30 + $0x32a0] ss:$16 sps:$4 sm:$0xff]  }
 0x358   : > { %v13616_v15 = vpop.f32.mrf.mxu1  ;;  %13861 = vmatmul.mubr.bf16.vlgmr.msra.gmra.mxu1 %v22751_v20  ;;  %v13576_v4 = vadd.f32 %v13575_v34, %v22680_v11  ;;  %13870 = vmatpush1.bf16.msra.mxu0 %v19396_v36  ;;  %v19419_v34 = vld [vmem:[%s21620_s30 + $0x3284] ss:$16 sps:$4 sm:$0xff]   ;;  %v19508_v20 = vld [vmem:[%s21620_s30 + $0x34a0] ss:$16 sps:$4 sm:$0xff]  }
 0x359   : > { %13911 = vmatpush1.bf16.msra.mxu1 %v19399_v29  ;;  %v13577_v19 = vpop.f32.mrf.mxu0  ;;  %13871 = vmatprep.subr.bf16.mxu0 %v19404_v16 }
 0x35a   : > { %v13618_v55 = vpop.f32.mrf.mxu1  ;;  %13912 = vmatprep.subr.bf16.mxu1 %v19407_v6  ;;  %v22776_v9 = vadd.f32 %v13616_v15, %v13576_v4  ;;  %v13578_v63 = vadd.f32 %v13577_v19, %v22687_v22  ;;  %13901 = vmatprep.mubr.bf16.mxu0 %v22765_v0  ;;  %v19416_v22 = vld [vmem:[%s21620_s30 + $0x3084] ss:$16 sps:$4 sm:$0xff]   ;;  %v19414_v15 = vld [vmem:[%s21620_s30 + $0x3080] ss:$16 sps:$4 sm:$0xff]  }
 0x35b   : > { %13942 = vmatprep.mubr.bf16.mxu1 %v22769_v13  ;;  %v13579_v11 = vpop.f32.mrf.mxu0  ;;  %v19417_v4 = vld [vmem:[%s21620_s30 + $0x3280] ss:$16 sps:$4 sm:$0xff]  }
 0x35c   : > { %v13620_v36 = vpop.f32.mrf.mxu1  ;;  %v22783_v29 = vadd.f32 %v13618_v55, %v13578_v63  ;;  %13872 = vmatpush1.bf16.msra.mxu0 %v19402_v44  ;;  %v19422_v63 = vld [vmem:[%s21620_s30 + $0x3064] ss:$16 sps:$4 sm:$0xff]   ;;  %v19423_v19 = vld [vmem:[%s21620_s30 + $0x3260] ss:$16 sps:$4 sm:$0xff]  }
 0x35d   : > { %13913 = vmatpush1.bf16.msra.mxu1 %v19405_v56  ;;  %v13580_v16 = vpop.f32.mrf.mxu0  ;;  %13873 = vmatprep.subr.bf16.mxu0 %v19410_v14  ;;  %v19425_v44 = vld [vmem:[%s21620_s30 + $0x3264] ss:$16 sps:$4 sm:$0xff]   ;;  %v19420_v56 = vld [vmem:[%s21620_s30 + $0x3060] ss:$16 sps:$4 sm:$0xff]  }
 0x35e   : > { %v13621_v6 = vpop.f32.mrf.mxu1  ;;  %13914 = vmatprep.subr.bf16.mxu1 %v19413_v35  ;;  %v19426_v55 = vld [vmem:[%s21620_s30 + $0x3040] ss:$16 sps:$4 sm:$0xff]   ;;  %v19434_v35 = vld [vmem:[%s21620_s30 + $0x3024] ss:$16 sps:$4 sm:$0xff]  }
 0x35f   : > { %v19429_v14 = vld [vmem:[%s21620_s30 + $0x3240] ss:$16 sps:$4 sm:$0xff]   ;;  %v19437_v11 = vld [vmem:[%s21620_s30 + $0x3224] ss:$16 sps:$4 sm:$0xff]  }
 0x360   : > { %13874 = vmatpush1.bf16.msra.mxu0 %v19408_v31  ;;  %v19428_v31 = vld [vmem:[%s21620_s30 + $0x3044] ss:$16 sps:$4 sm:$0xff]   ;;  %v19432_v36 = vld [vmem:[%s21620_s30 + $0x3020] ss:$16 sps:$4 sm:$0xff]  }
 0x361   : > { %13915 = vmatpush1.bf16.msra.mxu1 %v19411_v12  ;;  %13875 = vmatprep.subr.bf16.mxu0 %v19416_v22  ;;  %v19431_v12 = vld [vmem:[%s21620_s30 + $0x3244] ss:$16 sps:$4 sm:$0xff]   ;;  %v19435_v16 = vld [vmem:[%s21620_s30 + $0x3220] ss:$16 sps:$4 sm:$0xff]  }
 0x362   : > { %13916 = vmatprep.subr.bf16.mxu1 %v19419_v34  ;;  %v19440_v6 = vld [vmem:[%s21620_s30 + $0x3004] ss:$16 sps:$4 sm:$0xff]   ;;  %v19438_v34 = vld [vmem:[%s21620_s30 + $0x3000] ss:$16 sps:$4 sm:$0xff]  }
 0x363   : > { %v19443_v22 = vld [vmem:[%s21620_s30 + $0x3204] ss:$16 sps:$4 sm:$0xff]  }
 0x364   : > { %13876 = vmatpush1.bf16.msra.mxu0 %v19414_v15  ;;  %v19441_v15 = vld [vmem:[%s21620_s30 + $0x3200] ss:$16 sps:$4 sm:$0xff]  }
 0x365   : > { %13917 = vmatpush1.bf16.msra.mxu1 %v19417_v4  ;;  %13877 = vmatprep.subr.bf16.mxu0 %v19422_v63  ;;  %v19446_v4 = vld [vmem:[%s21620_s30 + $0x31e4] ss:$16 sps:$4 sm:$0xff]  }
 0x366   : > { %13918 = vmatprep.subr.bf16.mxu1 %v19425_v44  ;;  %v19449_v63 = vld [vmem:[%s21620_s30 + $0x33e4] ss:$16 sps:$4 sm:$0xff]   ;;  %v19444_v44 = vld [vmem:[%s21620_s30 + $0x31e0] ss:$16 sps:$4 sm:$0xff]  }
 0x368   : > { %13878 = vmatpush1.bf16.msra.mxu0 %v19420_v56  ;;  %v19447_v56 = vld [vmem:[%s21620_s30 + $0x33e0] ss:$16 sps:$4 sm:$0xff]  }
 0x369   : > { %13919 = vmatpush1.bf16.msra.mxu1 %v19423_v19  ;;  %13879 = vmatprep.subr.bf16.mxu0 %v19428_v31  ;;  %v19452_v19 = vld [vmem:[%s21620_s30 + $0x31c4] ss:$16 sps:$4 sm:$0xff]  }
 0x36a   : > { %13920 = vmatprep.subr.bf16.mxu1 %v19431_v12  ;;  %v19455_v31 = vld [vmem:[%s21620_s30 + $0x33c4] ss:$16 sps:$4 sm:$0xff]   ;;  %v19450_v12 = vld [vmem:[%s21620_s30 + $0x31c0] ss:$16 sps:$4 sm:$0xff]  }
 0x36c   : > { %13880 = vmatpush1.bf16.msra.mxu0 %v19426_v55  ;;  %v19453_v55 = vld [vmem:[%s21620_s30 + $0x33c0] ss:$16 sps:$4 sm:$0xff]  }
 0x36d   : > { %13921 = vmatpush1.bf16.msra.mxu1 %v19429_v14  ;;  %13881 = vmatprep.subr.bf16.mxu0 %v19434_v35  ;;  %v19458_v14 = vld [vmem:[%s21620_s30 + $0x31a4] ss:$16 sps:$4 sm:$0xff]  }
 0x36e   : > { %13922 = vmatprep.subr.bf16.mxu1 %v19437_v11  ;;  %v19461_v35 = vld [vmem:[%s21620_s30 + $0x33a4] ss:$16 sps:$4 sm:$0xff]   ;;  %v19456_v11 = vld [vmem:[%s21620_s30 + $0x31a0] ss:$16 sps:$4 sm:$0xff]  }
 0x370   : > { %13882 = vmatpush1.bf16.msra.mxu0 %v19432_v36  ;;  %v19459_v36 = vld [vmem:[%s21620_s30 + $0x33a0] ss:$16 sps:$4 sm:$0xff]  }
 0x371   : > { %13923 = vmatpush1.bf16.msra.mxu1 %v19435_v16  ;;  %13883 = vmatprep.subr.bf16.mxu0 %v19440_v6  ;;  %v19464_v16 = vld [vmem:[%s21620_s30 + $0x3184] ss:$16 sps:$4 sm:$0xff]  }
 0x372   : > { %13924 = vmatprep.subr.bf16.mxu1 %v19443_v22  ;;  %v19467_v6 = vld [vmem:[%s21620_s30 + $0x3384] ss:$16 sps:$4 sm:$0xff]   ;;  %v19462_v22 = vld [vmem:[%s21620_s30 + $0x3180] ss:$16 sps:$4 sm:$0xff]  }
 0x374   : > { %13884 = vmatpush1.bf16.msra.mxu0 %v19438_v34  ;;  %v19465_v34 = vld [vmem:[%s21620_s30 + $0x3380] ss:$16 sps:$4 sm:$0xff]  }
 0x375   : > { %13925 = vmatpush1.bf16.msra.mxu1 %v19441_v15  ;;  %13885 = vmatprep.subr.bf16.mxu0 %v19446_v4  ;;  %v19470_v15 = vld [vmem:[%s21620_s30 + $0x3164] ss:$16 sps:$4 sm:$0xff]  }
 0x376   : > { %13926 = vmatprep.subr.bf16.mxu1 %v19449_v63  ;;  %v19473_v4 = vld [vmem:[%s21620_s30 + $0x3364] ss:$16 sps:$4 sm:$0xff]   ;;  %v19468_v63 = vld [vmem:[%s21620_s30 + $0x3160] ss:$16 sps:$4 sm:$0xff]  }
 0x378   : > { %13886 = vmatpush2.bf16.msra.mxu0 %v19444_v44  ;;  %v19471_v44 = vld [vmem:[%s21620_s30 + $0x3360] ss:$16 sps:$4 sm:$0xff]  }
 0x379   : > { %13927 = vmatpush2.bf16.msra.mxu1 %v19447_v56  ;;  %13887 = vmatprep.subr.bf16.mxu0 %v19452_v19  ;;  %v19476_v56 = vld [vmem:[%s21620_s30 + $0x3144] ss:$16 sps:$4 sm:$0xff]  }
 0x37a   : > { %13928 = vmatprep.subr.bf16.mxu1 %v19455_v31  ;;  %v19479_v19 = vld [vmem:[%s21620_s30 + $0x3344] ss:$16 sps:$4 sm:$0xff]   ;;  %v19474_v31 = vld [vmem:[%s21620_s30 + $0x3140] ss:$16 sps:$4 sm:$0xff]  }
 0x37c   : > { %13888 = vmatpush2.bf16.msra.mxu0 %v19450_v12  ;;  %v19477_v12 = vld [vmem:[%s21620_s30 + $0x3340] ss:$16 sps:$4 sm:$0xff]  }
 0x37d   : > { %13929 = vmatpush2.bf16.msra.mxu1 %v19453_v55  ;;  %13889 = vmatprep.subr.bf16.mxu0 %v19458_v14  ;;  %v19482_v55 = vld [vmem:[%s21620_s30 + $0x3124] ss:$16 sps:$4 sm:$0xff]  }
 0x37e   : > { %13930 = vmatprep.subr.bf16.mxu1 %v19461_v35  ;;  %v19485_v14 = vld [vmem:[%s21620_s30 + $0x3324] ss:$16 sps:$4 sm:$0xff]   ;;  %v19480_v35 = vld [vmem:[%s21620_s30 + $0x3120] ss:$16 sps:$4 sm:$0xff]  }
 0x380   : > { %13890 = vmatpush2.bf16.msra.mxu0 %v19456_v11  ;;  %v19483_v11 = vld [vmem:[%s21620_s30 + $0x3320] ss:$16 sps:$4 sm:$0xff]  }
 0x381   : > { %13931 = vmatpush2.bf16.msra.mxu1 %v19459_v36  ;;  %13891 = vmatprep.subr.bf16.mxu0 %v19464_v16  ;;  %v19488_v36 = vld [vmem:[%s21620_s30 + $0x3104] ss:$16 sps:$4 sm:$0xff]  }
 0x382   : > { %13932 = vmatprep.subr.bf16.mxu1 %v19467_v6  ;;  %v19491_v16 = vld [vmem:[%s21620_s30 + $0x3304] ss:$16 sps:$4 sm:$0xff]   ;;  %v19486_v6 = vld [vmem:[%s21620_s30 + $0x3100] ss:$16 sps:$4 sm:$0xff]  }
 0x384   : > { %13892 = vmatpush2.bf16.msra.mxu0 %v19462_v22  ;;  %v19489_v22 = vld [vmem:[%s21620_s30 + $0x3300] ss:$16 sps:$4 sm:$0xff]  }
 0x385   : > { %13933 = vmatpush2.bf16.msra.mxu1 %v19465_v34  ;;  %13893 = vmatprep.subr.bf16.mxu0 %v19470_v15  ;;  %v19498_v34 = vld [vmem:[%s21620_s30 + $0x34e4] ss:$16 sps:$4 sm:$0xff]  }
 0x386   : > { %13934 = vmatprep.subr.bf16.mxu1 %v19473_v4  ;;  %v19501_v15 = vld [vmem:[%s21620_s30 + $0x36e4] ss:$16 sps:$4 sm:$0xff]   ;;  %v19496_v4 = vld [vmem:[%s21620_s30 + $0x34e0] ss:$16 sps:$4 sm:$0xff]  }
 0x388   : > { %13894 = vmatpush2.bf16.msra.mxu0 %v19468_v63  ;;  %v19499_v63 = vld [vmem:[%s21620_s30 + $0x36e0] ss:$16 sps:$4 sm:$0xff]  }
 0x389   : > { %13935 = vmatpush2.bf16.msra.mxu1 %v19471_v44  ;;  %13895 = vmatprep.subr.bf16.mxu0 %v19476_v56  ;;  %v22843_v44 = vcombine.low %v22754_v43, %v22754_v43  ;;  %v22847_v56 = vcombine.low %v22757_v28, %v22757_v28 }
 0x38a   : > { %13936 = vmatprep.subr.bf16.mxu1 %v19479_v19  ;;  %v22850_v19 = vld [vmem:[%s21634_s8 + $0xd0] sm:$0xff] }
 0x38b   : > { %24389 = vst [vmem:[#allocation20_spill] sm:$0xff] %v22843_v44  ;;  %24390 = vst [vmem:[#allocation21_spill] sm:$0xff] %v22847_v56  ;;  %v22861_v43 = vcombine.high %v22850_v19, %v22850_v19 }
 0x38c   : > { %13896 = vmatpush2.bf16.msra.mxu0 %v19474_v31  ;;  %v22853_v31 = vld [vmem:[%s21634_s8 + $0xd8] sm:$0xff] }
 0x38d   : > { %13937 = vmatpush2.bf16.msra.mxu1 %v19477_v12  ;;  %13897 = vmatprep.subr.bf16.mxu0 %v19482_v55  ;;  %v19504_v12 = vld [vmem:[%s21620_s30 + $0x34c4] ss:$16 sps:$4 sm:$0xff]   ;;  %24391 = vst [vmem:[#allocation22_spill] sm:$0xff] %v22861_v43  ;;  %v22865_v28 = vcombine.high %v22853_v31, %v22853_v31 }
 0x38e   : > { %13938 = vmatprep.subr.bf16.mxu1 %v19485_v14  ;;  %v19507_v55 = vld [vmem:[%s21620_s30 + $0x36c4] ss:$16 sps:$4 sm:$0xff]   ;;  %v19502_v14 = vld [vmem:[%s21620_s30 + $0x34c0] ss:$16 sps:$4 sm:$0xff]  }
 0x38f   : > { %24392 = vst [vmem:[#allocation23_spill] sm:$0xff] %v22865_v28 }
 0x390   : > { %13898 = vmatpush2.bf16.msra.mxu0 %v19480_v35  ;;  %v19505_v35 = vld [vmem:[%s21620_s30 + $0x36c0] ss:$16 sps:$4 sm:$0xff]  }
 0x391   : > { %13939 = vmatpush2.bf16.msra.mxu1 %v19483_v11  ;;  %13899 = vmatprep.subr.bf16.mxu0 %v19488_v36 }
 0x392   : > { %13940 = vmatprep.subr.bf16.mxu1 %v19491_v16 }
 0x394   : > { %13900 = vmatpush2.bf16.msra.mxu0 %v19486_v6 }
 0x395   : > { %13941 = vmatpush2.bf16.msra.mxu1 %v19489_v22  ;;  %13951 = vmatprep.subr.bf16.mxu0 %v19498_v34  ;;  %v19510_v34 = vld [vmem:[%s21620_s30 + $0x34a4] ss:$16 sps:$4 sm:$0xff]  }
 0x396   : > { %13992 = vmatprep.subr.bf16.mxu1 %v19501_v15  ;;  %v19513_v15 = vld [vmem:[%s21620_s30 + $0x36a4] ss:$16 sps:$4 sm:$0xff]  }
 0x397   : > { %v13657_v11 = vpop.f32.mrf.mxu0  ;;  %13902 = vmatmul.mubr.bf16.vlgmr.msra.gmra.mxu0 %v22843_v44  ;;  %v19511_v44 = vld [vmem:[%s21620_s30 + $0x36a0] ss:$16 sps:$4 sm:$0xff]  }
 0x398   : > { %v13698_v36 = vpop.f32.mrf.mxu1  ;;  %13943 = vmatmul.mubr.bf16.vlgmr.msra.gmra.mxu1 %v22847_v56  ;;  %v13658_v16 = vadd.f32 %v13657_v11, %v22776_v9  ;;  %13952 = vmatpush1.bf16.msra.mxu0 %v19496_v4  ;;  %v19519_v11 = vld [vmem:[%s21620_s30 + $0x3684] ss:$16 sps:$4 sm:$0xff]   ;;  %v19608_v56 = vld [vmem:[%s21620_s30 + $0x38a0] ss:$16 sps:$4 sm:$0xff]  }
 0x399   : > { %13993 = vmatpush1.bf16.msra.mxu1 %v19499_v63  ;;  %v13659_v6 = vpop.f32.mrf.mxu0  ;;  %13953 = vmatprep.subr.bf16.mxu0 %v19504_v12 }
 0x39a   : > { %v13700_v22 = vpop.f32.mrf.mxu1  ;;  %13994 = vmatprep.subr.bf16.mxu1 %v19507_v55  ;;  %v22872_v13 = vadd.f32 %v13698_v36, %v13658_v16  ;;  %v13660_v0 = vadd.f32 %v13659_v6, %v22783_v29  ;;  %13983 = vmatprep.mubr.bf16.mxu0 %v22861_v43  ;;  %v19516_v29 = vld [vmem:[%s21620_s30 + $0x3484] ss:$16 sps:$4 sm:$0xff]   ;;  %v19514_v36 = vld [vmem:[%s21620_s30 + $0x3480] ss:$16 sps:$4 sm:$0xff]  }
 0x39b   : > { %14024 = vmatprep.mubr.bf16.mxu1 %v22865_v28  ;;  %v13661_v9 = vpop.f32.mrf.mxu0  ;;  %v19517_v16 = vld [vmem:[%s21620_s30 + $0x3680] ss:$16 sps:$4 sm:$0xff]  }
 0x39c   : > { %v13702_v4 = vpop.f32.mrf.mxu1  ;;  %v22879_v63 = vadd.f32 %v13700_v22, %v13660_v0  ;;  %13954 = vmatpush1.bf16.msra.mxu0 %v19502_v14  ;;  %v19522_v0 = vld [vmem:[%s21620_s30 + $0x3464] ss:$16 sps:$4 sm:$0xff]   ;;  %v19523_v6 = vld [vmem:[%s21620_s30 + $0x3660] ss:$16 sps:$4 sm:$0xff]  }
 0x39d   : > { %13995 = vmatpush1.bf16.msra.mxu1 %v19505_v35  ;;  %v13662_v12 = vpop.f32.mrf.mxu0  ;;  %13955 = vmatprep.subr.bf16.mxu0 %v19510_v34  ;;  %v19525_v14 = vld [vmem:[%s21620_s30 + $0x3664] ss:$16 sps:$4 sm:$0xff]   ;;  %v19520_v35 = vld [vmem:[%s21620_s30 + $0x3460] ss:$16 sps:$4 sm:$0xff]  }
 0x39e   : > { %v13703_v55 = vpop.f32.mrf.mxu1  ;;  %13996 = vmatprep.subr.bf16.mxu1 %v19513_v15  ;;  %v19526_v22 = vld [vmem:[%s21620_s30 + $0x3440] ss:$16 sps:$4 sm:$0xff]   ;;  %v19534_v15 = vld [vmem:[%s21620_s30 + $0x3424] ss:$16 sps:$4 sm:$0xff]  }
 0x39f   : > { %v19529_v34 = vld [vmem:[%s21620_s30 + $0x3640] ss:$16 sps:$4 sm:$0xff]   ;;  %v19537_v9 = vld [vmem:[%s21620_s30 + $0x3624] ss:$16 sps:$4 sm:$0xff]  }
 0x3a0   : > { %13956 = vmatpush1.bf16.msra.mxu0 %v19508_v20  ;;  %v19528_v20 = vld [vmem:[%s21620_s30 + $0x3444] ss:$16 sps:$4 sm:$0xff]   ;;  %v19532_v4 = vld [vmem:[%s21620_s30 + $0x3420] ss:$16 sps:$4 sm:$0xff]  }
 0x3a1   : > { %13997 = vmatpush1.bf16.msra.mxu1 %v19511_v44  ;;  %13957 = vmatprep.subr.bf16.mxu0 %v19516_v29  ;;  %v19531_v44 = vld [vmem:[%s21620_s30 + $0x3644] ss:$16 sps:$4 sm:$0xff]   ;;  %v19535_v12 = vld [vmem:[%s21620_s30 + $0x3620] ss:$16 sps:$4 sm:$0xff]  }
 0x3a2   : > { %13998 = vmatprep.subr.bf16.mxu1 %v19519_v11  ;;  %v19540_v55 = vld [vmem:[%s21620_s30 + $0x3404] ss:$16 sps:$4 sm:$0xff]   ;;  %v19538_v11 = vld [vmem:[%s21620_s30 + $0x3400] ss:$16 sps:$4 sm:$0xff]  }
 0x3a3   : > { %v19543_v29 = vld [vmem:[%s21620_s30 + $0x3604] ss:$16 sps:$4 sm:$0xff]  }
 0x3a4   : > { %13958 = vmatpush1.bf16.msra.mxu0 %v19514_v36  ;;  %v19541_v36 = vld [vmem:[%s21620_s30 + $0x3600] ss:$16 sps:$4 sm:$0xff]  }
 0x3a5   : > { %13999 = vmatpush1.bf16.msra.mxu1 %v19517_v16  ;;  %13959 = vmatprep.subr.bf16.mxu0 %v19522_v0  ;;  %v19546_v16 = vld [vmem:[%s21620_s30 + $0x35e4] ss:$16 sps:$4 sm:$0xff]  }
 0x3a6   : > { %14000 = vmatprep.subr.bf16.mxu1 %v19525_v14  ;;  %v19549_v0 = vld [vmem:[%s21620_s30 + $0x37e4] ss:$16 sps:$4 sm:$0xff]   ;;  %v19544_v14 = vld [vmem:[%s21620_s30 + $0x35e0] ss:$16 sps:$4 sm:$0xff]  }
 0x3a8   : > { %13960 = vmatpush1.bf16.msra.mxu0 %v19520_v35  ;;  %v19547_v35 = vld [vmem:[%s21620_s30 + $0x37e0] ss:$16 sps:$4 sm:$0xff]  }
 0x3a9   : > { %14001 = vmatpush1.bf16.msra.mxu1 %v19523_v6  ;;  %13961 = vmatprep.subr.bf16.mxu0 %v19528_v20  ;;  %v19552_v6 = vld [vmem:[%s21620_s30 + $0x35c4] ss:$16 sps:$4 sm:$0xff]  }
 0x3aa   : > { %14002 = vmatprep.subr.bf16.mxu1 %v19531_v44  ;;  %v19555_v20 = vld [vmem:[%s21620_s30 + $0x37c4] ss:$16 sps:$4 sm:$0xff]   ;;  %v19550_v44 = vld [vmem:[%s21620_s30 + $0x35c0] ss:$16 sps:$4 sm:$0xff]  }
 0x3ac   : > { %13962 = vmatpush1.bf16.msra.mxu0 %v19526_v22  ;;  %v19553_v22 = vld [vmem:[%s21620_s30 + $0x37c0] ss:$16 sps:$4 sm:$0xff]  }
 0x3ad   : > { %14003 = vmatpush1.bf16.msra.mxu1 %v19529_v34  ;;  %13963 = vmatprep.subr.bf16.mxu0 %v19534_v15  ;;  %v19558_v34 = vld [vmem:[%s21620_s30 + $0x35a4] ss:$16 sps:$4 sm:$0xff]  }
 0x3ae   : > { %14004 = vmatprep.subr.bf16.mxu1 %v19537_v9  ;;  %v19561_v15 = vld [vmem:[%s21620_s30 + $0x37a4] ss:$16 sps:$4 sm:$0xff]   ;;  %v19556_v9 = vld [vmem:[%s21620_s30 + $0x35a0] ss:$16 sps:$4 sm:$0xff]  }
 0x3b0   : > { %13964 = vmatpush1.bf16.msra.mxu0 %v19532_v4  ;;  %v19559_v4 = vld [vmem:[%s21620_s30 + $0x37a0] ss:$16 sps:$4 sm:$0xff]  }
 0x3b1   : > { %14005 = vmatpush1.bf16.msra.mxu1 %v19535_v12  ;;  %13965 = vmatprep.subr.bf16.mxu0 %v19540_v55  ;;  %v19564_v12 = vld [vmem:[%s21620_s30 + $0x3584] ss:$16 sps:$4 sm:$0xff]  }
 0x3b2   : > { %14006 = vmatprep.subr.bf16.mxu1 %v19543_v29  ;;  %v19567_v55 = vld [vmem:[%s21620_s30 + $0x3784] ss:$16 sps:$4 sm:$0xff]   ;;  %v19562_v29 = vld [vmem:[%s21620_s30 + $0x3580] ss:$16 sps:$4 sm:$0xff]  }
 0x3b4   : > { %13966 = vmatpush1.bf16.msra.mxu0 %v19538_v11  ;;  %v19565_v11 = vld [vmem:[%s21620_s30 + $0x3780] ss:$16 sps:$4 sm:$0xff]  }
 0x3b5   : > { %14007 = vmatpush1.bf16.msra.mxu1 %v19541_v36  ;;  %13967 = vmatprep.subr.bf16.mxu0 %v19546_v16  ;;  %v19570_v36 = vld [vmem:[%s21620_s30 + $0x3564] ss:$16 sps:$4 sm:$0xff]  }
 0x3b6   : > { %14008 = vmatprep.subr.bf16.mxu1 %v19549_v0  ;;  %v19573_v16 = vld [vmem:[%s21620_s30 + $0x3764] ss:$16 sps:$4 sm:$0xff]   ;;  %v19568_v0 = vld [vmem:[%s21620_s30 + $0x3560] ss:$16 sps:$4 sm:$0xff]  }
 0x3b8   : > { %13968 = vmatpush2.bf16.msra.mxu0 %v19544_v14  ;;  %v19571_v14 = vld [vmem:[%s21620_s30 + $0x3760] ss:$16 sps:$4 sm:$0xff]  }
 0x3b9   : > { %14009 = vmatpush2.bf16.msra.mxu1 %v19547_v35  ;;  %13969 = vmatprep.subr.bf16.mxu0 %v19552_v6  ;;  %v19576_v35 = vld [vmem:[%s21620_s30 + $0x3544] ss:$16 sps:$4 sm:$0xff]  }
 0x3ba   : > { %14010 = vmatprep.subr.bf16.mxu1 %v19555_v20  ;;  %v19579_v6 = vld [vmem:[%s21620_s30 + $0x3744] ss:$16 sps:$4 sm:$0xff]   ;;  %v19574_v20 = vld [vmem:[%s21620_s30 + $0x3540] ss:$16 sps:$4 sm:$0xff]  }
 0x3bc   : > { %13970 = vmatpush2.bf16.msra.mxu0 %v19550_v44  ;;  %v19577_v44 = vld [vmem:[%s21620_s30 + $0x3740] ss:$16 sps:$4 sm:$0xff]  }
 0x3bd   : > { %14011 = vmatpush2.bf16.msra.mxu1 %v19553_v22  ;;  %13971 = vmatprep.subr.bf16.mxu0 %v19558_v34  ;;  %v19582_v22 = vld [vmem:[%s21620_s30 + $0x3524] ss:$16 sps:$4 sm:$0xff]  }
 0x3be   : > { %14012 = vmatprep.subr.bf16.mxu1 %v19561_v15  ;;  %v19585_v34 = vld [vmem:[%s21620_s30 + $0x3724] ss:$16 sps:$4 sm:$0xff]   ;;  %v19580_v15 = vld [vmem:[%s21620_s30 + $0x3520] ss:$16 sps:$4 sm:$0xff]  }
 0x3c0   : > { %13972 = vmatpush2.bf16.msra.mxu0 %v19556_v9  ;;  %v19583_v9 = vld [vmem:[%s21620_s30 + $0x3720] ss:$16 sps:$4 sm:$0xff]  }
 0x3c1   : > { %14013 = vmatpush2.bf16.msra.mxu1 %v19559_v4  ;;  %13973 = vmatprep.subr.bf16.mxu0 %v19564_v12  ;;  %v19588_v4 = vld [vmem:[%s21620_s30 + $0x3504] ss:$16 sps:$4 sm:$0xff]  }
 0x3c2   : > { %14014 = vmatprep.subr.bf16.mxu1 %v19567_v55  ;;  %v19591_v12 = vld [vmem:[%s21620_s30 + $0x3704] ss:$16 sps:$4 sm:$0xff]   ;;  %v19586_v55 = vld [vmem:[%s21620_s30 + $0x3500] ss:$16 sps:$4 sm:$0xff]  }
 0x3c4   : > { %13974 = vmatpush2.bf16.msra.mxu0 %v19562_v29  ;;  %v19589_v29 = vld [vmem:[%s21620_s30 + $0x3700] ss:$16 sps:$4 sm:$0xff]  }
 0x3c5   : > { %14015 = vmatpush2.bf16.msra.mxu1 %v19565_v11  ;;  %13975 = vmatprep.subr.bf16.mxu0 %v19570_v36  ;;  %v19598_v11 = vld [vmem:[%s21620_s30 + $0x38e4] ss:$16 sps:$4 sm:$0xff]  }
 0x3c6   : > { %14016 = vmatprep.subr.bf16.mxu1 %v19573_v16  ;;  %v19601_v36 = vld [vmem:[%s21620_s30 + $0x3ae4] ss:$16 sps:$4 sm:$0xff]   ;;  %v19596_v16 = vld [vmem:[%s21620_s30 + $0x38e0] ss:$16 sps:$4 sm:$0xff]  }
 0x3c8   : > { %13976 = vmatpush2.bf16.msra.mxu0 %v19568_v0  ;;  %v19599_v0 = vld [vmem:[%s21620_s30 + $0x3ae0] ss:$16 sps:$4 sm:$0xff]  }
 0x3c9   : > { %14017 = vmatpush2.bf16.msra.mxu1 %v19571_v14  ;;  %13977 = vmatprep.subr.bf16.mxu0 %v19576_v35  ;;  %v22939_v14 = vcombine.low %v22850_v19, %v22850_v19  ;;  %v22943_v35 = vcombine.low %v22853_v31, %v22853_v31 }
 0x3ca   : > { %14018 = vmatprep.subr.bf16.mxu1 %v19579_v6  ;;  %v22946_v6 = vld [vmem:[%s21634_s8 + $0xe0] sm:$0xff] }
 0x3cb   : > { %24393 = vst [vmem:[#allocation24_spill] sm:$0xff] %v22939_v14  ;;  %24394 = vst [vmem:[#allocation25_spill] sm:$0xff] %v22943_v35  ;;  %v22957_v19 = vcombine.high %v22946_v6, %v22946_v6 }
 0x3cc   : > { %13978 = vmatpush2.bf16.msra.mxu0 %v19574_v20  ;;  %v22949_v20 = vld [vmem:[%s21634_s8 + $0xe8] sm:$0xff] }
 0x3cd   : > { %14019 = vmatpush2.bf16.msra.mxu1 %v19577_v44  ;;  %13979 = vmatprep.subr.bf16.mxu0 %v19582_v22  ;;  %v19604_v44 = vld [vmem:[%s21620_s30 + $0x38c4] ss:$16 sps:$4 sm:$0xff]   ;;  %24395 = vst [vmem:[#allocation26_spill] sm:$0xff] %v22957_v19  ;;  %v22961_v31 = vcombine.high %v22949_v20, %v22949_v20 }
 0x3ce   : > { %14020 = vmatprep.subr.bf16.mxu1 %v19585_v34  ;;  %v19607_v22 = vld [vmem:[%s21620_s30 + $0x3ac4] ss:$16 sps:$4 sm:$0xff]   ;;  %v19602_v34 = vld [vmem:[%s21620_s30 + $0x38c0] ss:$16 sps:$4 sm:$0xff]  }
 0x3cf   : > { %24396 = vst [vmem:[#allocation27_spill] sm:$0xff] %v22961_v31 }
 0x3d0   : > { %13980 = vmatpush2.bf16.msra.mxu0 %v19580_v15  ;;  %v19605_v15 = vld [vmem:[%s21620_s30 + $0x3ac0] ss:$16 sps:$4 sm:$0xff]  }
 0x3d1   : > { %14021 = vmatpush2.bf16.msra.mxu1 %v19583_v9  ;;  %13981 = vmatprep.subr.bf16.mxu0 %v19588_v4 }
 0x3d2   : > { %14022 = vmatprep.subr.bf16.mxu1 %v19591_v12 }
 0x3d4   : > { %13982 = vmatpush2.bf16.msra.mxu0 %v19586_v55 }
 0x3d5   : > { %14023 = vmatpush2.bf16.msra.mxu1 %v19589_v29  ;;  %14033 = vmatprep.subr.bf16.mxu0 %v19598_v11  ;;  %v19610_v11 = vld [vmem:[%s21620_s30 + $0x38a4] ss:$16 sps:$4 sm:$0xff]  }
 0x3d6   : > { %14074 = vmatprep.subr.bf16.mxu1 %v19601_v36  ;;  %v19613_v36 = vld [vmem:[%s21620_s30 + $0x3aa4] ss:$16 sps:$4 sm:$0xff]  }
 0x3d7   : > { %v13739_v9 = vpop.f32.mrf.mxu0  ;;  %13984 = vmatmul.mubr.bf16.vlgmr.msra.gmra.mxu0 %v22939_v14  ;;  %v19611_v14 = vld [vmem:[%s21620_s30 + $0x3aa0] ss:$16 sps:$4 sm:$0xff]  }
 0x3d8   : > { %v13780_v4 = vpop.f32.mrf.mxu1  ;;  %14025 = vmatmul.mubr.bf16.vlgmr.msra.gmra.mxu1 %v22943_v35  ;;  %v13740_v12 = vadd.f32 %v13739_v9, %v22872_v13  ;;  %14034 = vmatpush1.bf16.msra.mxu0 %v19596_v16  ;;  %v19619_v9 = vld [vmem:[%s21620_s30 + $0x3a84] ss:$16 sps:$4 sm:$0xff]   ;;  %v19708_v35 = vld [vmem:[%s21620_s30 + $0x3ca0] ss:$16 sps:$4 sm:$0xff]  }
 0x3d9   : > { %14075 = vmatpush1.bf16.msra.mxu1 %v19599_v0  ;;  %v13741_v55 = vpop.f32.mrf.mxu0  ;;  %14035 = vmatprep.subr.bf16.mxu0 %v19604_v44 }
 0x3da   : > { %v13782_v29 = vpop.f32.mrf.mxu1  ;;  %14076 = vmatprep.subr.bf16.mxu1 %v19607_v22  ;;  %v22968_v28 = vadd.f32 %v13780_v4, %v13740_v12  ;;  %v13742_v43 = vadd.f32 %v13741_v55, %v22879_v63  ;;  %14065 = vmatprep.mubr.bf16.mxu0 %v22957_v19  ;;  %v19616_v63 = vld [vmem:[%s21620_s30 + $0x3884] ss:$16 sps:$4 sm:$0xff]   ;;  %v19614_v4 = vld [vmem:[%s21620_s30 + $0x3880] ss:$16 sps:$4 sm:$0xff]  }
 0x3db   : > { %14106 = vmatprep.mubr.bf16.mxu1 %v22961_v31  ;;  %v13743_v13 = vpop.f32.mrf.mxu0  ;;  %v19617_v12 = vld [vmem:[%s21620_s30 + $0x3a80] ss:$16 sps:$4 sm:$0xff]  }
 0x3dc   : > { %v13784_v16 = vpop.f32.mrf.mxu1  ;;  %v22975_v0 = vadd.f32 %v13782_v29, %v13742_v43  ;;  %14036 = vmatpush1.bf16.msra.mxu0 %v19602_v34  ;;  %v19622_v43 = vld [vmem:[%s21620_s30 + $0x3864] ss:$16 sps:$4 sm:$0xff]   ;;  %v19623_v55 = vld [vmem:[%s21620_s30 + $0x3a60] ss:$16 sps:$4 sm:$0xff]  }
 0x3dd   : > { %14077 = vmatpush1.bf16.msra.mxu1 %v19605_v15  ;;  %v13744_v44 = vpop.f32.mrf.mxu0  ;;  %14037 = vmatprep.subr.bf16.mxu0 %v19610_v11  ;;  %v19625_v34 = vld [vmem:[%s21620_s30 + $0x3a64] ss:$16 sps:$4 sm:$0xff]   ;;  %v19620_v15 = vld [vmem:[%s21620_s30 + $0x3860] ss:$16 sps:$4 sm:$0xff]  }
 0x3de   : > { %v13785_v22 = vpop.f32.mrf.mxu1  ;;  %14078 = vmatprep.subr.bf16.mxu1 %v19613_v36  ;;  %v19626_v29 = vld [vmem:[%s21620_s30 + $0x3840] ss:$16 sps:$4 sm:$0xff]   ;;  %v19634_v36 = vld [vmem:[%s21620_s30 + $0x3824] ss:$16 sps:$4 sm:$0xff]  }
 0x3df   : > { %v19629_v11 = vld [vmem:[%s21620_s30 + $0x3a40] ss:$16 sps:$4 sm:$0xff]   ;;  %v19637_v13 = vld [vmem:[%s21620_s30 + $0x3a24] ss:$16 sps:$4 sm:$0xff]  }
 0x3e0   : > { %14038 = vmatpush1.bf16.msra.mxu0 %v19608_v56  ;;  %v19628_v56 = vld [vmem:[%s21620_s30 + $0x3844] ss:$16 sps:$4 sm:$0xff]   ;;  %v19632_v16 = vld [vmem:[%s21620_s30 + $0x3820] ss:$16 sps:$4 sm:$0xff]  }
 0x3e1   : > { %14079 = vmatpush1.bf16.msra.mxu1 %v19611_v14  ;;  %14039 = vmatprep.subr.bf16.mxu0 %v19616_v63  ;;  %v19631_v14 = vld [vmem:[%s21620_s30 + $0x3a44] ss:$16 sps:$4 sm:$0xff]   ;;  %v19635_v44 = vld [vmem:[%s21620_s30 + $0x3a20] ss:$16 sps:$4 sm:$0xff]  }
 0x3e2   : > { %14080 = vmatprep.subr.bf16.mxu1 %v19619_v9  ;;  %v19640_v22 = vld [vmem:[%s21620_s30 + $0x3804] ss:$16 sps:$4 sm:$0xff]   ;;  %v19638_v9 = vld [vmem:[%s21620_s30 + $0x3800] ss:$16 sps:$4 sm:$0xff]  }
 0x3e3   : > { %v19643_v63 = vld [vmem:[%s21620_s30 + $0x3a04] ss:$16 sps:$4 sm:$0xff]  }
 0x3e4   : > { %14040 = vmatpush1.bf16.msra.mxu0 %v19614_v4  ;;  %v19641_v4 = vld [vmem:[%s21620_s30 + $0x3a00] ss:$16 sps:$4 sm:$0xff]  }
 0x3e5   : > { %14081 = vmatpush1.bf16.msra.mxu1 %v19617_v12  ;;  %14041 = vmatprep.subr.bf16.mxu0 %v19622_v43  ;;  %v19646_v12 = vld [vmem:[%s21620_s30 + $0x39e4] ss:$16 sps:$4 sm:$0xff]  }
 0x3e6   : > { %14082 = vmatprep.subr.bf16.mxu1 %v19625_v34  ;;  %v19649_v43 = vld [vmem:[%s21620_s30 + $0x3be4] ss:$16 sps:$4 sm:$0xff]   ;;  %v19644_v34 = vld [vmem:[%s21620_s30 + $0x39e0] ss:$16 sps:$4 sm:$0xff]  }
 0x3e8   : > { %14042 = vmatpush1.bf16.msra.mxu0 %v19620_v15  ;;  %v19647_v15 = vld [vmem:[%s21620_s30 + $0x3be0] ss:$16 sps:$4 sm:$0xff]  }
 0x3e9   : > { %14083 = vmatpush1.bf16.msra.mxu1 %v19623_v55  ;;  %14043 = vmatprep.subr.bf16.mxu0 %v19628_v56  ;;  %v19652_v55 = vld [vmem:[%s21620_s30 + $0x39c4] ss:$16 sps:$4 sm:$0xff]  }
 0x3ea   : > { %14084 = vmatprep.subr.bf16.mxu1 %v19631_v14  ;;  %v19655_v56 = vld [vmem:[%s21620_s30 + $0x3bc4] ss:$16 sps:$4 sm:$0xff]   ;;  %v19650_v14 = vld [vmem:[%s21620_s30 + $0x39c0] ss:$16 sps:$4 sm:$0xff]  }
 0x3ec   : > { %14044 = vmatpush1.bf16.msra.mxu0 %v19626_v29  ;;  %v19653_v29 = vld [vmem:[%s21620_s30 + $0x3bc0] ss:$16 sps:$4 sm:$0xff]  }
 0x3ed   : > { %14085 = vmatpush1.bf16.msra.mxu1 %v19629_v11  ;;  %14045 = vmatprep.subr.bf16.mxu0 %v19634_v36  ;;  %v19658_v11 = vld [vmem:[%s21620_s30 + $0x39a4] ss:$16 sps:$4 sm:$0xff]  }
 0x3ee   : > { %14086 = vmatprep.subr.bf16.mxu1 %v19637_v13  ;;  %v19661_v36 = vld [vmem:[%s21620_s30 + $0x3ba4] ss:$16 sps:$4 sm:$0xff]   ;;  %v19656_v13 = vld [vmem:[%s21620_s30 + $0x39a0] ss:$16 sps:$4 sm:$0xff]  }
 0x3f0   : > { %14046 = vmatpush1.bf16.msra.mxu0 %v19632_v16  ;;  %v19659_v16 = vld [vmem:[%s21620_s30 + $0x3ba0] ss:$16 sps:$4 sm:$0xff]  }
 0x3f1   : > { %14087 = vmatpush1.bf16.msra.mxu1 %v19635_v44  ;;  %14047 = vmatprep.subr.bf16.mxu0 %v19640_v22  ;;  %v19664_v44 = vld [vmem:[%s21620_s30 + $0x3984] ss:$16 sps:$4 sm:$0xff]  }
 0x3f2   : > { %14088 = vmatprep.subr.bf16.mxu1 %v19643_v63  ;;  %v19667_v22 = vld [vmem:[%s21620_s30 + $0x3b84] ss:$16 sps:$4 sm:$0xff]   ;;  %v19662_v63 = vld [vmem:[%s21620_s30 + $0x3980] ss:$16 sps:$4 sm:$0xff]  }
 0x3f4   : > { %14048 = vmatpush1.bf16.msra.mxu0 %v19638_v9  ;;  %v19665_v9 = vld [vmem:[%s21620_s30 + $0x3b80] ss:$16 sps:$4 sm:$0xff]  }
 0x3f5   : > { %14089 = vmatpush1.bf16.msra.mxu1 %v19641_v4  ;;  %14049 = vmatprep.subr.bf16.mxu0 %v19646_v12  ;;  %v19670_v4 = vld [vmem:[%s21620_s30 + $0x3964] ss:$16 sps:$4 sm:$0xff]  }
 0x3f6   : > { %14090 = vmatprep.subr.bf16.mxu1 %v19649_v43  ;;  %v19673_v12 = vld [vmem:[%s21620_s30 + $0x3b64] ss:$16 sps:$4 sm:$0xff]   ;;  %v19668_v43 = vld [vmem:[%s21620_s30 + $0x3960] ss:$16 sps:$4 sm:$0xff]  }
 0x3f8   : > { %14050 = vmatpush2.bf16.msra.mxu0 %v19644_v34  ;;  %v19671_v34 = vld [vmem:[%s21620_s30 + $0x3b60] ss:$16 sps:$4 sm:$0xff]  }
 0x3f9   : > { %14091 = vmatpush2.bf16.msra.mxu1 %v19647_v15  ;;  %14051 = vmatprep.subr.bf16.mxu0 %v19652_v55  ;;  %v19676_v15 = vld [vmem:[%s21620_s30 + $0x3944] ss:$16 sps:$4 sm:$0xff]  }
 0x3fa   : > { %14092 = vmatprep.subr.bf16.mxu1 %v19655_v56  ;;  %v19679_v55 = vld [vmem:[%s21620_s30 + $0x3b44] ss:$16 sps:$4 sm:$0xff]   ;;  %v19674_v56 = vld [vmem:[%s21620_s30 + $0x3940] ss:$16 sps:$4 sm:$0xff]  }
 0x3fc   : > { %14052 = vmatpush2.bf16.msra.mxu0 %v19650_v14  ;;  %v19677_v14 = vld [vmem:[%s21620_s30 + $0x3b40] ss:$16 sps:$4 sm:$0xff]  }
 0x3fd   : > { %14093 = vmatpush2.bf16.msra.mxu1 %v19653_v29  ;;  %14053 = vmatprep.subr.bf16.mxu0 %v19658_v11  ;;  %v19682_v29 = vld [vmem:[%s21620_s30 + $0x3924] ss:$16 sps:$4 sm:$0xff]  }
 0x3fe   : > { %14094 = vmatprep.subr.bf16.mxu1 %v19661_v36  ;;  %v19685_v11 = vld [vmem:[%s21620_s30 + $0x3b24] ss:$16 sps:$4 sm:$0xff]   ;;  %v19680_v36 = vld [vmem:[%s21620_s30 + $0x3920] ss:$16 sps:$4 sm:$0xff]  }
 0x400   : > { %14054 = vmatpush2.bf16.msra.mxu0 %v19656_v13  ;;  %v19683_v13 = vld [vmem:[%s21620_s30 + $0x3b20] ss:$16 sps:$4 sm:$0xff]  }
 0x401   : > { %14095 = vmatpush2.bf16.msra.mxu1 %v19659_v16  ;;  %14055 = vmatprep.subr.bf16.mxu0 %v19664_v44  ;;  %v19688_v16 = vld [vmem:[%s21620_s30 + $0x3904] ss:$16 sps:$4 sm:$0xff]  }
 0x402   : > { %14096 = vmatprep.subr.bf16.mxu1 %v19667_v22  ;;  %v19691_v44 = vld [vmem:[%s21620_s30 + $0x3b04] ss:$16 sps:$4 sm:$0xff]   ;;  %v19686_v22 = vld [vmem:[%s21620_s30 + $0x3900] ss:$16 sps:$4 sm:$0xff]  }
 0x404   : > { %14056 = vmatpush2.bf16.msra.mxu0 %v19662_v63  ;;  %v19689_v63 = vld [vmem:[%s21620_s30 + $0x3b00] ss:$16 sps:$4 sm:$0xff]  }
 0x405   : > { %14097 = vmatpush2.bf16.msra.mxu1 %v19665_v9  ;;  %14057 = vmatprep.subr.bf16.mxu0 %v19670_v4  ;;  %v19698_v9 = vld [vmem:[%s21620_s30 + $0x3ce4] ss:$16 sps:$4 sm:$0xff]  }
 0x406   : > { %14098 = vmatprep.subr.bf16.mxu1 %v19673_v12  ;;  %v19701_v4 = vld [vmem:[%s21620_s30 + $0x3ee4] ss:$16 sps:$4 sm:$0xff]  }
 0x407   : > { %v23032_v12 = vld [vmem:[%s21634_s8 + $0xf0] sm:$0xff] }
 0x408   : > { %14058 = vmatpush2.bf16.msra.mxu0 %v19668_v43  ;;  %v23035_v43 = vld [vmem:[%s21634_s8 + $0xf8] sm:$0xff] }
 0x409   : > { %14099 = vmatpush2.bf16.msra.mxu1 %v19671_v34  ;;  %14059 = vmatprep.subr.bf16.mxu0 %v19676_v15  ;;  %v19696_v34 = vld [vmem:[%s21620_s30 + $0x3ce0] ss:$16 sps:$4 sm:$0xff]  }
 0x40a   : > { %14100 = vmatprep.subr.bf16.mxu1 %v19679_v55  ;;  %v19699_v15 = vld [vmem:[%s21620_s30 + $0x3ee0] ss:$16 sps:$4 sm:$0xff]   ;;  %v23041_v55 = vcombine.low %v22946_v6, %v22946_v6  ;;  %v23057_v6 = vcombine.high %v23035_v43, %v23035_v43 }
 0x40c   : > { %14060 = vmatpush2.bf16.msra.mxu0 %v19674_v56  ;;  %24397 = vst [vmem:[#allocation28_spill] sm:$0xff] %v23041_v55  ;;  %v23045_v56 = vcombine.low %v22949_v20, %v22949_v20 }
 0x40d   : > { %14101 = vmatpush2.bf16.msra.mxu1 %v19677_v14  ;;  %14061 = vmatprep.subr.bf16.mxu0 %v19682_v29  ;;  %v19704_v14 = vld [vmem:[%s21620_s30 + $0x3cc4] ss:$16 sps:$4 sm:$0xff]  }
 0x40e   : > { %14102 = vmatprep.subr.bf16.mxu1 %v19685_v11  ;;  %v19707_v29 = vld [vmem:[%s21620_s30 + $0x3ec4] ss:$16 sps:$4 sm:$0xff]   ;;  %v19702_v11 = vld [vmem:[%s21620_s30 + $0x3cc0] ss:$16 sps:$4 sm:$0xff]  }
 0x410   : > { %14062 = vmatpush2.bf16.msra.mxu0 %v19680_v36  ;;  %v19705_v36 = vld [vmem:[%s21620_s30 + $0x3ec0] ss:$16 sps:$4 sm:$0xff]  }
 0x411   : > { %14103 = vmatpush2.bf16.msra.mxu1 %v19683_v13  ;;  %14063 = vmatprep.subr.bf16.mxu0 %v19688_v16  ;;  %v23053_v13 = vcombine.high %v23032_v12, %v23032_v12 }
 0x412   : > { %14104 = vmatprep.subr.bf16.mxu1 %v19691_v44 }
 0x414   : > { %14064 = vmatpush2.bf16.msra.mxu0 %v19686_v22 }
 0x415   : > { %14105 = vmatpush2.bf16.msra.mxu1 %v19689_v63  ;;  %14115 = vmatprep.subr.bf16.mxu0 %v19698_v9  ;;  %v19710_v9 = vld [vmem:[%s21620_s30 + $0x3ca4] ss:$16 sps:$4 sm:$0xff]  }
 0x416   : > { %14156 = vmatprep.subr.bf16.mxu1 %v19701_v4  ;;  %v19713_v4 = vld [vmem:[%s21620_s30 + $0x3ea4] ss:$16 sps:$4 sm:$0xff]  }
 0x417   : > { %v13821_v20 = vpop.f32.mrf.mxu0  ;;  %14066 = vmatmul.mubr.bf16.vlgmr.msra.gmra.mxu0 %v23041_v55  ;;  %v19711_v55 = vld [vmem:[%s21620_s30 + $0x3ea0] ss:$16 sps:$4 sm:$0xff]  }
 0x418   : > { %v13862_v16 = vpop.f32.mrf.mxu1  ;;  %14107 = vmatmul.mubr.bf16.vlgmr.msra.gmra.mxu1 %v23045_v56  ;;  %v13822_v44 = vadd.f32 %v13821_v20, %v22968_v28  ;;  %14116 = vmatpush1.bf16.msra.mxu0 %v19696_v34  ;;  %v19719_v20 = vld [vmem:[%s21620_s30 + $0x3e84] ss:$16 sps:$4 sm:$0xff]  }
 0x419   : > { %14157 = vmatpush1.bf16.msra.mxu1 %v19699_v15  ;;  %v13823_v22 = vpop.f32.mrf.mxu0  ;;  %14117 = vmatprep.subr.bf16.mxu0 %v19704_v14 }
 0x41a   : > { %v13864_v63 = vpop.f32.mrf.mxu1  ;;  %14158 = vmatprep.subr.bf16.mxu1 %v19707_v29  ;;  %v23064_v31 = vadd.f32 %v13862_v16, %v13822_v44  ;;  %v13824_v19 = vadd.f32 %v13823_v22, %v22975_v0  ;;  %14147 = vmatprep.mubr.bf16.mxu0 %v23053_v13  ;;  %v19716_v0 = vld [vmem:[%s21620_s30 + $0x3c84] ss:$16 sps:$4 sm:$0xff]   ;;  %v19714_v16 = vld [vmem:[%s21620_s30 + $0x3c80] ss:$16 sps:$4 sm:$0xff]  }
 0x41b   : > { %14188 = vmatprep.mubr.bf16.mxu1 %v23057_v6  ;;  %v13825_v28 = vpop.f32.mrf.mxu0  ;;  %v19717_v44 = vld [vmem:[%s21620_s30 + $0x3e80] ss:$16 sps:$4 sm:$0xff]  }
 0x41c   : > { %v13866_v34 = vpop.f32.mrf.mxu1  ;;  %v23071_v15 = vadd.f32 %v13864_v63, %v13824_v19  ;;  %14118 = vmatpush1.bf16.msra.mxu0 %v19702_v11  ;;  %v19722_v19 = vld [vmem:[%s21620_s30 + $0x3c64] ss:$16 sps:$4 sm:$0xff]   ;;  %v19723_v22 = vld [vmem:[%s21620_s30 + $0x3e60] ss:$16 sps:$4 sm:$0xff]  }
 0x41d   : > { %14159 = vmatpush1.bf16.msra.mxu1 %v19705_v36  ;;  %v13826_v14 = vpop.f32.mrf.mxu0  ;;  %14119 = vmatprep.subr.bf16.mxu0 %v19710_v9  ;;  %v19725_v11 = vld [vmem:[%s21620_s30 + $0x3e64] ss:$16 sps:$4 sm:$0xff]   ;;  %v19720_v36 = vld [vmem:[%s21620_s30 + $0x3c60] ss:$16 sps:$4 sm:$0xff]  }
 0x41e   : > { %v13867_v29 = vpop.f32.mrf.mxu1  ;;  %14160 = vmatprep.subr.bf16.mxu1 %v19713_v4  ;;  %v19726_v63 = vld [vmem:[%s21620_s30 + $0x3c40] ss:$16 sps:$4 sm:$0xff]   ;;  %v19734_v4 = vld [vmem:[%s21620_s30 + $0x3c24] ss:$16 sps:$4 sm:$0xff]  }
 0x41f   : > { %v19729_v9 = vld [vmem:[%s21620_s30 + $0x3e40] ss:$16 sps:$4 sm:$0xff]   ;;  %v19737_v28 = vld [vmem:[%s21620_s30 + $0x3e24] ss:$16 sps:$4 sm:$0xff]  }
 0x420   : > { %14120 = vmatpush1.bf16.msra.mxu0 %v19708_v35  ;;  %v19728_v35 = vld [vmem:[%s21620_s30 + $0x3c44] ss:$16 sps:$4 sm:$0xff]   ;;  %v19732_v34 = vld [vmem:[%s21620_s30 + $0x3c20] ss:$16 sps:$4 sm:$0xff]  }
 0x421   : > { %14161 = vmatpush1.bf16.msra.mxu1 %v19711_v55  ;;  %14121 = vmatprep.subr.bf16.mxu0 %v19716_v0  ;;  %v19731_v55 = vld [vmem:[%s21620_s30 + $0x3e44] ss:$16 sps:$4 sm:$0xff]   ;;  %v19735_v14 = vld [vmem:[%s21620_s30 + $0x3e20] ss:$16 sps:$4 sm:$0xff]  }
 0x422   : > { %14162 = vmatprep.subr.bf16.mxu1 %v19719_v20  ;;  %v19740_v29 = vld [vmem:[%s21620_s30 + $0x3c04] ss:$16 sps:$4 sm:$0xff]   ;;  %v19738_v20 = vld [vmem:[%s21620_s30 + $0x3c00] ss:$16 sps:$4 sm:$0xff]  }
 0x423   : > { %v19743_v0 = vld [vmem:[%s21620_s30 + $0x3e04] ss:$16 sps:$4 sm:$0xff]  }
 0x424   : > { %14122 = vmatpush1.bf16.msra.mxu0 %v19714_v16  ;;  %v19741_v16 = vld [vmem:[%s21620_s30 + $0x3e00] ss:$16 sps:$4 sm:$0xff]  }
 0x425   : > { %14163 = vmatpush1.bf16.msra.mxu1 %v19717_v44  ;;  %14123 = vmatprep.subr.bf16.mxu0 %v19722_v19  ;;  %v19746_v44 = vld [vmem:[%s21620_s30 + $0x3de4] ss:$16 sps:$4 sm:$0xff]  }
 0x426   : > { %14164 = vmatprep.subr.bf16.mxu1 %v19725_v11  ;;  %v19749_v19 = vld [vmem:[%s21620_s30 + $0x3fe4] ss:$16 sps:$4 sm:$0xff]   ;;  %v19744_v11 = vld [vmem:[%s21620_s30 + $0x3de0] ss:$16 sps:$4 sm:$0xff]  }
 0x428   : > { %14124 = vmatpush1.bf16.msra.mxu0 %v19720_v36  ;;  %v19747_v36 = vld [vmem:[%s21620_s30 + $0x3fe0] ss:$16 sps:$4 sm:$0xff]  }
 0x429   : > { %14165 = vmatpush1.bf16.msra.mxu1 %v19723_v22  ;;  %14125 = vmatprep.subr.bf16.mxu0 %v19728_v35  ;;  %v19752_v22 = vld [vmem:[%s21620_s30 + $0x3dc4] ss:$16 sps:$4 sm:$0xff]  }
 0x42a   : > { %14166 = vmatprep.subr.bf16.mxu1 %v19731_v55  ;;  %v19755_v35 = vld [vmem:[%s21620_s30 + $0x3fc4] ss:$16 sps:$4 sm:$0xff]   ;;  %v19750_v55 = vld [vmem:[%s21620_s30 + $0x3dc0] ss:$16 sps:$4 sm:$0xff]  }
 0x42c   : > { %14126 = vmatpush1.bf16.msra.mxu0 %v19726_v63  ;;  %v19753_v63 = vld [vmem:[%s21620_s30 + $0x3fc0] ss:$16 sps:$4 sm:$0xff]  }
 0x42d   : > { %14167 = vmatpush1.bf16.msra.mxu1 %v19729_v9  ;;  %14127 = vmatprep.subr.bf16.mxu0 %v19734_v4  ;;  %v19758_v9 = vld [vmem:[%s21620_s30 + $0x3da4] ss:$16 sps:$4 sm:$0xff]  }
 0x42e   : > { %14168 = vmatprep.subr.bf16.mxu1 %v19737_v28  ;;  %v19761_v4 = vld [vmem:[%s21620_s30 + $0x3fa4] ss:$16 sps:$4 sm:$0xff]   ;;  %v19756_v28 = vld [vmem:[%s21620_s30 + $0x3da0] ss:$16 sps:$4 sm:$0xff]  }
 0x430   : > { %14128 = vmatpush1.bf16.msra.mxu0 %v19732_v34  ;;  %v19759_v34 = vld [vmem:[%s21620_s30 + $0x3fa0] ss:$16 sps:$4 sm:$0xff]  }
 0x431   : > { %14169 = vmatpush1.bf16.msra.mxu1 %v19735_v14  ;;  %14129 = vmatprep.subr.bf16.mxu0 %v19740_v29  ;;  %v19764_v14 = vld [vmem:[%s21620_s30 + $0x3d84] ss:$16 sps:$4 sm:$0xff]  }
 0x432   : > { %14170 = vmatprep.subr.bf16.mxu1 %v19743_v0  ;;  %v19767_v29 = vld [vmem:[%s21620_s30 + $0x3f84] ss:$16 sps:$4 sm:$0xff]   ;;  %v19762_v0 = vld [vmem:[%s21620_s30 + $0x3d80] ss:$16 sps:$4 sm:$0xff]  }
 0x434   : > { %14130 = vmatpush1.bf16.msra.mxu0 %v19738_v20  ;;  %v19765_v20 = vld [vmem:[%s21620_s30 + $0x3f80] ss:$16 sps:$4 sm:$0xff]  }
 0x435   : > { %14171 = vmatpush1.bf16.msra.mxu1 %v19741_v16  ;;  %14131 = vmatprep.subr.bf16.mxu0 %v19746_v44  ;;  %v19770_v16 = vld [vmem:[%s21620_s30 + $0x3d64] ss:$16 sps:$4 sm:$0xff]  }
 0x436   : > { %14172 = vmatprep.subr.bf16.mxu1 %v19749_v19  ;;  %v19773_v44 = vld [vmem:[%s21620_s30 + $0x3f64] ss:$16 sps:$4 sm:$0xff]   ;;  %v19768_v19 = vld [vmem:[%s21620_s30 + $0x3d60] ss:$16 sps:$4 sm:$0xff]  }
 0x438   : > { %14132 = vmatpush2.bf16.msra.mxu0 %v19744_v11  ;;  %v19771_v11 = vld [vmem:[%s21620_s30 + $0x3f60] ss:$16 sps:$4 sm:$0xff]  }
 0x439   : > { %14173 = vmatpush2.bf16.msra.mxu1 %v19747_v36  ;;  %14133 = vmatprep.subr.bf16.mxu0 %v19752_v22  ;;  %v19776_v36 = vld [vmem:[%s21620_s30 + $0x3d44] ss:$16 sps:$4 sm:$0xff]  }
 0x43a   : > { %14174 = vmatprep.subr.bf16.mxu1 %v19755_v35  ;;  %v19779_v22 = vld [vmem:[%s21620_s30 + $0x3f44] ss:$16 sps:$4 sm:$0xff]   ;;  %v19774_v35 = vld [vmem:[%s21620_s30 + $0x3d40] ss:$16 sps:$4 sm:$0xff]  }
 0x43c   : > { %14134 = vmatpush2.bf16.msra.mxu0 %v19750_v55  ;;  %v19777_v55 = vld [vmem:[%s21620_s30 + $0x3f40] ss:$16 sps:$4 sm:$0xff]  }
 0x43d   : > { %14175 = vmatpush2.bf16.msra.mxu1 %v19753_v63  ;;  %14135 = vmatprep.subr.bf16.mxu0 %v19758_v9  ;;  %v19782_v63 = vld [vmem:[%s21620_s30 + $0x3d24] ss:$16 sps:$4 sm:$0xff]  }
 0x43e   : > { %14176 = vmatprep.subr.bf16.mxu1 %v19761_v4  ;;  %v19785_v9 = vld [vmem:[%s21620_s30 + $0x3f24] ss:$16 sps:$4 sm:$0xff]   ;;  %v19780_v4 = vld [vmem:[%s21620_s30 + $0x3d20] ss:$16 sps:$4 sm:$0xff]  }
 0x440   : > { %14136 = vmatpush2.bf16.msra.mxu0 %v19756_v28  ;;  %v19783_v28 = vld [vmem:[%s21620_s30 + $0x3f20] ss:$16 sps:$4 sm:$0xff]  }
 0x441   : > { %14177 = vmatpush2.bf16.msra.mxu1 %v19759_v34  ;;  %14137 = vmatprep.subr.bf16.mxu0 %v19764_v14  ;;  %v19788_v34 = vld [vmem:[%s21620_s30 + $0x3d04] ss:$16 sps:$4 sm:$0xff]  }
 0x442   : > { %14178 = vmatprep.subr.bf16.mxu1 %v19767_v29  ;;  %v19791_v14 = vld [vmem:[%s21620_s30 + $0x3f04] ss:$16 sps:$4 sm:$0xff]   ;;  %v19786_v29 = vld [vmem:[%s21620_s30 + $0x3d00] ss:$16 sps:$4 sm:$0xff]  }
 0x444   : > { %14138 = vmatpush2.bf16.msra.mxu0 %v19762_v0  ;;  %v19789_v0 = vld [vmem:[%s21620_s30 + $0x3f00] ss:$16 sps:$4 sm:$0xff]  }
 0x445   : > { %14179 = vmatpush2.bf16.msra.mxu1 %v19765_v20  ;;  %14139 = vmatprep.subr.bf16.mxu0 %v19770_v16  ;;  %v19798_v20 = vld [vmem:[%s21620_s30 + $0xec] ss:$16 sps:$4 sm:$0xff]  }
 0x446   : > { %14180 = vmatprep.subr.bf16.mxu1 %v19773_v44  ;;  %v19801_v16 = vld [vmem:[%s21620_s30 + $0x2ec] ss:$16 sps:$4 sm:$0xff]   ;;  %v19796_v44 = vld [vmem:[%s21620_s30 + $0xe8] ss:$16 sps:$4 sm:$0xff]  }
 0x448   : > { %14140 = vmatpush2.bf16.msra.mxu0 %v19768_v19  ;;  %v19799_v19 = vld [vmem:[%s21620_s30 + $0x2e8] ss:$16 sps:$4 sm:$0xff]  }
 0x449   : > { %14181 = vmatpush2.bf16.msra.mxu1 %v19771_v11  ;;  %14141 = vmatprep.subr.bf16.mxu0 %v19776_v36  ;;  %v23131_v11 = vcombine.low %v23032_v12, %v23032_v12  ;;  %v23135_v36 = vcombine.low %v23035_v43, %v23035_v43 }
 0x44a   : > { %14182 = vmatprep.subr.bf16.mxu1 %v19779_v22  ;;  %v19804_v22 = vld [vmem:[%s21620_s30 + $0xcc] ss:$16 sps:$4 sm:$0xff]  }
 0x44c   : > { %14142 = vmatpush2.bf16.msra.mxu0 %v19774_v35  ;;  %v19807_v35 = vld [vmem:[%s21620_s30 + $0x2cc] ss:$16 sps:$4 sm:$0xff]  }
 0x44d   : > { %14183 = vmatpush2.bf16.msra.mxu1 %v19777_v55  ;;  %14143 = vmatprep.subr.bf16.mxu0 %v19782_v63  ;;  %v19802_v55 = vld [vmem:[%s21620_s30 + $0xc8] ss:$16 sps:$4 sm:$0xff]  }
 0x44e   : > { %14184 = vmatprep.subr.bf16.mxu1 %v19785_v9  ;;  %v19805_v63 = vld [vmem:[%s21620_s30 + $0x2c8] ss:$16 sps:$4 sm:$0xff]  }
 0x450   : > { %14144 = vmatpush2.bf16.msra.mxu0 %v19780_v4 }
 0x451   : > { %14185 = vmatpush2.bf16.msra.mxu1 %v19783_v28  ;;  %14145 = vmatprep.subr.bf16.mxu0 %v19788_v34  ;;  %v19810_v34 = vld [vmem:[%s21620_s30 + $0xac] ss:$16 sps:$4 sm:$0xff]  }
 0x452   : > { %14186 = vmatprep.subr.bf16.mxu1 %v19791_v14  ;;  %v19813_v14 = vld [vmem:[%s21620_s30 + $0x2ac] ss:$16 sps:$4 sm:$0xff]  }
 0x454   : > { %14146 = vmatpush2.bf16.msra.mxu0 %v19786_v29 }
 0x455   : > { %14187 = vmatpush2.bf16.msra.mxu1 %v19789_v0  ;;  %14197 = vmatprep.subr.bf16.mxu0 %v19798_v20  ;;  %v19808_v20 = vld [vmem:[%s21620_s30 + $0xa8] ss:$16 sps:$4 sm:$0xff]  }
 0x456   : > { %14238 = vmatprep.subr.bf16.mxu1 %v19801_v16  ;;  %v19811_v16 = vld [vmem:[%s21620_s30 + $0x2a8] ss:$16 sps:$4 sm:$0xff]  }
 0x457   : > { %v13903_v9 = vpop.f32.mrf.mxu0  ;;  %14148 = vmatmul.mubr.bf16.vlgmr.msra.gmra.mxu0 %v23131_v11 }
 0x458   : > { %v13944_v4 = vpop.f32.mrf.mxu1  ;;  %14189 = vmatmul.mubr.bf16.vlgmr.msra.gmra.mxu1 %v23135_v36  ;;  %v13904_v12 = vadd.f32 %v13903_v9, %v23064_v31  ;;  %14198 = vmatpush1.bf16.msra.mxu0 %v19796_v44  ;;  %v19817_v9 = vld [vmem:[%s21620_s30 + $0x288] ss:$16 sps:$4 sm:$0xff]  }
 0x459   : > { %14239 = vmatpush1.bf16.msra.mxu1 %v19799_v19  ;;  %v13905_v43 = vpop.f32.mrf.mxu0  ;;  %14199 = vmatprep.subr.bf16.mxu0 %v19804_v22 }
 0x45a   : > { %v13946_v28 = vpop.f32.mrf.mxu1  ;;  %14240 = vmatprep.subr.bf16.mxu1 %v19807_v35  ;;  %v23146_v29 = vadd.f32 %v13944_v4, %v13904_v12  ;;  %v13906_v0 = vadd.f32 %v13905_v43, %v23071_v15  ;;  %14229 = vmatprep.mubr.bf16.mxu0 %v21684_v48  ;;  %v19816_v15 = vld [vmem:[%s21620_s30 + $0x8c] ss:$16 sps:$4 sm:$0xff]   ;;  %v19820_v4 = vld [vmem:[%s21620_s30 + $0x68] ss:$16 sps:$4 sm:$0xff]  }
 0x45b   : > { %14270 = vmatprep.mubr.bf16.mxu1 %v21689_v52  ;;  %v13907_v31 = vpop.f32.mrf.mxu0  ;;  %v19819_v48 = vld [vmem:[%s21620_s30 + $0x28c] ss:$16 sps:$4 sm:$0xff]   ;;  %v19814_v52 = vld [vmem:[%s21620_s30 + $0x88] ss:$16 sps:$4 sm:$0xff]  }
 0x45c   : > { %v13948_v44 = vpop.f32.mrf.mxu1  ;;  %v23153_v19 = vadd.f32 %v13946_v28, %v13906_v0  ;;  %14200 = vmatpush1.bf16.msra.mxu0 %v19802_v55  ;;  %v19822_v55 = vld [vmem:[%s21620_s30 + $0x6c] ss:$16 sps:$4 sm:$0xff]   ;;  %v19823_v12 = vld [vmem:[%s21620_s30 + $0x268] ss:$16 sps:$4 sm:$0xff]  }
 0x45d   : > { %14241 = vmatpush1.bf16.msra.mxu1 %v19805_v63  ;;  %v13908_v22 = vpop.f32.mrf.mxu0  ;;  %14201 = vmatprep.subr.bf16.mxu0 %v19810_v34  ;;  %v19825_v63 = vld [vmem:[%s21620_s30 + $0x26c] ss:$16 sps:$4 sm:$0xff]   ;;  %v19826_v34 = vld [vmem:[%s21620_s30 + $0x48] ss:$16 sps:$4 sm:$0xff]  }
 0x45e   : > { %v13949_v35 = vpop.f32.mrf.mxu1  ;;  %14242 = vmatprep.subr.bf16.mxu1 %v19813_v14  ;;  %v19828_v43 = vld [vmem:[%s21620_s30 + $0x4c] ss:$16 sps:$4 sm:$0xff]   ;;  %v19829_v14 = vld [vmem:[%s21620_s30 + $0x248] ss:$16 sps:$4 sm:$0xff]  }
 0x45f   : > { %v19831_v28 = vld [vmem:[%s21620_s30 + $0x24c] ss:$16 sps:$4 sm:$0xff]   ;;  %v19835_v31 = vld [vmem:[%s21620_s30 + $0x228] ss:$16 sps:$4 sm:$0xff]  }
 0x460   : > { %14202 = vmatpush1.bf16.msra.mxu0 %v19808_v20  ;;  %v19834_v0 = vld [vmem:[%s21620_s30 + $0x2c] ss:$16 sps:$4 sm:$0xff]   ;;  %v19838_v35 = vld [vmem:[%s21620_s30 + $0x8] ss:$16 sps:$4 sm:$0xff]  }
 0x461   : > { %14243 = vmatpush1.bf16.msra.mxu1 %v19811_v16  ;;  %14203 = vmatprep.subr.bf16.mxu0 %v19816_v15  ;;  %v19837_v20 = vld [vmem:[%s21620_s30 + $0x22c] ss:$16 sps:$4 sm:$0xff]   ;;  %v19832_v16 = vld [vmem:[%s21620_s30 + $0x28] ss:$16 sps:$4 sm:$0xff]  }
 0x462   : > { %14244 = vmatprep.subr.bf16.mxu1 %v19819_v48  ;;  %v19840_v44 = vld [vmem:[%s21620_s30 + $0xc] ss:$16 sps:$4 sm:$0xff]   ;;  %v19841_v15 = vld [vmem:[%s21620_s30 + $0x208] ss:$16 sps:$4 sm:$0xff]  }
 0x463   : > { %v19843_v22 = vld [vmem:[%s21620_s30 + $0x20c] ss:$16 sps:$4 sm:$0xff]  }
 0x464   : > { %14204 = vmatpush1.bf16.msra.mxu0 %v19814_v52  ;;  %v19846_v48 = vld [vmem:[%s21620_s30 + $0x1ec] ss:$16 sps:$4 sm:$0xff]  }
 0x465   : > { %14245 = vmatpush1.bf16.msra.mxu1 %v19817_v9  ;;  %14205 = vmatprep.subr.bf16.mxu0 %v19822_v55  ;;  %v19849_v52 = vld [vmem:[%s21620_s30 + $0x3ec] ss:$16 sps:$4 sm:$0xff]   ;;  %v19844_v9 = vld [vmem:[%s21620_s30 + $0x1e8] ss:$16 sps:$4 sm:$0xff]  }
 0x466   : > { %14246 = vmatprep.subr.bf16.mxu1 %v19825_v63  ;;  %v19847_v55 = vld [vmem:[%s21620_s30 + $0x3e8] ss:$16 sps:$4 sm:$0xff]   ;;  %v19852_v63 = vld [vmem:[%s21620_s30 + $0x1cc] ss:$16 sps:$4 sm:$0xff]  }
 0x468   : > { %14206 = vmatpush1.bf16.msra.mxu0 %v19820_v4  ;;  %v19855_v4 = vld [vmem:[%s21620_s30 + $0x3cc] ss:$16 sps:$4 sm:$0xff]  }
 0x469   : > { %14247 = vmatpush1.bf16.msra.mxu1 %v19823_v12  ;;  %14207 = vmatprep.subr.bf16.mxu0 %v19828_v43  ;;  %v19850_v12 = vld [vmem:[%s21620_s30 + $0x1c8] ss:$16 sps:$4 sm:$0xff]  }
 0x46a   : > { %14248 = vmatprep.subr.bf16.mxu1 %v19831_v28  ;;  %v19853_v43 = vld [vmem:[%s21620_s30 + $0x3c8] ss:$16 sps:$4 sm:$0xff]   ;;  %v19858_v28 = vld [vmem:[%s21620_s30 + $0x1ac] ss:$16 sps:$4 sm:$0xff]  }
 0x46c   : > { %14208 = vmatpush1.bf16.msra.mxu0 %v19826_v34  ;;  %v19861_v34 = vld [vmem:[%s21620_s30 + $0x3ac] ss:$16 sps:$4 sm:$0xff]  }
 0x46d   : > { %14249 = vmatpush1.bf16.msra.mxu1 %v19829_v14  ;;  %14209 = vmatprep.subr.bf16.mxu0 %v19834_v0  ;;  %v19856_v14 = vld [vmem:[%s21620_s30 + $0x1a8] ss:$16 sps:$4 sm:$0xff]  }
 0x46e   : > { %14250 = vmatprep.subr.bf16.mxu1 %v19837_v20  ;;  %v19859_v0 = vld [vmem:[%s21620_s30 + $0x3a8] ss:$16 sps:$4 sm:$0xff]   ;;  %v19864_v20 = vld [vmem:[%s21620_s30 + $0x18c] ss:$16 sps:$4 sm:$0xff]  }
 0x470   : > { %14210 = vmatpush1.bf16.msra.mxu0 %v19832_v16  ;;  %v19867_v16 = vld [vmem:[%s21620_s30 + $0x38c] ss:$16 sps:$4 sm:$0xff]  }
 0x471   : > { %14251 = vmatpush1.bf16.msra.mxu1 %v19835_v31  ;;  %14211 = vmatprep.subr.bf16.mxu0 %v19840_v44  ;;  %v19862_v31 = vld [vmem:[%s21620_s30 + $0x188] ss:$16 sps:$4 sm:$0xff]  }
 0x472   : > { %14252 = vmatprep.subr.bf16.mxu1 %v19843_v22  ;;  %v19865_v44 = vld [vmem:[%s21620_s30 + $0x388] ss:$16 sps:$4 sm:$0xff]   ;;  %v19870_v22 = vld [vmem:[%s21620_s30 + $0x16c] ss:$16 sps:$4 sm:$0xff]  }
 0x474   : > { %14212 = vmatpush1.bf16.msra.mxu0 %v19838_v35  ;;  %v19873_v35 = vld [vmem:[%s21620_s30 + $0x36c] ss:$16 sps:$4 sm:$0xff]  }
 0x475   : > { %14253 = vmatpush1.bf16.msra.mxu1 %v19841_v15  ;;  %14213 = vmatprep.subr.bf16.mxu0 %v19846_v48  ;;  %v19868_v15 = vld [vmem:[%s21620_s30 + $0x168] ss:$16 sps:$4 sm:$0xff]  }
 0x476   : > { %14254 = vmatprep.subr.bf16.mxu1 %v19849_v52  ;;  %v19871_v48 = vld [vmem:[%s21620_s30 + $0x368] ss:$16 sps:$4 sm:$0xff]   ;;  %v19876_v52 = vld [vmem:[%s21620_s30 + $0x14c] ss:$16 sps:$4 sm:$0xff]  }
 0x478   : > { %14214 = vmatpush2.bf16.msra.mxu0 %v19844_v9  ;;  %v19879_v9 = vld [vmem:[%s21620_s30 + $0x34c] ss:$16 sps:$4 sm:$0xff]  }
 0x479   : > { %14255 = vmatpush2.bf16.msra.mxu1 %v19847_v55  ;;  %14215 = vmatprep.subr.bf16.mxu0 %v19852_v63  ;;  %v19874_v55 = vld [vmem:[%s21620_s30 + $0x148] ss:$16 sps:$4 sm:$0xff]  }
 0x47a   : > { %14256 = vmatprep.subr.bf16.mxu1 %v19855_v4  ;;  %v19877_v63 = vld [vmem:[%s21620_s30 + $0x348] ss:$16 sps:$4 sm:$0xff]   ;;  %v19882_v4 = vld [vmem:[%s21620_s30 + $0x12c] ss:$16 sps:$4 sm:$0xff]  }
 0x47c   : > { %14216 = vmatpush2.bf16.msra.mxu0 %v19850_v12  ;;  %v19885_v12 = vld [vmem:[%s21620_s30 + $0x32c] ss:$16 sps:$4 sm:$0xff]  }
 0x47d   : > { %14257 = vmatpush2.bf16.msra.mxu1 %v19853_v43  ;;  %14217 = vmatprep.subr.bf16.mxu0 %v19858_v28  ;;  %v19880_v43 = vld [vmem:[%s21620_s30 + $0x128] ss:$16 sps:$4 sm:$0xff]  }
 0x47e   : > { %14258 = vmatprep.subr.bf16.mxu1 %v19861_v34  ;;  %v19883_v28 = vld [vmem:[%s21620_s30 + $0x328] ss:$16 sps:$4 sm:$0xff]   ;;  %v19888_v34 = vld [vmem:[%s21620_s30 + $0x10c] ss:$16 sps:$4 sm:$0xff]  }
 0x480   : > { %14218 = vmatpush2.bf16.msra.mxu0 %v19856_v14  ;;  %v19891_v14 = vld [vmem:[%s21620_s30 + $0x30c] ss:$16 sps:$4 sm:$0xff]  }
 0x481   : > { %14259 = vmatpush2.bf16.msra.mxu1 %v19859_v0  ;;  %14219 = vmatprep.subr.bf16.mxu0 %v19864_v20  ;;  %v19886_v0 = vld [vmem:[%s21620_s30 + $0x108] ss:$16 sps:$4 sm:$0xff]  }
 0x482   : > { %14260 = vmatprep.subr.bf16.mxu1 %v19867_v16  ;;  %v19889_v20 = vld [vmem:[%s21620_s30 + $0x308] ss:$16 sps:$4 sm:$0xff]   ;;  %v19894_v16 = vld [vmem:[%s21620_s30 + $0x4ec] ss:$16 sps:$4 sm:$0xff]  }
 0x484   : > { %14220 = vmatpush2.bf16.msra.mxu0 %v19862_v31  ;;  %v19897_v31 = vld [vmem:[%s21620_s30 + $0x6ec] ss:$16 sps:$4 sm:$0xff]  }
 0x485   : > { %14261 = vmatpush2.bf16.msra.mxu1 %v19865_v44  ;;  %14221 = vmatprep.subr.bf16.mxu0 %v19870_v22  ;;  %v19892_v44 = vld [vmem:[%s21620_s30 + $0x4e8] ss:$16 sps:$4 sm:$0xff]  }
 0x486   : > { %14262 = vmatprep.subr.bf16.mxu1 %v19873_v35  ;;  %v19895_v22 = vld [vmem:[%s21620_s30 + $0x6e8] ss:$16 sps:$4 sm:$0xff]   ;;  %v19900_v35 = vld [vmem:[%s21620_s30 + $0x4cc] ss:$16 sps:$4 sm:$0xff]  }
 0x488   : > { %14222 = vmatpush2.bf16.msra.mxu0 %v19868_v15  ;;  %v19903_v15 = vld [vmem:[%s21620_s30 + $0x6cc] ss:$16 sps:$4 sm:$0xff]  }
 0x489   : > { %14263 = vmatpush2.bf16.msra.mxu1 %v19871_v48  ;;  %14223 = vmatprep.subr.bf16.mxu0 %v19876_v52  ;;  %v19898_v48 = vld [vmem:[%s21620_s30 + $0x4c8] ss:$16 sps:$4 sm:$0xff]  }
 0x48a   : > { %14264 = vmatprep.subr.bf16.mxu1 %v19879_v9 }
 0x48c   : > { %14224 = vmatpush2.bf16.msra.mxu0 %v19874_v55 }
 0x48d   : > { %14265 = vmatpush2.bf16.msra.mxu1 %v19877_v63  ;;  %14225 = vmatprep.subr.bf16.mxu0 %v19882_v4  ;;  %v19901_v63 = vld [vmem:[%s21620_s30 + $0x6c8] ss:$16 sps:$4 sm:$0xff]  }
 0x48e   : > { %14266 = vmatprep.subr.bf16.mxu1 %v19885_v12 }
 0x490   : > { %14226 = vmatpush2.bf16.msra.mxu0 %v19880_v43  ;;  %v19906_v43 = vld [vmem:[%s21620_s30 + $0x4ac] ss:$16 sps:$4 sm:$0xff]  }
 0x491   : > { %14267 = vmatpush2.bf16.msra.mxu1 %v19883_v28  ;;  %14227 = vmatprep.subr.bf16.mxu0 %v19888_v34  ;;  %v19909_v28 = vld [vmem:[%s21620_s30 + $0x6ac] ss:$16 sps:$4 sm:$0xff]  }
 0x492   : > { %14268 = vmatprep.subr.bf16.mxu1 %v19891_v14 }
 0x494   : > { %14228 = vmatpush2.bf16.msra.mxu0 %v19886_v0  ;;  %v19907_v0 = vld [vmem:[%s21620_s30 + $0x6a8] ss:$16 sps:$4 sm:$0xff]  }
 0x495   : > { %14269 = vmatpush2.bf16.msra.mxu1 %v19889_v20  ;;  %14279 = vmatprep.subr.bf16.mxu0 %v19894_v16 }
 0x496   : > { %14320 = vmatprep.subr.bf16.mxu1 %v19897_v31 }
 0x497   : > { %v13985_v52 = vpop.f32.mrf.mxu0  ;;  %14230 = vmatmul.mubr.bf16.vlgmr.msra.gmra.mxu0 %v21711_v7  ;;  %v19904_v7 = vld [vmem:[%s21620_s30 + $0x4a8] ss:$16 sps:$4 sm:$0xff]  }
 0x498   : > { %v14026_v9 = vpop.f32.mrf.mxu1  ;;  %14271 = vmatmul.mubr.bf16.vlgmr.msra.gmra.mxu1 %v21713_v8  ;;  %v13986_v55 = vadd.f32 %v13985_v52, %v23146_v29  ;;  %14280 = vmatpush1.bf16.msra.mxu0 %v19892_v44  ;;  %v19913_v44 = vld [vmem:[%s21620_s30 + $0x688] ss:$16 sps:$4 sm:$0xff]   ;;  %v19924_v52 = vld [vmem:[%s21620_s30 + $0x44c] ss:$16 sps:$4 sm:$0xff]  }
 0x499   : > { %14321 = vmatpush1.bf16.msra.mxu1 %v19895_v22  ;;  %v13987_v4 = vpop.f32.mrf.mxu0  ;;  %14281 = vmatprep.subr.bf16.mxu0 %v19900_v35  ;;  %v19918_v22 = vld [vmem:[%s21620_s30 + $0x46c] ss:$16 sps:$4 sm:$0xff]  }
 0x49a   : > { %v14028_v12 = vpop.f32.mrf.mxu1  ;;  %14322 = vmatprep.subr.bf16.mxu1 %v19903_v15  ;;  %v23220_v34 = vadd.f32 %v14026_v9, %v13986_v55  ;;  %v13988_v14 = vadd.f32 %v13987_v4, %v23153_v19  ;;  %14311 = vmatprep.mubr.bf16.mxu0 %v21751_v37  ;;  %v19912_v19 = vld [vmem:[%s21620_s30 + $0x48c] ss:$16 sps:$4 sm:$0xff]   ;;  %v19916_v15 = vld [vmem:[%s21620_s30 + $0x468] ss:$16 sps:$4 sm:$0xff]  }
 0x49b   : > { %14352 = vmatprep.mubr.bf16.mxu1 %v21755_v38  ;;  %v13989_v8 = vpop.f32.mrf.mxu0  ;;  %v19915_v37 = vld [vmem:[%s21620_s30 + $0x68c] ss:$16 sps:$4 sm:$0xff]   ;;  %v19910_v38 = vld [vmem:[%s21620_s30 + $0x488] ss:$16 sps:$4 sm:$0xff]  }
 0x49c   : > { %v14030_v29 = vpop.f32.mrf.mxu1  ;;  %v23227_v20 = vadd.f32 %v14028_v12, %v13988_v14  ;;  %14282 = vmatpush1.bf16.msra.mxu0 %v19898_v48  ;;  %v19921_v35 = vld [vmem:[%s21620_s30 + $0x66c] ss:$16 sps:$4 sm:$0xff]   ;;  %v19919_v48 = vld [vmem:[%s21620_s30 + $0x668] ss:$16 sps:$4 sm:$0xff]  }
 0x49d   : > { %14323 = vmatpush1.bf16.msra.mxu1 %v19901_v63  ;;  %v13990_v16 = vpop.f32.mrf.mxu0  ;;  %14283 = vmatprep.subr.bf16.mxu0 %v19906_v43  ;;  %v19927_v9 = vld [vmem:[%s21620_s30 + $0x64c] ss:$16 sps:$4 sm:$0xff]   ;;  %v19922_v55 = vld [vmem:[%s21620_s30 + $0x448] ss:$16 sps:$4 sm:$0xff]  }
 0x49e   : > { %v14031_v31 = vpop.f32.mrf.mxu1  ;;  %14324 = vmatprep.subr.bf16.mxu1 %v19909_v28  ;;  %v19925_v63 = vld [vmem:[%s21620_s30 + $0x648] ss:$16 sps:$4 sm:$0xff]   ;;  %v19930_v4 = vld [vmem:[%s21620_s30 + $0x42c] ss:$16 sps:$4 sm:$0xff]  }
 0x49f   : > { %v19933_v12 = vld [vmem:[%s21620_s30 + $0x62c] ss:$16 sps:$4 sm:$0xff]   ;;  %v19928_v43 = vld [vmem:[%s21620_s30 + $0x428] ss:$16 sps:$4 sm:$0xff]  }
 0x4a0   : > { %14284 = vmatpush1.bf16.msra.mxu0 %v19904_v7  ;;  %v19931_v28 = vld [vmem:[%s21620_s30 + $0x628] ss:$16 sps:$4 sm:$0xff]   ;;  %v19936_v14 = vld [vmem:[%s21620_s30 + $0x40c] ss:$16 sps:$4 sm:$0xff]  }
 0x4a1   : > { %14325 = vmatpush1.bf16.msra.mxu1 %v19907_v0  ;;  %14285 = vmatprep.subr.bf16.mxu0 %v19912_v19  ;;  %v19939_v7 = vld [vmem:[%s21620_s30 + $0x60c] ss:$16 sps:$4 sm:$0xff]   ;;  %v19934_v0 = vld [vmem:[%s21620_s30 + $0x408] ss:$16 sps:$4 sm:$0xff]  }
 0x4a2   : > { %14326 = vmatprep.subr.bf16.mxu1 %v19915_v37  ;;  %v19937_v8 = vld [vmem:[%s21620_s30 + $0x608] ss:$16 sps:$4 sm:$0xff]   ;;  %v19942_v29 = vld [vmem:[%s21620_s30 + $0x5ec] ss:$16 sps:$4 sm:$0xff]  }
 0x4a3   : > { %v19945_v16 = vld [vmem:[%s21620_s30 + $0x7ec] ss:$16 sps:$4 sm:$0xff]   ;;  %v19940_v31 = vld [vmem:[%s21620_s30 + $0x5e8] ss:$16 sps:$4 sm:$0xff]  }
 0x4a4   : > { %14286 = vmatpush1.bf16.msra.mxu0 %v19910_v38  ;;  %v19943_v19 = vld [vmem:[%s21620_s30 + $0x7e8] ss:$16 sps:$4 sm:$0xff]   ;;  %v19948_v37 = vld [vmem:[%s21620_s30 + $0x5cc] ss:$16 sps:$4 sm:$0xff]  }
 0x4a5   : > { %14327 = vmatpush1.bf16.msra.mxu1 %v19913_v44  ;;  %14287 = vmatprep.subr.bf16.mxu0 %v19918_v22  ;;  %v19951_v38 = vld [vmem:[%s21620_s30 + $0x7cc] ss:$16 sps:$4 sm:$0xff]   ;;  %v19946_v44 = vld [vmem:[%s21620_s30 + $0x5c8] ss:$16 sps:$4 sm:$0xff]  }
 0x4a6   : > { %14328 = vmatprep.subr.bf16.mxu1 %v19921_v35  ;;  %v19949_v22 = vld [vmem:[%s21620_s30 + $0x7c8] ss:$16 sps:$4 sm:$0xff]   ;;  %v19954_v35 = vld [vmem:[%s21620_s30 + $0x5ac] ss:$16 sps:$4 sm:$0xff]  }
 0x4a8   : > { %14288 = vmatpush1.bf16.msra.mxu0 %v19916_v15  ;;  %v19957_v15 = vld [vmem:[%s21620_s30 + $0x7ac] ss:$16 sps:$4 sm:$0xff]  }
 0x4a9   : > { %14329 = vmatpush1.bf16.msra.mxu1 %v19919_v48  ;;  %14289 = vmatprep.subr.bf16.mxu0 %v19924_v52  ;;  %v19952_v48 = vld [vmem:[%s21620_s30 + $0x5a8] ss:$16 sps:$4 sm:$0xff]  }
 0x4aa   : > { %14330 = vmatprep.subr.bf16.mxu1 %v19927_v9  ;;  %v19955_v52 = vld [vmem:[%s21620_s30 + $0x7a8] ss:$16 sps:$4 sm:$0xff]   ;;  %v19960_v9 = vld [vmem:[%s21620_s30 + $0x58c] ss:$16 sps:$4 sm:$0xff]  }
 0x4ac   : > { %14290 = vmatpush1.bf16.msra.mxu0 %v19922_v55  ;;  %v19963_v55 = vld [vmem:[%s21620_s30 + $0x78c] ss:$16 sps:$4 sm:$0xff]  }
 0x4ad   : > { %14331 = vmatpush1.bf16.msra.mxu1 %v19925_v63  ;;  %14291 = vmatprep.subr.bf16.mxu0 %v19930_v4  ;;  %v19958_v63 = vld [vmem:[%s21620_s30 + $0x588] ss:$16 sps:$4 sm:$0xff]  }
 0x4ae   : > { %14332 = vmatprep.subr.bf16.mxu1 %v19933_v12  ;;  %v19961_v4 = vld [vmem:[%s21620_s30 + $0x788] ss:$16 sps:$4 sm:$0xff]   ;;  %v19966_v12 = vld [vmem:[%s21620_s30 + $0x56c] ss:$16 sps:$4 sm:$0xff]  }
 0x4b0   : > { %14292 = vmatpush1.bf16.msra.mxu0 %v19928_v43  ;;  %v19969_v43 = vld [vmem:[%s21620_s30 + $0x76c] ss:$16 sps:$4 sm:$0xff]  }
 0x4b1   : > { %14333 = vmatpush1.bf16.msra.mxu1 %v19931_v28  ;;  %14293 = vmatprep.subr.bf16.mxu0 %v19936_v14  ;;  %v19964_v28 = vld [vmem:[%s21620_s30 + $0x568] ss:$16 sps:$4 sm:$0xff]  }
 0x4b2   : > { %14334 = vmatprep.subr.bf16.mxu1 %v19939_v7  ;;  %v19967_v14 = vld [vmem:[%s21620_s30 + $0x768] ss:$16 sps:$4 sm:$0xff]   ;;  %v19972_v7 = vld [vmem:[%s21620_s30 + $0x54c] ss:$16 sps:$4 sm:$0xff]  }
 0x4b4   : > { %14294 = vmatpush1.bf16.msra.mxu0 %v19934_v0  ;;  %v19975_v0 = vld [vmem:[%s21620_s30 + $0x74c] ss:$16 sps:$4 sm:$0xff]  }
 0x4b5   : > { %14335 = vmatpush1.bf16.msra.mxu1 %v19937_v8  ;;  %14295 = vmatprep.subr.bf16.mxu0 %v19942_v29  ;;  %v19970_v8 = vld [vmem:[%s21620_s30 + $0x548] ss:$16 sps:$4 sm:$0xff]  }
 0x4b6   : > { %14336 = vmatprep.subr.bf16.mxu1 %v19945_v16  ;;  %v19973_v29 = vld [vmem:[%s21620_s30 + $0x748] ss:$16 sps:$4 sm:$0xff]   ;;  %v19978_v16 = vld [vmem:[%s21620_s30 + $0x52c] ss:$16 sps:$4 sm:$0xff]  }
 0x4b8   : > { %14296 = vmatpush2.bf16.msra.mxu0 %v19940_v31  ;;  %v19981_v31 = vld [vmem:[%s21620_s30 + $0x72c] ss:$16 sps:$4 sm:$0xff]  }
 0x4b9   : > { %14337 = vmatpush2.bf16.msra.mxu1 %v19943_v19  ;;  %14297 = vmatprep.subr.bf16.mxu0 %v19948_v37  ;;  %v19976_v19 = vld [vmem:[%s21620_s30 + $0x528] ss:$16 sps:$4 sm:$0xff]  }
 0x4ba   : > { %14338 = vmatprep.subr.bf16.mxu1 %v19951_v38  ;;  %v19979_v37 = vld [vmem:[%s21620_s30 + $0x728] ss:$16 sps:$4 sm:$0xff]   ;;  %v19984_v38 = vld [vmem:[%s21620_s30 + $0x50c] ss:$16 sps:$4 sm:$0xff]  }
 0x4bc   : > { %14298 = vmatpush2.bf16.msra.mxu0 %v19946_v44  ;;  %v19987_v44 = vld [vmem:[%s21620_s30 + $0x70c] ss:$16 sps:$4 sm:$0xff]  }
 0x4bd   : > { %14339 = vmatpush2.bf16.msra.mxu1 %v19949_v22  ;;  %14299 = vmatprep.subr.bf16.mxu0 %v19954_v35  ;;  %v19982_v22 = vld [vmem:[%s21620_s30 + $0x508] ss:$16 sps:$4 sm:$0xff]  }
 0x4be   : > { %14340 = vmatprep.subr.bf16.mxu1 %v19957_v15  ;;  %v19985_v35 = vld [vmem:[%s21620_s30 + $0x708] ss:$16 sps:$4 sm:$0xff]   ;;  %v19990_v15 = vld [vmem:[%s21620_s30 + $0x8ec] ss:$16 sps:$4 sm:$0xff]  }
 0x4c0   : > { %14300 = vmatpush2.bf16.msra.mxu0 %v19952_v48  ;;  %v19993_v48 = vld [vmem:[%s21620_s30 + $0xaec] ss:$16 sps:$4 sm:$0xff]  }
 0x4c1   : > { %14341 = vmatpush2.bf16.msra.mxu1 %v19955_v52  ;;  %14301 = vmatprep.subr.bf16.mxu0 %v19960_v9  ;;  %v19988_v52 = vld [vmem:[%s21620_s30 + $0x8e8] ss:$16 sps:$4 sm:$0xff]  }
 0x4c2   : > { %14342 = vmatprep.subr.bf16.mxu1 %v19963_v55  ;;  %v19991_v9 = vld [vmem:[%s21620_s30 + $0xae8] ss:$16 sps:$4 sm:$0xff]   ;;  %v19996_v55 = vld [vmem:[%s21620_s30 + $0x8cc] ss:$16 sps:$4 sm:$0xff]  }
 0x4c4   : > { %14302 = vmatpush2.bf16.msra.mxu0 %v19958_v63  ;;  %v19999_v63 = vld [vmem:[%s21620_s30 + $0xacc] ss:$16 sps:$4 sm:$0xff]  }
 0x4c5   : > { %14343 = vmatpush2.bf16.msra.mxu1 %v19961_v4  ;;  %14303 = vmatprep.subr.bf16.mxu0 %v19966_v12 }
 0x4c6   : > { %14344 = vmatprep.subr.bf16.mxu1 %v19969_v43  ;;  %v19994_v43 = vld [vmem:[%s21620_s30 + $0x8c8] ss:$16 sps:$4 sm:$0xff]  }
 0x4c8   : > { %14304 = vmatpush2.bf16.msra.mxu0 %v19964_v28  ;;  %v19997_v28 = vld [vmem:[%s21620_s30 + $0xac8] ss:$16 sps:$4 sm:$0xff]  }
 0x4c9   : > { %14345 = vmatpush2.bf16.msra.mxu1 %v19967_v14  ;;  %14305 = vmatprep.subr.bf16.mxu0 %v19972_v7 }
 0x4ca   : > { %14346 = vmatprep.subr.bf16.mxu1 %v19975_v0  ;;  %v20002_v0 = vld [vmem:[%s21620_s30 + $0x8ac] ss:$16 sps:$4 sm:$0xff]  }
 0x4cc   : > { %14306 = vmatpush2.bf16.msra.mxu0 %v19970_v8  ;;  %v20005_v8 = vld [vmem:[%s21620_s30 + $0xaac] ss:$16 sps:$4 sm:$0xff]  }
 0x4cd   : > { %14347 = vmatpush2.bf16.msra.mxu1 %v19973_v29  ;;  %14307 = vmatprep.subr.bf16.mxu0 %v19978_v16  ;;  %v20000_v29 = vld [vmem:[%s21620_s30 + $0x8a8] ss:$16 sps:$4 sm:$0xff]  }
 0x4ce   : > { %14348 = vmatprep.subr.bf16.mxu1 %v19981_v31  ;;  %v20003_v16 = vld [vmem:[%s21620_s30 + $0xaa8] ss:$16 sps:$4 sm:$0xff]  }
 0x4d0   : > { %14308 = vmatpush2.bf16.msra.mxu0 %v19976_v19 }
 0x4d1   : > { %14349 = vmatpush2.bf16.msra.mxu1 %v19979_v37  ;;  %14309 = vmatprep.subr.bf16.mxu0 %v19984_v38  ;;  %v20008_v37 = vld [vmem:[%s21620_s30 + $0x88c] ss:$16 sps:$4 sm:$0xff]   ;;  %v20009_v38 = vld [vmem:[%s21620_s30 + $0xa88] ss:$16 sps:$4 sm:$0xff]  }
 0x4d2   : > { %14350 = vmatprep.subr.bf16.mxu1 %v19987_v44  ;;  %v20014_v44 = vld [vmem:[%s21620_s30 + $0x86c] ss:$16 sps:$4 sm:$0xff]  }
 0x4d4   : > { %14310 = vmatpush2.bf16.msra.mxu0 %v19982_v22  ;;  %v20017_v22 = vld [vmem:[%s21620_s30 + $0xa6c] ss:$16 sps:$4 sm:$0xff]  }
 0x4d5   : > { %14351 = vmatpush2.bf16.msra.mxu1 %v19985_v35  ;;  %14361 = vmatprep.subr.bf16.mxu0 %v19990_v15  ;;  %v20012_v35 = vld [vmem:[%s21620_s30 + $0x868] ss:$16 sps:$4 sm:$0xff]  }
 0x4d6   : > { %14402 = vmatprep.subr.bf16.mxu1 %v19993_v48  ;;  %v20015_v15 = vld [vmem:[%s21620_s30 + $0xa68] ss:$16 sps:$4 sm:$0xff]   ;;  %v20020_v48 = vld [vmem:[%s21620_s30 + $0x84c] ss:$16 sps:$4 sm:$0xff]  }
 0x4d7   : > { %v23287_v4 = vpop.f32.mrf.mxu0  ;;  %14312 = vmatmul.mubr.bf16.vlgmr.msra.gmra.mxu0 %v21799_v17 }
 0x4d8   : > { %v23289_v12 = vpop.f32.mrf.mxu1  ;;  %14353 = vmatmul.mubr.bf16.vlgmr.msra.gmra.mxu1 %v21803_v18  ;;  %14362 = vmatpush1.bf16.msra.mxu0 %v19988_v52  ;;  %v20023_v52 = vld [vmem:[%s21620_s30 + $0xa4c] ss:$16 sps:$4 sm:$0xff]  }
 0x4d9   : > { %14403 = vmatpush1.bf16.msra.mxu1 %v19991_v9  ;;  %v23295_v14 = vpop.f32.mrf.mxu0  ;;  %14363 = vmatprep.subr.bf16.mxu0 %v19996_v55  ;;  %v20018_v9 = vld [vmem:[%s21620_s30 + $0x848] ss:$16 sps:$4 sm:$0xff]  }
 0x4da   : > { %v23297_v7 = vpop.f32.mrf.mxu1  ;;  %14404 = vmatprep.subr.bf16.mxu1 %v19999_v63  ;;  %14393 = vmatprep.mubr.bf16.mxu0 %v21817_v25  ;;  %v20011_v25 = vld [vmem:[%s21620_s30 + $0xa8c] ss:$16 sps:$4 sm:$0xff]   ;;  %v20021_v55 = vld [vmem:[%s21620_s30 + $0xa48] ss:$16 sps:$4 sm:$0xff]  }
 0x4db   : > { %14434 = vmatprep.mubr.bf16.mxu1 %v21821_v26  ;;  %v14071_v17 = vpop.f32.mrf.mxu0  ;;  %v20006_v26 = vld [vmem:[%s21620_s30 + $0x888] ss:$16 sps:$4 sm:$0xff]   ;;  %v20026_v63 = vld [vmem:[%s21620_s30 + $0x82c] ss:$16 sps:$4 sm:$0xff]  }
 0x4dc   : > { %v14112_v18 = vpop.f32.mrf.mxu1  ;;  %14364 = vmatpush1.bf16.msra.mxu0 %v19994_v43  ;;  %v20029_v43 = vld [vmem:[%s21620_s30 + $0xa2c] ss:$16 sps:$4 sm:$0xff]  }
 0x4dd   : > { %14405 = vmatpush1.bf16.msra.mxu1 %v19997_v28  ;;  %v14072_v31 = vpop.f32.mrf.mxu0  ;;  %14365 = vmatprep.subr.bf16.mxu0 %v20002_v0  ;;  %v20024_v28 = vld [vmem:[%s21620_s30 + $0x828] ss:$16 sps:$4 sm:$0xff]   ;;  %v20035_v17 = vld [vmem:[%s21620_s30 + $0xa0c] ss:$16 sps:$4 sm:$0xff]  }
 0x4de   : > { %v14113_v19 = vpop.f32.mrf.mxu1  ;;  %14406 = vmatprep.subr.bf16.mxu1 %v20005_v8  ;;  %v20027_v0 = vld [vmem:[%s21620_s30 + $0xa28] ss:$16 sps:$4 sm:$0xff]   ;;  %v20032_v8 = vld [vmem:[%s21620_s30 + $0x80c] ss:$16 sps:$4 sm:$0xff]  }
 0x4df   : > { %v20030_v18 = vld [vmem:[%s21620_s30 + $0x808] ss:$16 sps:$4 sm:$0xff]   ;;  %v20041_v31 = vld [vmem:[%s21620_s30 + $0xbec] ss:$16 sps:$4 sm:$0xff]  }
 0x4e0   : > { %14366 = vmatpush1.bf16.msra.mxu0 %v20000_v29  ;;  %v20033_v29 = vld [vmem:[%s21620_s30 + $0xa08] ss:$16 sps:$4 sm:$0xff]  }
 0x4e1   : > { %14407 = vmatpush1.bf16.msra.mxu1 %v20003_v16  ;;  %14367 = vmatprep.subr.bf16.mxu0 %v20008_v37  ;;  %v20038_v16 = vld [vmem:[%s21620_s30 + $0x9ec] ss:$16 sps:$4 sm:$0xff]   ;;  %v20036_v19 = vld [vmem:[%s21620_s30 + $0x9e8] ss:$16 sps:$4 sm:$0xff]  }
 0x4e2   : > { %14408 = vmatprep.subr.bf16.mxu1 %v20011_v25  ;;  %v20039_v37 = vld [vmem:[%s21620_s30 + $0xbe8] ss:$16 sps:$4 sm:$0xff]   ;;  %v20044_v25 = vld [vmem:[%s21620_s30 + $0x9cc] ss:$16 sps:$4 sm:$0xff]  }
 0x4e4   : > { %14368 = vmatpush1.bf16.msra.mxu0 %v20006_v26  ;;  %v20047_v26 = vld [vmem:[%s21620_s30 + $0xbcc] ss:$16 sps:$4 sm:$0xff]  }
 0x4e5   : > { %14409 = vmatpush1.bf16.msra.mxu1 %v20009_v38  ;;  %14369 = vmatprep.subr.bf16.mxu0 %v20014_v44  ;;  %v20042_v38 = vld [vmem:[%s21620_s30 + $0x9c8] ss:$16 sps:$4 sm:$0xff]  }
 0x4e6   : > { %14410 = vmatprep.subr.bf16.mxu1 %v20017_v22  ;;  %v20045_v44 = vld [vmem:[%s21620_s30 + $0xbc8] ss:$16 sps:$4 sm:$0xff]   ;;  %v20050_v22 = vld [vmem:[%s21620_s30 + $0x9ac] ss:$16 sps:$4 sm:$0xff]  }
 0x4e8   : > { %14370 = vmatpush1.bf16.msra.mxu0 %v20012_v35  ;;  %v20053_v35 = vld [vmem:[%s21620_s30 + $0xbac] ss:$16 sps:$4 sm:$0xff]  }
 0x4e9   : > { %14411 = vmatpush1.bf16.msra.mxu1 %v20015_v15  ;;  %14371 = vmatprep.subr.bf16.mxu0 %v20020_v48  ;;  %v20048_v15 = vld [vmem:[%s21620_s30 + $0x9a8] ss:$16 sps:$4 sm:$0xff]  }
 0x4ea   : > { %14412 = vmatprep.subr.bf16.mxu1 %v20023_v52  ;;  %v20051_v48 = vld [vmem:[%s21620_s30 + $0xba8] ss:$16 sps:$4 sm:$0xff]   ;;  %v20056_v52 = vld [vmem:[%s21620_s30 + $0x98c] ss:$16 sps:$4 sm:$0xff]  }
 0x4ec   : > { %14372 = vmatpush1.bf16.msra.mxu0 %v20018_v9  ;;  %v20059_v9 = vld [vmem:[%s21620_s30 + $0xb8c] ss:$16 sps:$4 sm:$0xff]  }
 0x4ed   : > { %14413 = vmatpush1.bf16.msra.mxu1 %v20021_v55  ;;  %14373 = vmatprep.subr.bf16.mxu0 %v20026_v63  ;;  %v20054_v55 = vld [vmem:[%s21620_s30 + $0x988] ss:$16 sps:$4 sm:$0xff]  }
 0x4ee   : > { %14414 = vmatprep.subr.bf16.mxu1 %v20029_v43  ;;  %v20057_v63 = vld [vmem:[%s21620_s30 + $0xb88] ss:$16 sps:$4 sm:$0xff]   ;;  %v20062_v43 = vld [vmem:[%s21620_s30 + $0x96c] ss:$16 sps:$4 sm:$0xff]  }
 0x4f0   : > { %14374 = vmatpush1.bf16.msra.mxu0 %v20024_v28  ;;  %v20065_v28 = vld [vmem:[%s21620_s30 + $0xb6c] ss:$16 sps:$4 sm:$0xff]  }
 0x4f1   : > { %14415 = vmatpush1.bf16.msra.mxu1 %v20027_v0  ;;  %14375 = vmatprep.subr.bf16.mxu0 %v20032_v8  ;;  %v20060_v0 = vld [vmem:[%s21620_s30 + $0x968] ss:$16 sps:$4 sm:$0xff]  }
 0x4f2   : > { %14416 = vmatprep.subr.bf16.mxu1 %v20035_v17  ;;  %v20063_v8 = vld [vmem:[%s21620_s30 + $0xb68] ss:$16 sps:$4 sm:$0xff]   ;;  %v20068_v17 = vld [vmem:[%s21620_s30 + $0x94c] ss:$16 sps:$4 sm:$0xff]  }
 0x4f4   : > { %14376 = vmatpush1.bf16.msra.mxu0 %v20030_v18  ;;  %v20071_v18 = vld [vmem:[%s21620_s30 + $0xb4c] ss:$16 sps:$4 sm:$0xff]  }
 0x4f5   : > { %14417 = vmatpush1.bf16.msra.mxu1 %v20033_v29  ;;  %14377 = vmatprep.subr.bf16.mxu0 %v20038_v16  ;;  %v20066_v29 = vld [vmem:[%s21620_s30 + $0x948] ss:$16 sps:$4 sm:$0xff]  }
 0x4f6   : > { %14418 = vmatprep.subr.bf16.mxu1 %v20041_v31  ;;  %v20069_v16 = vld [vmem:[%s21620_s30 + $0xb48] ss:$16 sps:$4 sm:$0xff]   ;;  %v20074_v31 = vld [vmem:[%s21620_s30 + $0x92c] ss:$16 sps:$4 sm:$0xff]  }
 0x4f8   : > { %14378 = vmatpush2.bf16.msra.mxu0 %v20036_v19  ;;  %v20077_v19 = vld [vmem:[%s21620_s30 + $0xb2c] ss:$16 sps:$4 sm:$0xff]  }
 0x4f9   : > { %14419 = vmatpush2.bf16.msra.mxu1 %v20039_v37  ;;  %14379 = vmatprep.subr.bf16.mxu0 %v20044_v25  ;;  %v20072_v37 = vld [vmem:[%s21620_s30 + $0x928] ss:$16 sps:$4 sm:$0xff]  }
 0x4fa   : > { %14420 = vmatprep.subr.bf16.mxu1 %v20047_v26  ;;  %v20075_v25 = vld [vmem:[%s21620_s30 + $0xb28] ss:$16 sps:$4 sm:$0xff]   ;;  %v20080_v26 = vld [vmem:[%s21620_s30 + $0x90c] ss:$16 sps:$4 sm:$0xff]  }
 0x4fc   : > { %14380 = vmatpush2.bf16.msra.mxu0 %v20042_v38  ;;  %v20083_v38 = vld [vmem:[%s21620_s30 + $0xb0c] ss:$16 sps:$4 sm:$0xff]  }
 0x4fd   : > { %14421 = vmatpush2.bf16.msra.mxu1 %v20045_v44  ;;  %14381 = vmatprep.subr.bf16.mxu0 %v20050_v22  ;;  %v20078_v44 = vld [vmem:[%s21620_s30 + $0x908] ss:$16 sps:$4 sm:$0xff]  }
 0x4fe   : > { %14422 = vmatprep.subr.bf16.mxu1 %v20053_v35  ;;  %v20081_v22 = vld [vmem:[%s21620_s30 + $0xb08] ss:$16 sps:$4 sm:$0xff]   ;;  %v20086_v35 = vld [vmem:[%s21620_s30 + $0xcec] ss:$16 sps:$4 sm:$0xff]  }
 0x500   : > { %14382 = vmatpush2.bf16.msra.mxu0 %v20048_v15  ;;  %v20089_v15 = vld [vmem:[%s21620_s30 + $0xeec] ss:$16 sps:$4 sm:$0xff]  }
 0x501   : > { %14423 = vmatpush2.bf16.msra.mxu1 %v20051_v48  ;;  %14383 = vmatprep.subr.bf16.mxu0 %v20056_v52  ;;  %v14068_v48 = vadd.f32 %v23287_v4, %v23220_v34  ;;  %v14070_v52 = vadd.f32 %v23295_v14, %v23227_v20  ;;  %v20090_v4 = vld [vmem:[%s21620_s30 + $0xcc8] ss:$16 sps:$4 sm:$0xff]  }
 0x502   : > { %14424 = vmatprep.subr.bf16.mxu1 %v20059_v9  ;;  %v20084_v9 = vld [vmem:[%s21620_s30 + $0xce8] ss:$16 sps:$4 sm:$0xff]  }
 0x503   : > { %v14111_v34 = vadd.f32 %v23297_v7, %v14070_v52  ;;  %v20093_v14 = vld [vmem:[%s21620_s30 + $0xec8] ss:$16 sps:$4 sm:$0xff]   ;;  %v20110_v52 = vld [vmem:[%s21620_s30 + $0xc6c] ss:$16 sps:$4 sm:$0xff]  }
 0x504   : > { %14384 = vmatpush2.bf16.msra.mxu0 %v20054_v55  ;;  %v20087_v55 = vld [vmem:[%s21620_s30 + $0xee8] ss:$16 sps:$4 sm:$0xff]  }
 0x505   : > { %14425 = vmatpush2.bf16.msra.mxu1 %v20057_v63  ;;  %14385 = vmatprep.subr.bf16.mxu0 %v20062_v43  ;;  %v20092_v63 = vld [vmem:[%s21620_s30 + $0xccc] ss:$16 sps:$4 sm:$0xff]  }
 0x506   : > { %14426 = vmatprep.subr.bf16.mxu1 %v20065_v28  ;;  %v20095_v43 = vld [vmem:[%s21620_s30 + $0xecc] ss:$16 sps:$4 sm:$0xff]   ;;  %v14109_v28 = vadd.f32 %v23289_v12, %v14068_v48  ;;  %v20105_v48 = vld [vmem:[%s21620_s30 + $0xe88] ss:$16 sps:$4 sm:$0xff]  }
 0x507   : > { %v20098_v12 = vld [vmem:[%s21620_s30 + $0xcac] ss:$16 sps:$4 sm:$0xff]  }
 0x508   : > { %14386 = vmatpush2.bf16.msra.mxu0 %v20060_v0 }
 0x509   : > { %14427 = vmatpush2.bf16.msra.mxu1 %v20063_v8  ;;  %14387 = vmatprep.subr.bf16.mxu0 %v20068_v17  ;;  %v337_v17 = vld [vmem:[#allocation2 + $0x10] sm:$0xff] }
 0x50a   : > { %14428 = vmatprep.subr.bf16.mxu1 %v20071_v18 }
 0x50c   : > { %14388 = vmatpush2.bf16.msra.mxu0 %v20066_v29 }
 0x50d   : > { %14429 = vmatpush2.bf16.msra.mxu1 %v20069_v16  ;;  %14389 = vmatprep.subr.bf16.mxu0 %v20074_v31  ;;  %v20101_v16 = vld [vmem:[%s21620_s30 + $0xeac] ss:$16 sps:$4 sm:$0xff]  }
 0x50e   : > { %14430 = vmatprep.subr.bf16.mxu1 %v20077_v19 }
 0x510   : > { %14390 = vmatpush2.bf16.msra.mxu0 %v20072_v37 }
 0x511   : > { %14431 = vmatpush2.bf16.msra.mxu1 %v20075_v25  ;;  %14391 = vmatprep.subr.bf16.mxu0 %v20080_v26  ;;  %v20096_v26 = vld [vmem:[%s21620_s30 + $0xca8] ss:$16 sps:$4 sm:$0xff]  }
 0x512   : > { %14432 = vmatprep.subr.bf16.mxu1 %v20083_v38  ;;  %v20099_v38 = vld [vmem:[%s21620_s30 + $0xea8] ss:$16 sps:$4 sm:$0xff]  }
 0x514   : > { %14392 = vmatpush2.bf16.msra.mxu0 %v20078_v44 }
 0x515   : > { %14433 = vmatpush2.bf16.msra.mxu1 %v20081_v22  ;;  %14443 = vmatprep.subr.bf16.mxu0 %v20086_v35 }
 0x516   : > { %14484 = vmatprep.subr.bf16.mxu1 %v20089_v15  ;;  %v20102_v15 = vld [vmem:[%s21620_s30 + $0xc88] ss:$16 sps:$4 sm:$0xff]  }
 0x517   : > { %v14149_v0 = vpop.f32.mrf.mxu0  ;;  %14394 = vmatmul.mubr.bf16.vlgmr.msra.gmra.mxu0 %v21891_v39 }
 0x518   : > { %v14190_v8 = vpop.f32.mrf.mxu1  ;;  %14435 = vmatmul.mubr.bf16.vlgmr.msra.gmra.mxu1 %v21895_v40  ;;  %v14150_v20 = vadd.f32 %v14149_v0, %v14109_v28  ;;  %14444 = vmatpush1.bf16.msra.mxu0 %v20084_v9  ;;  %v338_v40 = vld [vmem:[#allocation2] sm:$0xff]  ;;  %v20113_v9 = vld [vmem:[%s21620_s30 + $0xe6c] ss:$16 sps:$4 sm:$0xff]   ;;  %v20114_v0 = vld [vmem:[%s21620_s30 + $0xc48] ss:$16 sps:$4 sm:$0xff]  }
 0x519   : > { %14485 = vmatpush1.bf16.msra.mxu1 %v20087_v55  ;;  %v14151_v18 = vpop.f32.mrf.mxu0  ;;  %14445 = vmatprep.subr.bf16.mxu0 %v20092_v63  ;;  %v20108_v55 = vld [vmem:[%s21620_s30 + $0xc68] ss:$16 sps:$4 sm:$0xff]   ;;  %v20119_v28 = vld [vmem:[%s21620_s30 + $0xe4c] ss:$16 sps:$4 sm:$0xff]  }
 0x51a   : > { %v14192_v29 = vpop.f32.mrf.mxu1  ;;  %14486 = vmatprep.subr.bf16.mxu1 %v20095_v43  ;;  %v14191_v31 = vadd.f32 %v14190_v8, %v14150_v20  ;;  %v14152_v39 = vadd.f32 %v14151_v18, %v14111_v34  ;;  %14475 = vmatprep.mubr.bf16.mxu0 %v21907_v23  ;;  %v20104_v23 = vld [vmem:[%s21620_s30 + $0xc8c] ss:$16 sps:$4 sm:$0xff]   ;;  %v20111_v63 = vld [vmem:[%s21620_s30 + $0xe68] ss:$16 sps:$4 sm:$0xff]  }
 0x51b   : > { %14516 = vmatprep.mubr.bf16.mxu1 %v21911_v24  ;;  %v14153_v7 = vpop.f32.mrf.mxu0  ;;  %v20107_v24 = vld [vmem:[%s21620_s30 + $0xe8c] ss:$16 sps:$4 sm:$0xff]   ;;  %v20117_v8 = vld [vmem:[%s21620_s30 + $0xe48] ss:$16 sps:$4 sm:$0xff]  }
 0x51c   : > { %v14194_v19 = vpop.f32.mrf.mxu1  ;;  %v15509_v37 = vadd.f32 %v14191_v31, %v337_v17  ;;  %v14193_v25 = vadd.f32 %v14192_v29, %v14152_v39  ;;  %14446 = vmatpush1.bf16.msra.mxu0 %v20090_v4  ;;  %v20116_v43 = vld [vmem:[%s21620_s30 + $0xc4c] ss:$16 sps:$4 sm:$0xff]   ;;  %v20120_v4 = vld [vmem:[%s21620_s30 + $0xc28] ss:$16 sps:$4 sm:$0xff]  }
 0x51d   : > { %14487 = vmatpush1.bf16.msra.mxu1 %v20093_v14  ;;  %v14154_v44 = vpop.f32.mrf.mxu0  ;;  %14447 = vmatprep.subr.bf16.mxu0 %v20098_v12  ;;  %v20122_v34 = vld [vmem:[%s21620_s30 + $0xc2c] ss:$16 sps:$4 sm:$0xff]   ;;  %v20123_v14 = vld [vmem:[%s21620_s30 + $0xe28] ss:$16 sps:$4 sm:$0xff]  }
 0x51e   : > { %v14195_v22 = vpop.f32.mrf.mxu1  ;;  %14488 = vmatprep.subr.bf16.mxu1 %v20101_v16  ;;  %15513 = vst [vmem:[#allocation2 + $0x10] sm:$0xff] %v15509_v37  ;;  %v15510_v35 = vadd.f32 %v14193_v25, %v338_v40  ;;  %v20125_v20 = vld [vmem:[%s21620_s30 + $0xe2c] ss:$16 sps:$4 sm:$0xff]   ;;  %v20126_v29 = vld [vmem:[%s21620_s30 + $0xc08] ss:$16 sps:$4 sm:$0xff]  }
 0x51f   : > { %v20128_v17 = vld [vmem:[%s21620_s30 + $0xc0c] ss:$16 sps:$4 sm:$0xff]   ;;  %v20129_v12 = vld [vmem:[%s21620_s30 + $0xe08] ss:$16 sps:$4 sm:$0xff]  }
 0x520   : > { %15514 = vst [vmem:[#allocation2] sm:$0xff] %v15510_v35  ;;  %14448 = vmatpush1.bf16.msra.mxu0 %v20096_v26  ;;  %v20131_v18 = vld [vmem:[%s21620_s30 + $0xe0c] ss:$16 sps:$4 sm:$0xff]   ;;  %v20132_v39 = vld [vmem:[%s21620_s30 + $0xde8] ss:$16 sps:$4 sm:$0xff]  }
 0x521   : > { %14489 = vmatpush1.bf16.msra.mxu1 %v20099_v38  ;;  %14449 = vmatprep.subr.bf16.mxu0 %v20104_v23  ;;  %v20134_v16 = vld [vmem:[%s21620_s30 + $0xdec] ss:$16 sps:$4 sm:$0xff]   ;;  %v20135_v40 = vld [vmem:[%s21620_s30 + $0xfe8] ss:$16 sps:$4 sm:$0xff]  }
 0x522   : > { %14490 = vmatprep.subr.bf16.mxu1 %v20107_v24  ;;  %v20137_v31 = vld [vmem:[%s21620_s30 + $0xfec] ss:$16 sps:$4 sm:$0xff]   ;;  %v20138_v37 = vld [vmem:[%s21620_s30 + $0xdc8] ss:$16 sps:$4 sm:$0xff]  }
 0x523   : > { %v20140_v7 = vld [vmem:[%s21620_s30 + $0xdcc] ss:$16 sps:$4 sm:$0xff]   ;;  %v20141_v25 = vld [vmem:[%s21620_s30 + $0xfc8] ss:$16 sps:$4 sm:$0xff]  }
 0x524   : > { %14450 = vmatpush1.bf16.msra.mxu0 %v20102_v15  ;;  %v20143_v19 = vld [vmem:[%s21620_s30 + $0xfcc] ss:$16 sps:$4 sm:$0xff]   ;;  %v20144_v44 = vld [vmem:[%s21620_s30 + $0xda8] ss:$16 sps:$4 sm:$0xff]  }
 0x525   : > { %14491 = vmatpush1.bf16.msra.mxu1 %v20105_v48  ;;  %14451 = vmatprep.subr.bf16.mxu0 %v20110_v52  ;;  %v20146_v26 = vld [vmem:[%s21620_s30 + $0xdac] ss:$16 sps:$4 sm:$0xff]   ;;  %v20147_v22 = vld [vmem:[%s21620_s30 + $0xfa8] ss:$16 sps:$4 sm:$0xff]  }
 0x526   : > { %14492 = vmatprep.subr.bf16.mxu1 %v20113_v9  ;;  %v20149_v38 = vld [vmem:[%s21620_s30 + $0xfac] ss:$16 sps:$4 sm:$0xff]   ;;  %v20150_v35 = vld [vmem:[%s21620_s30 + $0xd88] ss:$16 sps:$4 sm:$0xff]  }
 0x527   : > { %v20152_v23 = vld [vmem:[%s21620_s30 + $0xd8c] ss:$16 sps:$4 sm:$0xff]   ;;  %v20153_v15 = vld [vmem:[%s21620_s30 + $0xf88] ss:$16 sps:$4 sm:$0xff]  }
 0x528   : > { %14452 = vmatpush1.bf16.msra.mxu0 %v20108_v55  ;;  %v20155_v24 = vld [vmem:[%s21620_s30 + $0xf8c] ss:$16 sps:$4 sm:$0xff]   ;;  %v20156_v9 = vld [vmem:[%s21620_s30 + $0xd68] ss:$16 sps:$4 sm:$0xff]  }
 0x529   : > { %14493 = vmatpush1.bf16.msra.mxu1 %v20111_v63  ;;  %14453 = vmatprep.subr.bf16.mxu0 %v20116_v43  ;;  %v20158_v48 = vld [vmem:[%s21620_s30 + $0xd6c] ss:$16 sps:$4 sm:$0xff]   ;;  %v20159_v55 = vld [vmem:[%s21620_s30 + $0xf68] ss:$16 sps:$4 sm:$0xff]  }
 0x52a   : > { %14494 = vmatprep.subr.bf16.mxu1 %v20119_v28  ;;  %v20161_v52 = vld [vmem:[%s21620_s30 + $0xf6c] ss:$16 sps:$4 sm:$0xff]   ;;  %v20162_v28 = vld [vmem:[%s21620_s30 + $0xd48] ss:$16 sps:$4 sm:$0xff]  }
 0x52b   : > { %v20164_v63 = vld [vmem:[%s21620_s30 + $0xd4c] ss:$16 sps:$4 sm:$0xff]  }
 0x52c   : > { %14454 = vmatpush1.bf16.msra.mxu0 %v20114_v0  ;;  %v20167_v43 = vld [vmem:[%s21620_s30 + $0xf4c] ss:$16 sps:$4 sm:$0xff]   ;;  %v20165_v0 = vld [vmem:[%s21620_s30 + $0xf48] ss:$16 sps:$4 sm:$0xff]  }
 0x52d   : > { %14495 = vmatpush1.bf16.msra.mxu1 %v20117_v8  ;;  %14455 = vmatprep.subr.bf16.mxu0 %v20122_v34  ;;  %v20170_v8 = vld [vmem:[%s21620_s30 + $0xd2c] ss:$16 sps:$4 sm:$0xff]  }
 0x52e   : > { %14496 = vmatprep.subr.bf16.mxu1 %v20125_v20  ;;  %v20173_v34 = vld [vmem:[%s21620_s30 + $0xf2c] ss:$16 sps:$4 sm:$0xff]   ;;  %v20168_v20 = vld [vmem:[%s21620_s30 + $0xd28] ss:$16 sps:$4 sm:$0xff]  }
 0x530   : > { %14456 = vmatpush1.bf16.msra.mxu0 %v20120_v4  ;;  %v20171_v4 = vld [vmem:[%s21620_s30 + $0xf28] ss:$16 sps:$4 sm:$0xff]  }
 0x531   : > { %14497 = vmatpush1.bf16.msra.mxu1 %v20123_v14  ;;  %14457 = vmatprep.subr.bf16.mxu0 %v20128_v17  ;;  %v20176_v14 = vld [vmem:[%s21620_s30 + $0xd0c] ss:$16 sps:$4 sm:$0xff]  }
 0x532   : > { %14498 = vmatprep.subr.bf16.mxu1 %v20131_v18  ;;  %v20179_v17 = vld [vmem:[%s21620_s30 + $0xf0c] ss:$16 sps:$4 sm:$0xff]   ;;  %v20174_v18 = vld [vmem:[%s21620_s30 + $0xd08] ss:$16 sps:$4 sm:$0xff]  }
 0x534   : > { %14458 = vmatpush1.bf16.msra.mxu0 %v20126_v29  ;;  %v20177_v29 = vld [vmem:[%s21620_s30 + $0xf08] ss:$16 sps:$4 sm:$0xff]  }
 0x535   : > { %14499 = vmatpush1.bf16.msra.mxu1 %v20129_v12  ;;  %14459 = vmatprep.subr.bf16.mxu0 %v20134_v16  ;;  %v20182_v12 = vld [vmem:[%s21620_s30 + $0x10ec] ss:$16 sps:$4 sm:$0xff]  }
 0x536   : > { %14500 = vmatprep.subr.bf16.mxu1 %v20137_v31  ;;  %v20185_v16 = vld [vmem:[%s21620_s30 + $0x12ec] ss:$16 sps:$4 sm:$0xff]   ;;  %v20180_v31 = vld [vmem:[%s21620_s30 + $0x10e8] ss:$16 sps:$4 sm:$0xff]  }
 0x538   : > { %14460 = vmatpush2.bf16.msra.mxu0 %v20132_v39  ;;  %v20183_v39 = vld [vmem:[%s21620_s30 + $0x12e8] ss:$16 sps:$4 sm:$0xff]  }
 0x539   : > { %14501 = vmatpush2.bf16.msra.mxu1 %v20135_v40  ;;  %14461 = vmatprep.subr.bf16.mxu0 %v20140_v7  ;;  %v20188_v40 = vld [vmem:[%s21620_s30 + $0x10cc] ss:$16 sps:$4 sm:$0xff]  }
 0x53a   : > { %14502 = vmatprep.subr.bf16.mxu1 %v20143_v19  ;;  %v20191_v7 = vld [vmem:[%s21620_s30 + $0x12cc] ss:$16 sps:$4 sm:$0xff]  }
 0x53c   : > { %14462 = vmatpush2.bf16.msra.mxu0 %v20138_v37 }
 0x53d   : > { %14503 = vmatpush2.bf16.msra.mxu1 %v20141_v25  ;;  %14463 = vmatprep.subr.bf16.mxu0 %v20146_v26  ;;  %v20186_v26 = vld [vmem:[%s21620_s30 + $0x10c8] ss:$16 sps:$4 sm:$0xff]  }
 0x53e   : > { %14504 = vmatprep.subr.bf16.mxu1 %v20149_v38  ;;  %v20189_v38 = vld [vmem:[%s21620_s30 + $0x12c8] ss:$16 sps:$4 sm:$0xff]  }
 0x540   : > { %14464 = vmatpush2.bf16.msra.mxu0 %v20144_v44 }
 0x541   : > { %14505 = vmatpush2.bf16.msra.mxu1 %v20147_v22  ;;  %14465 = vmatprep.subr.bf16.mxu0 %v20152_v23  ;;  %v20194_v23 = vld [vmem:[%s21620_s30 + $0x10ac] ss:$16 sps:$4 sm:$0xff]  }
 0x542   : > { %14506 = vmatprep.subr.bf16.mxu1 %v20155_v24  ;;  %v20197_v24 = vld [vmem:[%s21620_s30 + $0x12ac] ss:$16 sps:$4 sm:$0xff]  }
 0x544   : > { %14466 = vmatpush2.bf16.msra.mxu0 %v20150_v35 }
 0x545   : > { %14507 = vmatpush2.bf16.msra.mxu1 %v20153_v15  ;;  %14467 = vmatprep.subr.bf16.mxu0 %v20158_v48  ;;  %v20192_v15 = vld [vmem:[%s21620_s30 + $0x10a8] ss:$16 sps:$4 sm:$0xff]  }
 0x546   : > { %14508 = vmatprep.subr.bf16.mxu1 %v20161_v52  ;;  %v20195_v48 = vld [vmem:[%s21620_s30 + $0x12a8] ss:$16 sps:$4 sm:$0xff]  }
 0x548   : > { %14468 = vmatpush2.bf16.msra.mxu0 %v20156_v9 }
 0x549   : > { %14509 = vmatpush2.bf16.msra.mxu1 %v20159_v55  ;;  %14469 = vmatprep.subr.bf16.mxu0 %v20164_v63  ;;  %v20200_v55 = vld [vmem:[%s21620_s30 + $0x108c] ss:$16 sps:$4 sm:$0xff]   ;;  %v20201_v63 = vld [vmem:[%s21620_s30 + $0x1288] ss:$16 sps:$4 sm:$0xff]  }
 0x54a   : > { %14510 = vmatprep.subr.bf16.mxu1 %v20167_v43  ;;  %v20206_v43 = vld [vmem:[%s21620_s30 + $0x106c] ss:$16 sps:$4 sm:$0xff]  }
 0x54c   : > { %14470 = vmatpush2.bf16.msra.mxu0 %v20162_v28  ;;  %v20209_v28 = vld [vmem:[%s21620_s30 + $0x126c] ss:$16 sps:$4 sm:$0xff]  }
 0x54d   : > { %14511 = vmatpush2.bf16.msra.mxu1 %v20165_v0  ;;  %14471 = vmatprep.subr.bf16.mxu0 %v20170_v8  ;;  %v20204_v0 = vld [vmem:[%s21620_s30 + $0x1068] ss:$16 sps:$4 sm:$0xff]  }
 0x54e   : > { %14512 = vmatprep.subr.bf16.mxu1 %v20173_v34  ;;  %v20207_v8 = vld [vmem:[%s21620_s30 + $0x1268] ss:$16 sps:$4 sm:$0xff]   ;;  %v20212_v34 = vld [vmem:[%s21620_s30 + $0x104c] ss:$16 sps:$4 sm:$0xff]  }
 0x550   : > { %14472 = vmatpush2.bf16.msra.mxu0 %v20168_v20  ;;  %v20215_v20 = vld [vmem:[%s21620_s30 + $0x124c] ss:$16 sps:$4 sm:$0xff]  }
 0x551   : > { %14513 = vmatpush2.bf16.msra.mxu1 %v20171_v4  ;;  %14473 = vmatprep.subr.bf16.mxu0 %v20176_v14  ;;  %v20210_v4 = vld [vmem:[%s21620_s30 + $0x1048] ss:$16 sps:$4 sm:$0xff]  }
 0x552   : > { %14514 = vmatprep.subr.bf16.mxu1 %v20179_v17  ;;  %v20213_v14 = vld [vmem:[%s21620_s30 + $0x1248] ss:$16 sps:$4 sm:$0xff]   ;;  %v20218_v17 = vld [vmem:[%s21620_s30 + $0x102c] ss:$16 sps:$4 sm:$0xff]  }
 0x554   : > { %14474 = vmatpush2.bf16.msra.mxu0 %v20174_v18  ;;  %v20221_v18 = vld [vmem:[%s21620_s30 + $0x122c] ss:$16 sps:$4 sm:$0xff]  }
 0x555   : > { %14515 = vmatpush2.bf16.msra.mxu1 %v20177_v29  ;;  %14525 = vmatprep.subr.bf16.mxu0 %v20182_v12  ;;  %v20216_v29 = vld [vmem:[%s21620_s30 + $0x1028] ss:$16 sps:$4 sm:$0xff]  }
 0x556   : > { %14566 = vmatprep.subr.bf16.mxu1 %v20185_v16  ;;  %v20219_v12 = vld [vmem:[%s21620_s30 + $0x1228] ss:$16 sps:$4 sm:$0xff]   ;;  %v20224_v16 = vld [vmem:[%s21620_s30 + $0x100c] ss:$16 sps:$4 sm:$0xff]  }
 0x557   : > { %v14231_v19 = vpop.f32.mrf.mxu0  ;;  %14476 = vmatmul.mubr.bf16.vlgmr.msra.gmra.mxu0 %v21982_v60 }
 0x558   : > { %v14272_v37 = vpop.f32.mrf.mxu1  ;;  %14517 = vmatmul.mubr.bf16.vlgmr.msra.gmra.mxu1 %v21986_v61  ;;  %14526 = vmatpush1.bf16.msra.mxu0 %v20180_v31  ;;  %v20227_v31 = vld [vmem:[%s21620_s30 + $0x120c] ss:$16 sps:$4 sm:$0xff]  }
 0x559   : > { %v23439_v25 = vadd.f32 %v14272_v37, %v14231_v19  ;;  %14567 = vmatpush1.bf16.msra.mxu1 %v20183_v39  ;;  %v14233_v44 = vpop.f32.mrf.mxu0  ;;  %14527 = vmatprep.subr.bf16.mxu0 %v20188_v40  ;;  %v20222_v39 = vld [vmem:[%s21620_s30 + $0x1008] ss:$16 sps:$4 sm:$0xff]   ;;  %v20233_v19 = vld [vmem:[%s21620_s30 + $0x13ec] ss:$16 sps:$4 sm:$0xff]  }
 0x55a   : > { %v14274_v22 = vpop.f32.mrf.mxu1  ;;  %14568 = vmatprep.subr.bf16.mxu1 %v20191_v7  ;;  %14557 = vmatprep.mubr.bf16.mxu0 %v21997_v41  ;;  %v20203_v41 = vld [vmem:[%s21620_s30 + $0x128c] ss:$16 sps:$4 sm:$0xff]   ;;  %v20225_v40 = vld [vmem:[%s21620_s30 + $0x1208] ss:$16 sps:$4 sm:$0xff]  }
 0x55b   : > { %v23445_v35 = vadd.f32 %v14274_v22, %v14233_v44  ;;  %14598 = vmatprep.mubr.bf16.mxu1 %v22001_v42  ;;  %v14235_v60 = vpop.f32.mrf.mxu0  ;;  %v20198_v42 = vld [vmem:[%s21620_s30 + $0x1088] ss:$16 sps:$4 sm:$0xff]   ;;  %v20230_v7 = vld [vmem:[%s21620_s30 + $0x11ec] ss:$16 sps:$4 sm:$0xff]  }
 0x55c   : > { %v14276_v61 = vpop.f32.mrf.mxu1  ;;  %14528 = vmatpush1.bf16.msra.mxu0 %v20186_v26  ;;  %v20228_v37 = vld [vmem:[%s21620_s30 + $0x11e8] ss:$16 sps:$4 sm:$0xff]   ;;  %v20239_v44 = vld [vmem:[%s21620_s30 + $0x13cc] ss:$16 sps:$4 sm:$0xff]  }
 0x55d   : > { %14569 = vmatpush1.bf16.msra.mxu1 %v20189_v38  ;;  %v14236_v52 = vpop.f32.mrf.mxu0  ;;  %14529 = vmatprep.subr.bf16.mxu0 %v20194_v23  ;;  %v20231_v26 = vld [vmem:[%s21620_s30 + $0x13e8] ss:$16 sps:$4 sm:$0xff]   ;;  %v20236_v38 = vld [vmem:[%s21620_s30 + $0x11cc] ss:$16 sps:$4 sm:$0xff]  }
 0x55e   : > { %v14277_v9 = vpop.f32.mrf.mxu1  ;;  %14570 = vmatprep.subr.bf16.mxu1 %v20197_v24  ;;  %v20234_v22 = vld [vmem:[%s21620_s30 + $0x11c8] ss:$16 sps:$4 sm:$0xff]   ;;  %v20242_v24 = vld [vmem:[%s21620_s30 + $0x11ac] ss:$16 sps:$4 sm:$0xff]  }
 0x55f   : > { %v20237_v23 = vld [vmem:[%s21620_s30 + $0x13c8] ss:$16 sps:$4 sm:$0xff]   ;;  %v20245_v60 = vld [vmem:[%s21620_s30 + $0x13ac] ss:$16 sps:$4 sm:$0xff]  }
 0x560   : > { %14530 = vmatpush1.bf16.msra.mxu0 %v20192_v15  ;;  %v20240_v61 = vld [vmem:[%s21620_s30 + $0x11a8] ss:$16 sps:$4 sm:$0xff]   ;;  %v20251_v52 = vld [vmem:[%s21620_s30 + $0x138c] ss:$16 sps:$4 sm:$0xff]  }
 0x561   : > { %14571 = vmatpush1.bf16.msra.mxu1 %v20195_v48  ;;  %14531 = vmatprep.subr.bf16.mxu0 %v20200_v55  ;;  %v20243_v15 = vld [vmem:[%s21620_s30 + $0x13a8] ss:$16 sps:$4 sm:$0xff]   ;;  %v20248_v48 = vld [vmem:[%s21620_s30 + $0x118c] ss:$16 sps:$4 sm:$0xff]  }
 0x562   : > { %14572 = vmatprep.subr.bf16.mxu1 %v20203_v41  ;;  %v20246_v9 = vld [vmem:[%s21620_s30 + $0x1188] ss:$16 sps:$4 sm:$0xff]   ;;  %v20254_v41 = vld [vmem:[%s21620_s30 + $0x116c] ss:$16 sps:$4 sm:$0xff]  }
 0x563   : > { %v20249_v55 = vld [vmem:[%s21620_s30 + $0x1388] ss:$16 sps:$4 sm:$0xff]  }
 0x564   : > { %14532 = vmatpush1.bf16.msra.mxu0 %v20198_v42  ;;  %v20257_v42 = vld [vmem:[%s21620_s30 + $0x136c] ss:$16 sps:$4 sm:$0xff]  }
 0x565   : > { %14573 = vmatpush1.bf16.msra.mxu1 %v20201_v63  ;;  %14533 = vmatprep.subr.bf16.mxu0 %v20206_v43  ;;  %v20252_v63 = vld [vmem:[%s21620_s30 + $0x1168] ss:$16 sps:$4 sm:$0xff]  }
 0x566   : > { %14574 = vmatprep.subr.bf16.mxu1 %v20209_v28  ;;  %v20255_v43 = vld [vmem:[%s21620_s30 + $0x1368] ss:$16 sps:$4 sm:$0xff]   ;;  %v20260_v28 = vld [vmem:[%s21620_s30 + $0x114c] ss:$16 sps:$4 sm:$0xff]  }
 0x568   : > { %14534 = vmatpush1.bf16.msra.mxu0 %v20204_v0  ;;  %v20263_v0 = vld [vmem:[%s21620_s30 + $0x134c] ss:$16 sps:$4 sm:$0xff]  }
 0x569   : > { %14575 = vmatpush1.bf16.msra.mxu1 %v20207_v8  ;;  %14535 = vmatprep.subr.bf16.mxu0 %v20212_v34  ;;  %v20258_v8 = vld [vmem:[%s21620_s30 + $0x1148] ss:$16 sps:$4 sm:$0xff]  }
 0x56a   : > { %14576 = vmatprep.subr.bf16.mxu1 %v20215_v20  ;;  %v20261_v34 = vld [vmem:[%s21620_s30 + $0x1348] ss:$16 sps:$4 sm:$0xff]   ;;  %v20266_v20 = vld [vmem:[%s21620_s30 + $0x112c] ss:$16 sps:$4 sm:$0xff]  }
 0x56c   : > { %14536 = vmatpush1.bf16.msra.mxu0 %v20210_v4  ;;  %v20269_v4 = vld [vmem:[%s21620_s30 + $0x132c] ss:$16 sps:$4 sm:$0xff]  }
 0x56d   : > { %14577 = vmatpush1.bf16.msra.mxu1 %v20213_v14  ;;  %14537 = vmatprep.subr.bf16.mxu0 %v20218_v17  ;;  %v20264_v14 = vld [vmem:[%s21620_s30 + $0x1128] ss:$16 sps:$4 sm:$0xff]  }
 0x56e   : > { %14578 = vmatprep.subr.bf16.mxu1 %v20221_v18  ;;  %v20267_v17 = vld [vmem:[%s21620_s30 + $0x1328] ss:$16 sps:$4 sm:$0xff]   ;;  %v20272_v18 = vld [vmem:[%s21620_s30 + $0x110c] ss:$16 sps:$4 sm:$0xff]  }
 0x570   : > { %14538 = vmatpush1.bf16.msra.mxu0 %v20216_v29  ;;  %v20275_v29 = vld [vmem:[%s21620_s30 + $0x130c] ss:$16 sps:$4 sm:$0xff]  }
 0x571   : > { %14579 = vmatpush1.bf16.msra.mxu1 %v20219_v12  ;;  %14539 = vmatprep.subr.bf16.mxu0 %v20224_v16  ;;  %v20270_v12 = vld [vmem:[%s21620_s30 + $0x1108] ss:$16 sps:$4 sm:$0xff]  }
 0x572   : > { %14580 = vmatprep.subr.bf16.mxu1 %v20227_v31  ;;  %v20273_v16 = vld [vmem:[%s21620_s30 + $0x1308] ss:$16 sps:$4 sm:$0xff]   ;;  %v20278_v31 = vld [vmem:[%s21620_s30 + $0x14ec] ss:$16 sps:$4 sm:$0xff]  }
 0x574   : > { %14540 = vmatpush1.bf16.msra.mxu0 %v20222_v39  ;;  %v20281_v39 = vld [vmem:[%s21620_s30 + $0x16ec] ss:$16 sps:$4 sm:$0xff]  }
 0x575   : > { %14581 = vmatpush1.bf16.msra.mxu1 %v20225_v40  ;;  %14541 = vmatprep.subr.bf16.mxu0 %v20230_v7  ;;  %v20276_v40 = vld [vmem:[%s21620_s30 + $0x14e8] ss:$16 sps:$4 sm:$0xff]  }
 0x576   : > { %14582 = vmatprep.subr.bf16.mxu1 %v20233_v19  ;;  %v20279_v7 = vld [vmem:[%s21620_s30 + $0x16e8] ss:$16 sps:$4 sm:$0xff]   ;;  %v20284_v19 = vld [vmem:[%s21620_s30 + $0x14cc] ss:$16 sps:$4 sm:$0xff]  }
 0x578   : > { %14542 = vmatpush2.bf16.msra.mxu0 %v20228_v37  ;;  %v20287_v37 = vld [vmem:[%s21620_s30 + $0x16cc] ss:$16 sps:$4 sm:$0xff]  }
 0x579   : > { %14583 = vmatpush2.bf16.msra.mxu1 %v20231_v26  ;;  %14543 = vmatprep.subr.bf16.mxu0 %v20236_v38 }
 0x57a   : > { %14584 = vmatprep.subr.bf16.mxu1 %v20239_v44 }
 0x57c   : > { %14544 = vmatpush2.bf16.msra.mxu0 %v20234_v22  ;;  %v20282_v22 = vld [vmem:[%s21620_s30 + $0x14c8] ss:$16 sps:$4 sm:$0xff]  }
 0x57d   : > { %14585 = vmatpush2.bf16.msra.mxu1 %v20237_v23  ;;  %14545 = vmatprep.subr.bf16.mxu0 %v20242_v24  ;;  %v20285_v23 = vld [vmem:[%s21620_s30 + $0x16c8] ss:$16 sps:$4 sm:$0xff]  }
 0x57e   : > { %14586 = vmatprep.subr.bf16.mxu1 %v20245_v60 }
 0x580   : > { %14546 = vmatpush2.bf16.msra.mxu0 %v20240_v61  ;;  %v20290_v61 = vld [vmem:[%s21620_s30 + $0x14ac] ss:$16 sps:$4 sm:$0xff]  }
 0x581   : > { %14587 = vmatpush2.bf16.msra.mxu1 %v20243_v15  ;;  %14547 = vmatprep.subr.bf16.mxu0 %v20248_v48  ;;  %v20293_v15 = vld [vmem:[%s21620_s30 + $0x16ac] ss:$16 sps:$4 sm:$0xff]  }
 0x582   : > { %14588 = vmatprep.subr.bf16.mxu1 %v20251_v52 }
 0x584   : > { %14548 = vmatpush2.bf16.msra.mxu0 %v20246_v9  ;;  %v20288_v9 = vld [vmem:[%s21620_s30 + $0x14a8] ss:$16 sps:$4 sm:$0xff]  }
 0x585   : > { %14589 = vmatpush2.bf16.msra.mxu1 %v20249_v55  ;;  %14549 = vmatprep.subr.bf16.mxu0 %v20254_v41  ;;  %v20291_v55 = vld [vmem:[%s21620_s30 + $0x16a8] ss:$16 sps:$4 sm:$0xff]  }
 0x586   : > { %14590 = vmatprep.subr.bf16.mxu1 %v20257_v42 }
 0x588   : > { %14550 = vmatpush2.bf16.msra.mxu0 %v20252_v63  ;;  %v20297_v63 = vld [vmem:[%s21620_s30 + $0x1688] ss:$16 sps:$4 sm:$0xff]  }
 0x589   : > { %14591 = vmatpush2.bf16.msra.mxu1 %v20255_v43  ;;  %14551 = vmatprep.subr.bf16.mxu0 %v20260_v28  ;;  %v20302_v43 = vld [vmem:[%s21620_s30 + $0x146c] ss:$16 sps:$4 sm:$0xff]  }
 0x58a   : > { %14592 = vmatprep.subr.bf16.mxu1 %v20263_v0  ;;  %v20305_v28 = vld [vmem:[%s21620_s30 + $0x166c] ss:$16 sps:$4 sm:$0xff]   ;;  %v20300_v0 = vld [vmem:[%s21620_s30 + $0x1468] ss:$16 sps:$4 sm:$0xff]  }
 0x58c   : > { %14552 = vmatpush2.bf16.msra.mxu0 %v20258_v8  ;;  %v20303_v8 = vld [vmem:[%s21620_s30 + $0x1668] ss:$16 sps:$4 sm:$0xff]  }
 0x58d   : > { %14593 = vmatpush2.bf16.msra.mxu1 %v20261_v34  ;;  %14553 = vmatprep.subr.bf16.mxu0 %v20266_v20  ;;  %v20308_v34 = vld [vmem:[%s21620_s30 + $0x144c] ss:$16 sps:$4 sm:$0xff]  }
 0x58e   : > { %14594 = vmatprep.subr.bf16.mxu1 %v20269_v4  ;;  %v20311_v20 = vld [vmem:[%s21620_s30 + $0x164c] ss:$16 sps:$4 sm:$0xff]   ;;  %v20306_v4 = vld [vmem:[%s21620_s30 + $0x1448] ss:$16 sps:$4 sm:$0xff]  }
 0x590   : > { %14554 = vmatpush2.bf16.msra.mxu0 %v20264_v14  ;;  %v20309_v14 = vld [vmem:[%s21620_s30 + $0x1648] ss:$16 sps:$4 sm:$0xff]  }
 0x591   : > { %14595 = vmatpush2.bf16.msra.mxu1 %v20267_v17  ;;  %14555 = vmatprep.subr.bf16.mxu0 %v20272_v18  ;;  %v20314_v17 = vld [vmem:[%s21620_s30 + $0x142c] ss:$16 sps:$4 sm:$0xff]  }
 0x592   : > { %14596 = vmatprep.subr.bf16.mxu1 %v20275_v29  ;;  %v20317_v18 = vld [vmem:[%s21620_s30 + $0x162c] ss:$16 sps:$4 sm:$0xff]   ;;  %v20312_v29 = vld [vmem:[%s21620_s30 + $0x1428] ss:$16 sps:$4 sm:$0xff]  }
 0x594   : > { %14556 = vmatpush2.bf16.msra.mxu0 %v20270_v12  ;;  %v20315_v12 = vld [vmem:[%s21620_s30 + $0x1628] ss:$16 sps:$4 sm:$0xff]  }
 0x595   : > { %14597 = vmatpush2.bf16.msra.mxu1 %v20273_v16  ;;  %14607 = vmatprep.subr.bf16.mxu0 %v20278_v31  ;;  %v20320_v16 = vld [vmem:[%s21620_s30 + $0x140c] ss:$16 sps:$4 sm:$0xff]  }
 0x596   : > { %14648 = vmatprep.subr.bf16.mxu1 %v20281_v39  ;;  %v20323_v31 = vld [vmem:[%s21620_s30 + $0x160c] ss:$16 sps:$4 sm:$0xff]   ;;  %v20318_v39 = vld [vmem:[%s21620_s30 + $0x1408] ss:$16 sps:$4 sm:$0xff]  }
 0x597   : > { %v14313_v26 = vpop.f32.mrf.mxu0  ;;  %14558 = vmatmul.mubr.bf16.vlgmr.msra.gmra.mxu0 %v22075_v47 }
 0x598   : > { %v14354_v38 = vpop.f32.mrf.mxu1  ;;  %14599 = vmatmul.mubr.bf16.vlgmr.msra.gmra.mxu1 %v22079_v49  ;;  %v14314_v44 = vadd.f32 %v14313_v26, %v23439_v25  ;;  %14608 = vmatpush1.bf16.msra.mxu0 %v20276_v40  ;;  %v20321_v40 = vld [vmem:[%s21620_s30 + $0x1608] ss:$16 sps:$4 sm:$0xff]  }
 0x599   : > { %14649 = vmatpush1.bf16.msra.mxu1 %v20279_v7  ;;  %v14315_v24 = vpop.f32.mrf.mxu0  ;;  %14609 = vmatprep.subr.bf16.mxu0 %v20284_v19  ;;  %v20326_v7 = vld [vmem:[%s21620_s30 + $0x15ec] ss:$16 sps:$4 sm:$0xff]   ;;  %v20327_v26 = vld [vmem:[%s21620_s30 + $0x17e8] ss:$16 sps:$4 sm:$0xff]  }
 0x59a   : > { %v14356_v60 = vpop.f32.mrf.mxu1  ;;  %14650 = vmatprep.subr.bf16.mxu1 %v20287_v37  ;;  %v23516_v48 = vadd.f32 %v14354_v38, %v14314_v44  ;;  %v14316_v47 = vadd.f32 %v14315_v24, %v23445_v35  ;;  %14639 = vmatprep.mubr.bf16.mxu0 %v22093_v59  ;;  %v20296_v59 = vld [vmem:[%s21620_s30 + $0x148c] ss:$16 sps:$4 sm:$0xff]   ;;  %v20294_v35 = vld [vmem:[%s21620_s30 + $0x1488] ss:$16 sps:$4 sm:$0xff]  }
 0x59b   : > { %14680 = vmatprep.mubr.bf16.mxu1 %v22097_v62  ;;  %v14317_v49 = vpop.f32.mrf.mxu0  ;;  %v20299_v62 = vld [vmem:[%s21620_s30 + $0x168c] ss:$16 sps:$4 sm:$0xff]   ;;  %v20324_v37 = vld [vmem:[%s21620_s30 + $0x15e8] ss:$16 sps:$4 sm:$0xff]  }
 0x59c   : > { %v14358_v25 = vpop.f32.mrf.mxu1  ;;  %v23521_v52 = vadd.f32 %v14356_v60, %v14316_v47  ;;  %14610 = vmatpush1.bf16.msra.mxu0 %v20282_v22  ;;  %v20329_v19 = vld [vmem:[%s21620_s30 + $0x17ec] ss:$16 sps:$4 sm:$0xff]   ;;  %v20330_v22 = vld [vmem:[%s21620_s30 + $0x15c8] ss:$16 sps:$4 sm:$0xff]  }
 0x59d   : > { %14651 = vmatpush1.bf16.msra.mxu1 %v20285_v23  ;;  %v14318_v41 = vpop.f32.mrf.mxu0  ;;  %14611 = vmatprep.subr.bf16.mxu0 %v20290_v61  ;;  %v20332_v38 = vld [vmem:[%s21620_s30 + $0x15cc] ss:$16 sps:$4 sm:$0xff]   ;;  %v20333_v23 = vld [vmem:[%s21620_s30 + $0x17c8] ss:$16 sps:$4 sm:$0xff]  }
 0x59e   : > { %v14359_v42 = vpop.f32.mrf.mxu1  ;;  %14652 = vmatprep.subr.bf16.mxu1 %v20293_v15  ;;  %v20335_v44 = vld [vmem:[%s21620_s30 + $0x17cc] ss:$16 sps:$4 sm:$0xff]   ;;  %v20336_v61 = vld [vmem:[%s21620_s30 + $0x15a8] ss:$16 sps:$4 sm:$0xff]  }
 0x59f   : > { %v20338_v24 = vld [vmem:[%s21620_s30 + $0x15ac] ss:$16 sps:$4 sm:$0xff]   ;;  %v20339_v15 = vld [vmem:[%s21620_s30 + $0x17a8] ss:$16 sps:$4 sm:$0xff]  }
 0x5a0   : > { %14612 = vmatpush1.bf16.msra.mxu0 %v20288_v9  ;;  %v20341_v60 = vld [vmem:[%s21620_s30 + $0x17ac] ss:$16 sps:$4 sm:$0xff]   ;;  %v20342_v25 = vld [vmem:[%s21620_s30 + $0x1588] ss:$16 sps:$4 sm:$0xff]  }
 0x5a1   : > { %14653 = vmatpush1.bf16.msra.mxu1 %v20291_v55  ;;  %14613 = vmatprep.subr.bf16.mxu0 %v20296_v59  ;;  %v20344_v47 = vld [vmem:[%s21620_s30 + $0x158c] ss:$16 sps:$4 sm:$0xff]   ;;  %v20345_v9 = vld [vmem:[%s21620_s30 + $0x1788] ss:$16 sps:$4 sm:$0xff]  }
 0x5a2   : > { %14654 = vmatprep.subr.bf16.mxu1 %v20299_v62  ;;  %v20347_v49 = vld [vmem:[%s21620_s30 + $0x178c] ss:$16 sps:$4 sm:$0xff]   ;;  %v20348_v42 = vld [vmem:[%s21620_s30 + $0x1568] ss:$16 sps:$4 sm:$0xff]  }
 0x5a3   : > { %v20350_v55 = vld [vmem:[%s21620_s30 + $0x156c] ss:$16 sps:$4 sm:$0xff]   ;;  %v20351_v59 = vld [vmem:[%s21620_s30 + $0x1768] ss:$16 sps:$4 sm:$0xff]  }
 0x5a4   : > { %14614 = vmatpush1.bf16.msra.mxu0 %v20294_v35  ;;  %v20353_v41 = vld [vmem:[%s21620_s30 + $0x176c] ss:$16 sps:$4 sm:$0xff]  }
 0x5a5   : > { %14655 = vmatpush1.bf16.msra.mxu1 %v20297_v63  ;;  %14615 = vmatprep.subr.bf16.mxu0 %v20302_v43  ;;  %v20356_v62 = vld [vmem:[%s21620_s30 + $0x154c] ss:$16 sps:$4 sm:$0xff]   ;;  %v20354_v63 = vld [vmem:[%s21620_s30 + $0x1548] ss:$16 sps:$4 sm:$0xff]  }
 0x5a6   : > { %14656 = vmatprep.subr.bf16.mxu1 %v20305_v28  ;;  %v20359_v35 = vld [vmem:[%s21620_s30 + $0x174c] ss:$16 sps:$4 sm:$0xff]   ;;  %v20357_v43 = vld [vmem:[%s21620_s30 + $0x1748] ss:$16 sps:$4 sm:$0xff]  }
 0x5a7   : > { %v20362_v28 = vld [vmem:[%s21620_s30 + $0x152c] ss:$16 sps:$4 sm:$0xff]  }
 0x5a8   : > { %14616 = vmatpush1.bf16.msra.mxu0 %v20300_v0  ;;  %v20365_v0 = vld [vmem:[%s21620_s30 + $0x172c] ss:$16 sps:$4 sm:$0xff]  }
 0x5a9   : > { %14657 = vmatpush1.bf16.msra.mxu1 %v20303_v8  ;;  %14617 = vmatprep.subr.bf16.mxu0 %v20308_v34  ;;  %v20360_v8 = vld [vmem:[%s21620_s30 + $0x1528] ss:$16 sps:$4 sm:$0xff]  }
 0x5aa   : > { %14658 = vmatprep.subr.bf16.mxu1 %v20311_v20  ;;  %v20363_v34 = vld [vmem:[%s21620_s30 + $0x1728] ss:$16 sps:$4 sm:$0xff]   ;;  %v20368_v20 = vld [vmem:[%s21620_s30 + $0x150c] ss:$16 sps:$4 sm:$0xff]  }
 0x5ac   : > { %14618 = vmatpush1.bf16.msra.mxu0 %v20306_v4  ;;  %v20371_v4 = vld [vmem:[%s21620_s30 + $0x170c] ss:$16 sps:$4 sm:$0xff]  }
 0x5ad   : > { %14659 = vmatpush1.bf16.msra.mxu1 %v20309_v14  ;;  %14619 = vmatprep.subr.bf16.mxu0 %v20314_v17  ;;  %v20366_v14 = vld [vmem:[%s21620_s30 + $0x1508] ss:$16 sps:$4 sm:$0xff]  }
 0x5ae   : > { %14660 = vmatprep.subr.bf16.mxu1 %v20317_v18  ;;  %v20369_v17 = vld [vmem:[%s21620_s30 + $0x1708] ss:$16 sps:$4 sm:$0xff]   ;;  %v20374_v18 = vld [vmem:[%s21620_s30 + $0x18ec] ss:$16 sps:$4 sm:$0xff]  }
 0x5b0   : > { %14620 = vmatpush1.bf16.msra.mxu0 %v20312_v29  ;;  %v20377_v29 = vld [vmem:[%s21620_s30 + $0x1aec] ss:$16 sps:$4 sm:$0xff]  }
 0x5b1   : > { %14661 = vmatpush1.bf16.msra.mxu1 %v20315_v12  ;;  %14621 = vmatprep.subr.bf16.mxu0 %v20320_v16  ;;  %v20372_v12 = vld [vmem:[%s21620_s30 + $0x18e8] ss:$16 sps:$4 sm:$0xff]  }
 0x5b2   : > { %14662 = vmatprep.subr.bf16.mxu1 %v20323_v31  ;;  %v20375_v16 = vld [vmem:[%s21620_s30 + $0x1ae8] ss:$16 sps:$4 sm:$0xff]   ;;  %v20380_v31 = vld [vmem:[%s21620_s30 + $0x18cc] ss:$16 sps:$4 sm:$0xff]  }
 0x5b4   : > { %14622 = vmatpush1.bf16.msra.mxu0 %v20318_v39  ;;  %v20383_v39 = vld [vmem:[%s21620_s30 + $0x1acc] ss:$16 sps:$4 sm:$0xff]  }
 0x5b5   : > { %14663 = vmatpush1.bf16.msra.mxu1 %v20321_v40  ;;  %14623 = vmatprep.subr.bf16.mxu0 %v20326_v7 }
 0x5b6   : > { %14664 = vmatprep.subr.bf16.mxu1 %v20329_v19 }
 0x5b8   : > { %14624 = vmatpush2.bf16.msra.mxu0 %v20324_v37  ;;  %v20378_v37 = vld [vmem:[%s21620_s30 + $0x18c8] ss:$16 sps:$4 sm:$0xff]  }
 0x5b9   : > { %14665 = vmatpush2.bf16.msra.mxu1 %v20327_v26  ;;  %14625 = vmatprep.subr.bf16.mxu0 %v20332_v38  ;;  %v20381_v26 = vld [vmem:[%s21620_s30 + $0x1ac8] ss:$16 sps:$4 sm:$0xff]  }
 0x5ba   : > { %14666 = vmatprep.subr.bf16.mxu1 %v20335_v44 }
 0x5bc   : > { %14626 = vmatpush2.bf16.msra.mxu0 %v20330_v22  ;;  %v20386_v22 = vld [vmem:[%s21620_s30 + $0x18ac] ss:$16 sps:$4 sm:$0xff]  }
 0x5bd   : > { %14667 = vmatpush2.bf16.msra.mxu1 %v20333_v23  ;;  %14627 = vmatprep.subr.bf16.mxu0 %v20338_v24  ;;  %v20389_v23 = vld [vmem:[%s21620_s30 + $0x1aac] ss:$16 sps:$4 sm:$0xff]  }
 0x5be   : > { %14668 = vmatprep.subr.bf16.mxu1 %v20341_v60 }
 0x5c0   : > { %14628 = vmatpush2.bf16.msra.mxu0 %v20336_v61  ;;  %v20384_v61 = vld [vmem:[%s21620_s30 + $0x18a8] ss:$16 sps:$4 sm:$0xff]  }
 0x5c1   : > { %14669 = vmatpush2.bf16.msra.mxu1 %v20339_v15  ;;  %14629 = vmatprep.subr.bf16.mxu0 %v20344_v47  ;;  %v20387_v15 = vld [vmem:[%s21620_s30 + $0x1aa8] ss:$16 sps:$4 sm:$0xff]  }
 0x5c2   : > { %14670 = vmatprep.subr.bf16.mxu1 %v20347_v49 }
 0x5c4   : > { %14630 = vmatpush2.bf16.msra.mxu0 %v20342_v25  ;;  %v20393_v25 = vld [vmem:[%s21620_s30 + $0x1a88] ss:$16 sps:$4 sm:$0xff]  }
 0x5c5   : > { %14671 = vmatpush2.bf16.msra.mxu1 %v20345_v9  ;;  %14631 = vmatprep.subr.bf16.mxu0 %v20350_v55  ;;  %v20398_v9 = vld [vmem:[%s21620_s30 + $0x186c] ss:$16 sps:$4 sm:$0xff]  }
 0x5c6   : > { %14672 = vmatprep.subr.bf16.mxu1 %v20353_v41  ;;  %v20401_v55 = vld [vmem:[%s21620_s30 + $0x1a6c] ss:$16 sps:$4 sm:$0xff]   ;;  %v20396_v41 = vld [vmem:[%s21620_s30 + $0x1868] ss:$16 sps:$4 sm:$0xff]  }
 0x5c8   : > { %14632 = vmatpush2.bf16.msra.mxu0 %v20348_v42  ;;  %v20399_v42 = vld [vmem:[%s21620_s30 + $0x1a68] ss:$16 sps:$4 sm:$0xff]  }
 0x5c9   : > { %14673 = vmatpush2.bf16.msra.mxu1 %v20351_v59  ;;  %14633 = vmatprep.subr.bf16.mxu0 %v20356_v62  ;;  %v20404_v59 = vld [vmem:[%s21620_s30 + $0x184c] ss:$16 sps:$4 sm:$0xff]  }
 0x5ca   : > { %14674 = vmatprep.subr.bf16.mxu1 %v20359_v35  ;;  %v20407_v62 = vld [vmem:[%s21620_s30 + $0x1a4c] ss:$16 sps:$4 sm:$0xff]   ;;  %v20402_v35 = vld [vmem:[%s21620_s30 + $0x1848] ss:$16 sps:$4 sm:$0xff]  }
 0x5cc   : > { %14634 = vmatpush2.bf16.msra.mxu0 %v20354_v63  ;;  %v20405_v63 = vld [vmem:[%s21620_s30 + $0x1a48] ss:$16 sps:$4 sm:$0xff]  }
 0x5cd   : > { %14675 = vmatpush2.bf16.msra.mxu1 %v20357_v43  ;;  %14635 = vmatprep.subr.bf16.mxu0 %v20362_v28  ;;  %v20410_v43 = vld [vmem:[%s21620_s30 + $0x182c] ss:$16 sps:$4 sm:$0xff]  }
 0x5ce   : > { %14676 = vmatprep.subr.bf16.mxu1 %v20365_v0  ;;  %v20413_v28 = vld [vmem:[%s21620_s30 + $0x1a2c] ss:$16 sps:$4 sm:$0xff]   ;;  %v20408_v0 = vld [vmem:[%s21620_s30 + $0x1828] ss:$16 sps:$4 sm:$0xff]  }
 0x5d0   : > { %14636 = vmatpush2.bf16.msra.mxu0 %v20360_v8  ;;  %v20411_v8 = vld [vmem:[%s21620_s30 + $0x1a28] ss:$16 sps:$4 sm:$0xff]  }
 0x5d1   : > { %14677 = vmatpush2.bf16.msra.mxu1 %v20363_v34  ;;  %14637 = vmatprep.subr.bf16.mxu0 %v20368_v20  ;;  %v20416_v34 = vld [vmem:[%s21620_s30 + $0x180c] ss:$16 sps:$4 sm:$0xff]  }
 0x5d2   : > { %14678 = vmatprep.subr.bf16.mxu1 %v20371_v4  ;;  %v20419_v20 = vld [vmem:[%s21620_s30 + $0x1a0c] ss:$16 sps:$4 sm:$0xff]   ;;  %v20414_v4 = vld [vmem:[%s21620_s30 + $0x1808] ss:$16 sps:$4 sm:$0xff]  }
 0x5d4   : > { %14638 = vmatpush2.bf16.msra.mxu0 %v20366_v14  ;;  %v20417_v14 = vld [vmem:[%s21620_s30 + $0x1a08] ss:$16 sps:$4 sm:$0xff]  }
 0x5d5   : > { %14679 = vmatpush2.bf16.msra.mxu1 %v20369_v17  ;;  %14689 = vmatprep.subr.bf16.mxu0 %v20374_v18  ;;  %v20422_v17 = vld [vmem:[%s21620_s30 + $0x19ec] ss:$16 sps:$4 sm:$0xff]  }
 0x5d6   : > { %14730 = vmatprep.subr.bf16.mxu1 %v20377_v29  ;;  %v20425_v18 = vld [vmem:[%s21620_s30 + $0x1bec] ss:$16 sps:$4 sm:$0xff]   ;;  %v20420_v29 = vld [vmem:[%s21620_s30 + $0x19e8] ss:$16 sps:$4 sm:$0xff]  }
 0x5d7   : > { %v14395_v40 = vpop.f32.mrf.mxu0  ;;  %14640 = vmatmul.mubr.bf16.vlgmr.msra.gmra.mxu0 %v22171_v45 }
 0x5d8   : > { %v14436_v7 = vpop.f32.mrf.mxu1  ;;  %14681 = vmatmul.mubr.bf16.vlgmr.msra.gmra.mxu1 %v22175_v46  ;;  %v14396_v19 = vadd.f32 %v14395_v40, %v23516_v48  ;;  %14690 = vmatpush1.bf16.msra.mxu0 %v20372_v12  ;;  %v20423_v12 = vld [vmem:[%s21620_s30 + $0x1be8] ss:$16 sps:$4 sm:$0xff]  }
 0x5d9   : > { %14731 = vmatpush1.bf16.msra.mxu1 %v20375_v16  ;;  %v14397_v38 = vpop.f32.mrf.mxu0  ;;  %14691 = vmatprep.subr.bf16.mxu0 %v20380_v31  ;;  %v20428_v16 = vld [vmem:[%s21620_s30 + $0x19cc] ss:$16 sps:$4 sm:$0xff]   ;;  %v20429_v40 = vld [vmem:[%s21620_s30 + $0x1bc8] ss:$16 sps:$4 sm:$0xff]  }
 0x5da   : > { %v14438_v44 = vpop.f32.mrf.mxu1  ;;  %14732 = vmatprep.subr.bf16.mxu1 %v20383_v39  ;;  %v23590_v24 = vadd.f32 %v14436_v7, %v14396_v19  ;;  %v14398_v45 = vadd.f32 %v14397_v38, %v23521_v52  ;;  %14721 = vmatprep.mubr.bf16.mxu0 %v22189_v50  ;;  %v20392_v50 = vld [vmem:[%s21620_s30 + $0x188c] ss:$16 sps:$4 sm:$0xff]   ;;  %v20390_v52 = vld [vmem:[%s21620_s30 + $0x1888] ss:$16 sps:$4 sm:$0xff]  }
 0x5db   : > { %14762 = vmatprep.mubr.bf16.mxu1 %v22193_v51  ;;  %v14399_v46 = vpop.f32.mrf.mxu0  ;;  %v20395_v51 = vld [vmem:[%s21620_s30 + $0x1a8c] ss:$16 sps:$4 sm:$0xff]   ;;  %v20426_v39 = vld [vmem:[%s21620_s30 + $0x19c8] ss:$16 sps:$4 sm:$0xff]  }
 0x5dc   : > { %v14440_v48 = vpop.f32.mrf.mxu1  ;;  %v23595_v60 = vadd.f32 %v14438_v44, %v14398_v45  ;;  %14692 = vmatpush1.bf16.msra.mxu0 %v20378_v37  ;;  %v20431_v31 = vld [vmem:[%s21620_s30 + $0x1bcc] ss:$16 sps:$4 sm:$0xff]   ;;  %v20432_v37 = vld [vmem:[%s21620_s30 + $0x19a8] ss:$16 sps:$4 sm:$0xff]  }
 0x5dd   : > { %14733 = vmatpush1.bf16.msra.mxu1 %v20381_v26  ;;  %v14400_v47 = vpop.f32.mrf.mxu0  ;;  %14693 = vmatprep.subr.bf16.mxu0 %v20386_v22  ;;  %v20434_v7 = vld [vmem:[%s21620_s30 + $0x19ac] ss:$16 sps:$4 sm:$0xff]   ;;  %v20435_v26 = vld [vmem:[%s21620_s30 + $0x1ba8] ss:$16 sps:$4 sm:$0xff]  }
 0x5de   : > { %v14441_v49 = vpop.f32.mrf.mxu1  ;;  %14734 = vmatprep.subr.bf16.mxu1 %v20389_v23  ;;  %v20437_v19 = vld [vmem:[%s21620_s30 + $0x1bac] ss:$16 sps:$4 sm:$0xff]   ;;  %v20438_v22 = vld [vmem:[%s21620_s30 + $0x1988] ss:$16 sps:$4 sm:$0xff]  }
 0x5df   : > { %v20440_v38 = vld [vmem:[%s21620_s30 + $0x198c] ss:$16 sps:$4 sm:$0xff]   ;;  %v20441_v23 = vld [vmem:[%s21620_s30 + $0x1b88] ss:$16 sps:$4 sm:$0xff]  }
 0x5e0   : > { %14694 = vmatpush1.bf16.msra.mxu0 %v20384_v61  ;;  %v20443_v44 = vld [vmem:[%s21620_s30 + $0x1b8c] ss:$16 sps:$4 sm:$0xff]   ;;  %v20444_v48 = vld [vmem:[%s21620_s30 + $0x1968] ss:$16 sps:$4 sm:$0xff]  }
 0x5e1   : > { %14735 = vmatpush1.bf16.msra.mxu1 %v20387_v15  ;;  %14695 = vmatprep.subr.bf16.mxu0 %v20392_v50  ;;  %v20446_v45 = vld [vmem:[%s21620_s30 + $0x196c] ss:$16 sps:$4 sm:$0xff]   ;;  %v20447_v61 = vld [vmem:[%s21620_s30 + $0x1b68] ss:$16 sps:$4 sm:$0xff]  }
 0x5e2   : > { %14736 = vmatprep.subr.bf16.mxu1 %v20395_v51  ;;  %v20449_v46 = vld [vmem:[%s21620_s30 + $0x1b6c] ss:$16 sps:$4 sm:$0xff]   ;;  %v20450_v49 = vld [vmem:[%s21620_s30 + $0x1948] ss:$16 sps:$4 sm:$0xff]  }
 0x5e3   : > { %v20452_v15 = vld [vmem:[%s21620_s30 + $0x194c] ss:$16 sps:$4 sm:$0xff]   ;;  %v20453_v50 = vld [vmem:[%s21620_s30 + $0x1b48] ss:$16 sps:$4 sm:$0xff]  }
 0x5e4   : > { %14696 = vmatpush1.bf16.msra.mxu0 %v20390_v52  ;;  %v20455_v47 = vld [vmem:[%s21620_s30 + $0x1b4c] ss:$16 sps:$4 sm:$0xff]  }
 0x5e5   : > { %14737 = vmatpush1.bf16.msra.mxu1 %v20393_v25  ;;  %14697 = vmatprep.subr.bf16.mxu0 %v20398_v9  ;;  %v20458_v51 = vld [vmem:[%s21620_s30 + $0x192c] ss:$16 sps:$4 sm:$0xff]   ;;  %v20456_v25 = vld [vmem:[%s21620_s30 + $0x1928] ss:$16 sps:$4 sm:$0xff]  }
 0x5e6   : > { %14738 = vmatprep.subr.bf16.mxu1 %v20401_v55  ;;  %v20461_v52 = vld [vmem:[%s21620_s30 + $0x1b2c] ss:$16 sps:$4 sm:$0xff]   ;;  %v20459_v9 = vld [vmem:[%s21620_s30 + $0x1b28] ss:$16 sps:$4 sm:$0xff]  }
 0x5e7   : > { %v20464_v55 = vld [vmem:[%s21620_s30 + $0x190c] ss:$16 sps:$4 sm:$0xff]  }
 0x5e8   : > { %14698 = vmatpush1.bf16.msra.mxu0 %v20396_v41  ;;  %v20467_v41 = vld [vmem:[%s21620_s30 + $0x1b0c] ss:$16 sps:$4 sm:$0xff]  }
 0x5e9   : > { %14739 = vmatpush1.bf16.msra.mxu1 %v20399_v42  ;;  %14699 = vmatprep.subr.bf16.mxu0 %v20404_v59  ;;  %v20462_v42 = vld [vmem:[%s21620_s30 + $0x1908] ss:$16 sps:$4 sm:$0xff]  }
 0x5ea   : > { %14740 = vmatprep.subr.bf16.mxu1 %v20407_v62  ;;  %v20465_v59 = vld [vmem:[%s21620_s30 + $0x1b08] ss:$16 sps:$4 sm:$0xff]   ;;  %v20470_v62 = vld [vmem:[%s21620_s30 + $0x1cec] ss:$16 sps:$4 sm:$0xff]  }
 0x5ec   : > { %14700 = vmatpush1.bf16.msra.mxu0 %v20402_v35  ;;  %v20473_v35 = vld [vmem:[%s21620_s30 + $0x1eec] ss:$16 sps:$4 sm:$0xff]  }
 0x5ed   : > { %14741 = vmatpush1.bf16.msra.mxu1 %v20405_v63  ;;  %14701 = vmatprep.subr.bf16.mxu0 %v20410_v43  ;;  %v20468_v63 = vld [vmem:[%s21620_s30 + $0x1ce8] ss:$16 sps:$4 sm:$0xff]  }
 0x5ee   : > { %14742 = vmatprep.subr.bf16.mxu1 %v20413_v28  ;;  %v20471_v43 = vld [vmem:[%s21620_s30 + $0x1ee8] ss:$16 sps:$4 sm:$0xff]   ;;  %v20476_v28 = vld [vmem:[%s21620_s30 + $0x1ccc] ss:$16 sps:$4 sm:$0xff]  }
 0x5f0   : > { %14702 = vmatpush1.bf16.msra.mxu0 %v20408_v0  ;;  %v20479_v0 = vld [vmem:[%s21620_s30 + $0x1ecc] ss:$16 sps:$4 sm:$0xff]  }
 0x5f1   : > { %14743 = vmatpush1.bf16.msra.mxu1 %v20411_v8  ;;  %14703 = vmatprep.subr.bf16.mxu0 %v20416_v34 }
 0x5f2   : > { %14744 = vmatprep.subr.bf16.mxu1 %v20419_v20 }
 0x5f4   : > { %14704 = vmatpush1.bf16.msra.mxu0 %v20414_v4  ;;  %v20474_v4 = vld [vmem:[%s21620_s30 + $0x1cc8] ss:$16 sps:$4 sm:$0xff]  }
 0x5f5   : > { %14745 = vmatpush1.bf16.msra.mxu1 %v20417_v14  ;;  %14705 = vmatprep.subr.bf16.mxu0 %v20422_v17  ;;  %v20477_v14 = vld [vmem:[%s21620_s30 + $0x1ec8] ss:$16 sps:$4 sm:$0xff]  }
 0x5f6   : > { %14746 = vmatprep.subr.bf16.mxu1 %v20425_v18 }
 0x5f8   : > { %14706 = vmatpush2.bf16.msra.mxu0 %v20420_v29  ;;  %v20482_v29 = vld [vmem:[%s21620_s30 + $0x1cac] ss:$16 sps:$4 sm:$0xff]  }
 0x5f9   : > { %14747 = vmatpush2.bf16.msra.mxu1 %v20423_v12  ;;  %14707 = vmatprep.subr.bf16.mxu0 %v20428_v16  ;;  %v20485_v12 = vld [vmem:[%s21620_s30 + $0x1eac] ss:$16 sps:$4 sm:$0xff]  }
 0x5fa   : > { %14748 = vmatprep.subr.bf16.mxu1 %v20431_v31 }
 0x5fc   : > { %14708 = vmatpush2.bf16.msra.mxu0 %v20426_v39  ;;  %v20480_v39 = vld [vmem:[%s21620_s30 + $0x1ca8] ss:$16 sps:$4 sm:$0xff]  }
 0x5fd   : > { %14749 = vmatpush2.bf16.msra.mxu1 %v20429_v40  ;;  %14709 = vmatprep.subr.bf16.mxu0 %v20434_v7  ;;  %v20483_v40 = vld [vmem:[%s21620_s30 + $0x1ea8] ss:$16 sps:$4 sm:$0xff]  }
 0x5fe   : > { %14750 = vmatprep.subr.bf16.mxu1 %v20437_v19 }
 0x600   : > { %14710 = vmatpush2.bf16.msra.mxu0 %v20432_v37  ;;  %v20489_v37 = vld [vmem:[%s21620_s30 + $0x1e88] ss:$16 sps:$4 sm:$0xff]  }
 0x601   : > { %14751 = vmatpush2.bf16.msra.mxu1 %v20435_v26  ;;  %14711 = vmatprep.subr.bf16.mxu0 %v20440_v38  ;;  %v20494_v26 = vld [vmem:[%s21620_s30 + $0x1c6c] ss:$16 sps:$4 sm:$0xff]  }
 0x602   : > { %14752 = vmatprep.subr.bf16.mxu1 %v20443_v44  ;;  %v20497_v38 = vld [vmem:[%s21620_s30 + $0x1e6c] ss:$16 sps:$4 sm:$0xff]   ;;  %v20492_v44 = vld [vmem:[%s21620_s30 + $0x1c68] ss:$16 sps:$4 sm:$0xff]  }
 0x604   : > { %14712 = vmatpush2.bf16.msra.mxu0 %v20438_v22  ;;  %v20495_v22 = vld [vmem:[%s21620_s30 + $0x1e68] ss:$16 sps:$4 sm:$0xff]  }
 0x605   : > { %14753 = vmatpush2.bf16.msra.mxu1 %v20441_v23  ;;  %14713 = vmatprep.subr.bf16.mxu0 %v20446_v45  ;;  %v20500_v23 = vld [vmem:[%s21620_s30 + $0x1c4c] ss:$16 sps:$4 sm:$0xff]  }
 0x606   : > { %14754 = vmatprep.subr.bf16.mxu1 %v20449_v46  ;;  %v20503_v45 = vld [vmem:[%s21620_s30 + $0x1e4c] ss:$16 sps:$4 sm:$0xff]   ;;  %v20498_v46 = vld [vmem:[%s21620_s30 + $0x1c48] ss:$16 sps:$4 sm:$0xff]  }
 0x608   : > { %14714 = vmatpush2.bf16.msra.mxu0 %v20444_v48  ;;  %v20501_v48 = vld [vmem:[%s21620_s30 + $0x1e48] ss:$16 sps:$4 sm:$0xff]  }
 0x609   : > { %14755 = vmatpush2.bf16.msra.mxu1 %v20447_v61  ;;  %14715 = vmatprep.subr.bf16.mxu0 %v20452_v15  ;;  %v20506_v61 = vld [vmem:[%s21620_s30 + $0x1c2c] ss:$16 sps:$4 sm:$0xff]  }
 0x60a   : > { %14756 = vmatprep.subr.bf16.mxu1 %v20455_v47  ;;  %v20509_v15 = vld [vmem:[%s21620_s30 + $0x1e2c] ss:$16 sps:$4 sm:$0xff]   ;;  %v20504_v47 = vld [vmem:[%s21620_s30 + $0x1c28] ss:$16 sps:$4 sm:$0xff]  }
 0x60c   : > { %14716 = vmatpush2.bf16.msra.mxu0 %v20450_v49  ;;  %v20507_v49 = vld [vmem:[%s21620_s30 + $0x1e28] ss:$16 sps:$4 sm:$0xff]  }
 0x60d   : > { %14757 = vmatpush2.bf16.msra.mxu1 %v20453_v50  ;;  %14717 = vmatprep.subr.bf16.mxu0 %v20458_v51  ;;  %v20512_v50 = vld [vmem:[%s21620_s30 + $0x1c0c] ss:$16 sps:$4 sm:$0xff]  }
 0x60e   : > { %14758 = vmatprep.subr.bf16.mxu1 %v20461_v52  ;;  %v20515_v51 = vld [vmem:[%s21620_s30 + $0x1e0c] ss:$16 sps:$4 sm:$0xff]   ;;  %v20510_v52 = vld [vmem:[%s21620_s30 + $0x1c08] ss:$16 sps:$4 sm:$0xff]  }
 0x610   : > { %14718 = vmatpush2.bf16.msra.mxu0 %v20456_v25  ;;  %v20513_v25 = vld [vmem:[%s21620_s30 + $0x1e08] ss:$16 sps:$4 sm:$0xff]  }
 0x611   : > { %14759 = vmatpush2.bf16.msra.mxu1 %v20459_v9  ;;  %14719 = vmatprep.subr.bf16.mxu0 %v20464_v55  ;;  %v20518_v9 = vld [vmem:[%s21620_s30 + $0x1dec] ss:$16 sps:$4 sm:$0xff]  }
 0x612   : > { %14760 = vmatprep.subr.bf16.mxu1 %v20467_v41  ;;  %v20521_v55 = vld [vmem:[%s21620_s30 + $0x1fec] ss:$16 sps:$4 sm:$0xff]   ;;  %v20516_v41 = vld [vmem:[%s21620_s30 + $0x1de8] ss:$16 sps:$4 sm:$0xff]  }
 0x614   : > { %14720 = vmatpush2.bf16.msra.mxu0 %v20462_v42  ;;  %v20519_v42 = vld [vmem:[%s21620_s30 + $0x1fe8] ss:$16 sps:$4 sm:$0xff]  }
 0x615   : > { %14761 = vmatpush2.bf16.msra.mxu1 %v20465_v59  ;;  %14771 = vmatprep.subr.bf16.mxu0 %v20470_v62  ;;  %v20524_v59 = vld [vmem:[%s21620_s30 + $0x1dcc] ss:$16 sps:$4 sm:$0xff]  }
 0x616   : > { %14812 = vmatprep.subr.bf16.mxu1 %v20473_v35  ;;  %v20527_v62 = vld [vmem:[%s21620_s30 + $0x1fcc] ss:$16 sps:$4 sm:$0xff]   ;;  %v20522_v35 = vld [vmem:[%s21620_s30 + $0x1dc8] ss:$16 sps:$4 sm:$0xff]  }
 0x617   : > { %v14477_v8 = vpop.f32.mrf.mxu0  ;;  %14722 = vmatmul.mubr.bf16.vlgmr.msra.gmra.mxu0 %v22267_v1 }
 0x618   : > { %v14518_v34 = vpop.f32.mrf.mxu1  ;;  %14763 = vmatmul.mubr.bf16.vlgmr.msra.gmra.mxu1 %v22271_v2  ;;  %v14478_v20 = vadd.f32 %v14477_v8, %v23590_v24  ;;  %14772 = vmatpush1.bf16.msra.mxu0 %v20468_v63  ;;  %v20525_v63 = vld [vmem:[%s21620_s30 + $0x1fc8] ss:$16 sps:$4 sm:$0xff]  }
 0x619   : > { %14813 = vmatpush1.bf16.msra.mxu1 %v20471_v43  ;;  %v14479_v17 = vpop.f32.mrf.mxu0  ;;  %14773 = vmatprep.subr.bf16.mxu0 %v20476_v28  ;;  %v20530_v43 = vld [vmem:[%s21620_s30 + $0x1dac] ss:$16 sps:$4 sm:$0xff]   ;;  %v20531_v8 = vld [vmem:[%s21620_s30 + $0x1fa8] ss:$16 sps:$4 sm:$0xff]  }
 0x61a   : > { %v14520_v18 = vpop.f32.mrf.mxu1  ;;  %14814 = vmatprep.subr.bf16.mxu1 %v20479_v0  ;;  %v23664_v16 = vadd.f32 %v14518_v34, %v14478_v20  ;;  %v14480_v1 = vadd.f32 %v14479_v17, %v23595_v60  ;;  %14803 = vmatprep.mubr.bf16.mxu0 %v22285_v53  ;;  %v20488_v53 = vld [vmem:[%s21620_s30 + $0x1c8c] ss:$16 sps:$4 sm:$0xff]   ;;  %v20486_v60 = vld [vmem:[%s21620_s30 + $0x1c88] ss:$16 sps:$4 sm:$0xff]  }
 0x61b   : > { %14844 = vmatprep.mubr.bf16.mxu1 %v22289_v54  ;;  %v14481_v2 = vpop.f32.mrf.mxu0  ;;  %v20491_v54 = vld [vmem:[%s21620_s30 + $0x1e8c] ss:$16 sps:$4 sm:$0xff]   ;;  %v20528_v0 = vld [vmem:[%s21620_s30 + $0x1da8] ss:$16 sps:$4 sm:$0xff]  }
 0x61c   : > { %v14522_v24 = vpop.f32.mrf.mxu1  ;;  %v23669_v31 = vadd.f32 %v14520_v18, %v14480_v1  ;;  %14774 = vmatpush1.bf16.msra.mxu0 %v20474_v4  ;;  %v20533_v28 = vld [vmem:[%s21620_s30 + $0x1fac] ss:$16 sps:$4 sm:$0xff]   ;;  %v20534_v4 = vld [vmem:[%s21620_s30 + $0x1d88] ss:$16 sps:$4 sm:$0xff]  }
 0x61d   : > { %14815 = vmatpush1.bf16.msra.mxu1 %v20477_v14  ;;  %v14482_v7 = vpop.f32.mrf.mxu0  ;;  %14775 = vmatprep.subr.bf16.mxu0 %v20482_v29  ;;  %v20536_v34 = vld [vmem:[%s21620_s30 + $0x1d8c] ss:$16 sps:$4 sm:$0xff]   ;;  %v20537_v14 = vld [vmem:[%s21620_s30 + $0x1f88] ss:$16 sps:$4 sm:$0xff]  }
 0x61e   : > { %v14523_v19 = vpop.f32.mrf.mxu1  ;;  %14816 = vmatprep.subr.bf16.mxu1 %v20485_v12  ;;  %v20539_v20 = vld [vmem:[%s21620_s30 + $0x1f8c] ss:$16 sps:$4 sm:$0xff]   ;;  %v20540_v29 = vld [vmem:[%s21620_s30 + $0x1d68] ss:$16 sps:$4 sm:$0xff]  }
 0x61f   : > { %v20542_v17 = vld [vmem:[%s21620_s30 + $0x1d6c] ss:$16 sps:$4 sm:$0xff]   ;;  %v20543_v12 = vld [vmem:[%s21620_s30 + $0x1f68] ss:$16 sps:$4 sm:$0xff]  }
 0x620   : > { %14776 = vmatpush1.bf16.msra.mxu0 %v20480_v39  ;;  %v20545_v18 = vld [vmem:[%s21620_s30 + $0x1f6c] ss:$16 sps:$4 sm:$0xff]   ;;  %v20546_v24 = vld [vmem:[%s21620_s30 + $0x1d48] ss:$16 sps:$4 sm:$0xff]  }
 0x621   : > { %14817 = vmatpush1.bf16.msra.mxu1 %v20483_v40  ;;  %14777 = vmatprep.subr.bf16.mxu0 %v20488_v53  ;;  %v20548_v1 = vld [vmem:[%s21620_s30 + $0x1d4c] ss:$16 sps:$4 sm:$0xff]   ;;  %v20549_v39 = vld [vmem:[%s21620_s30 + $0x1f48] ss:$16 sps:$4 sm:$0xff]  }
 0x622   : > { %14818 = vmatprep.subr.bf16.mxu1 %v20491_v54  ;;  %v20551_v2 = vld [vmem:[%s21620_s30 + $0x1f4c] ss:$16 sps:$4 sm:$0xff]   ;;  %v20552_v19 = vld [vmem:[%s21620_s30 + $0x1d28] ss:$16 sps:$4 sm:$0xff]  }
 0x623   : > { %v20554_v40 = vld [vmem:[%s21620_s30 + $0x1d2c] ss:$16 sps:$4 sm:$0xff]   ;;  %v20555_v53 = vld [vmem:[%s21620_s30 + $0x1f28] ss:$16 sps:$4 sm:$0xff]  }
 0x624   : > { %14778 = vmatpush1.bf16.msra.mxu0 %v20486_v60  ;;  %v20557_v7 = vld [vmem:[%s21620_s30 + $0x1f2c] ss:$16 sps:$4 sm:$0xff]  }
 0x625   : > { %14819 = vmatpush1.bf16.msra.mxu1 %v20489_v37  ;;  %14779 = vmatprep.subr.bf16.mxu0 %v20494_v26  ;;  %v20560_v54 = vld [vmem:[%s21620_s30 + $0x1d0c] ss:$16 sps:$4 sm:$0xff]   ;;  %v20558_v37 = vld [vmem:[%s21620_s30 + $0x1d08] ss:$16 sps:$4 sm:$0xff]  }
 0x626   : > { %14820 = vmatprep.subr.bf16.mxu1 %v20497_v38  ;;  %v20563_v60 = vld [vmem:[%s21620_s30 + $0x1f0c] ss:$16 sps:$4 sm:$0xff]   ;;  %v20561_v26 = vld [vmem:[%s21620_s30 + $0x1f08] ss:$16 sps:$4 sm:$0xff]  }
 0x627   : > { %v20566_v38 = vld [vmem:[%s21620_s30 + $0x20ec] ss:$16 sps:$4 sm:$0xff]  }
 0x628   : > { %14780 = vmatpush1.bf16.msra.mxu0 %v20492_v44  ;;  %v20569_v44 = vld [vmem:[%s21620_s30 + $0x22ec] ss:$16 sps:$4 sm:$0xff]  }
 0x629   : > { %14821 = vmatpush1.bf16.msra.mxu1 %v20495_v22  ;;  %14781 = vmatprep.subr.bf16.mxu0 %v20500_v23  ;;  %v20564_v22 = vld [vmem:[%s21620_s30 + $0x20e8] ss:$16 sps:$4 sm:$0xff]  }
 0x62a   : > { %14822 = vmatprep.subr.bf16.mxu1 %v20503_v45  ;;  %v20567_v23 = vld [vmem:[%s21620_s30 + $0x22e8] ss:$16 sps:$4 sm:$0xff]   ;;  %v20572_v45 = vld [vmem:[%s21620_s30 + $0x20cc] ss:$16 sps:$4 sm:$0xff]  }
 0x62c   : > { %14782 = vmatpush1.bf16.msra.mxu0 %v20498_v46  ;;  %v20575_v46 = vld [vmem:[%s21620_s30 + $0x22cc] ss:$16 sps:$4 sm:$0xff]  }
 0x62d   : > { %14823 = vmatpush1.bf16.msra.mxu1 %v20501_v48  ;;  %14783 = vmatprep.subr.bf16.mxu0 %v20506_v61 }
 0x62e   : > { %14824 = vmatprep.subr.bf16.mxu1 %v20509_v15 }
 0x630   : > { %14784 = vmatpush1.bf16.msra.mxu0 %v20504_v47  ;;  %v20570_v47 = vld [vmem:[%s21620_s30 + $0x20c8] ss:$16 sps:$4 sm:$0xff]  }
 0x631   : > { %14825 = vmatpush1.bf16.msra.mxu1 %v20507_v49  ;;  %14785 = vmatprep.subr.bf16.mxu0 %v20512_v50  ;;  %v20573_v49 = vld [vmem:[%s21620_s30 + $0x22c8] ss:$16 sps:$4 sm:$0xff]  }
 0x632   : > { %14826 = vmatprep.subr.bf16.mxu1 %v20515_v51 }
 0x634   : > { %14786 = vmatpush1.bf16.msra.mxu0 %v20510_v52  ;;  %v20578_v52 = vld [vmem:[%s21620_s30 + $0x20ac] ss:$16 sps:$4 sm:$0xff]  }
 0x635   : > { %14827 = vmatpush1.bf16.msra.mxu1 %v20513_v25  ;;  %14787 = vmatprep.subr.bf16.mxu0 %v20518_v9  ;;  %v20581_v25 = vld [vmem:[%s21620_s30 + $0x22ac] ss:$16 sps:$4 sm:$0xff]  }
 0x636   : > { %14828 = vmatprep.subr.bf16.mxu1 %v20521_v55 }
 0x638   : > { %14788 = vmatpush2.bf16.msra.mxu0 %v20516_v41  ;;  %v20576_v41 = vld [vmem:[%s21620_s30 + $0x20a8] ss:$16 sps:$4 sm:$0xff]  }
 0x639   : > { %14829 = vmatpush2.bf16.msra.mxu1 %v20519_v42  ;;  %14789 = vmatprep.subr.bf16.mxu0 %v20524_v59  ;;  %v20579_v42 = vld [vmem:[%s21620_s30 + $0x22a8] ss:$16 sps:$4 sm:$0xff]  }
 0x63a   : > { %14830 = vmatprep.subr.bf16.mxu1 %v20527_v62 }
 0x63c   : > { %14790 = vmatpush2.bf16.msra.mxu0 %v20522_v35  ;;  %v20585_v35 = vld [vmem:[%s21620_s30 + $0x2288] ss:$16 sps:$4 sm:$0xff]  }
 0x63d   : > { %14831 = vmatpush2.bf16.msra.mxu1 %v20525_v63  ;;  %14791 = vmatprep.subr.bf16.mxu0 %v20530_v43  ;;  %v20590_v63 = vld [vmem:[%s21620_s30 + $0x206c] ss:$16 sps:$4 sm:$0xff]  }
 0x63e   : > { %14832 = vmatprep.subr.bf16.mxu1 %v20533_v28  ;;  %v20593_v43 = vld [vmem:[%s21620_s30 + $0x226c] ss:$16 sps:$4 sm:$0xff]   ;;  %v20588_v28 = vld [vmem:[%s21620_s30 + $0x2068] ss:$16 sps:$4 sm:$0xff]  }
 0x640   : > { %14792 = vmatpush2.bf16.msra.mxu0 %v20528_v0  ;;  %v20591_v0 = vld [vmem:[%s21620_s30 + $0x2268] ss:$16 sps:$4 sm:$0xff]  }
 0x641   : > { %14833 = vmatpush2.bf16.msra.mxu1 %v20531_v8  ;;  %14793 = vmatprep.subr.bf16.mxu0 %v20536_v34  ;;  %v20596_v8 = vld [vmem:[%s21620_s30 + $0x204c] ss:$16 sps:$4 sm:$0xff]  }
 0x642   : > { %14834 = vmatprep.subr.bf16.mxu1 %v20539_v20  ;;  %v20599_v34 = vld [vmem:[%s21620_s30 + $0x224c] ss:$16 sps:$4 sm:$0xff]   ;;  %v20594_v20 = vld [vmem:[%s21620_s30 + $0x2048] ss:$16 sps:$4 sm:$0xff]  }
 0x644   : > { %14794 = vmatpush2.bf16.msra.mxu0 %v20534_v4  ;;  %v20597_v4 = vld [vmem:[%s21620_s30 + $0x2248] ss:$16 sps:$4 sm:$0xff]  }
 0x645   : > { %14835 = vmatpush2.bf16.msra.mxu1 %v20537_v14  ;;  %14795 = vmatprep.subr.bf16.mxu0 %v20542_v17  ;;  %v20602_v14 = vld [vmem:[%s21620_s30 + $0x202c] ss:$16 sps:$4 sm:$0xff]  }
 0x646   : > { %14836 = vmatprep.subr.bf16.mxu1 %v20545_v18  ;;  %v20605_v17 = vld [vmem:[%s21620_s30 + $0x222c] ss:$16 sps:$4 sm:$0xff]   ;;  %v20600_v18 = vld [vmem:[%s21620_s30 + $0x2028] ss:$16 sps:$4 sm:$0xff]  }
 0x648   : > { %14796 = vmatpush2.bf16.msra.mxu0 %v20540_v29  ;;  %v20603_v29 = vld [vmem:[%s21620_s30 + $0x2228] ss:$16 sps:$4 sm:$0xff]  }
 0x649   : > { %14837 = vmatpush2.bf16.msra.mxu1 %v20543_v12  ;;  %14797 = vmatprep.subr.bf16.mxu0 %v20548_v1  ;;  %v20608_v12 = vld [vmem:[%s21620_s30 + $0x200c] ss:$16 sps:$4 sm:$0xff]  }
 0x64a   : > { %14838 = vmatprep.subr.bf16.mxu1 %v20551_v2  ;;  %v20611_v1 = vld [vmem:[%s21620_s30 + $0x220c] ss:$16 sps:$4 sm:$0xff]   ;;  %v20606_v2 = vld [vmem:[%s21620_s30 + $0x2008] ss:$16 sps:$4 sm:$0xff]  }
 0x64c   : > { %14798 = vmatpush2.bf16.msra.mxu0 %v20546_v24  ;;  %v20609_v24 = vld [vmem:[%s21620_s30 + $0x2208] ss:$16 sps:$4 sm:$0xff]  }
 0x64d   : > { %14839 = vmatpush2.bf16.msra.mxu1 %v20549_v39  ;;  %14799 = vmatprep.subr.bf16.mxu0 %v20554_v40  ;;  %v20614_v39 = vld [vmem:[%s21620_s30 + $0x21ec] ss:$16 sps:$4 sm:$0xff]  }
 0x64e   : > { %14840 = vmatprep.subr.bf16.mxu1 %v20557_v7  ;;  %v20617_v40 = vld [vmem:[%s21620_s30 + $0x23ec] ss:$16 sps:$4 sm:$0xff]   ;;  %v20612_v7 = vld [vmem:[%s21620_s30 + $0x21e8] ss:$16 sps:$4 sm:$0xff]  }
 0x650   : > { %14800 = vmatpush2.bf16.msra.mxu0 %v20552_v19  ;;  %v20615_v19 = vld [vmem:[%s21620_s30 + $0x23e8] ss:$16 sps:$4 sm:$0xff]  }
 0x651   : > { %14841 = vmatpush2.bf16.msra.mxu1 %v20555_v53  ;;  %14801 = vmatprep.subr.bf16.mxu0 %v20560_v54  ;;  %v20620_v53 = vld [vmem:[%s21620_s30 + $0x21cc] ss:$16 sps:$4 sm:$0xff]  }
 0x652   : > { %14842 = vmatprep.subr.bf16.mxu1 %v20563_v60  ;;  %v20623_v54 = vld [vmem:[%s21620_s30 + $0x23cc] ss:$16 sps:$4 sm:$0xff]   ;;  %v20618_v60 = vld [vmem:[%s21620_s30 + $0x21c8] ss:$16 sps:$4 sm:$0xff]  }
 0x654   : > { %14802 = vmatpush2.bf16.msra.mxu0 %v20558_v37  ;;  %v20621_v37 = vld [vmem:[%s21620_s30 + $0x23c8] ss:$16 sps:$4 sm:$0xff]  }
 0x655   : > { %14843 = vmatpush2.bf16.msra.mxu1 %v20561_v26  ;;  %14853 = vmatprep.subr.bf16.mxu0 %v20566_v38  ;;  %v20626_v26 = vld [vmem:[%s21620_s30 + $0x21ac] ss:$16 sps:$4 sm:$0xff]  }
 0x656   : > { %14894 = vmatprep.subr.bf16.mxu1 %v20569_v44  ;;  %v20629_v38 = vld [vmem:[%s21620_s30 + $0x23ac] ss:$16 sps:$4 sm:$0xff]   ;;  %v20624_v44 = vld [vmem:[%s21620_s30 + $0x21a8] ss:$16 sps:$4 sm:$0xff]  }
 0x657   : > { %v14559_v48 = vpop.f32.mrf.mxu0  ;;  %14804 = vmatmul.mubr.bf16.vlgmr.msra.gmra.mxu0 %v22363_v10 }
 0x658   : > { %v14600_v61 = vpop.f32.mrf.mxu1  ;;  %14845 = vmatmul.mubr.bf16.vlgmr.msra.gmra.mxu1 %v22367_v30  ;;  %v14560_v15 = vadd.f32 %v14559_v48, %v23664_v16  ;;  %14854 = vmatpush1.bf16.msra.mxu0 %v20564_v22  ;;  %v20627_v22 = vld [vmem:[%s21620_s30 + $0x23a8] ss:$16 sps:$4 sm:$0xff]  }
 0x659   : > { %14895 = vmatpush1.bf16.msra.mxu1 %v20567_v23  ;;  %v14561_v50 = vpop.f32.mrf.mxu0  ;;  %14855 = vmatprep.subr.bf16.mxu0 %v20572_v45  ;;  %v20632_v23 = vld [vmem:[%s21620_s30 + $0x218c] ss:$16 sps:$4 sm:$0xff]   ;;  %v20633_v48 = vld [vmem:[%s21620_s30 + $0x2388] ss:$16 sps:$4 sm:$0xff]  }
 0x65a   : > { %v14602_v51 = vpop.f32.mrf.mxu1  ;;  %14896 = vmatprep.subr.bf16.mxu1 %v20575_v46  ;;  %v23738_v9 = vadd.f32 %v14600_v61, %v14560_v15  ;;  %v14562_v10 = vadd.f32 %v14561_v50, %v23669_v31  ;;  %14885 = vmatprep.mubr.bf16.mxu0 %v22381_v3  ;;  %v20584_v3 = vld [vmem:[%s21620_s30 + $0x208c] ss:$16 sps:$4 sm:$0xff]   ;;  %v20582_v31 = vld [vmem:[%s21620_s30 + $0x2088] ss:$16 sps:$4 sm:$0xff]  }
 0x65b   : > { %14926 = vmatprep.mubr.bf16.mxu1 %v22385_v5  ;;  %v14563_v30 = vpop.f32.mrf.mxu0  ;;  %v20587_v5 = vld [vmem:[%s21620_s30 + $0x228c] ss:$16 sps:$4 sm:$0xff]   ;;  %v20630_v46 = vld [vmem:[%s21620_s30 + $0x2188] ss:$16 sps:$4 sm:$0xff]  }
 0x65c   : > { %v14604_v16 = vpop.f32.mrf.mxu1  ;;  %v23743_v55 = vadd.f32 %v14602_v51, %v14562_v10  ;;  %14856 = vmatpush1.bf16.msra.mxu0 %v20570_v47  ;;  %v20635_v45 = vld [vmem:[%s21620_s30 + $0x238c] ss:$16 sps:$4 sm:$0xff]   ;;  %v20636_v47 = vld [vmem:[%s21620_s30 + $0x2168] ss:$16 sps:$4 sm:$0xff]  }
 0x65d   : > { %14897 = vmatpush1.bf16.msra.mxu1 %v20573_v49  ;;  %v14564_v59 = vpop.f32.mrf.mxu0  ;;  %14857 = vmatprep.subr.bf16.mxu0 %v20578_v52  ;;  %v20638_v61 = vld [vmem:[%s21620_s30 + $0x216c] ss:$16 sps:$4 sm:$0xff]   ;;  %v20639_v49 = vld [vmem:[%s21620_s30 + $0x2368] ss:$16 sps:$4 sm:$0xff]  }
 0x65e   : > { %v14605_v62 = vpop.f32.mrf.mxu1  ;;  %14898 = vmatprep.subr.bf16.mxu1 %v20581_v25  ;;  %v20641_v15 = vld [vmem:[%s21620_s30 + $0x236c] ss:$16 sps:$4 sm:$0xff]   ;;  %v20642_v52 = vld [vmem:[%s21620_s30 + $0x2148] ss:$16 sps:$4 sm:$0xff]  }
 0x65f   : > { %v20644_v50 = vld [vmem:[%s21620_s30 + $0x214c] ss:$16 sps:$4 sm:$0xff]   ;;  %v20645_v25 = vld [vmem:[%s21620_s30 + $0x2348] ss:$16 sps:$4 sm:$0xff]  }
 0x660   : > { %14858 = vmatpush1.bf16.msra.mxu0 %v20576_v41  ;;  %v20647_v51 = vld [vmem:[%s21620_s30 + $0x234c] ss:$16 sps:$4 sm:$0xff]   ;;  %v20648_v16 = vld [vmem:[%s21620_s30 + $0x2128] ss:$16 sps:$4 sm:$0xff]  }
 0x661   : > { %14899 = vmatpush1.bf16.msra.mxu1 %v20579_v42  ;;  %14859 = vmatprep.subr.bf16.mxu0 %v20584_v3  ;;  %v20650_v10 = vld [vmem:[%s21620_s30 + $0x212c] ss:$16 sps:$4 sm:$0xff]   ;;  %v20651_v41 = vld [vmem:[%s21620_s30 + $0x2328] ss:$16 sps:$4 sm:$0xff]  }
 0x662   : > { %14900 = vmatprep.subr.bf16.mxu1 %v20587_v5  ;;  %v20653_v30 = vld [vmem:[%s21620_s30 + $0x232c] ss:$16 sps:$4 sm:$0xff]   ;;  %v20654_v62 = vld [vmem:[%s21620_s30 + $0x2108] ss:$16 sps:$4 sm:$0xff]  }
 0x663   : > { %v20656_v42 = vld [vmem:[%s21620_s30 + $0x210c] ss:$16 sps:$4 sm:$0xff]   ;;  %v20657_v3 = vld [vmem:[%s21620_s30 + $0x2308] ss:$16 sps:$4 sm:$0xff]  }
 0x664   : > { %14860 = vmatpush1.bf16.msra.mxu0 %v20582_v31  ;;  %v20659_v59 = vld [vmem:[%s21620_s30 + $0x230c] ss:$16 sps:$4 sm:$0xff]  }
 0x665   : > { %14901 = vmatpush1.bf16.msra.mxu1 %v20585_v35  ;;  %14861 = vmatprep.subr.bf16.mxu0 %v20590_v63  ;;  %v20662_v5 = vld [vmem:[%s21620_s30 + $0x24ec] ss:$16 sps:$4 sm:$0xff]   ;;  %v20660_v35 = vld [vmem:[%s21620_s30 + $0x24e8] ss:$16 sps:$4 sm:$0xff]  }
 0x666   : > { %14902 = vmatprep.subr.bf16.mxu1 %v20593_v43  ;;  %v20665_v31 = vld [vmem:[%s21620_s30 + $0x26ec] ss:$16 sps:$4 sm:$0xff]   ;;  %v20663_v63 = vld [vmem:[%s21620_s30 + $0x26e8] ss:$16 sps:$4 sm:$0xff]  }
 0x667   : > { %v20668_v43 = vld [vmem:[%s21620_s30 + $0x24cc] ss:$16 sps:$4 sm:$0xff]  }
 0x668   : > { %14862 = vmatpush1.bf16.msra.mxu0 %v20588_v28  ;;  %v20671_v28 = vld [vmem:[%s21620_s30 + $0x26cc] ss:$16 sps:$4 sm:$0xff]  }
 0x669   : > { %14903 = vmatpush1.bf16.msra.mxu1 %v20591_v0  ;;  %14863 = vmatprep.subr.bf16.mxu0 %v20596_v8 }
 0x66a   : > { %14904 = vmatprep.subr.bf16.mxu1 %v20599_v34 }
 0x66c   : > { %14864 = vmatpush1.bf16.msra.mxu0 %v20594_v20  ;;  %v20666_v20 = vld [vmem:[%s21620_s30 + $0x24c8] ss:$16 sps:$4 sm:$0xff]  }
 0x66d   : > { %14905 = vmatpush1.bf16.msra.mxu1 %v20597_v4  ;;  %14865 = vmatprep.subr.bf16.mxu0 %v20602_v14  ;;  %v20669_v4 = vld [vmem:[%s21620_s30 + $0x26c8] ss:$16 sps:$4 sm:$0xff]  }
 0x66e   : > { %14906 = vmatprep.subr.bf16.mxu1 %v20605_v17 }
 0x670   : > { %14866 = vmatpush1.bf16.msra.mxu0 %v20600_v18  ;;  %v20674_v18 = vld [vmem:[%s21620_s30 + $0x24ac] ss:$16 sps:$4 sm:$0xff]  }
 0x671   : > { %14907 = vmatpush1.bf16.msra.mxu1 %v20603_v29  ;;  %14867 = vmatprep.subr.bf16.mxu0 %v20608_v12  ;;  %v20677_v29 = vld [vmem:[%s21620_s30 + $0x26ac] ss:$16 sps:$4 sm:$0xff]  }
 0x672   : > { %14908 = vmatprep.subr.bf16.mxu1 %v20611_v1 }
 0x674   : > { %14868 = vmatpush1.bf16.msra.mxu0 %v20606_v2  ;;  %v20672_v2 = vld [vmem:[%s21620_s30 + $0x24a8] ss:$16 sps:$4 sm:$0xff]  }
 0x675   : > { %14909 = vmatpush1.bf16.msra.mxu1 %v20609_v24  ;;  %14869 = vmatprep.subr.bf16.mxu0 %v20614_v39  ;;  %v20675_v24 = vld [vmem:[%s21620_s30 + $0x26a8] ss:$16 sps:$4 sm:$0xff]  }
 0x676   : > { %14910 = vmatprep.subr.bf16.mxu1 %v20617_v40 }
 0x678   : > { %14870 = vmatpush2.bf16.msra.mxu0 %v20612_v7  ;;  %v20681_v7 = vld [vmem:[%s21620_s30 + $0x2688] ss:$16 sps:$4 sm:$0xff]  }
 0x679   : > { %14911 = vmatpush2.bf16.msra.mxu1 %v20615_v19  ;;  %14871 = vmatprep.subr.bf16.mxu0 %v20620_v53  ;;  %v20686_v19 = vld [vmem:[%s21620_s30 + $0x246c] ss:$16 sps:$4 sm:$0xff]  }
 0x67a   : > { %14912 = vmatprep.subr.bf16.mxu1 %v20623_v54  ;;  %v20689_v53 = vld [vmem:[%s21620_s30 + $0x266c] ss:$16 sps:$4 sm:$0xff]   ;;  %v20684_v54 = vld [vmem:[%s21620_s30 + $0x2468] ss:$16 sps:$4 sm:$0xff]  }
 0x67c   : > { %14872 = vmatpush2.bf16.msra.mxu0 %v20618_v60  ;;  %v20687_v60 = vld [vmem:[%s21620_s30 + $0x2668] ss:$16 sps:$4 sm:$0xff]  }
 0x67d   : > { %14913 = vmatpush2.bf16.msra.mxu1 %v20621_v37  ;;  %14873 = vmatprep.subr.bf16.mxu0 %v20626_v26  ;;  %v20692_v37 = vld [vmem:[%s21620_s30 + $0x244c] ss:$16 sps:$4 sm:$0xff]  }
 0x67e   : > { %14914 = vmatprep.subr.bf16.mxu1 %v20629_v38  ;;  %v20695_v26 = vld [vmem:[%s21620_s30 + $0x264c] ss:$16 sps:$4 sm:$0xff]   ;;  %v20690_v38 = vld [vmem:[%s21620_s30 + $0x2448] ss:$16 sps:$4 sm:$0xff]  }
 0x680   : > { %14874 = vmatpush2.bf16.msra.mxu0 %v20624_v44  ;;  %v20693_v44 = vld [vmem:[%s21620_s30 + $0x2648] ss:$16 sps:$4 sm:$0xff]  }
 0x681   : > { %14915 = vmatpush2.bf16.msra.mxu1 %v20627_v22  ;;  %14875 = vmatprep.subr.bf16.mxu0 %v20632_v23  ;;  %v20698_v22 = vld [vmem:[%s21620_s30 + $0x242c] ss:$16 sps:$4 sm:$0xff]  }
 0x682   : > { %14916 = vmatprep.subr.bf16.mxu1 %v20635_v45  ;;  %v20701_v23 = vld [vmem:[%s21620_s30 + $0x262c] ss:$16 sps:$4 sm:$0xff]   ;;  %v20696_v45 = vld [vmem:[%s21620_s30 + $0x2428] ss:$16 sps:$4 sm:$0xff]  }
 0x684   : > { %14876 = vmatpush2.bf16.msra.mxu0 %v20630_v46  ;;  %v20699_v46 = vld [vmem:[%s21620_s30 + $0x2628] ss:$16 sps:$4 sm:$0xff]  }
 0x685   : > { %14917 = vmatpush2.bf16.msra.mxu1 %v20633_v48  ;;  %14877 = vmatprep.subr.bf16.mxu0 %v20638_v61  ;;  %v20704_v48 = vld [vmem:[%s21620_s30 + $0x240c] ss:$16 sps:$4 sm:$0xff]  }
 0x686   : > { %14918 = vmatprep.subr.bf16.mxu1 %v20641_v15  ;;  %v20707_v61 = vld [vmem:[%s21620_s30 + $0x260c] ss:$16 sps:$4 sm:$0xff]   ;;  %v20702_v15 = vld [vmem:[%s21620_s30 + $0x2408] ss:$16 sps:$4 sm:$0xff]  }
 0x688   : > { %14878 = vmatpush2.bf16.msra.mxu0 %v20636_v47  ;;  %v20705_v47 = vld [vmem:[%s21620_s30 + $0x2608] ss:$16 sps:$4 sm:$0xff]  }
 0x689   : > { %14919 = vmatpush2.bf16.msra.mxu1 %v20639_v49  ;;  %14879 = vmatprep.subr.bf16.mxu0 %v20644_v50  ;;  %v20710_v49 = vld [vmem:[%s21620_s30 + $0x25ec] ss:$16 sps:$4 sm:$0xff]  }
 0x68a   : > { %14920 = vmatprep.subr.bf16.mxu1 %v20647_v51  ;;  %v20713_v50 = vld [vmem:[%s21620_s30 + $0x27ec] ss:$16 sps:$4 sm:$0xff]   ;;  %v20708_v51 = vld [vmem:[%s21620_s30 + $0x25e8] ss:$16 sps:$4 sm:$0xff]  }
 0x68c   : > { %14880 = vmatpush2.bf16.msra.mxu0 %v20642_v52  ;;  %v20711_v52 = vld [vmem:[%s21620_s30 + $0x27e8] ss:$16 sps:$4 sm:$0xff]  }
 0x68d   : > { %14921 = vmatpush2.bf16.msra.mxu1 %v20645_v25  ;;  %14881 = vmatprep.subr.bf16.mxu0 %v20650_v10  ;;  %v20716_v25 = vld [vmem:[%s21620_s30 + $0x25cc] ss:$16 sps:$4 sm:$0xff]  }
 0x68e   : > { %14922 = vmatprep.subr.bf16.mxu1 %v20653_v30  ;;  %v20719_v10 = vld [vmem:[%s21620_s30 + $0x27cc] ss:$16 sps:$4 sm:$0xff]   ;;  %v20714_v30 = vld [vmem:[%s21620_s30 + $0x25c8] ss:$16 sps:$4 sm:$0xff]  }
 0x690   : > { %14882 = vmatpush2.bf16.msra.mxu0 %v20648_v16  ;;  %v20717_v16 = vld [vmem:[%s21620_s30 + $0x27c8] ss:$16 sps:$4 sm:$0xff]  }
 0x691   : > { %14923 = vmatpush2.bf16.msra.mxu1 %v20651_v41  ;;  %14883 = vmatprep.subr.bf16.mxu0 %v20656_v42  ;;  %v20722_v41 = vld [vmem:[%s21620_s30 + $0x25ac] ss:$16 sps:$4 sm:$0xff]  }
 0x692   : > { %14924 = vmatprep.subr.bf16.mxu1 %v20659_v59  ;;  %v20725_v42 = vld [vmem:[%s21620_s30 + $0x27ac] ss:$16 sps:$4 sm:$0xff]   ;;  %v20720_v59 = vld [vmem:[%s21620_s30 + $0x25a8] ss:$16 sps:$4 sm:$0xff]  }
 0x694   : > { %14884 = vmatpush2.bf16.msra.mxu0 %v20654_v62  ;;  %v20723_v62 = vld [vmem:[%s21620_s30 + $0x27a8] ss:$16 sps:$4 sm:$0xff]  }
 0x695   : > { %14925 = vmatpush2.bf16.msra.mxu1 %v20657_v3  ;;  %14935 = vmatprep.subr.bf16.mxu0 %v20662_v5  ;;  %v20728_v3 = vld [vmem:[%s21620_s30 + $0x258c] ss:$16 sps:$4 sm:$0xff]  }
 0x696   : > { %14976 = vmatprep.subr.bf16.mxu1 %v20665_v31  ;;  %v20731_v5 = vld [vmem:[%s21620_s30 + $0x278c] ss:$16 sps:$4 sm:$0xff]   ;;  %v20726_v31 = vld [vmem:[%s21620_s30 + $0x2588] ss:$16 sps:$4 sm:$0xff]  }
 0x697   : > { %v14641_v0 = vpop.f32.mrf.mxu0  ;;  %14886 = vmatmul.mubr.bf16.vlgmr.msra.gmra.mxu0 %v22459_v21 }
 0x698   : > { %v14682_v8 = vpop.f32.mrf.mxu1  ;;  %14927 = vmatmul.mubr.bf16.vlgmr.msra.gmra.mxu1 %v22463_v27  ;;  %v14642_v34 = vadd.f32 %v14641_v0, %v23738_v9  ;;  %14936 = vmatpush1.bf16.msra.mxu0 %v20660_v35  ;;  %v20729_v35 = vld [vmem:[%s21620_s30 + $0x2788] ss:$16 sps:$4 sm:$0xff]  }
 0x699   : > { %14977 = vmatpush1.bf16.msra.mxu1 %v20663_v63  ;;  %v14643_v14 = vpop.f32.mrf.mxu0  ;;  %14937 = vmatprep.subr.bf16.mxu0 %v20668_v43  ;;  %v20734_v63 = vld [vmem:[%s21620_s30 + $0x256c] ss:$16 sps:$4 sm:$0xff]   ;;  %v20735_v0 = vld [vmem:[%s21620_s30 + $0x2768] ss:$16 sps:$4 sm:$0xff]  }
 0x69a   : > { %v14684_v17 = vpop.f32.mrf.mxu1  ;;  %14978 = vmatprep.subr.bf16.mxu1 %v20671_v28  ;;  %v23812_v12 = vadd.f32 %v14682_v8, %v14642_v34  ;;  %v14644_v21 = vadd.f32 %v14643_v14, %v23743_v55  ;;  %14967 = vmatprep.mubr.bf16.mxu0 %v22477_v32  ;;  %v20680_v32 = vld [vmem:[%s21620_s30 + $0x248c] ss:$16 sps:$4 sm:$0xff]   ;;  %v20678_v55 = vld [vmem:[%s21620_s30 + $0x2488] ss:$16 sps:$4 sm:$0xff]  }
 0x69b   : > { %15008 = vmatprep.mubr.bf16.mxu1 %v22481_v33  ;;  %v14645_v27 = vpop.f32.mrf.mxu0  ;;  %v20683_v33 = vld [vmem:[%s21620_s30 + $0x268c] ss:$16 sps:$4 sm:$0xff]   ;;  %v20732_v28 = vld [vmem:[%s21620_s30 + $0x2568] ss:$16 sps:$4 sm:$0xff]  }
 0x69c   : > { %v14686_v9 = vpop.f32.mrf.mxu1  ;;  %v23817_v1 = vadd.f32 %v14684_v17, %v14644_v21  ;;  %14938 = vmatpush1.bf16.msra.mxu0 %v20666_v20  ;;  %v20737_v43 = vld [vmem:[%s21620_s30 + $0x276c] ss:$16 sps:$4 sm:$0xff]   ;;  %v20738_v20 = vld [vmem:[%s21620_s30 + $0x2548] ss:$16 sps:$4 sm:$0xff]  }
 0x69d   : > { %14979 = vmatpush1.bf16.msra.mxu1 %v20669_v4  ;;  %v14646_v39 = vpop.f32.mrf.mxu0  ;;  %14939 = vmatprep.subr.bf16.mxu0 %v20674_v18  ;;  %v20740_v8 = vld [vmem:[%s21620_s30 + $0x254c] ss:$16 sps:$4 sm:$0xff]   ;;  %v20741_v4 = vld [vmem:[%s21620_s30 + $0x2748] ss:$16 sps:$4 sm:$0xff]  }
 0x69e   : > { %v14687_v40 = vpop.f32.mrf.mxu1  ;;  %14980 = vmatprep.subr.bf16.mxu1 %v20677_v29  ;;  %v20743_v34 = vld [vmem:[%s21620_s30 + $0x274c] ss:$16 sps:$4 sm:$0xff]   ;;  %v20744_v18 = vld [vmem:[%s21620_s30 + $0x2528] ss:$16 sps:$4 sm:$0xff]  }
 0x69f   : > { %v20746_v14 = vld [vmem:[%s21620_s30 + $0x252c] ss:$16 sps:$4 sm:$0xff]   ;;  %v20747_v29 = vld [vmem:[%s21620_s30 + $0x2728] ss:$16 sps:$4 sm:$0xff]  }
 0x6a0   : > { %14940 = vmatpush1.bf16.msra.mxu0 %v20672_v2  ;;  %v20749_v17 = vld [vmem:[%s21620_s30 + $0x272c] ss:$16 sps:$4 sm:$0xff]   ;;  %v20750_v9 = vld [vmem:[%s21620_s30 + $0x2508] ss:$16 sps:$4 sm:$0xff]  }
 0x6a1   : > { %14981 = vmatpush1.bf16.msra.mxu1 %v20675_v24  ;;  %14941 = vmatprep.subr.bf16.mxu0 %v20680_v32  ;;  %v20752_v21 = vld [vmem:[%s21620_s30 + $0x250c] ss:$16 sps:$4 sm:$0xff]   ;;  %v20753_v2 = vld [vmem:[%s21620_s30 + $0x2708] ss:$16 sps:$4 sm:$0xff]  }
 0x6a2   : > { %14982 = vmatprep.subr.bf16.mxu1 %v20683_v33  ;;  %v20755_v27 = vld [vmem:[%s21620_s30 + $0x270c] ss:$16 sps:$4 sm:$0xff]   ;;  %v20756_v40 = vld [vmem:[%s21620_s30 + $0x28e8] ss:$16 sps:$4 sm:$0xff]  }
 0x6a3   : > { %v20758_v24 = vld [vmem:[%s21620_s30 + $0x28ec] ss:$16 sps:$4 sm:$0xff]   ;;  %v20759_v32 = vld [vmem:[%s21620_s30 + $0x2ae8] ss:$16 sps:$4 sm:$0xff]  }
 0x6a4   : > { %14942 = vmatpush1.bf16.msra.mxu0 %v20678_v55  ;;  %v20761_v39 = vld [vmem:[%s21620_s30 + $0x2aec] ss:$16 sps:$4 sm:$0xff]  }
 0x6a5   : > { %14983 = vmatpush1.bf16.msra.mxu1 %v20681_v7  ;;  %14943 = vmatprep.subr.bf16.mxu0 %v20686_v19  ;;  %v20764_v33 = vld [vmem:[%s21620_s30 + $0x28cc] ss:$16 sps:$4 sm:$0xff]  }
 0x6a6   : > { %14984 = vmatprep.subr.bf16.mxu1 %v20689_v53  ;;  %v20767_v55 = vld [vmem:[%s21620_s30 + $0x2acc] ss:$16 sps:$4 sm:$0xff]  }
 0x6a8   : > { %14944 = vmatpush1.bf16.msra.mxu0 %v20684_v54  ;;  %v20762_v54 = vld [vmem:[%s21620_s30 + $0x28c8] ss:$16 sps:$4 sm:$0xff]  }
 0x6a9   : > { %14985 = vmatpush1.bf16.msra.mxu1 %v20687_v60  ;;  %14945 = vmatprep.subr.bf16.mxu0 %v20692_v37  ;;  %v20765_v60 = vld [vmem:[%s21620_s30 + $0x2ac8] ss:$16 sps:$4 sm:$0xff]  }
 0x6aa   : > { %14986 = vmatprep.subr.bf16.mxu1 %v20695_v26 }
 0x6ac   : > { %14946 = vmatpush1.bf16.msra.mxu0 %v20690_v38  ;;  %v20770_v38 = vld [vmem:[%s21620_s30 + $0x28ac] ss:$16 sps:$4 sm:$0xff]  }
 0x6ad   : > { %14987 = vmatpush1.bf16.msra.mxu1 %v20693_v44  ;;  %14947 = vmatprep.subr.bf16.mxu0 %v20698_v22  ;;  %v20773_v44 = vld [vmem:[%s21620_s30 + $0x2aac] ss:$16 sps:$4 sm:$0xff]  }
 0x6ae   : > { %14988 = vmatprep.subr.bf16.mxu1 %v20701_v23 }
 0x6b0   : > { %14948 = vmatpush1.bf16.msra.mxu0 %v20696_v45 }
 0x6b1   : > { %14989 = vmatpush1.bf16.msra.mxu1 %v20699_v46  ;;  %14949 = vmatprep.subr.bf16.mxu0 %v20704_v48  ;;  %v20768_v48 = vld [vmem:[%s21620_s30 + $0x28a8] ss:$16 sps:$4 sm:$0xff]  }
 0x6b2   : > { %14990 = vmatprep.subr.bf16.mxu1 %v20707_v61  ;;  %v20771_v61 = vld [vmem:[%s21620_s30 + $0x2aa8] ss:$16 sps:$4 sm:$0xff]  }
 0x6b4   : > { %14950 = vmatpush1.bf16.msra.mxu0 %v20702_v15 }
 0x6b5   : > { %14991 = vmatpush1.bf16.msra.mxu1 %v20705_v47  ;;  %14951 = vmatprep.subr.bf16.mxu0 %v20710_v49  ;;  %v20779_v49 = vld [vmem:[%s21620_s30 + $0x2a8c] ss:$16 sps:$4 sm:$0xff]  }
 0x6b6   : > { %14992 = vmatprep.subr.bf16.mxu1 %v20713_v50  ;;  %v20774_v50 = vld [vmem:[%s21620_s30 + $0x2888] ss:$16 sps:$4 sm:$0xff]  }
 0x6b8   : > { %14952 = vmatpush2.bf16.msra.mxu0 %v20708_v51  ;;  %v20777_v51 = vld [vmem:[%s21620_s30 + $0x2a88] ss:$16 sps:$4 sm:$0xff]  }
 0x6b9   : > { %14993 = vmatpush2.bf16.msra.mxu1 %v20711_v52  ;;  %14953 = vmatprep.subr.bf16.mxu0 %v20716_v25  ;;  %v20782_v52 = vld [vmem:[%s21620_s30 + $0x286c] ss:$16 sps:$4 sm:$0xff]  }
 0x6ba   : > { %14994 = vmatprep.subr.bf16.mxu1 %v20719_v10  ;;  %v20785_v25 = vld [vmem:[%s21620_s30 + $0x2a6c] ss:$16 sps:$4 sm:$0xff]   ;;  %v20780_v10 = vld [vmem:[%s21620_s30 + $0x2868] ss:$16 sps:$4 sm:$0xff]  }
 0x6bc   : > { %14954 = vmatpush2.bf16.msra.mxu0 %v20714_v30  ;;  %v20783_v30 = vld [vmem:[%s21620_s30 + $0x2a68] ss:$16 sps:$4 sm:$0xff]  }
 0x6bd   : > { %14995 = vmatpush2.bf16.msra.mxu1 %v20717_v16  ;;  %14955 = vmatprep.subr.bf16.mxu0 %v20722_v41  ;;  %v20788_v16 = vld [vmem:[%s21620_s30 + $0x284c] ss:$16 sps:$4 sm:$0xff]  }
 0x6be   : > { %14996 = vmatprep.subr.bf16.mxu1 %v20725_v42  ;;  %v20791_v41 = vld [vmem:[%s21620_s30 + $0x2a4c] ss:$16 sps:$4 sm:$0xff]   ;;  %v20786_v42 = vld [vmem:[%s21620_s30 + $0x2848] ss:$16 sps:$4 sm:$0xff]  }
 0x6c0   : > { %14956 = vmatpush2.bf16.msra.mxu0 %v20720_v59  ;;  %v20789_v59 = vld [vmem:[%s21620_s30 + $0x2a48] ss:$16 sps:$4 sm:$0xff]  }
 0x6c1   : > { %14997 = vmatpush2.bf16.msra.mxu1 %v20723_v62  ;;  %14957 = vmatprep.subr.bf16.mxu0 %v20728_v3  ;;  %v20794_v62 = vld [vmem:[%s21620_s30 + $0x282c] ss:$16 sps:$4 sm:$0xff]  }
 0x6c2   : > { %14998 = vmatprep.subr.bf16.mxu1 %v20731_v5  ;;  %v20797_v3 = vld [vmem:[%s21620_s30 + $0x2a2c] ss:$16 sps:$4 sm:$0xff]   ;;  %v20792_v5 = vld [vmem:[%s21620_s30 + $0x2828] ss:$16 sps:$4 sm:$0xff]  }
 0x6c4   : > { %14958 = vmatpush2.bf16.msra.mxu0 %v20726_v31  ;;  %v20795_v31 = vld [vmem:[%s21620_s30 + $0x2a28] ss:$16 sps:$4 sm:$0xff]  }
 0x6c5   : > { %14999 = vmatpush2.bf16.msra.mxu1 %v20729_v35  ;;  %14959 = vmatprep.subr.bf16.mxu0 %v20734_v63  ;;  %v20800_v35 = vld [vmem:[%s21620_s30 + $0x280c] ss:$16 sps:$4 sm:$0xff]  }
 0x6c6   : > { %15000 = vmatprep.subr.bf16.mxu1 %v20737_v43  ;;  %v20803_v63 = vld [vmem:[%s21620_s30 + $0x2a0c] ss:$16 sps:$4 sm:$0xff]   ;;  %v20798_v43 = vld [vmem:[%s21620_s30 + $0x2808] ss:$16 sps:$4 sm:$0xff]  }
 0x6c8   : > { %14960 = vmatpush2.bf16.msra.mxu0 %v20732_v28  ;;  %v20801_v28 = vld [vmem:[%s21620_s30 + $0x2a08] ss:$16 sps:$4 sm:$0xff]  }
 0x6c9   : > { %15001 = vmatpush2.bf16.msra.mxu1 %v20735_v0  ;;  %14961 = vmatprep.subr.bf16.mxu0 %v20740_v8  ;;  %v20806_v0 = vld [vmem:[%s21620_s30 + $0x29ec] ss:$16 sps:$4 sm:$0xff]  }
 0x6ca   : > { %15002 = vmatprep.subr.bf16.mxu1 %v20743_v34  ;;  %v20809_v8 = vld [vmem:[%s21620_s30 + $0x2bec] ss:$16 sps:$4 sm:$0xff]   ;;  %v20804_v34 = vld [vmem:[%s21620_s30 + $0x29e8] ss:$16 sps:$4 sm:$0xff]  }
 0x6cc   : > { %14962 = vmatpush2.bf16.msra.mxu0 %v20738_v20  ;;  %v20807_v20 = vld [vmem:[%s21620_s30 + $0x2be8] ss:$16 sps:$4 sm:$0xff]  }
 0x6cd   : > { %15003 = vmatpush2.bf16.msra.mxu1 %v20741_v4  ;;  %14963 = vmatprep.subr.bf16.mxu0 %v20746_v14  ;;  %v20812_v4 = vld [vmem:[%s21620_s30 + $0x29cc] ss:$16 sps:$4 sm:$0xff]  }
 0x6ce   : > { %15004 = vmatprep.subr.bf16.mxu1 %v20749_v17  ;;  %v20815_v14 = vld [vmem:[%s21620_s30 + $0x2bcc] ss:$16 sps:$4 sm:$0xff]   ;;  %v20810_v17 = vld [vmem:[%s21620_s30 + $0x29c8] ss:$16 sps:$4 sm:$0xff]  }
 0x6d0   : > { %14964 = vmatpush2.bf16.msra.mxu0 %v20744_v18  ;;  %v20813_v18 = vld [vmem:[%s21620_s30 + $0x2bc8] ss:$16 sps:$4 sm:$0xff]  }
 0x6d1   : > { %15005 = vmatpush2.bf16.msra.mxu1 %v20747_v29  ;;  %14965 = vmatprep.subr.bf16.mxu0 %v20752_v21  ;;  %v20818_v29 = vld [vmem:[%s21620_s30 + $0x29ac] ss:$16 sps:$4 sm:$0xff]  }
 0x6d2   : > { %15006 = vmatprep.subr.bf16.mxu1 %v20755_v27  ;;  %v20821_v21 = vld [vmem:[%s21620_s30 + $0x2bac] ss:$16 sps:$4 sm:$0xff]   ;;  %v20816_v27 = vld [vmem:[%s21620_s30 + $0x29a8] ss:$16 sps:$4 sm:$0xff]  }
 0x6d4   : > { %14966 = vmatpush2.bf16.msra.mxu0 %v20750_v9  ;;  %v20819_v9 = vld [vmem:[%s21620_s30 + $0x2ba8] ss:$16 sps:$4 sm:$0xff]  }
 0x6d5   : > { %15007 = vmatpush2.bf16.msra.mxu1 %v20753_v2  ;;  %15017 = vmatprep.subr.bf16.mxu0 %v20758_v24  ;;  %v20824_v2 = vld [vmem:[%s21620_s30 + $0x298c] ss:$16 sps:$4 sm:$0xff]  }
 0x6d6   : > { %15058 = vmatprep.subr.bf16.mxu1 %v20761_v39  ;;  %v20827_v24 = vld [vmem:[%s21620_s30 + $0x2b8c] ss:$16 sps:$4 sm:$0xff]   ;;  %v20822_v39 = vld [vmem:[%s21620_s30 + $0x2988] ss:$16 sps:$4 sm:$0xff]  }
 0x6d7   : > { %v14723_v7 = vpop.f32.mrf.mxu0  ;;  %14968 = vmatmul.mubr.bf16.vlgmr.msra.gmra.mxu0 %v22555_v57 }
 0x6d8   : > { %v14764_v19 = vpop.f32.mrf.mxu1  ;;  %15009 = vmatmul.mubr.bf16.vlgmr.msra.gmra.mxu1 %v22559_v58  ;;  %v14724_v53 = vadd.f32 %v14723_v7, %v23812_v12  ;;  %15018 = vmatpush1.bf16.msra.mxu0 %v20756_v40  ;;  %v24398_v58 = vld [vmem:[#allocation10_spill] sm:$0xff]  ;;  %v24399_v12 = vld [vmem:[#allocation11_spill] sm:$0xff] }
 0x6d9   : > { %15059 = vmatpush1.bf16.msra.mxu1 %v20759_v32  ;;  %v14725_v37 = vpop.f32.mrf.mxu0  ;;  %15019 = vmatprep.subr.bf16.mxu0 %v20764_v33  ;;  %v20825_v40 = vld [vmem:[%s21620_s30 + $0x2b88] ss:$16 sps:$4 sm:$0xff]   ;;  %v20830_v32 = vld [vmem:[%s21620_s30 + $0x296c] ss:$16 sps:$4 sm:$0xff]  }
 0x6da   : > { %v14766_v26 = vpop.f32.mrf.mxu1  ;;  %15060 = vmatprep.subr.bf16.mxu1 %v20767_v55  ;;  %v23886_v22 = vadd.f32 %v14764_v19, %v14724_v53  ;;  %v14726_v57 = vadd.f32 %v14725_v37, %v23817_v1  ;;  %15049 = vmatprep.mubr.bf16.mxu0 %v24398_v58  ;;  %v20776_v1 = vld [vmem:[%s21620_s30 + $0x288c] ss:$16 sps:$4 sm:$0xff]   ;;  %v20828_v55 = vld [vmem:[%s21620_s30 + $0x2968] ss:$16 sps:$4 sm:$0xff]  }
 0x6db   : > { %15090 = vmatprep.mubr.bf16.mxu1 %v24399_v12  ;;  %v14727_v23 = vpop.f32.mrf.mxu0  ;;  %v20833_v33 = vld [vmem:[%s21620_s30 + $0x2b6c] ss:$16 sps:$4 sm:$0xff]   ;;  %v20831_v7 = vld [vmem:[%s21620_s30 + $0x2b68] ss:$16 sps:$4 sm:$0xff]  }
 0x6dc   : > { %v14768_v45 = vpop.f32.mrf.mxu1  ;;  %v23891_v46 = vadd.f32 %v14766_v26, %v14726_v57  ;;  %15020 = vmatpush1.bf16.msra.mxu0 %v20762_v54  ;;  %v20836_v19 = vld [vmem:[%s21620_s30 + $0x294c] ss:$16 sps:$4 sm:$0xff]   ;;  %v20834_v54 = vld [vmem:[%s21620_s30 + $0x2948] ss:$16 sps:$4 sm:$0xff]  }
 0x6dd   : > { %15061 = vmatpush1.bf16.msra.mxu1 %v20765_v60  ;;  %v14728_v15 = vpop.f32.mrf.mxu0  ;;  %15021 = vmatprep.subr.bf16.mxu0 %v20770_v38  ;;  %v20839_v53 = vld [vmem:[%s21620_s30 + $0x2b4c] ss:$16 sps:$4 sm:$0xff]   ;;  %v20837_v60 = vld [vmem:[%s21620_s30 + $0x2b48] ss:$16 sps:$4 sm:$0xff]  }
 0x6de   : > { %v14769_v47 = vpop.f32.mrf.mxu1  ;;  %15062 = vmatprep.subr.bf16.mxu1 %v20773_v44  ;;  %v20842_v37 = vld [vmem:[%s21620_s30 + $0x292c] ss:$16 sps:$4 sm:$0xff]   ;;  %v20840_v38 = vld [vmem:[%s21620_s30 + $0x2928] ss:$16 sps:$4 sm:$0xff]  }
 0x6df   : > { %v20845_v26 = vld [vmem:[%s21620_s30 + $0x2b2c] ss:$16 sps:$4 sm:$0xff]   ;;  %v20843_v44 = vld [vmem:[%s21620_s30 + $0x2b28] ss:$16 sps:$4 sm:$0xff]  }
 0x6e0   : > { %15022 = vmatpush1.bf16.msra.mxu0 %v20768_v48  ;;  %v20848_v57 = vld [vmem:[%s21620_s30 + $0x290c] ss:$16 sps:$4 sm:$0xff]   ;;  %v20846_v12 = vld [vmem:[%s21620_s30 + $0x2908] ss:$16 sps:$4 sm:$0xff]  }
 0x6e1   : > { %15063 = vmatpush1.bf16.msra.mxu1 %v20771_v61  ;;  %15023 = vmatprep.subr.bf16.mxu0 %v20776_v1  ;;  %v20851_v58 = vld [vmem:[%s21620_s30 + $0x2b0c] ss:$16 sps:$4 sm:$0xff]   ;;  %v20849_v23 = vld [vmem:[%s21620_s30 + $0x2b08] ss:$16 sps:$4 sm:$0xff]  }
 0x6e2   : > { %15064 = vmatprep.subr.bf16.mxu1 %v20779_v49  ;;  %v20854_v45 = vld [vmem:[%s21620_s30 + $0x2cec] ss:$16 sps:$4 sm:$0xff]   ;;  %v20852_v61 = vld [vmem:[%s21620_s30 + $0x2ce8] ss:$16 sps:$4 sm:$0xff]  }
 0x6e3   : > { %v20857_v48 = vld [vmem:[%s21620_s30 + $0x2eec] ss:$16 sps:$4 sm:$0xff]   ;;  %v20855_v15 = vld [vmem:[%s21620_s30 + $0x2ee8] ss:$16 sps:$4 sm:$0xff]  }
 0x6e4   : > { %15024 = vmatpush1.bf16.msra.mxu0 %v20774_v50  ;;  %v20860_v47 = vld [vmem:[%s21620_s30 + $0x2ccc] ss:$16 sps:$4 sm:$0xff]  }
 0x6e5   : > { %15065 = vmatpush1.bf16.msra.mxu1 %v20777_v51  ;;  %15025 = vmatprep.subr.bf16.mxu0 %v20782_v52  ;;  %v20863_v1 = vld [vmem:[%s21620_s30 + $0x2ecc] ss:$16 sps:$4 sm:$0xff]   ;;  %v24400_v51 = vld [vmem:[#allocation12_spill] sm:$0xff] }
 0x6e6   : > { %15066 = vmatprep.subr.bf16.mxu1 %v20785_v25  ;;  %v24401_v52 = vld [vmem:[#allocation13_spill] sm:$0xff] }
 0x6e8   : > { %15026 = vmatpush1.bf16.msra.mxu0 %v20780_v10  ;;  %v20858_v10 = vld [vmem:[%s21620_s30 + $0x2cc8] ss:$16 sps:$4 sm:$0xff]  }
 0x6e9   : > { %15067 = vmatpush1.bf16.msra.mxu1 %v20783_v30  ;;  %15027 = vmatprep.subr.bf16.mxu0 %v20788_v16  ;;  %v20861_v30 = vld [vmem:[%s21620_s30 + $0x2ec8] ss:$16 sps:$4 sm:$0xff]  }
 0x6ea   : > { %15068 = vmatprep.subr.bf16.mxu1 %v20791_v41 }
 0x6ec   : > { %15028 = vmatpush1.bf16.msra.mxu0 %v20786_v42  ;;  %v20866_v42 = vld [vmem:[%s21620_s30 + $0x2cac] ss:$16 sps:$4 sm:$0xff]  }
 0x6ed   : > { %15069 = vmatpush1.bf16.msra.mxu1 %v20789_v59  ;;  %15029 = vmatprep.subr.bf16.mxu0 %v20794_v62  ;;  %v20869_v59 = vld [vmem:[%s21620_s30 + $0x2eac] ss:$16 sps:$4 sm:$0xff]  }
 0x6ee   : > { %15070 = vmatprep.subr.bf16.mxu1 %v20797_v3 }
 0x6f0   : > { %15030 = vmatpush1.bf16.msra.mxu0 %v20792_v5  ;;  %v24402_v5 = vld [vmem:[#allocation14_spill] sm:$0xff] }
 0x6f1   : > { %15071 = vmatpush1.bf16.msra.mxu1 %v20795_v31  ;;  %15031 = vmatprep.subr.bf16.mxu0 %v20800_v35 }
 0x6f2   : > { %15072 = vmatprep.subr.bf16.mxu1 %v20803_v63 }
 0x6f4   : > { %15032 = vmatpush1.bf16.msra.mxu0 %v20798_v43  ;;  %v20864_v43 = vld [vmem:[%s21620_s30 + $0x2ca8] ss:$16 sps:$4 sm:$0xff]  }
 0x6f5   : > { %15073 = vmatpush1.bf16.msra.mxu1 %v20801_v28  ;;  %15033 = vmatprep.subr.bf16.mxu0 %v20806_v0  ;;  %v20867_v28 = vld [vmem:[%s21620_s30 + $0x2ea8] ss:$16 sps:$4 sm:$0xff]  }
 0x6f6   : > { %15074 = vmatprep.subr.bf16.mxu1 %v20809_v8 }
 0x6f8   : > { %15034 = vmatpush2.bf16.msra.mxu0 %v20804_v34  ;;  %v20875_v34 = vld [vmem:[%s21620_s30 + $0x2e8c] ss:$16 sps:$4 sm:$0xff]  }
 0x6f9   : > { %15075 = vmatpush2.bf16.msra.mxu1 %v20807_v20  ;;  %15035 = vmatprep.subr.bf16.mxu0 %v20812_v4  ;;  %v20870_v20 = vld [vmem:[%s21620_s30 + $0x2c88] ss:$16 sps:$4 sm:$0xff]  }
 0x6fa   : > { %15076 = vmatprep.subr.bf16.mxu1 %v20815_v14  ;;  %v20873_v4 = vld [vmem:[%s21620_s30 + $0x2e88] ss:$16 sps:$4 sm:$0xff]   ;;  %v20878_v14 = vld [vmem:[%s21620_s30 + $0x2c6c] ss:$16 sps:$4 sm:$0xff]  }
 0x6fc   : > { %15036 = vmatpush2.bf16.msra.mxu0 %v20810_v17  ;;  %v20881_v17 = vld [vmem:[%s21620_s30 + $0x2e6c] ss:$16 sps:$4 sm:$0xff]  }
 0x6fd   : > { %15077 = vmatpush2.bf16.msra.mxu1 %v20813_v18  ;;  %15037 = vmatprep.subr.bf16.mxu0 %v20818_v29  ;;  %v20876_v18 = vld [vmem:[%s21620_s30 + $0x2c68] ss:$16 sps:$4 sm:$0xff]  }
 0x6fe   : > { %15078 = vmatprep.subr.bf16.mxu1 %v20821_v21  ;;  %v20879_v29 = vld [vmem:[%s21620_s30 + $0x2e68] ss:$16 sps:$4 sm:$0xff]   ;;  %v20884_v21 = vld [vmem:[%s21620_s30 + $0x2c4c] ss:$16 sps:$4 sm:$0xff]  }
 0x700   : > { %15038 = vmatpush2.bf16.msra.mxu0 %v20816_v27  ;;  %v20887_v27 = vld [vmem:[%s21620_s30 + $0x2e4c] ss:$16 sps:$4 sm:$0xff]  }
 0x701   : > { %15079 = vmatpush2.bf16.msra.mxu1 %v20819_v9  ;;  %15039 = vmatprep.subr.bf16.mxu0 %v20824_v2  ;;  %v20882_v9 = vld [vmem:[%s21620_s30 + $0x2c48] ss:$16 sps:$4 sm:$0xff]  }
 0x702   : > { %15080 = vmatprep.subr.bf16.mxu1 %v20827_v24  ;;  %v20885_v2 = vld [vmem:[%s21620_s30 + $0x2e48] ss:$16 sps:$4 sm:$0xff]   ;;  %v20890_v24 = vld [vmem:[%s21620_s30 + $0x2c2c] ss:$16 sps:$4 sm:$0xff]  }
 0x704   : > { %15040 = vmatpush2.bf16.msra.mxu0 %v20822_v39  ;;  %v20893_v39 = vld [vmem:[%s21620_s30 + $0x2e2c] ss:$16 sps:$4 sm:$0xff]  }
 0x705   : > { %15081 = vmatpush2.bf16.msra.mxu1 %v20825_v40  ;;  %15041 = vmatprep.subr.bf16.mxu0 %v20830_v32  ;;  %v20888_v40 = vld [vmem:[%s21620_s30 + $0x2c28] ss:$16 sps:$4 sm:$0xff]  }
 0x706   : > { %15082 = vmatprep.subr.bf16.mxu1 %v20833_v33  ;;  %v20891_v32 = vld [vmem:[%s21620_s30 + $0x2e28] ss:$16 sps:$4 sm:$0xff]   ;;  %v20896_v33 = vld [vmem:[%s21620_s30 + $0x2c0c] ss:$16 sps:$4 sm:$0xff]  }
 0x708   : > { %15042 = vmatpush2.bf16.msra.mxu0 %v20828_v55  ;;  %v20899_v55 = vld [vmem:[%s21620_s30 + $0x2e0c] ss:$16 sps:$4 sm:$0xff]  }
 0x709   : > { %15083 = vmatpush2.bf16.msra.mxu1 %v20831_v7  ;;  %15043 = vmatprep.subr.bf16.mxu0 %v20836_v19  ;;  %v20894_v7 = vld [vmem:[%s21620_s30 + $0x2c08] ss:$16 sps:$4 sm:$0xff]  }
 0x70a   : > { %15084 = vmatprep.subr.bf16.mxu1 %v20839_v53  ;;  %v20897_v19 = vld [vmem:[%s21620_s30 + $0x2e08] ss:$16 sps:$4 sm:$0xff]   ;;  %v20902_v53 = vld [vmem:[%s21620_s30 + $0x2dec] ss:$16 sps:$4 sm:$0xff]  }
 0x70c   : > { %15044 = vmatpush2.bf16.msra.mxu0 %v20834_v54  ;;  %v20905_v54 = vld [vmem:[%s21620_s30 + $0x2fec] ss:$16 sps:$4 sm:$0xff]  }
 0x70d   : > { %15085 = vmatpush2.bf16.msra.mxu1 %v20837_v60  ;;  %15045 = vmatprep.subr.bf16.mxu0 %v20842_v37  ;;  %v20900_v60 = vld [vmem:[%s21620_s30 + $0x2de8] ss:$16 sps:$4 sm:$0xff]  }
 0x70e   : > { %15086 = vmatprep.subr.bf16.mxu1 %v20845_v26  ;;  %v20903_v37 = vld [vmem:[%s21620_s30 + $0x2fe8] ss:$16 sps:$4 sm:$0xff]   ;;  %v20908_v26 = vld [vmem:[%s21620_s30 + $0x2dcc] ss:$16 sps:$4 sm:$0xff]  }
 0x710   : > { %15046 = vmatpush2.bf16.msra.mxu0 %v20840_v38  ;;  %v20911_v38 = vld [vmem:[%s21620_s30 + $0x2fcc] ss:$16 sps:$4 sm:$0xff]  }
 0x711   : > { %15087 = vmatpush2.bf16.msra.mxu1 %v20843_v44  ;;  %15047 = vmatprep.subr.bf16.mxu0 %v20848_v57  ;;  %v20906_v44 = vld [vmem:[%s21620_s30 + $0x2dc8] ss:$16 sps:$4 sm:$0xff]  }
 0x712   : > { %15088 = vmatprep.subr.bf16.mxu1 %v20851_v58  ;;  %v20909_v57 = vld [vmem:[%s21620_s30 + $0x2fc8] ss:$16 sps:$4 sm:$0xff]   ;;  %v20914_v58 = vld [vmem:[%s21620_s30 + $0x2dac] ss:$16 sps:$4 sm:$0xff]  }
 0x714   : > { %15048 = vmatpush2.bf16.msra.mxu0 %v20846_v12  ;;  %v20917_v12 = vld [vmem:[%s21620_s30 + $0x2fac] ss:$16 sps:$4 sm:$0xff]  }
 0x715   : > { %15089 = vmatpush2.bf16.msra.mxu1 %v20849_v23  ;;  %15099 = vmatprep.subr.bf16.mxu0 %v20854_v45  ;;  %v20912_v23 = vld [vmem:[%s21620_s30 + $0x2da8] ss:$16 sps:$4 sm:$0xff]  }
 0x716   : > { %15140 = vmatprep.subr.bf16.mxu1 %v20857_v48  ;;  %v20915_v45 = vld [vmem:[%s21620_s30 + $0x2fa8] ss:$16 sps:$4 sm:$0xff]   ;;  %v20920_v48 = vld [vmem:[%s21620_s30 + $0x2d8c] ss:$16 sps:$4 sm:$0xff]  }
 0x717   : > { %v14805_v49 = vpop.f32.mrf.mxu0  ;;  %15050 = vmatmul.mubr.bf16.vlgmr.msra.gmra.mxu0 %v24400_v51  ;;  %v20927_v51 = vld [vmem:[%s21620_s30 + $0x2f68] ss:$16 sps:$4 sm:$0xff]  }
 0x718   : > { %v14846_v50 = vpop.f32.mrf.mxu1  ;;  %15091 = vmatmul.mubr.bf16.vlgmr.msra.gmra.mxu1 %v24401_v52  ;;  %v14806_v25 = vadd.f32 %v14805_v49, %v23886_v22  ;;  %15100 = vmatpush1.bf16.msra.mxu0 %v20852_v61  ;;  %v24403_v22 = vld [vmem:[#allocation15_spill] sm:$0xff] }
 0x719   : > { %15141 = vmatpush1.bf16.msra.mxu1 %v20855_v15  ;;  %v14807_v16 = vpop.f32.mrf.mxu0  ;;  %15101 = vmatprep.subr.bf16.mxu0 %v20860_v47  ;;  %v20923_v61 = vld [vmem:[%s21620_s30 + $0x2f8c] ss:$16 sps:$4 sm:$0xff]   ;;  %v20918_v15 = vld [vmem:[%s21620_s30 + $0x2d88] ss:$16 sps:$4 sm:$0xff]  }
 0x71a   : > { %v14848_v41 = vpop.f32.mrf.mxu1  ;;  %15142 = vmatprep.subr.bf16.mxu1 %v20863_v1  ;;  %v23960_v62 = vadd.f32 %v14846_v50, %v14806_v25  ;;  %v14808_v3 = vadd.f32 %v14807_v16, %v23891_v46  ;;  %15131 = vmatprep.mubr.bf16.mxu0 %v24402_v5  ;;  %v20872_v46 = vld [vmem:[%s21620_s30 + $0x2c8c] ss:$16 sps:$4 sm:$0xff]   ;;  %v20921_v47 = vld [vmem:[%s21620_s30 + $0x2f88] ss:$16 sps:$4 sm:$0xff]  }
 0x71b   : > { %15172 = vmatprep.mubr.bf16.mxu1 %v24403_v22  ;;  %v14809_v31 = vpop.f32.mrf.mxu0  ;;  %v20926_v1 = vld [vmem:[%s21620_s30 + $0x2d6c] ss:$16 sps:$4 sm:$0xff]   ;;  %v20924_v50 = vld [vmem:[%s21620_s30 + $0x2d68] ss:$16 sps:$4 sm:$0xff]  }
 0x71c   : > { %v14850_v35 = vpop.f32.mrf.mxu1  ;;  %v23965_v63 = vadd.f32 %v14848_v41, %v14808_v3  ;;  %15102 = vmatpush1.bf16.msra.mxu0 %v20858_v10  ;;  %v20929_v49 = vld [vmem:[%s21620_s30 + $0x2f6c] ss:$16 sps:$4 sm:$0xff]   ;;  %v20930_v10 = vld [vmem:[%s21620_s30 + $0x2d48] ss:$16 sps:$4 sm:$0xff]  }
 0x71d   : > { %15143 = vmatpush1.bf16.msra.mxu1 %v20861_v30  ;;  %v14810_v0 = vpop.f32.mrf.mxu0  ;;  %15103 = vmatprep.subr.bf16.mxu0 %v20866_v42  ;;  %v20932_v52 = vld [vmem:[%s21620_s30 + $0x2d4c] ss:$16 sps:$4 sm:$0xff]   ;;  %v20933_v30 = vld [vmem:[%s21620_s30 + $0x2f48] ss:$16 sps:$4 sm:$0xff]  }
 0x71e   : > { %v14851_v8 = vpop.f32.mrf.mxu1  ;;  %15144 = vmatprep.subr.bf16.mxu1 %v20869_v59  ;;  %v20935_v25 = vld [vmem:[%s21620_s30 + $0x2f4c] ss:$16 sps:$4 sm:$0xff]   ;;  %v20936_v42 = vld [vmem:[%s21620_s30 + $0x2d28] ss:$16 sps:$4 sm:$0xff]  }
 0x71f   : > { %v20938_v16 = vld [vmem:[%s21620_s30 + $0x2d2c] ss:$16 sps:$4 sm:$0xff]   ;;  %v20939_v59 = vld [vmem:[%s21620_s30 + $0x2f28] ss:$16 sps:$4 sm:$0xff]  }
 0x720   : > { %15104 = vmatpush1.bf16.msra.mxu0 %v20864_v43  ;;  %v20941_v41 = vld [vmem:[%s21620_s30 + $0x2f2c] ss:$16 sps:$4 sm:$0xff]   ;;  %v20942_v22 = vld [vmem:[%s21620_s30 + $0x2d08] ss:$16 sps:$4 sm:$0xff]  }
 0x721   : > { %15145 = vmatpush1.bf16.msra.mxu1 %v20867_v28  ;;  %15105 = vmatprep.subr.bf16.mxu0 %v20872_v46  ;;  %v20944_v3 = vld [vmem:[%s21620_s30 + $0x2d0c] ss:$16 sps:$4 sm:$0xff]   ;;  %v20945_v31 = vld [vmem:[%s21620_s30 + $0x2f08] ss:$16 sps:$4 sm:$0xff]  }
 0x722   : > { %15146 = vmatprep.subr.bf16.mxu1 %v20875_v34  ;;  %v20947_v5 = vld [vmem:[%s21620_s30 + $0x2f0c] ss:$16 sps:$4 sm:$0xff]   ;;  %v20948_v28 = vld [vmem:[%s21620_s30 + $0x30e8] ss:$16 sps:$4 sm:$0xff]  }
 0x723   : > { %v20950_v35 = vld [vmem:[%s21620_s30 + $0x30ec] ss:$16 sps:$4 sm:$0xff]   ;;  %v20951_v0 = vld [vmem:[%s21620_s30 + $0x32e8] ss:$16 sps:$4 sm:$0xff]  }
 0x724   : > { %15106 = vmatpush1.bf16.msra.mxu0 %v20870_v20  ;;  %v20953_v43 = vld [vmem:[%s21620_s30 + $0x32ec] ss:$16 sps:$4 sm:$0xff]  }
 0x725   : > { %15147 = vmatpush1.bf16.msra.mxu1 %v20873_v4  ;;  %15107 = vmatprep.subr.bf16.mxu0 %v20878_v14  ;;  %v20956_v8 = vld [vmem:[%s21620_s30 + $0x30cc] ss:$16 sps:$4 sm:$0xff]   ;;  %v24404_v4 = vld [vmem:[#allocation16_spill] sm:$0xff] }
 0x726   : > { %15148 = vmatprep.subr.bf16.mxu1 %v20881_v17  ;;  %v20959_v46 = vld [vmem:[%s21620_s30 + $0x32cc] ss:$16 sps:$4 sm:$0xff]  }
 0x727   : > { %v24405_v14 = vld [vmem:[#allocation17_spill] sm:$0xff] }
 0x728   : > { %15108 = vmatpush1.bf16.msra.mxu0 %v20876_v18  ;;  %v20954_v18 = vld [vmem:[%s21620_s30 + $0x30c8] ss:$16 sps:$4 sm:$0xff]  }
 0x729   : > { %15149 = vmatpush1.bf16.msra.mxu1 %v20879_v29  ;;  %15109 = vmatprep.subr.bf16.mxu0 %v20884_v21  ;;  %v20957_v29 = vld [vmem:[%s21620_s30 + $0x32c8] ss:$16 sps:$4 sm:$0xff]  }
 0x72a   : > { %15150 = vmatprep.subr.bf16.mxu1 %v20887_v27 }
 0x72c   : > { %15110 = vmatpush1.bf16.msra.mxu0 %v20882_v9  ;;  %v20962_v9 = vld [vmem:[%s21620_s30 + $0x30ac] ss:$16 sps:$4 sm:$0xff]  }
 0x72d   : > { %15151 = vmatpush1.bf16.msra.mxu1 %v20885_v2  ;;  %15111 = vmatprep.subr.bf16.mxu0 %v20890_v24  ;;  %v20965_v2 = vld [vmem:[%s21620_s30 + $0x32ac] ss:$16 sps:$4 sm:$0xff]  }
 0x72e   : > { %15152 = vmatprep.subr.bf16.mxu1 %v20893_v39 }
 0x730   : > { %15112 = vmatpush1.bf16.msra.mxu0 %v20888_v40  ;;  %v24406_v40 = vld [vmem:[#allocation18_spill] sm:$0xff] }
 0x731   : > { %15153 = vmatpush1.bf16.msra.mxu1 %v20891_v32  ;;  %15113 = vmatprep.subr.bf16.mxu0 %v20896_v33 }
 0x732   : > { %15154 = vmatprep.subr.bf16.mxu1 %v20899_v55 }
 0x734   : > { %15114 = vmatpush1.bf16.msra.mxu0 %v20894_v7  ;;  %v20960_v7 = vld [vmem:[%s21620_s30 + $0x30a8] ss:$16 sps:$4 sm:$0xff]  }
 0x735   : > { %15155 = vmatpush1.bf16.msra.mxu1 %v20897_v19  ;;  %15115 = vmatprep.subr.bf16.mxu0 %v20902_v53  ;;  %v20963_v19 = vld [vmem:[%s21620_s30 + $0x32a8] ss:$16 sps:$4 sm:$0xff]  }
 0x736   : > { %15156 = vmatprep.subr.bf16.mxu1 %v20905_v54 }
 0x738   : > { %15116 = vmatpush2.bf16.msra.mxu0 %v20900_v60  ;;  %v20971_v60 = vld [vmem:[%s21620_s30 + $0x328c] ss:$16 sps:$4 sm:$0xff]  }
 0x739   : > { %15157 = vmatpush2.bf16.msra.mxu1 %v20903_v37  ;;  %15117 = vmatprep.subr.bf16.mxu0 %v20908_v26  ;;  %v20966_v37 = vld [vmem:[%s21620_s30 + $0x3088] ss:$16 sps:$4 sm:$0xff]  }
 0x73a   : > { %15158 = vmatprep.subr.bf16.mxu1 %v20911_v38  ;;  %v20969_v26 = vld [vmem:[%s21620_s30 + $0x3288] ss:$16 sps:$4 sm:$0xff]   ;;  %v20974_v38 = vld [vmem:[%s21620_s30 + $0x306c] ss:$16 sps:$4 sm:$0xff]  }
 0x73c   : > { %15118 = vmatpush2.bf16.msra.mxu0 %v20906_v44  ;;  %v20977_v44 = vld [vmem:[%s21620_s30 + $0x326c] ss:$16 sps:$4 sm:$0xff]  }
 0x73d   : > { %15159 = vmatpush2.bf16.msra.mxu1 %v20909_v57  ;;  %15119 = vmatprep.subr.bf16.mxu0 %v20914_v58  ;;  %v20972_v57 = vld [vmem:[%s21620_s30 + $0x3068] ss:$16 sps:$4 sm:$0xff]  }
 0x73e   : > { %15160 = vmatprep.subr.bf16.mxu1 %v20917_v12  ;;  %v20975_v58 = vld [vmem:[%s21620_s30 + $0x3268] ss:$16 sps:$4 sm:$0xff]   ;;  %v20980_v12 = vld [vmem:[%s21620_s30 + $0x304c] ss:$16 sps:$4 sm:$0xff]  }
 0x740   : > { %15120 = vmatpush2.bf16.msra.mxu0 %v20912_v23  ;;  %v20983_v23 = vld [vmem:[%s21620_s30 + $0x324c] ss:$16 sps:$4 sm:$0xff]  }
 0x741   : > { %15161 = vmatpush2.bf16.msra.mxu1 %v20915_v45  ;;  %15121 = vmatprep.subr.bf16.mxu0 %v20920_v48  ;;  %v20978_v45 = vld [vmem:[%s21620_s30 + $0x3048] ss:$16 sps:$4 sm:$0xff]  }
 0x742   : > { %15162 = vmatprep.subr.bf16.mxu1 %v20923_v61  ;;  %v20981_v48 = vld [vmem:[%s21620_s30 + $0x3248] ss:$16 sps:$4 sm:$0xff]   ;;  %v20986_v61 = vld [vmem:[%s21620_s30 + $0x302c] ss:$16 sps:$4 sm:$0xff]  }
 0x744   : > { %15122 = vmatpush2.bf16.msra.mxu0 %v20918_v15  ;;  %v20989_v15 = vld [vmem:[%s21620_s30 + $0x322c] ss:$16 sps:$4 sm:$0xff]  }
 0x745   : > { %15163 = vmatpush2.bf16.msra.mxu1 %v20921_v47  ;;  %15123 = vmatprep.subr.bf16.mxu0 %v20926_v1  ;;  %v20984_v47 = vld [vmem:[%s21620_s30 + $0x3028] ss:$16 sps:$4 sm:$0xff]  }
 0x746   : > { %15164 = vmatprep.subr.bf16.mxu1 %v20929_v49  ;;  %v20987_v1 = vld [vmem:[%s21620_s30 + $0x3228] ss:$16 sps:$4 sm:$0xff]   ;;  %v20992_v49 = vld [vmem:[%s21620_s30 + $0x300c] ss:$16 sps:$4 sm:$0xff]  }
 0x748   : > { %15124 = vmatpush2.bf16.msra.mxu0 %v20924_v50  ;;  %v20995_v50 = vld [vmem:[%s21620_s30 + $0x320c] ss:$16 sps:$4 sm:$0xff]  }
 0x749   : > { %15165 = vmatpush2.bf16.msra.mxu1 %v20927_v51  ;;  %15125 = vmatprep.subr.bf16.mxu0 %v20932_v52  ;;  %v20990_v51 = vld [vmem:[%s21620_s30 + $0x3008] ss:$16 sps:$4 sm:$0xff]  }
 0x74a   : > { %15166 = vmatprep.subr.bf16.mxu1 %v20935_v25  ;;  %v20993_v52 = vld [vmem:[%s21620_s30 + $0x3208] ss:$16 sps:$4 sm:$0xff]   ;;  %v20998_v25 = vld [vmem:[%s21620_s30 + $0x31ec] ss:$16 sps:$4 sm:$0xff]  }
 0x74c   : > { %15126 = vmatpush2.bf16.msra.mxu0 %v20930_v10  ;;  %v21001_v10 = vld [vmem:[%s21620_s30 + $0x33ec] ss:$16 sps:$4 sm:$0xff]  }
 0x74d   : > { %15167 = vmatpush2.bf16.msra.mxu1 %v20933_v30  ;;  %15127 = vmatprep.subr.bf16.mxu0 %v20938_v16  ;;  %v20996_v30 = vld [vmem:[%s21620_s30 + $0x31e8] ss:$16 sps:$4 sm:$0xff]  }
 0x74e   : > { %15168 = vmatprep.subr.bf16.mxu1 %v20941_v41  ;;  %v20999_v16 = vld [vmem:[%s21620_s30 + $0x33e8] ss:$16 sps:$4 sm:$0xff]   ;;  %v21004_v41 = vld [vmem:[%s21620_s30 + $0x31cc] ss:$16 sps:$4 sm:$0xff]  }
 0x750   : > { %15128 = vmatpush2.bf16.msra.mxu0 %v20936_v42  ;;  %v21007_v42 = vld [vmem:[%s21620_s30 + $0x33cc] ss:$16 sps:$4 sm:$0xff]  }
 0x751   : > { %15169 = vmatpush2.bf16.msra.mxu1 %v20939_v59  ;;  %15129 = vmatprep.subr.bf16.mxu0 %v20944_v3  ;;  %v21002_v59 = vld [vmem:[%s21620_s30 + $0x31c8] ss:$16 sps:$4 sm:$0xff]  }
 0x752   : > { %15170 = vmatprep.subr.bf16.mxu1 %v20947_v5  ;;  %v21005_v3 = vld [vmem:[%s21620_s30 + $0x33c8] ss:$16 sps:$4 sm:$0xff]   ;;  %v21010_v5 = vld [vmem:[%s21620_s30 + $0x31ac] ss:$16 sps:$4 sm:$0xff]  }
 0x754   : > { %15130 = vmatpush2.bf16.msra.mxu0 %v20942_v22  ;;  %v21013_v22 = vld [vmem:[%s21620_s30 + $0x33ac] ss:$16 sps:$4 sm:$0xff]  }
 0x755   : > { %15171 = vmatpush2.bf16.msra.mxu1 %v20945_v31  ;;  %15181 = vmatprep.subr.bf16.mxu0 %v20950_v35  ;;  %v21008_v31 = vld [vmem:[%s21620_s30 + $0x31a8] ss:$16 sps:$4 sm:$0xff]  }
 0x756   : > { %15222 = vmatprep.subr.bf16.mxu1 %v20953_v43  ;;  %v21011_v35 = vld [vmem:[%s21620_s30 + $0x33a8] ss:$16 sps:$4 sm:$0xff]   ;;  %v21016_v43 = vld [vmem:[%s21620_s30 + $0x318c] ss:$16 sps:$4 sm:$0xff]  }
 0x757   : > { %v14887_v34 = vpop.f32.mrf.mxu0  ;;  %15132 = vmatmul.mubr.bf16.vlgmr.msra.gmra.mxu0 %v24404_v4  ;;  %v21023_v4 = vld [vmem:[%s21620_s30 + $0x3368] ss:$16 sps:$4 sm:$0xff]  }
 0x758   : > { %v14928_v20 = vpop.f32.mrf.mxu1  ;;  %15173 = vmatmul.mubr.bf16.vlgmr.msra.gmra.mxu1 %v24405_v14  ;;  %v14888_v17 = vadd.f32 %v14887_v34, %v23960_v62  ;;  %15182 = vmatpush1.bf16.msra.mxu0 %v20948_v28  ;;  %v24407_v62 = vld [vmem:[#allocation19_spill] sm:$0xff] }
 0x759   : > { %15223 = vmatpush1.bf16.msra.mxu1 %v20951_v0  ;;  %v14889_v21 = vpop.f32.mrf.mxu0  ;;  %15183 = vmatprep.subr.bf16.mxu0 %v20956_v8  ;;  %v21019_v28 = vld [vmem:[%s21620_s30 + $0x338c] ss:$16 sps:$4 sm:$0xff]   ;;  %v21014_v0 = vld [vmem:[%s21620_s30 + $0x3188] ss:$16 sps:$4 sm:$0xff]  }
 0x75a   : > { %v14930_v27 = vpop.f32.mrf.mxu1  ;;  %15224 = vmatprep.subr.bf16.mxu1 %v20959_v46  ;;  %v24034_v24 = vadd.f32 %v14928_v20, %v14888_v17  ;;  %v14890_v39 = vadd.f32 %v14889_v21, %v23965_v63  ;;  %15213 = vmatprep.mubr.bf16.mxu0 %v24406_v40  ;;  %v20968_v63 = vld [vmem:[%s21620_s30 + $0x308c] ss:$16 sps:$4 sm:$0xff]   ;;  %v21017_v8 = vld [vmem:[%s21620_s30 + $0x3388] ss:$16 sps:$4 sm:$0xff]  }
 0x75b   : > { %15254 = vmatprep.mubr.bf16.mxu1 %v24407_v62  ;;  %v14891_v32 = vpop.f32.mrf.mxu0  ;;  %v21022_v46 = vld [vmem:[%s21620_s30 + $0x316c] ss:$16 sps:$4 sm:$0xff]   ;;  %v21020_v20 = vld [vmem:[%s21620_s30 + $0x3168] ss:$16 sps:$4 sm:$0xff]  }
 0x75c   : > { %v14932_v33 = vpop.f32.mrf.mxu1  ;;  %v24039_v55 = vadd.f32 %v14930_v27, %v14890_v39  ;;  %15184 = vmatpush1.bf16.msra.mxu0 %v20954_v18  ;;  %v21025_v34 = vld [vmem:[%s21620_s30 + $0x336c] ss:$16 sps:$4 sm:$0xff]   ;;  %v21026_v18 = vld [vmem:[%s21620_s30 + $0x3148] ss:$16 sps:$4 sm:$0xff]  }
 0x75d   : > { %15225 = vmatpush1.bf16.msra.mxu1 %v20957_v29  ;;  %v14892_v53 = vpop.f32.mrf.mxu0  ;;  %15185 = vmatprep.subr.bf16.mxu0 %v20962_v9  ;;  %v21028_v14 = vld [vmem:[%s21620_s30 + $0x314c] ss:$16 sps:$4 sm:$0xff]   ;;  %v21029_v29 = vld [vmem:[%s21620_s30 + $0x3348] ss:$16 sps:$4 sm:$0xff]  }
 0x75e   : > { %v14933_v54 = vpop.f32.mrf.mxu1  ;;  %15226 = vmatprep.subr.bf16.mxu1 %v20965_v2  ;;  %v21031_v17 = vld [vmem:[%s21620_s30 + $0x334c] ss:$16 sps:$4 sm:$0xff]   ;;  %v21032_v9 = vld [vmem:[%s21620_s30 + $0x3128] ss:$16 sps:$4 sm:$0xff]  }
 0x75f   : > { %v21034_v21 = vld [vmem:[%s21620_s30 + $0x312c] ss:$16 sps:$4 sm:$0xff]   ;;  %v21035_v2 = vld [vmem:[%s21620_s30 + $0x3328] ss:$16 sps:$4 sm:$0xff]  }
 0x760   : > { %15186 = vmatpush1.bf16.msra.mxu0 %v20960_v7  ;;  %v21037_v27 = vld [vmem:[%s21620_s30 + $0x332c] ss:$16 sps:$4 sm:$0xff]   ;;  %v21038_v62 = vld [vmem:[%s21620_s30 + $0x3108] ss:$16 sps:$4 sm:$0xff]  }
 0x761   : > { %15227 = vmatpush1.bf16.msra.mxu1 %v20963_v19  ;;  %15187 = vmatprep.subr.bf16.mxu0 %v20968_v63  ;;  %v21040_v39 = vld [vmem:[%s21620_s30 + $0x310c] ss:$16 sps:$4 sm:$0xff]   ;;  %v21041_v32 = vld [vmem:[%s21620_s30 + $0x3308] ss:$16 sps:$4 sm:$0xff]  }
 0x762   : > { %15228 = vmatprep.subr.bf16.mxu1 %v20971_v60  ;;  %v21043_v40 = vld [vmem:[%s21620_s30 + $0x330c] ss:$16 sps:$4 sm:$0xff]   ;;  %v21044_v19 = vld [vmem:[%s21620_s30 + $0x34e8] ss:$16 sps:$4 sm:$0xff]  }
 0x763   : > { %v21046_v33 = vld [vmem:[%s21620_s30 + $0x34ec] ss:$16 sps:$4 sm:$0xff]   ;;  %v21047_v53 = vld [vmem:[%s21620_s30 + $0x36e8] ss:$16 sps:$4 sm:$0xff]  }
 0x764   : > { %15188 = vmatpush1.bf16.msra.mxu0 %v20966_v37  ;;  %v21049_v7 = vld [vmem:[%s21620_s30 + $0x36ec] ss:$16 sps:$4 sm:$0xff]  }
 0x765   : > { %15229 = vmatpush1.bf16.msra.mxu1 %v20969_v26  ;;  %15189 = vmatprep.subr.bf16.mxu0 %v20974_v38  ;;  %v21052_v54 = vld [vmem:[%s21620_s30 + $0x34cc] ss:$16 sps:$4 sm:$0xff]   ;;  %v24408_v26 = vld [vmem:[#allocation20_spill] sm:$0xff] }
 0x766   : > { %15230 = vmatprep.subr.bf16.mxu1 %v20977_v44  ;;  %v21055_v63 = vld [vmem:[%s21620_s30 + $0x36cc] ss:$16 sps:$4 sm:$0xff]  }
 0x767   : > { %v24409_v38 = vld [vmem:[#allocation21_spill] sm:$0xff] }
 0x768   : > { %15190 = vmatpush1.bf16.msra.mxu0 %v20972_v57  ;;  %v21050_v57 = vld [vmem:[%s21620_s30 + $0x34c8] ss:$16 sps:$4 sm:$0xff]  }
 0x769   : > { %15231 = vmatpush1.bf16.msra.mxu1 %v20975_v58  ;;  %15191 = vmatprep.subr.bf16.mxu0 %v20980_v12  ;;  %v21053_v58 = vld [vmem:[%s21620_s30 + $0x36c8] ss:$16 sps:$4 sm:$0xff]  }
 0x76a   : > { %15232 = vmatprep.subr.bf16.mxu1 %v20983_v23 }
 0x76c   : > { %15192 = vmatpush1.bf16.msra.mxu0 %v20978_v45  ;;  %v21058_v45 = vld [vmem:[%s21620_s30 + $0x34ac] ss:$16 sps:$4 sm:$0xff]  }
 0x76d   : > { %15233 = vmatpush1.bf16.msra.mxu1 %v20981_v48  ;;  %15193 = vmatprep.subr.bf16.mxu0 %v20986_v61  ;;  %v21061_v48 = vld [vmem:[%s21620_s30 + $0x36ac] ss:$16 sps:$4 sm:$0xff]  }
 0x76e   : > { %15234 = vmatprep.subr.bf16.mxu1 %v20989_v15 }
 0x770   : > { %15194 = vmatpush1.bf16.msra.mxu0 %v20984_v47  ;;  %v24410_v47 = vld [vmem:[#allocation22_spill] sm:$0xff] }
 0x771   : > { %15235 = vmatpush1.bf16.msra.mxu1 %v20987_v1  ;;  %15195 = vmatprep.subr.bf16.mxu0 %v20992_v49 }
 0x772   : > { %15236 = vmatprep.subr.bf16.mxu1 %v20995_v50 }
 0x774   : > { %15196 = vmatpush1.bf16.msra.mxu0 %v20990_v51  ;;  %v21056_v51 = vld [vmem:[%s21620_s30 + $0x34a8] ss:$16 sps:$4 sm:$0xff]  }
 0x775   : > { %15237 = vmatpush1.bf16.msra.mxu1 %v20993_v52  ;;  %15197 = vmatprep.subr.bf16.mxu0 %v20998_v25  ;;  %v21059_v52 = vld [vmem:[%s21620_s30 + $0x36a8] ss:$16 sps:$4 sm:$0xff]  }
 0x776   : > { %15238 = vmatprep.subr.bf16.mxu1 %v21001_v10 }
 0x778   : > { %15198 = vmatpush2.bf16.msra.mxu0 %v20996_v30  ;;  %v21067_v30 = vld [vmem:[%s21620_s30 + $0x368c] ss:$16 sps:$4 sm:$0xff]  }
 0x779   : > { %15239 = vmatpush2.bf16.msra.mxu1 %v20999_v16  ;;  %15199 = vmatprep.subr.bf16.mxu0 %v21004_v41  ;;  %v21062_v16 = vld [vmem:[%s21620_s30 + $0x3488] ss:$16 sps:$4 sm:$0xff]  }
 0x77a   : > { %15240 = vmatprep.subr.bf16.mxu1 %v21007_v42  ;;  %v21065_v41 = vld [vmem:[%s21620_s30 + $0x3688] ss:$16 sps:$4 sm:$0xff]   ;;  %v21070_v42 = vld [vmem:[%s21620_s30 + $0x346c] ss:$16 sps:$4 sm:$0xff]  }
 0x77c   : > { %15200 = vmatpush2.bf16.msra.mxu0 %v21002_v59  ;;  %v21073_v59 = vld [vmem:[%s21620_s30 + $0x366c] ss:$16 sps:$4 sm:$0xff]  }
 0x77d   : > { %15241 = vmatpush2.bf16.msra.mxu1 %v21005_v3  ;;  %15201 = vmatprep.subr.bf16.mxu0 %v21010_v5  ;;  %v21068_v3 = vld [vmem:[%s21620_s30 + $0x3468] ss:$16 sps:$4 sm:$0xff]  }
 0x77e   : > { %15242 = vmatprep.subr.bf16.mxu1 %v21013_v22  ;;  %v21071_v5 = vld [vmem:[%s21620_s30 + $0x3668] ss:$16 sps:$4 sm:$0xff]   ;;  %v21076_v22 = vld [vmem:[%s21620_s30 + $0x344c] ss:$16 sps:$4 sm:$0xff]  }
 0x780   : > { %15202 = vmatpush2.bf16.msra.mxu0 %v21008_v31  ;;  %v21079_v31 = vld [vmem:[%s21620_s30 + $0x364c] ss:$16 sps:$4 sm:$0xff]  }
 0x781   : > { %15243 = vmatpush2.bf16.msra.mxu1 %v21011_v35  ;;  %15203 = vmatprep.subr.bf16.mxu0 %v21016_v43  ;;  %v21074_v35 = vld [vmem:[%s21620_s30 + $0x3448] ss:$16 sps:$4 sm:$0xff]  }
 0x782   : > { %15244 = vmatprep.subr.bf16.mxu1 %v21019_v28  ;;  %v21077_v43 = vld [vmem:[%s21620_s30 + $0x3648] ss:$16 sps:$4 sm:$0xff]   ;;  %v21082_v28 = vld [vmem:[%s21620_s30 + $0x342c] ss:$16 sps:$4 sm:$0xff]  }
 0x784   : > { %15204 = vmatpush2.bf16.msra.mxu0 %v21014_v0  ;;  %v21085_v0 = vld [vmem:[%s21620_s30 + $0x362c] ss:$16 sps:$4 sm:$0xff]  }
 0x785   : > { %15245 = vmatpush2.bf16.msra.mxu1 %v21017_v8  ;;  %15205 = vmatprep.subr.bf16.mxu0 %v21022_v46  ;;  %v21080_v8 = vld [vmem:[%s21620_s30 + $0x3428] ss:$16 sps:$4 sm:$0xff]  }
 0x786   : > { %15246 = vmatprep.subr.bf16.mxu1 %v21025_v34  ;;  %v21083_v46 = vld [vmem:[%s21620_s30 + $0x3628] ss:$16 sps:$4 sm:$0xff]   ;;  %v21088_v34 = vld [vmem:[%s21620_s30 + $0x340c] ss:$16 sps:$4 sm:$0xff]  }
 0x788   : > { %15206 = vmatpush2.bf16.msra.mxu0 %v21020_v20  ;;  %v21091_v20 = vld [vmem:[%s21620_s30 + $0x360c] ss:$16 sps:$4 sm:$0xff]  }
 0x789   : > { %15247 = vmatpush2.bf16.msra.mxu1 %v21023_v4  ;;  %15207 = vmatprep.subr.bf16.mxu0 %v21028_v14  ;;  %v21086_v4 = vld [vmem:[%s21620_s30 + $0x3408] ss:$16 sps:$4 sm:$0xff]  }
 0x78a   : > { %15248 = vmatprep.subr.bf16.mxu1 %v21031_v17  ;;  %v21089_v14 = vld [vmem:[%s21620_s30 + $0x3608] ss:$16 sps:$4 sm:$0xff]   ;;  %v21094_v17 = vld [vmem:[%s21620_s30 + $0x35ec] ss:$16 sps:$4 sm:$0xff]  }
 0x78c   : > { %15208 = vmatpush2.bf16.msra.mxu0 %v21026_v18  ;;  %v21097_v18 = vld [vmem:[%s21620_s30 + $0x37ec] ss:$16 sps:$4 sm:$0xff]  }
 0x78d   : > { %15249 = vmatpush2.bf16.msra.mxu1 %v21029_v29  ;;  %15209 = vmatprep.subr.bf16.mxu0 %v21034_v21  ;;  %v21092_v29 = vld [vmem:[%s21620_s30 + $0x35e8] ss:$16 sps:$4 sm:$0xff]  }
 0x78e   : > { %15250 = vmatprep.subr.bf16.mxu1 %v21037_v27  ;;  %v21095_v21 = vld [vmem:[%s21620_s30 + $0x37e8] ss:$16 sps:$4 sm:$0xff]   ;;  %v21100_v27 = vld [vmem:[%s21620_s30 + $0x35cc] ss:$16 sps:$4 sm:$0xff]  }
 0x790   : > { %15210 = vmatpush2.bf16.msra.mxu0 %v21032_v9  ;;  %v21103_v9 = vld [vmem:[%s21620_s30 + $0x37cc] ss:$16 sps:$4 sm:$0xff]  }
 0x791   : > { %15251 = vmatpush2.bf16.msra.mxu1 %v21035_v2  ;;  %15211 = vmatprep.subr.bf16.mxu0 %v21040_v39  ;;  %v21098_v2 = vld [vmem:[%s21620_s30 + $0x35c8] ss:$16 sps:$4 sm:$0xff]  }
 0x792   : > { %15252 = vmatprep.subr.bf16.mxu1 %v21043_v40  ;;  %v21101_v39 = vld [vmem:[%s21620_s30 + $0x37c8] ss:$16 sps:$4 sm:$0xff]   ;;  %v21106_v40 = vld [vmem:[%s21620_s30 + $0x35ac] ss:$16 sps:$4 sm:$0xff]  }
 0x794   : > { %15212 = vmatpush2.bf16.msra.mxu0 %v21038_v62  ;;  %v21109_v62 = vld [vmem:[%s21620_s30 + $0x37ac] ss:$16 sps:$4 sm:$0xff]  }
 0x795   : > { %15253 = vmatpush2.bf16.msra.mxu1 %v21041_v32  ;;  %15263 = vmatprep.subr.bf16.mxu0 %v21046_v33  ;;  %v21104_v32 = vld [vmem:[%s21620_s30 + $0x35a8] ss:$16 sps:$4 sm:$0xff]  }
 0x796   : > { %15304 = vmatprep.subr.bf16.mxu1 %v21049_v7  ;;  %v21107_v33 = vld [vmem:[%s21620_s30 + $0x37a8] ss:$16 sps:$4 sm:$0xff]   ;;  %v21112_v7 = vld [vmem:[%s21620_s30 + $0x358c] ss:$16 sps:$4 sm:$0xff]  }
 0x797   : > { %v14969_v60 = vpop.f32.mrf.mxu0  ;;  %15214 = vmatmul.mubr.bf16.vlgmr.msra.gmra.mxu0 %v24408_v26  ;;  %v21119_v26 = vld [vmem:[%s21620_s30 + $0x3768] ss:$16 sps:$4 sm:$0xff]  }
 0x798   : > { %v15010_v37 = vpop.f32.mrf.mxu1  ;;  %15255 = vmatmul.mubr.bf16.vlgmr.msra.gmra.mxu1 %v24409_v38  ;;  %v14970_v44 = vadd.f32 %v14969_v60, %v24034_v24  ;;  %15264 = vmatpush1.bf16.msra.mxu0 %v21044_v19  ;;  %v24411_v24 = vld [vmem:[#allocation23_spill] sm:$0xff] }
 0x799   : > { %15305 = vmatpush1.bf16.msra.mxu1 %v21047_v53  ;;  %v14971_v12 = vpop.f32.mrf.mxu0  ;;  %15265 = vmatprep.subr.bf16.mxu0 %v21052_v54  ;;  %v21115_v19 = vld [vmem:[%s21620_s30 + $0x378c] ss:$16 sps:$4 sm:$0xff]   ;;  %v21110_v53 = vld [vmem:[%s21620_s30 + $0x3588] ss:$16 sps:$4 sm:$0xff]  }
 0x79a   : > { %v15012_v23 = vpop.f32.mrf.mxu1  ;;  %15306 = vmatprep.subr.bf16.mxu1 %v21055_v63  ;;  %v24108_v61 = vadd.f32 %v15010_v37, %v14970_v44  ;;  %v14972_v15 = vadd.f32 %v14971_v12, %v24039_v55  ;;  %15295 = vmatprep.mubr.bf16.mxu0 %v24410_v47  ;;  %v21064_v55 = vld [vmem:[%s21620_s30 + $0x348c] ss:$16 sps:$4 sm:$0xff]   ;;  %v21113_v54 = vld [vmem:[%s21620_s30 + $0x3788] ss:$16 sps:$4 sm:$0xff]  }
 0x79b   : > { %15336 = vmatprep.mubr.bf16.mxu1 %v24411_v24  ;;  %v14973_v1 = vpop.f32.mrf.mxu0  ;;  %v21118_v63 = vld [vmem:[%s21620_s30 + $0x356c] ss:$16 sps:$4 sm:$0xff]   ;;  %v21116_v37 = vld [vmem:[%s21620_s30 + $0x3568] ss:$16 sps:$4 sm:$0xff]  }
 0x79c   : > { %v15014_v49 = vpop.f32.mrf.mxu1  ;;  %v24113_v50 = vadd.f32 %v15012_v23, %v14972_v15  ;;  %15266 = vmatpush1.bf16.msra.mxu0 %v21050_v57  ;;  %v21121_v60 = vld [vmem:[%s21620_s30 + $0x376c] ss:$16 sps:$4 sm:$0xff]   ;;  %v21122_v57 = vld [vmem:[%s21620_s30 + $0x3548] ss:$16 sps:$4 sm:$0xff]  }
 0x79d   : > { %15307 = vmatpush1.bf16.msra.mxu1 %v21053_v58  ;;  %v14974_v25 = vpop.f32.mrf.mxu0  ;;  %15267 = vmatprep.subr.bf16.mxu0 %v21058_v45  ;;  %v21124_v38 = vld [vmem:[%s21620_s30 + $0x354c] ss:$16 sps:$4 sm:$0xff]   ;;  %v21125_v58 = vld [vmem:[%s21620_s30 + $0x3748] ss:$16 sps:$4 sm:$0xff]  }
 0x79e   : > { %v15015_v10 = vpop.f32.mrf.mxu1  ;;  %15308 = vmatprep.subr.bf16.mxu1 %v21061_v48  ;;  %v21127_v44 = vld [vmem:[%s21620_s30 + $0x374c] ss:$16 sps:$4 sm:$0xff]   ;;  %v21128_v45 = vld [vmem:[%s21620_s30 + $0x3528] ss:$16 sps:$4 sm:$0xff]  }
 0x79f   : > { %v21130_v12 = vld [vmem:[%s21620_s30 + $0x352c] ss:$16 sps:$4 sm:$0xff]   ;;  %v21131_v48 = vld [vmem:[%s21620_s30 + $0x3728] ss:$16 sps:$4 sm:$0xff]  }
 0x7a0   : > { %15268 = vmatpush1.bf16.msra.mxu0 %v21056_v51  ;;  %v21133_v23 = vld [vmem:[%s21620_s30 + $0x372c] ss:$16 sps:$4 sm:$0xff]   ;;  %v21134_v24 = vld [vmem:[%s21620_s30 + $0x3508] ss:$16 sps:$4 sm:$0xff]  }
 0x7a1   : > { %15309 = vmatpush1.bf16.msra.mxu1 %v21059_v52  ;;  %15269 = vmatprep.subr.bf16.mxu0 %v21064_v55  ;;  %v21136_v15 = vld [vmem:[%s21620_s30 + $0x350c] ss:$16 sps:$4 sm:$0xff]   ;;  %v21137_v1 = vld [vmem:[%s21620_s30 + $0x3708] ss:$16 sps:$4 sm:$0xff]  }
 0x7a2   : > { %15310 = vmatprep.subr.bf16.mxu1 %v21067_v30  ;;  %v21139_v47 = vld [vmem:[%s21620_s30 + $0x370c] ss:$16 sps:$4 sm:$0xff]   ;;  %v21140_v52 = vld [vmem:[%s21620_s30 + $0x38e8] ss:$16 sps:$4 sm:$0xff]  }
 0x7a3   : > { %v21142_v49 = vld [vmem:[%s21620_s30 + $0x38ec] ss:$16 sps:$4 sm:$0xff]   ;;  %v21143_v25 = vld [vmem:[%s21620_s30 + $0x3ae8] ss:$16 sps:$4 sm:$0xff]  }
 0x7a4   : > { %15270 = vmatpush1.bf16.msra.mxu0 %v21062_v16  ;;  %v21145_v51 = vld [vmem:[%s21620_s30 + $0x3aec] ss:$16 sps:$4 sm:$0xff]  }
 0x7a5   : > { %15311 = vmatpush1.bf16.msra.mxu1 %v21065_v41  ;;  %15271 = vmatprep.subr.bf16.mxu0 %v21070_v42  ;;  %v21148_v10 = vld [vmem:[%s21620_s30 + $0x38cc] ss:$16 sps:$4 sm:$0xff]   ;;  %v24412_v41 = vld [vmem:[#allocation24_spill] sm:$0xff] }
 0x7a6   : > { %15312 = vmatprep.subr.bf16.mxu1 %v21073_v59  ;;  %v21151_v55 = vld [vmem:[%s21620_s30 + $0x3acc] ss:$16 sps:$4 sm:$0xff]  }
 0x7a7   : > { %v24413_v42 = vld [vmem:[#allocation25_spill] sm:$0xff] }
 0x7a8   : > { %15272 = vmatpush1.bf16.msra.mxu0 %v21068_v3  ;;  %v21146_v3 = vld [vmem:[%s21620_s30 + $0x38c8] ss:$16 sps:$4 sm:$0xff]  }
 0x7a9   : > { %15313 = vmatpush1.bf16.msra.mxu1 %v21071_v5  ;;  %15273 = vmatprep.subr.bf16.mxu0 %v21076_v22  ;;  %v21149_v5 = vld [vmem:[%s21620_s30 + $0x3ac8] ss:$16 sps:$4 sm:$0xff]  }
 0x7aa   : > { %15314 = vmatprep.subr.bf16.mxu1 %v21079_v31 }
 0x7ac   : > { %15274 = vmatpush1.bf16.msra.mxu0 %v21074_v35  ;;  %v21154_v35 = vld [vmem:[%s21620_s30 + $0x38ac] ss:$16 sps:$4 sm:$0xff]  }
 0x7ad   : > { %15315 = vmatpush1.bf16.msra.mxu1 %v21077_v43  ;;  %15275 = vmatprep.subr.bf16.mxu0 %v21082_v28  ;;  %v21157_v43 = vld [vmem:[%s21620_s30 + $0x3aac] ss:$16 sps:$4 sm:$0xff]  }
 0x7ae   : > { %15316 = vmatprep.subr.bf16.mxu1 %v21085_v0 }
 0x7b0   : > { %15276 = vmatpush1.bf16.msra.mxu0 %v21080_v8  ;;  %v24414_v8 = vld [vmem:[#allocation26_spill] sm:$0xff] }
 0x7b1   : > { %15317 = vmatpush1.bf16.msra.mxu1 %v21083_v46  ;;  %15277 = vmatprep.subr.bf16.mxu0 %v21088_v34 }
 0x7b2   : > { %15318 = vmatprep.subr.bf16.mxu1 %v21091_v20 }
 0x7b4   : > { %15278 = vmatpush1.bf16.msra.mxu0 %v21086_v4  ;;  %v21152_v4 = vld [vmem:[%s21620_s30 + $0x38a8] ss:$16 sps:$4 sm:$0xff]  }
 0x7b5   : > { %15319 = vmatpush1.bf16.msra.mxu1 %v21089_v14  ;;  %15279 = vmatprep.subr.bf16.mxu0 %v21094_v17  ;;  %v21155_v14 = vld [vmem:[%s21620_s30 + $0x3aa8] ss:$16 sps:$4 sm:$0xff]  }
 0x7b6   : > { %15320 = vmatprep.subr.bf16.mxu1 %v21097_v18 }
 0x7b8   : > { %15280 = vmatpush2.bf16.msra.mxu0 %v21092_v29  ;;  %v21163_v29 = vld [vmem:[%s21620_s30 + $0x3a8c] ss:$16 sps:$4 sm:$0xff]  }
 0x7b9   : > { %15321 = vmatpush2.bf16.msra.mxu1 %v21095_v21  ;;  %15281 = vmatprep.subr.bf16.mxu0 %v21100_v27  ;;  %v21158_v21 = vld [vmem:[%s21620_s30 + $0x3888] ss:$16 sps:$4 sm:$0xff]  }
 0x7ba   : > { %15322 = vmatprep.subr.bf16.mxu1 %v21103_v9  ;;  %v21161_v27 = vld [vmem:[%s21620_s30 + $0x3a88] ss:$16 sps:$4 sm:$0xff]   ;;  %v21166_v9 = vld [vmem:[%s21620_s30 + $0x386c] ss:$16 sps:$4 sm:$0xff]  }
 0x7bc   : > { %15282 = vmatpush2.bf16.msra.mxu0 %v21098_v2  ;;  %v21169_v2 = vld [vmem:[%s21620_s30 + $0x3a6c] ss:$16 sps:$4 sm:$0xff]  }
 0x7bd   : > { %15323 = vmatpush2.bf16.msra.mxu1 %v21101_v39  ;;  %15283 = vmatprep.subr.bf16.mxu0 %v21106_v40  ;;  %v21164_v39 = vld [vmem:[%s21620_s30 + $0x3868] ss:$16 sps:$4 sm:$0xff]  }
 0x7be   : > { %15324 = vmatprep.subr.bf16.mxu1 %v21109_v62  ;;  %v21167_v40 = vld [vmem:[%s21620_s30 + $0x3a68] ss:$16 sps:$4 sm:$0xff]   ;;  %v21172_v62 = vld [vmem:[%s21620_s30 + $0x384c] ss:$16 sps:$4 sm:$0xff]  }
 0x7c0   : > { %15284 = vmatpush2.bf16.msra.mxu0 %v21104_v32  ;;  %v21175_v32 = vld [vmem:[%s21620_s30 + $0x3a4c] ss:$16 sps:$4 sm:$0xff]  }
 0x7c1   : > { %15325 = vmatpush2.bf16.msra.mxu1 %v21107_v33  ;;  %15285 = vmatprep.subr.bf16.mxu0 %v21112_v7  ;;  %v21170_v33 = vld [vmem:[%s21620_s30 + $0x3848] ss:$16 sps:$4 sm:$0xff]  }
 0x7c2   : > { %15326 = vmatprep.subr.bf16.mxu1 %v21115_v19  ;;  %v21173_v7 = vld [vmem:[%s21620_s30 + $0x3a48] ss:$16 sps:$4 sm:$0xff]   ;;  %v21178_v19 = vld [vmem:[%s21620_s30 + $0x382c] ss:$16 sps:$4 sm:$0xff]  }
 0x7c4   : > { %15286 = vmatpush2.bf16.msra.mxu0 %v21110_v53  ;;  %v21181_v53 = vld [vmem:[%s21620_s30 + $0x3a2c] ss:$16 sps:$4 sm:$0xff]  }
 0x7c5   : > { %15327 = vmatpush2.bf16.msra.mxu1 %v21113_v54  ;;  %15287 = vmatprep.subr.bf16.mxu0 %v21118_v63  ;;  %v21176_v54 = vld [vmem:[%s21620_s30 + $0x3828] ss:$16 sps:$4 sm:$0xff]  }
 0x7c6   : > { %15328 = vmatprep.subr.bf16.mxu1 %v21121_v60  ;;  %v21179_v63 = vld [vmem:[%s21620_s30 + $0x3a28] ss:$16 sps:$4 sm:$0xff]   ;;  %v21184_v60 = vld [vmem:[%s21620_s30 + $0x380c] ss:$16 sps:$4 sm:$0xff]  }
 0x7c8   : > { %15288 = vmatpush2.bf16.msra.mxu0 %v21116_v37  ;;  %v21187_v37 = vld [vmem:[%s21620_s30 + $0x3a0c] ss:$16 sps:$4 sm:$0xff]  }
 0x7c9   : > { %15329 = vmatpush2.bf16.msra.mxu1 %v21119_v26  ;;  %15289 = vmatprep.subr.bf16.mxu0 %v21124_v38  ;;  %v21182_v26 = vld [vmem:[%s21620_s30 + $0x3808] ss:$16 sps:$4 sm:$0xff]  }
 0x7ca   : > { %15330 = vmatprep.subr.bf16.mxu1 %v21127_v44  ;;  %v21185_v38 = vld [vmem:[%s21620_s30 + $0x3a08] ss:$16 sps:$4 sm:$0xff]   ;;  %v21190_v44 = vld [vmem:[%s21620_s30 + $0x39ec] ss:$16 sps:$4 sm:$0xff]  }
 0x7cc   : > { %15290 = vmatpush2.bf16.msra.mxu0 %v21122_v57  ;;  %v21193_v57 = vld [vmem:[%s21620_s30 + $0x3bec] ss:$16 sps:$4 sm:$0xff]  }
 0x7cd   : > { %15331 = vmatpush2.bf16.msra.mxu1 %v21125_v58  ;;  %15291 = vmatprep.subr.bf16.mxu0 %v21130_v12  ;;  %v21188_v58 = vld [vmem:[%s21620_s30 + $0x39e8] ss:$16 sps:$4 sm:$0xff]  }
 0x7ce   : > { %15332 = vmatprep.subr.bf16.mxu1 %v21133_v23  ;;  %v21191_v12 = vld [vmem:[%s21620_s30 + $0x3be8] ss:$16 sps:$4 sm:$0xff]   ;;  %v21196_v23 = vld [vmem:[%s21620_s30 + $0x39cc] ss:$16 sps:$4 sm:$0xff]  }
 0x7d0   : > { %15292 = vmatpush2.bf16.msra.mxu0 %v21128_v45  ;;  %v21199_v45 = vld [vmem:[%s21620_s30 + $0x3bcc] ss:$16 sps:$4 sm:$0xff]  }
 0x7d1   : > { %15333 = vmatpush2.bf16.msra.mxu1 %v21131_v48  ;;  %15293 = vmatprep.subr.bf16.mxu0 %v21136_v15  ;;  %v21194_v48 = vld [vmem:[%s21620_s30 + $0x39c8] ss:$16 sps:$4 sm:$0xff]  }
 0x7d2   : > { %15334 = vmatprep.subr.bf16.mxu1 %v21139_v47  ;;  %v21197_v15 = vld [vmem:[%s21620_s30 + $0x3bc8] ss:$16 sps:$4 sm:$0xff]   ;;  %v21202_v47 = vld [vmem:[%s21620_s30 + $0x39ac] ss:$16 sps:$4 sm:$0xff]  }
 0x7d4   : > { %15294 = vmatpush2.bf16.msra.mxu0 %v21134_v24  ;;  %v21205_v24 = vld [vmem:[%s21620_s30 + $0x3bac] ss:$16 sps:$4 sm:$0xff]  }
 0x7d5   : > { %15335 = vmatpush2.bf16.msra.mxu1 %v21137_v1  ;;  %15345 = vmatprep.subr.bf16.mxu0 %v21142_v49  ;;  %v21200_v1 = vld [vmem:[%s21620_s30 + $0x39a8] ss:$16 sps:$4 sm:$0xff]  }
 0x7d6   : > { %15386 = vmatprep.subr.bf16.mxu1 %v21145_v51  ;;  %v21203_v49 = vld [vmem:[%s21620_s30 + $0x3ba8] ss:$16 sps:$4 sm:$0xff]   ;;  %v21208_v51 = vld [vmem:[%s21620_s30 + $0x398c] ss:$16 sps:$4 sm:$0xff]  }
 0x7d7   : > { %v15051_v30 = vpop.f32.mrf.mxu0  ;;  %15296 = vmatmul.mubr.bf16.vlgmr.msra.gmra.mxu0 %v24412_v41  ;;  %v21215_v41 = vld [vmem:[%s21620_s30 + $0x3b68] ss:$16 sps:$4 sm:$0xff]  }
 0x7d8   : > { %v15092_v16 = vpop.f32.mrf.mxu1  ;;  %15337 = vmatmul.mubr.bf16.vlgmr.msra.gmra.mxu1 %v24413_v42  ;;  %v15052_v59 = vadd.f32 %v15051_v30, %v24108_v61  ;;  %15346 = vmatpush1.bf16.msra.mxu0 %v21140_v52  ;;  %v24415_v61 = vld [vmem:[#allocation27_spill] sm:$0xff] }
 0x7d9   : > { %15387 = vmatpush1.bf16.msra.mxu1 %v21143_v25  ;;  %v15053_v22 = vpop.f32.mrf.mxu0  ;;  %15347 = vmatprep.subr.bf16.mxu0 %v21148_v10  ;;  %v21211_v52 = vld [vmem:[%s21620_s30 + $0x3b8c] ss:$16 sps:$4 sm:$0xff]   ;;  %v21206_v25 = vld [vmem:[%s21620_s30 + $0x3988] ss:$16 sps:$4 sm:$0xff]  }
 0x7da   : > { %v15094_v31 = vpop.f32.mrf.mxu1  ;;  %15388 = vmatprep.subr.bf16.mxu1 %v21151_v55  ;;  %v24182_v28 = vadd.f32 %v15092_v16, %v15052_v59  ;;  %v15054_v0 = vadd.f32 %v15053_v22, %v24113_v50  ;;  %15377 = vmatprep.mubr.bf16.mxu0 %v24414_v8  ;;  %v21160_v50 = vld [vmem:[%s21620_s30 + $0x388c] ss:$16 sps:$4 sm:$0xff]   ;;  %v21209_v10 = vld [vmem:[%s21620_s30 + $0x3b88] ss:$16 sps:$4 sm:$0xff]  }
 0x7db   : > { %15418 = vmatprep.mubr.bf16.mxu1 %v24415_v61  ;;  %v15055_v46 = vpop.f32.mrf.mxu0  ;;  %v21214_v55 = vld [vmem:[%s21620_s30 + $0x396c] ss:$16 sps:$4 sm:$0xff]   ;;  %v21212_v16 = vld [vmem:[%s21620_s30 + $0x3968] ss:$16 sps:$4 sm:$0xff]  }
 0x7dc   : > { %v15096_v34 = vpop.f32.mrf.mxu1  ;;  %v24187_v20 = vadd.f32 %v15094_v31, %v15054_v0  ;;  %15348 = vmatpush1.bf16.msra.mxu0 %v21146_v3  ;;  %v21217_v30 = vld [vmem:[%s21620_s30 + $0x3b6c] ss:$16 sps:$4 sm:$0xff]   ;;  %v21218_v3 = vld [vmem:[%s21620_s30 + $0x3948] ss:$16 sps:$4 sm:$0xff]  }
 0x7dd   : > { %15389 = vmatpush1.bf16.msra.mxu1 %v21149_v5  ;;  %v15056_v17 = vpop.f32.mrf.mxu0  ;;  %15349 = vmatprep.subr.bf16.mxu0 %v21154_v35  ;;  %v21220_v42 = vld [vmem:[%s21620_s30 + $0x394c] ss:$16 sps:$4 sm:$0xff]   ;;  %v21221_v5 = vld [vmem:[%s21620_s30 + $0x3b48] ss:$16 sps:$4 sm:$0xff]  }
 0x7de   : > { %v15097_v18 = vpop.f32.mrf.mxu1  ;;  %15390 = vmatprep.subr.bf16.mxu1 %v21157_v43  ;;  %v21223_v59 = vld [vmem:[%s21620_s30 + $0x3b4c] ss:$16 sps:$4 sm:$0xff]   ;;  %v21224_v35 = vld [vmem:[%s21620_s30 + $0x3928] ss:$16 sps:$4 sm:$0xff]  }
 0x7df   : > { %v21226_v22 = vld [vmem:[%s21620_s30 + $0x392c] ss:$16 sps:$4 sm:$0xff]   ;;  %v21227_v43 = vld [vmem:[%s21620_s30 + $0x3b28] ss:$16 sps:$4 sm:$0xff]  }
 0x7e0   : > { %15350 = vmatpush1.bf16.msra.mxu0 %v21152_v4  ;;  %v21229_v31 = vld [vmem:[%s21620_s30 + $0x3b2c] ss:$16 sps:$4 sm:$0xff]   ;;  %v21230_v61 = vld [vmem:[%s21620_s30 + $0x3908] ss:$16 sps:$4 sm:$0xff]  }
 0x7e1   : > { %15391 = vmatpush1.bf16.msra.mxu1 %v21155_v14  ;;  %15351 = vmatprep.subr.bf16.mxu0 %v21160_v50  ;;  %v21232_v0 = vld [vmem:[%s21620_s30 + $0x390c] ss:$16 sps:$4 sm:$0xff]   ;;  %v21233_v46 = vld [vmem:[%s21620_s30 + $0x3b08] ss:$16 sps:$4 sm:$0xff]  }
 0x7e2   : > { %15392 = vmatprep.subr.bf16.mxu1 %v21163_v29  ;;  %v21235_v8 = vld [vmem:[%s21620_s30 + $0x3b0c] ss:$16 sps:$4 sm:$0xff]   ;;  %v21236_v14 = vld [vmem:[%s21620_s30 + $0x3ce8] ss:$16 sps:$4 sm:$0xff]  }
 0x7e3   : > { %v21238_v34 = vld [vmem:[%s21620_s30 + $0x3cec] ss:$16 sps:$4 sm:$0xff]   ;;  %v21239_v17 = vld [vmem:[%s21620_s30 + $0x3ee8] ss:$16 sps:$4 sm:$0xff]  }
 0x7e4   : > { %15352 = vmatpush1.bf16.msra.mxu0 %v21158_v21  ;;  %v21241_v4 = vld [vmem:[%s21620_s30 + $0x3eec] ss:$16 sps:$4 sm:$0xff]  }
 0x7e5   : > { %15393 = vmatpush1.bf16.msra.mxu1 %v21161_v27  ;;  %15353 = vmatprep.subr.bf16.mxu0 %v21166_v9  ;;  %v21244_v18 = vld [vmem:[%s21620_s30 + $0x3ccc] ss:$16 sps:$4 sm:$0xff]   ;;  %v24416_v27 = vld [vmem:[#allocation28_spill] sm:$0xff] }
 0x7e6   : > { %15394 = vmatprep.subr.bf16.mxu1 %v21169_v2  ;;  %v21247_v50 = vld [vmem:[%s21620_s30 + $0x3ecc] ss:$16 sps:$4 sm:$0xff]   ;;  %v21242_v2 = vld [vmem:[%s21620_s30 + $0x3cc8] ss:$16 sps:$4 sm:$0xff]  }
 0x7e8   : > { %15354 = vmatpush1.bf16.msra.mxu0 %v21164_v39  ;;  %v21245_v39 = vld [vmem:[%s21620_s30 + $0x3ec8] ss:$16 sps:$4 sm:$0xff]  }
 0x7e9   : > { %15395 = vmatpush1.bf16.msra.mxu1 %v21167_v40  ;;  %15355 = vmatprep.subr.bf16.mxu0 %v21172_v62 }
 0x7ea   : > { %15396 = vmatprep.subr.bf16.mxu1 %v21175_v32  ;;  %v21250_v32 = vld [vmem:[%s21620_s30 + $0x3cac] ss:$16 sps:$4 sm:$0xff]  }
 0x7ec   : > { %15356 = vmatpush1.bf16.msra.mxu0 %v21170_v33  ;;  %v21253_v33 = vld [vmem:[%s21620_s30 + $0x3eac] ss:$16 sps:$4 sm:$0xff]  }
 0x7ed   : > { %15397 = vmatpush1.bf16.msra.mxu1 %v21173_v7  ;;  %15357 = vmatprep.subr.bf16.mxu0 %v21178_v19 }
 0x7ee   : > { %15398 = vmatprep.subr.bf16.mxu1 %v21181_v53 }
 0x7f0   : > { %15358 = vmatpush1.bf16.msra.mxu0 %v21176_v54  ;;  %v21248_v54 = vld [vmem:[%s21620_s30 + $0x3ca8] ss:$16 sps:$4 sm:$0xff]  }
 0x7f1   : > { %15399 = vmatpush1.bf16.msra.mxu1 %v21179_v63  ;;  %15359 = vmatprep.subr.bf16.mxu0 %v21184_v60  ;;  %v21251_v63 = vld [vmem:[%s21620_s30 + $0x3ea8] ss:$16 sps:$4 sm:$0xff]  }
 0x7f2   : > { %15400 = vmatprep.subr.bf16.mxu1 %v21187_v37 }
 0x7f4   : > { %15360 = vmatpush1.bf16.msra.mxu0 %v21182_v26  ;;  %v21257_v26 = vld [vmem:[%s21620_s30 + $0x3e88] ss:$16 sps:$4 sm:$0xff]  }
 0x7f5   : > { %15401 = vmatpush1.bf16.msra.mxu1 %v21185_v38  ;;  %15361 = vmatprep.subr.bf16.mxu0 %v21190_v44  ;;  %v21262_v38 = vld [vmem:[%s21620_s30 + $0x3c6c] ss:$16 sps:$4 sm:$0xff]  }
 0x7f6   : > { %15402 = vmatprep.subr.bf16.mxu1 %v21193_v57  ;;  %v21265_v44 = vld [vmem:[%s21620_s30 + $0x3e6c] ss:$16 sps:$4 sm:$0xff]   ;;  %v21260_v57 = vld [vmem:[%s21620_s30 + $0x3c68] ss:$16 sps:$4 sm:$0xff]  }
 0x7f8   : > { %15362 = vmatpush2.bf16.msra.mxu0 %v21188_v58  ;;  %v21263_v58 = vld [vmem:[%s21620_s30 + $0x3e68] ss:$16 sps:$4 sm:$0xff]  }
 0x7f9   : > { %15403 = vmatpush2.bf16.msra.mxu1 %v21191_v12  ;;  %15363 = vmatprep.subr.bf16.mxu0 %v21196_v23  ;;  %v21268_v12 = vld [vmem:[%s21620_s30 + $0x3c4c] ss:$16 sps:$4 sm:$0xff]  }
 0x7fa   : > { %15404 = vmatprep.subr.bf16.mxu1 %v21199_v45  ;;  %v21271_v23 = vld [vmem:[%s21620_s30 + $0x3e4c] ss:$16 sps:$4 sm:$0xff]   ;;  %v21266_v45 = vld [vmem:[%s21620_s30 + $0x3c48] ss:$16 sps:$4 sm:$0xff]  }
 0x7fc   : > { %15364 = vmatpush2.bf16.msra.mxu0 %v21194_v48  ;;  %v21269_v48 = vld [vmem:[%s21620_s30 + $0x3e48] ss:$16 sps:$4 sm:$0xff]  }
 0x7fd   : > { %15405 = vmatpush2.bf16.msra.mxu1 %v21197_v15  ;;  %15365 = vmatprep.subr.bf16.mxu0 %v21202_v47  ;;  %v21274_v15 = vld [vmem:[%s21620_s30 + $0x3c2c] ss:$16 sps:$4 sm:$0xff]  }
 0x7fe   : > { %15406 = vmatprep.subr.bf16.mxu1 %v21205_v24  ;;  %v21277_v47 = vld [vmem:[%s21620_s30 + $0x3e2c] ss:$16 sps:$4 sm:$0xff]   ;;  %v21272_v24 = vld [vmem:[%s21620_s30 + $0x3c28] ss:$16 sps:$4 sm:$0xff]  }
 0x800   : > { %15366 = vmatpush2.bf16.msra.mxu0 %v21200_v1  ;;  %v21275_v1 = vld [vmem:[%s21620_s30 + $0x3e28] ss:$16 sps:$4 sm:$0xff]  }
 0x801   : > { %15407 = vmatpush2.bf16.msra.mxu1 %v21203_v49  ;;  %15367 = vmatprep.subr.bf16.mxu0 %v21208_v51  ;;  %v21280_v49 = vld [vmem:[%s21620_s30 + $0x3c0c] ss:$16 sps:$4 sm:$0xff]  }
 0x802   : > { %15408 = vmatprep.subr.bf16.mxu1 %v21211_v52  ;;  %v21283_v51 = vld [vmem:[%s21620_s30 + $0x3e0c] ss:$16 sps:$4 sm:$0xff]   ;;  %v21278_v52 = vld [vmem:[%s21620_s30 + $0x3c08] ss:$16 sps:$4 sm:$0xff]  }
 0x804   : > { %15368 = vmatpush2.bf16.msra.mxu0 %v21206_v25  ;;  %v21281_v25 = vld [vmem:[%s21620_s30 + $0x3e08] ss:$16 sps:$4 sm:$0xff]  }
 0x805   : > { %15409 = vmatpush2.bf16.msra.mxu1 %v21209_v10  ;;  %15369 = vmatprep.subr.bf16.mxu0 %v21214_v55  ;;  %v21286_v10 = vld [vmem:[%s21620_s30 + $0x3dec] ss:$16 sps:$4 sm:$0xff]  }
 0x806   : > { %15410 = vmatprep.subr.bf16.mxu1 %v21217_v30  ;;  %v21289_v55 = vld [vmem:[%s21620_s30 + $0x3fec] ss:$16 sps:$4 sm:$0xff]   ;;  %v21284_v30 = vld [vmem:[%s21620_s30 + $0x3de8] ss:$16 sps:$4 sm:$0xff]  }
 0x808   : > { %15370 = vmatpush2.bf16.msra.mxu0 %v21212_v16  ;;  %v21287_v16 = vld [vmem:[%s21620_s30 + $0x3fe8] ss:$16 sps:$4 sm:$0xff]  }
 0x809   : > { %15411 = vmatpush2.bf16.msra.mxu1 %v21215_v41  ;;  %15371 = vmatprep.subr.bf16.mxu0 %v21220_v42  ;;  %v21292_v41 = vld [vmem:[%s21620_s30 + $0x3dcc] ss:$16 sps:$4 sm:$0xff]  }
 0x80a   : > { %15412 = vmatprep.subr.bf16.mxu1 %v21223_v59  ;;  %v21295_v42 = vld [vmem:[%s21620_s30 + $0x3fcc] ss:$16 sps:$4 sm:$0xff]   ;;  %v21290_v59 = vld [vmem:[%s21620_s30 + $0x3dc8] ss:$16 sps:$4 sm:$0xff]  }
 0x80c   : > { %15372 = vmatpush2.bf16.msra.mxu0 %v21218_v3  ;;  %v21293_v3 = vld [vmem:[%s21620_s30 + $0x3fc8] ss:$16 sps:$4 sm:$0xff]  }
 0x80d   : > { %15413 = vmatpush2.bf16.msra.mxu1 %v21221_v5  ;;  %15373 = vmatprep.subr.bf16.mxu0 %v21226_v22  ;;  %v21298_v5 = vld [vmem:[%s21620_s30 + $0x3dac] ss:$16 sps:$4 sm:$0xff]  }
 0x80e   : > { %15414 = vmatprep.subr.bf16.mxu1 %v21229_v31  ;;  %v21301_v22 = vld [vmem:[%s21620_s30 + $0x3fac] ss:$16 sps:$4 sm:$0xff]   ;;  %v21296_v31 = vld [vmem:[%s21620_s30 + $0x3da8] ss:$16 sps:$4 sm:$0xff]  }
 0x810   : > { %15374 = vmatpush2.bf16.msra.mxu0 %v21224_v35  ;;  %v21299_v35 = vld [vmem:[%s21620_s30 + $0x3fa8] ss:$16 sps:$4 sm:$0xff]  }
 0x811   : > { %15415 = vmatpush2.bf16.msra.mxu1 %v21227_v43  ;;  %15375 = vmatprep.subr.bf16.mxu0 %v21232_v0  ;;  %v21304_v43 = vld [vmem:[%s21620_s30 + $0x3d8c] ss:$16 sps:$4 sm:$0xff]  }
 0x812   : > { %15416 = vmatprep.subr.bf16.mxu1 %v21235_v8  ;;  %v21307_v0 = vld [vmem:[%s21620_s30 + $0x3f8c] ss:$16 sps:$4 sm:$0xff]   ;;  %v21302_v8 = vld [vmem:[%s21620_s30 + $0x3d88] ss:$16 sps:$4 sm:$0xff]  }
 0x814   : > { %15376 = vmatpush2.bf16.msra.mxu0 %v21230_v61  ;;  %v21305_v61 = vld [vmem:[%s21620_s30 + $0x3f88] ss:$16 sps:$4 sm:$0xff]  }
 0x815   : > { %15417 = vmatpush2.bf16.msra.mxu1 %v21233_v46  ;;  %15427 = vmatprep.subr.bf16.mxu0 %v21238_v34  ;;  %v21310_v46 = vld [vmem:[%s21620_s30 + $0x3d6c] ss:$16 sps:$4 sm:$0xff]  }
 0x816   : > { %15468 = vmatprep.subr.bf16.mxu1 %v21241_v4  ;;  %v21313_v34 = vld [vmem:[%s21620_s30 + $0x3f6c] ss:$16 sps:$4 sm:$0xff]   ;;  %v21308_v4 = vld [vmem:[%s21620_s30 + $0x3d68] ss:$16 sps:$4 sm:$0xff]  }
 0x817   : > { %v15133_v29 = vpop.f32.mrf.mxu0  ;;  %15378 = vmatmul.mubr.bf16.vlgmr.msra.gmra.mxu0 %v24416_v27  ;;  %v21325_v27 = vld [vmem:[%s21620_s30 + $0x3f2c] ss:$16 sps:$4 sm:$0xff]  }
 0x818   : > { %v15174_v21 = vpop.f32.mrf.mxu1  ;;  %15419 = vmatmul.mubr.bf16.vlgmr.msra.gmra.mxu1 %v23045_v56  ;;  %v15134_v9 = vadd.f32 %v15133_v29, %v24182_v28  ;;  %15428 = vmatpush1.bf16.msra.mxu0 %v21236_v14  ;;  %v21311_v14 = vld [vmem:[%s21620_s30 + $0x3f68] ss:$16 sps:$4 sm:$0xff]  }
 0x819   : > { %15469 = vmatpush1.bf16.msra.mxu1 %v21239_v17  ;;  %v15135_v40 = vpop.f32.mrf.mxu0  ;;  %15429 = vmatprep.subr.bf16.mxu0 %v21244_v18  ;;  %v21316_v17 = vld [vmem:[%s21620_s30 + $0x3d4c] ss:$16 sps:$4 sm:$0xff]   ;;  %v21317_v29 = vld [vmem:[%s21620_s30 + $0x3f48] ss:$16 sps:$4 sm:$0xff]  }
 0x81a   : > { %v15176_v62 = vpop.f32.mrf.mxu1  ;;  %15470 = vmatprep.subr.bf16.mxu1 %v21247_v50  ;;  %v24256_v7 = vadd.f32 %v15174_v21, %v15134_v9  ;;  %v15136_v56 = vadd.f32 %v15135_v40, %v24187_v20  ;;  %15459 = vmatprep.mubr.bf16.mxu0 %v23053_v13  ;;  %v21256_v13 = vld [vmem:[%s21620_s30 + $0x3c8c] ss:$16 sps:$4 sm:$0xff]   ;;  %v21254_v20 = vld [vmem:[%s21620_s30 + $0x3c88] ss:$16 sps:$4 sm:$0xff]  }
 0x81b   : > { %15500 = vmatprep.mubr.bf16.mxu1 %v23057_v6  ;;  %v15137_v28 = vpop.f32.mrf.mxu0  ;;  %v21259_v6 = vld [vmem:[%s21620_s30 + $0x3e8c] ss:$16 sps:$4 sm:$0xff]   ;;  %v21314_v50 = vld [vmem:[%s21620_s30 + $0x3d48] ss:$16 sps:$4 sm:$0xff]  }
 0x81c   : > { %v15178_v19 = vpop.f32.mrf.mxu1  ;;  %v24261_v53 = vadd.f32 %v15176_v62, %v15136_v56  ;;  %15430 = vmatpush1.bf16.msra.mxu0 %v21242_v2  ;;  %v21319_v18 = vld [vmem:[%s21620_s30 + $0x3f4c] ss:$16 sps:$4 sm:$0xff]   ;;  %v21320_v9 = vld [vmem:[%s21620_s30 + $0x3d28] ss:$16 sps:$4 sm:$0xff]  }
 0x81d   : > { %15471 = vmatpush1.bf16.msra.mxu1 %v21245_v39  ;;  %v15138_v60 = vpop.f32.mrf.mxu0  ;;  %15431 = vmatprep.subr.bf16.mxu0 %v21250_v32  ;;  %v21322_v21 = vld [vmem:[%s21620_s30 + $0x3d2c] ss:$16 sps:$4 sm:$0xff]   ;;  %v21323_v2 = vld [vmem:[%s21620_s30 + $0x3f28] ss:$16 sps:$4 sm:$0xff]  }
 0x81e   : > { %v15179_v37 = vpop.f32.mrf.mxu1  ;;  %15472 = vmatprep.subr.bf16.mxu1 %v21253_v33  ;;  %v21328_v39 = vld [vmem:[%s21620_s30 + $0x3d0c] ss:$16 sps:$4 sm:$0xff]   ;;  %v21326_v62 = vld [vmem:[%s21620_s30 + $0x3d08] ss:$16 sps:$4 sm:$0xff]  }
 0x81f   : > { %v21331_v40 = vld [vmem:[%s21620_s30 + $0x3f0c] ss:$16 sps:$4 sm:$0xff]   ;;  %v21329_v32 = vld [vmem:[%s21620_s30 + $0x3f08] ss:$16 sps:$4 sm:$0xff]  }
 0x820   : > { %15432 = vmatpush1.bf16.msra.mxu0 %v21248_v54 }
 0x821   : > { %15473 = vmatpush1.bf16.msra.mxu1 %v21251_v63  ;;  %15433 = vmatprep.subr.bf16.mxu0 %v21256_v13 }
 0x822   : > { %15474 = vmatprep.subr.bf16.mxu1 %v21259_v6 }
 0x824   : > { %15434 = vmatpush1.bf16.msra.mxu0 %v21254_v20 }
 0x825   : > { %15475 = vmatpush1.bf16.msra.mxu1 %v21257_v26  ;;  %15435 = vmatprep.subr.bf16.mxu0 %v21262_v38 }
 0x826   : > { %15476 = vmatprep.subr.bf16.mxu1 %v21265_v44 }
 0x828   : > { %15436 = vmatpush1.bf16.msra.mxu0 %v21260_v57 }
 0x829   : > { %15477 = vmatpush1.bf16.msra.mxu1 %v21263_v58  ;;  %15437 = vmatprep.subr.bf16.mxu0 %v21268_v12 }
 0x82a   : > { %15478 = vmatprep.subr.bf16.mxu1 %v21271_v23 }
 0x82c   : > { %15438 = vmatpush1.bf16.msra.mxu0 %v21266_v45 }
 0x82d   : > { %15479 = vmatpush1.bf16.msra.mxu1 %v21269_v48  ;;  %15439 = vmatprep.subr.bf16.mxu0 %v21274_v15 }
 0x82e   : > { %15480 = vmatprep.subr.bf16.mxu1 %v21277_v47 }
 0x830   : > { %15440 = vmatpush1.bf16.msra.mxu0 %v21272_v24 }
 0x831   : > { %15481 = vmatpush1.bf16.msra.mxu1 %v21275_v1  ;;  %15441 = vmatprep.subr.bf16.mxu0 %v21280_v49 }
 0x832   : > { %15482 = vmatprep.subr.bf16.mxu1 %v21283_v51 }
 0x834   : > { %15442 = vmatpush1.bf16.msra.mxu0 %v21278_v52 }
 0x835   : > { %15483 = vmatpush1.bf16.msra.mxu1 %v21281_v25  ;;  %15443 = vmatprep.subr.bf16.mxu0 %v21286_v10 }
 0x836   : > { %15484 = vmatprep.subr.bf16.mxu1 %v21289_v55 }
 0x838   : > { %15444 = vmatpush2.bf16.msra.mxu0 %v21284_v30 }
 0x839   : > { %15485 = vmatpush2.bf16.msra.mxu1 %v21287_v16  ;;  %15445 = vmatprep.subr.bf16.mxu0 %v21292_v41 }
 0x83a   : > { %15486 = vmatprep.subr.bf16.mxu1 %v21295_v42 }
 0x83c   : > { %15446 = vmatpush2.bf16.msra.mxu0 %v21290_v59 }
 0x83d   : > { %15487 = vmatpush2.bf16.msra.mxu1 %v21293_v3  ;;  %15447 = vmatprep.subr.bf16.mxu0 %v21298_v5  ;;  %v339_v3 = vld [vmem:[#allocation2 + $0x18] sm:$0xff] }
 0x83e   : > { %15488 = vmatprep.subr.bf16.mxu1 %v21301_v22 }
 0x840   : > { %15448 = vmatpush2.bf16.msra.mxu0 %v21296_v31 }
 0x841   : > { %15489 = vmatpush2.bf16.msra.mxu1 %v21299_v35  ;;  %15449 = vmatprep.subr.bf16.mxu0 %v21304_v43  ;;  %v340_v43 = vld [vmem:[#allocation2 + $0x8] sm:$0xff] }
 0x842   : > { %15490 = vmatprep.subr.bf16.mxu1 %v21307_v0 }
 0x844   : > { %15450 = vmatpush2.bf16.msra.mxu0 %v21302_v8 }
 0x845   : > { %15491 = vmatpush2.bf16.msra.mxu1 %v21305_v61  ;;  %15451 = vmatprep.subr.bf16.mxu0 %v21310_v46 }
 0x846   : > { %15492 = vmatprep.subr.bf16.mxu1 %v21313_v34 }
 0x848   : > { %15452 = vmatpush2.bf16.msra.mxu0 %v21308_v4 }
 0x849   : > { %15493 = vmatpush2.bf16.msra.mxu1 %v21311_v14  ;;  %15453 = vmatprep.subr.bf16.mxu0 %v21316_v17 }
 0x84a   : > { %15494 = vmatprep.subr.bf16.mxu1 %v21319_v18 }
 0x84c   : > { %15454 = vmatpush2.bf16.msra.mxu0 %v21314_v50 }
 0x84d   : > { %15495 = vmatpush2.bf16.msra.mxu1 %v21317_v29  ;;  %15455 = vmatprep.subr.bf16.mxu0 %v21322_v21 }
 0x84e   : > { %15496 = vmatprep.subr.bf16.mxu1 %v21325_v27 }
 0x850   : > { %15456 = vmatpush2.bf16.msra.mxu0 %v21320_v9 }
 0x851   : > { %15497 = vmatpush2.bf16.msra.mxu1 %v21323_v2  ;;  %15457 = vmatprep.subr.bf16.mxu0 %v21328_v39 }
 0x852   : > { %15498 = vmatprep.subr.bf16.mxu1 %v21331_v40 }
 0x854   : > { %15458 = vmatpush2.bf16.msra.mxu0 %v21326_v62 }
 0x855   : > { %15499 = vmatpush2.bf16.msra.mxu1 %v21329_v32 }
 0x857   : > { %v15215_v33 = vpop.f32.mrf.mxu0  ;;  %15460 = vmatmul.mubr.bf16.vlgmr.msra.gmra.mxu0 %v23131_v11 }
 0x858   : > { %v15256_v56 = vpop.f32.mrf.mxu1  ;;  %15501 = vmatmul.mubr.bf16.vlgmr.msra.gmra.mxu1 %v23135_v36  ;;  %v15216_v28 = vadd.f32 %v15215_v33, %v24256_v7 }
 0x859   : > { %v15217_v19 = vpop.f32.mrf.mxu0 }
 0x85a   : > { %v15258_v54 = vpop.f32.mrf.mxu1  ;;  %v15257_v63 = vadd.f32 %v15256_v56, %v15216_v28  ;;  %v15218_v60 = vadd.f32 %v15217_v19, %v24261_v53 }
 0x85b   : > { %v15219_v37 = vpop.f32.mrf.mxu0 }
 0x85c   : > { %v15260_v13 = vpop.f32.mrf.mxu1  ;;  %v15259_v6 = vadd.f32 %v15258_v54, %v15218_v60 }
 0x85d   : > { %v15220_v20 = vpop.f32.mrf.mxu0 }
 0x85e   : > { %v15261_v26 = vpop.f32.mrf.mxu1 }
 0x897   : > { %v15297_v38 = vpop.f32.mrf.mxu0 }
 0x898   : > { %v15338_v44 = vpop.f32.mrf.mxu1  ;;  %v15298_v57 = vadd.f32 %v15297_v38, %v15257_v63 }
 0x899   : > { %v15299_v58 = vpop.f32.mrf.mxu0 }
 0x89a   : > { %v15340_v12 = vpop.f32.mrf.mxu1  ;;  %v15339_v11 = vadd.f32 %v15338_v44, %v15298_v57  ;;  %v15300_v23 = vadd.f32 %v15299_v58, %v15259_v6 }
 0x89b   : > { %v15301_v36 = vpop.f32.mrf.mxu0 }
 0x89c   : > { %v15342_v45 = vpop.f32.mrf.mxu1  ;;  %v15341_v7 = vadd.f32 %v15340_v12, %v15300_v23 }
 0x89d   : > { %v15302_v48 = vpop.f32.mrf.mxu0 }
 0x89e   : > { %v15343_v15 = vpop.f32.mrf.mxu1 }
 0x8d7   : > { %v15379_v47 = vpop.f32.mrf.mxu0 }
 0x8d8   : > { %v15420_v24 = vpop.f32.mrf.mxu1  ;;  %v15380_v10 = vadd.f32 %v15379_v47, %v15339_v11 }
 0x8d9   : > { %v15381_v53 = vpop.f32.mrf.mxu0 }
 0x8da   : > { %v15422_v1 = vpop.f32.mrf.mxu1  ;;  %v15382_v55 = vadd.f32 %v15381_v53, %v15341_v7  ;;  %v15421_v30 = vadd.f32 %v15420_v24, %v15380_v10 }
 0x8db   : > { %v15383_v49 = vpop.f32.mrf.mxu0 }
 0x8dc   : > { %v15424_v51 = vpop.f32.mrf.mxu1  ;;  %v15423_v42 = vadd.f32 %v15422_v1, %v15382_v55 }
 0x8dd   : > { %v15384_v52 = vpop.f32.mrf.mxu0 }
 0x8de   : > { %v15425_v25 = vpop.f32.mrf.mxu1 }
 0x917   : > { %v15461_v16 = vpop.f32.mrf.mxu0 }
 0x918   : > { %v15502_v41 = vpop.f32.mrf.mxu1  ;;  %v15462_v59 = vadd.f32 %v15461_v16, %v15421_v30 }
 0x919   : > { %v15463_v5 = vpop.f32.mrf.mxu0 }
 0x91a   : > { %v15504_v22 = vpop.f32.mrf.mxu1  ;;  %v15503_v31 = vadd.f32 %v15502_v41, %v15462_v59  ;;  %v15464_v35 = vadd.f32 %v15463_v5, %v15423_v42 }
 0x91b   : > { %v15465_v0 = vpop.f32.mrf.mxu0 }
 0x91c   : > { %v15506_v8 = vpop.f32.mrf.mxu1  ;;  %v15511_v61 = vadd.f32 %v15503_v31, %v339_v3  ;;  %v15505_v46 = vadd.f32 %v15504_v22, %v15464_v35  ;;  %15520 = sbr.rel (%p18035_p6) target bundleno = 2597 (0xa25), region = 56 }
 0x91d   : > { %v15466_v34 = vpop.f32.mrf.mxu0 }
 0x91e   : > { %v15507_v4 = vpop.f32.mrf.mxu1  ;;  %15515 = vst [vmem:[#allocation2 + $0x18] sm:$0xff] %v15511_v61  ;;  %v15512_v14 = vadd.f32 %v15505_v46, %v340_v43 }
 0x920   : > { %15516 = vst [vmem:[#allocation2 + $0x8] sm:$0xff] %v15512_v14 }
 0x921   : > { %v15606_v17 = vld [vmem:[#allocation7 + $0xf8] sm:$0xff]  ;;  %v15605_v21 = vld [vmem:[#allocation7 + $0xf0] sm:$0xff]  ;;  %v15604_v39 = vld [vmem:[#allocation7 + $0xe8] sm:$0xff]  ;;  %v15527_v12 = vlaneseq }
 0x922   : > { %v15638_v18 = vld [vmem:[#allocation7 + $0x1f8] sm:$0xff]  ;;  %18045 = vmatprep.subr.mxu0 %v15606_v17  ;;  %v15637_v27 = vld [vmem:[#allocation7 + $0x1f0] sm:$0xff]  ;;  %v15636_v40 = vld [vmem:[#allocation7 + $0x1e8] sm:$0xff] }
 0x923   : > { %v15590_v50 = vld [vmem:[#allocation7 + $0x78] sm:$0xff]  ;;  %18080 = vmatprep.subr.mxu1 %v15638_v18  ;;  %v15589_v9 = vld [vmem:[#allocation7 + $0x70] sm:$0xff]  ;;  %v15588_v62 = vld [vmem:[#allocation7 + $0x68] sm:$0xff]  ;;  %v15528_v24 = vshrl.u32 %v15527_v12, 7 }
 0x924   : > { %v15622_v29 = vld [vmem:[#allocation7 + $0x178] sm:$0xff]  ;;  %18046 = vmatpush3.msra.mxu0 %v15590_v50  ;;  %v15621_v2 = vld [vmem:[#allocation7 + $0x170] sm:$0xff]  ;;  %v15620_v32 = vld [vmem:[#allocation7 + $0x168] sm:$0xff] }
 0x925   : > { %18081 = vmatpush3.msra.mxu1 %v15622_v29  ;;  %18047 = vmatprep.subr.mxu0 %v15605_v21  ;;  %v15603_v33 = vld [vmem:[#allocation7 + $0xe0] sm:$0xff]  ;;  %v15602_v54 = vld [vmem:[#allocation7 + $0xd8] sm:$0xff]  ;;  %v15601_v13 = vld [vmem:[#allocation7 + $0xd0] sm:$0xff]  ;;  %v15529_v16 = vsub.s32 0, %v15528_v24  ;;  %v15533_v41 = vsub.s32 1, %v15528_v24  ;;  %v15537_v42 = vsub.s32 2, %v15528_v24 }
 0x926   : > { %18082 = vmatprep.subr.mxu1 %v15637_v27  ;;  %18048 = vmatpush3.msra.mxu0 %v15589_v9  ;;  %v15635_v56 = vld [vmem:[#allocation7 + $0x1e0] sm:$0xff]  ;;  %v15634_v63 = vld [vmem:[#allocation7 + $0x1d8] sm:$0xff]  ;;  %v15633_v6 = vld [vmem:[#allocation7 + $0x1d0] sm:$0xff]  ;;  %v15541_v22 = vsub.s32 3, %v15528_v24 }
 0x927   : > { %18083 = vmatpush3.msra.mxu1 %v15621_v2  ;;  %18049 = vmatprep.subr.mxu0 %v15604_v39  ;;  %v15587_v28 = vld [vmem:[#allocation7 + $0x60] sm:$0xff]  ;;  %v15586_v60 = vld [vmem:[#allocation7 + $0x58] sm:$0xff]  ;;  %v15585_v20 = vld [vmem:[#allocation7 + $0x50] sm:$0xff] }
 0x928   : > { %18084 = vmatprep.subr.mxu1 %v15636_v40  ;;  %v15619_v19 = vld [vmem:[#allocation7 + $0x160] sm:$0xff]  ;;  %18050 = vmatpush3.msra.mxu0 %v15588_v62  ;;  %v15618_v37 = vld [vmem:[#allocation7 + $0x158] sm:$0xff]  ;;  %v15617_v26 = vld [vmem:[#allocation7 + $0x150] sm:$0xff] }
 0x929   : > { %18085 = vmatpush3.msra.mxu1 %v15620_v32  ;;  %18051 = vmatprep.subr.mxu0 %v15603_v33  ;;  %v15600_v38 = vld [vmem:[#allocation7 + $0xc8] sm:$0xff]  ;;  %v15599_v11 = vld [vmem:[#allocation7 + $0xc0] sm:$0xff]  ;;  %v15598_v7 = vld [vmem:[#allocation7 + $0xb8] sm:$0xff] }
 0x92a   : > { %18086 = vmatprep.subr.mxu1 %v15635_v56  ;;  %18052 = vmatpush3.msra.mxu0 %v15587_v28  ;;  %v15632_v44 = vld [vmem:[#allocation7 + $0x1c8] sm:$0xff]  ;;  %v15631_v23 = vld [vmem:[#allocation7 + $0x1c0] sm:$0xff]  ;;  %v15630_v48 = vld [vmem:[#allocation7 + $0x1b8] sm:$0xff] }
 0x92b   : > { %18087 = vmatpush3.msra.mxu1 %v15619_v19  ;;  %18053 = vmatprep.subr.mxu0 %v15602_v54  ;;  %v15584_v57 = vld [vmem:[#allocation7 + $0x48] sm:$0xff]  ;;  %v15583_v36 = vld [vmem:[#allocation7 + $0x40] sm:$0xff]  ;;  %v15582_v15 = vld [vmem:[#allocation7 + $0x38] sm:$0xff] }
 0x92c   : > { %18088 = vmatprep.subr.mxu1 %v15634_v63  ;;  %18054 = vmatpush3.msra.mxu0 %v15586_v60  ;;  %v15616_v58 = vld [vmem:[#allocation7 + $0x148] sm:$0xff]  ;;  %v15615_v45 = vld [vmem:[#allocation7 + $0x140] sm:$0xff]  ;;  %v15614_v47 = vld [vmem:[#allocation7 + $0x138] sm:$0xff] }
 0x92d   : > { %18089 = vmatpush3.msra.mxu1 %v15618_v37  ;;  %18055 = vmatprep.subr.mxu0 %v15601_v13  ;;  %v15597_v53 = vld [vmem:[#allocation7 + $0xb0] sm:$0xff]  ;;  %v15596_v52 = vld [vmem:[#allocation7 + $0xa8] sm:$0xff]  ;;  %v15595_v30 = vld [vmem:[#allocation7 + $0xa0] sm:$0xff] }
 0x92e   : > { %18090 = vmatprep.subr.mxu1 %v15633_v6  ;;  %18056 = vmatpush3.msra.mxu0 %v15585_v20  ;;  %v15629_v1 = vld [vmem:[#allocation7 + $0x1b0] sm:$0xff]  ;;  %v15628_v25 = vld [vmem:[#allocation7 + $0x1a8] sm:$0xff]  ;;  %v15627_v59 = vld [vmem:[#allocation7 + $0x1a0] sm:$0xff] }
 0x92f   : > { %18091 = vmatpush3.msra.mxu1 %v15617_v26  ;;  %18057 = vmatprep.subr.mxu0 %v15600_v38  ;;  %v15581_v49 = vld [vmem:[#allocation7 + $0x30] sm:$0xff]  ;;  %v15580_v10 = vld [vmem:[#allocation7 + $0x28] sm:$0xff]  ;;  %v15579_v3 = vld [vmem:[#allocation7 + $0x20] sm:$0xff] }
 0x930   : > { %18092 = vmatprep.subr.mxu1 %v15632_v44  ;;  %18058 = vmatpush3.msra.mxu0 %v15584_v57  ;;  %v15613_v51 = vld [vmem:[#allocation7 + $0x130] sm:$0xff]  ;;  %v15612_v55 = vld [vmem:[#allocation7 + $0x128] sm:$0xff]  ;;  %v15611_v5 = vld [vmem:[#allocation7 + $0x120] sm:$0xff] }
 0x931   : > { %18093 = vmatpush3.msra.mxu1 %v15616_v58  ;;  %18059 = vmatprep.subr.mxu0 %v15599_v11  ;;  %v15594_v31 = vld [vmem:[#allocation7 + $0x98] sm:$0xff]  ;;  %v15521_v43 = vld [vmem:[#allocation2 + $0x10] sm:$0xff]  ;;  %v15524_v18 = vld [vmem:[#allocation2 + $0x8] sm:$0xff] }
 0x932   : > { %18094 = vmatprep.subr.mxu1 %v15631_v23  ;;  %18060 = vmatpush3.msra.mxu0 %v15583_v36  ;;  %v15626_v35 = vld [vmem:[#allocation7 + $0x198] sm:$0xff]  ;;  %v15593_v50 = vld [vmem:[#allocation7 + $0x90] sm:$0xff]  ;;  %v15592_v2 = vld [vmem:[#allocation7 + $0x88] sm:$0xff] }
 0x933   : > { %18095 = vmatpush3.msra.mxu1 %v15615_v45  ;;  %18061 = vmatprep.subr.mxu0 %v15598_v7  ;;  %v15522_v0 = vld [vmem:[#allocation2] sm:$0xff]  ;;  %v15523_v8 = vld [vmem:[#allocation2 + $0x18] sm:$0xff]  ;;  %v15624_v32 = vld [vmem:[#allocation7 + $0x188] sm:$0xff] }
 0x934   : > { %18096 = vmatprep.subr.mxu1 %v15630_v48  ;;  %18062 = vmatpush3.msra.mxu0 %v15582_v15  ;;  %v15525_v61 = vld [vmem:[#allocation5] sm:$0xf]  ;;  %v15625_v29 = vld [vmem:[#allocation7 + $0x190] sm:$0xff]  ;;  %v15576_v33 = vld [vmem:[#allocation7 + $0x8] sm:$0xff] }
 0x935   : > { %18097 = vmatpush3.msra.mxu1 %v15614_v47  ;;  %18063 = vmatprep.subr.mxu0 %v15597_v53  ;;  %v15578_v46 = vld [vmem:[#allocation7 + $0x18] sm:$0xff]  ;;  %v15530_v4 = vrot.slane %v15525_v61, %v15529_v16  ;;  %v15534_v14 = vrot.slane %v15525_v61, %v15533_v41  ;;  %v15538_v17 = vrot.slane %v15525_v61, %v15537_v42  ;;  %v15577_v27 = vld [vmem:[#allocation7 + $0x10] sm:$0xff]  ;;  %v15608_v56 = vld [vmem:[#allocation7 + $0x108] sm:$0xff] }
 0x936   : > { %18098 = vmatprep.subr.mxu1 %v15629_v1  ;;  %18064 = vmatpush3.msra.mxu0 %v15581_v49  ;;  %v15610_v34 = vld [vmem:[#allocation7 + $0x118] sm:$0xff]  ;;  %v15542_v21 = vrot.slane %v15525_v61, %v15541_v22  ;;  %v15609_v9 = vld [vmem:[#allocation7 + $0x110] sm:$0xff]  ;;  %v15591_v60 = vld [vmem:[#allocation7 + $0x80] sm:$0xff] }
 0x937   : > { %18099 = vmatpush3.msra.mxu1 %v15613_v51  ;;  %18065 = vmatprep.subr.mxu0 %v15596_v52  ;;  %v15547_v39 = vadd.f32 %v15530_v4, %v15521_v43  ;;  %v15548_v40 = vadd.f32 %v15534_v14, %v15522_v0  ;;  %v15549_v62 = vadd.f32 %v15538_v17, %v15523_v8  ;;  %v15623_v37 = vld [vmem:[#allocation7 + $0x180] sm:$0xff] }
 0x938   : > { %18100 = vmatprep.subr.mxu1 %v15628_v25  ;;  %18066 = vmatpush3.msra.mxu0 %v15580_v10  ;;  %v15550_v28 = vadd.f32 %v15542_v21, %v15524_v18  ;;  %v15575_v6 = vld [vmem:[#allocation7] sm:$0xff] }
 0x939   : > { %18101 = vmatpush3.msra.mxu1 %v15612_v55  ;;  %18067 = vmatprep.subr.mxu0 %v15595_v30  ;;  %v18036_v19 = vmul.f32 -1.442695, %v15547_v39  ;;  %v18037_v54 = vmul.f32 -1.442695, %v15548_v40  ;;  %v18038_v63 = vmul.f32 -1.442695, %v15549_v62 }
 0x93a   : > { %18102 = vmatprep.subr.mxu1 %v15627_v59  ;;  %18068 = vmatpush3.msra.mxu0 %v15579_v3  ;;  %v18039_v13 = vmul.f32 -1.442695, %v15550_v28  ;;  %v15607_v20 = vld [vmem:[#allocation7 + $0x100] sm:$0xff] }
 0x93b   : > { %18103 = vmatpush3.msra.mxu1 %v15611_v5  ;;  %18069 = vmatprep.subr.mxu0 %v15594_v31  ;;  %21332 = vpow2.f32 %v18036_v19 }
 0x93c   : > { %18104 = vmatprep.subr.mxu1 %v15626_v35  ;;  %18070 = vmatpush3.msra.mxu0 %v15578_v46  ;;  %21334 = vpow2.f32 %v18037_v54 }
 0x93d   : > { %18105 = vmatpush3.msra.mxu1 %v15610_v34  ;;  %18071 = vmatprep.subr.mxu0 %v15593_v50  ;;  %21336 = vpow2.f32 %v18038_v63 }
 0x93e   : > { %18106 = vmatprep.subr.mxu1 %v15625_v29  ;;  %18072 = vmatpush3.msra.mxu0 %v15577_v27  ;;  %21338 = vpow2.f32 %v18039_v13 }
 0x93f   : > { %18107 = vmatpush3.msra.mxu1 %v15609_v9  ;;  %18073 = vmatprep.subr.mxu0 %v15592_v2 }
 0x940   : > { %18108 = vmatprep.subr.mxu1 %v15624_v32  ;;  %18074 = vmatpush3.msra.mxu0 %v15576_v33 }
 0x941   : > { %18109 = vmatpush3.msra.mxu1 %v15608_v56  ;;  %18075 = vmatprep.subr.mxu0 %v15591_v60 }
 0x942   : > { %18110 = vmatprep.subr.mxu1 %v15623_v37  ;;  %18076 = vmatpush3.msra.mxu0 %v15575_v6 }
 0x943   : > { %18111 = vmatpush3.msra.mxu1 %v15607_v20 }
 0x948   : > { %v21333_v26 = vpop.eup %21332 }
 0x949   : > { %v21335_v38 = vpop.eup %21334  ;;  %v15563_v44 = vadd.f32 1.0, %v21333_v26 }
 0x94a   : > { %v21337_v57 = vpop.eup %21336  ;;  %v15564_v58 = vadd.f32 1.0, %v21335_v38 }
 0x94b   : > { %v21339_v12 = vpop.eup %21338  ;;  %v15565_v11 = vadd.f32 1.0, %v21337_v57  ;;  %21340 = vrcp.f32 %v15563_v44 }
 0x94c   : > { %21342 = vrcp.f32 %v15564_v58  ;;  %v15566_v23 = vadd.f32 1.0, %v21339_v12 }
 0x94d   : > { %21344 = vrcp.f32 %v15565_v11 }
 0x94e   : > { %21346 = vrcp.f32 %v15566_v23 }
 0x958   : > { %v21341_v36 = vpop.eup %21340 }
 0x959   : > { %v21343_v45 = vpop.eup %21342 }
 0x95a   : > { %v21345_v7 = vpop.eup %21344  ;;  %15703 = vmatprep.mubr.f32.mxu0 %v21343_v45 }
 0x95b   : > { %v21347_v48 = vpop.eup %21346  ;;  %15704 = vmatmul.mubr.f32.vlgmr.msra.gmra.mxu0 %v21341_v36 }
 0x95c   : > { %15773 = vmatprep.mubr.f32.mxu1 %v21347_v48 }
 0x95d   : > { %15774 = vmatmul.mubr.f32.vlgmr.msra.gmra.mxu1 %v21345_v7 }
 0xa1b   : > { %v18077_v15 = vpop.f32.mrf.mxu0 }
 0xa1d   : > { %v18112_v47 = vpop.f32.mrf.mxu1  ;;  %v18078_v24 = vpop.f32.mrf.mxu0 }
 0xa1e   : > { %v18079_v53 = vadd.f32 %v18078_v24, %v18077_v15 }
 0xa1f   : > { %v18113_v1 = vpop.f32.mrf.mxu1 }
 0xa20   : > { %v18114_v49 = vadd.f32 %v18113_v1, %v18112_v47 }
 0xa22   : > { %v15776_v51 = vadd.f32 %v18114_v49, %v18079_v53 }
 0xa24   : > { %15779 = vst [vmem:[%s24347_s4] sm:$0xff] %v15776_v51 }
 0xa25 PF: > { %s18_s20 = sadd.s32 1, %s21482_s20   ;;  %s24417_s24 = smov %s24424_s15 }
 0xa26   : > { %p15_p8 = scmp.ge.s32.totalorder %s18_s20, 7   ;;  %s24418_s15 = smov %s21466_s16 }
 0xa27   : > { %s24419_s16 = smov %s21470_s17  ;;  %s24420_s17 = smov %s21611_s9 }
 0xa28   : > { %s24421_s18 = smov %s21478_s19  ;;  %s24422_s19 = smov %s24417_s24 }
 0xa29   :  { %17 = sbr.rel (!%p15_p8) target bundleno = 5 (0x5), region = 97 }
 0xa2e   :  { %15805 = vsyncpa [#allocation4], 1 }
 0xa2f   :  { %15807 = vsyncpa [#allocation4 + $0x1], 1 }
 0xa30   :  { %15808 = vsyncpa [#allocation6], 1 }

</bundles_post_ra>
